<compile_context>
chip_gen: v6e
topology: v6e:2x2x1
jax: 0.10.0
libtpu: 0.0.40
codegen_flags: <defaults>
</compile_context>

<pallas_src>
import jax
import jax.numpy as jnp
from jax.experimental import pallas as pl
from jax.experimental.pallas import tpu as pltpu

EPS = 1e-5

# Static problem configuration.
BATCH = 2
IN_C, IN_H, IN_W = 4, 16, 16          # assumes IN_H == IN_W
CONV_LAYERS = ((8, 3), (16, 3))       # (out_channels, kernel_size)
POOL = 2
HIDDEN = 128
NUM_CLASSES = 3


# ---------------------------------------------------------------------------
# In-kernel building blocks
# ---------------------------------------------------------------------------

def _conv_relu(xpad_ref, w_ref, b_ref, n_imgs, hw, c_in, c_out, ksize):
    """Conv(kxk, pad already applied) + folded-BN + ReLU.

    xpad_ref holds the zero-padded NHWC map in VMEM.  Each of the k*k taps is a
    static shifted slice of the ref, collapsed to (M, c_in) (leading-dim-only
    reshape) and accumulated through a small MXU matmul against the matching
    c_in rows of the im2col weight.  Rows of the result are ordered (n, y, x),
    x fastest."""
    m = n_imgs * hw * hw
    acc = None
    for di in range(ksize):
        for dj in range(ksize):
            piece = xpad_ref[:, di:di + hw, dj:dj + hw, :].reshape(m, c_in)
            tap = (di * ksize + dj) * c_in
            part = jnp.dot(piece, w_ref[tap:tap + c_in, :],
                           preferred_element_type=jnp.float32)
            acc = part if acc is None else acc + part
    return jnp.maximum(acc + b_ref[...], 0.0)


def _maxpool2x2(h, n_imgs, hw, c):
    """Exact 2x2 / stride-2 max-pool of h: (n_imgs*hw*hw, c), rows ordered
    (n, y, x) with x fastest.  Returns (n_imgs*(hw/2)*(hw/2), c), rows ordered
    (n, y', x').  Only leading-dim reshapes (minor dim preserved), static
    slices and elementwise maxima -- no masks, no matmuls, no strided ops."""
    ho = hw // POOL
    # Pool along x: adjacent rows (x even / x odd) become a split leading dim.
    hx = h.reshape(n_imgs * hw * ho, POOL, c)
    px = jnp.maximum(jax.lax.slice_in_dim(hx, 0, 1, axis=1),
                     jax.lax.slice_in_dim(hx, 1, 2, axis=1))
    px = px.reshape(n_imgs * hw * ho, c)                 # rows (n, y, x')
    # Pool along y: rows ho apart become a split leading dim.
    py = px.reshape(n_imgs * ho, POOL, ho, c)
    p = jnp.maximum(jax.lax.slice_in_dim(py, 0, 1, axis=1),
                    jax.lax.slice_in_dim(py, 1, 2, axis=1))
    return p.reshape(n_imgs * ho * ho, c)                # rows (n, y', x')


# ---------------------------------------------------------------------------
# Fused forward kernel
# ---------------------------------------------------------------------------

def _cnn_fused_kernel(xp_ref, wc1_ref, bc1_ref, wc2_ref, bc2_ref,
                      wd1_ref, bd1_ref, wd2_ref, bd2_ref,
                      out_ref, pad2_ref):
    c1 = CONV_LAYERS[0][0]            # 8
    c2 = CONV_LAYERS[1][0]            # 16
    h1 = IN_H                         # 16
    h2 = h1 // POOL                   # 8
    h3 = h2 // POOL                   # 4

    # ---- conv block 1: Conv2d(3x3, pad=1) + BN(folded) + ReLU + MaxPool(2) ----
    a1 = _conv_relu(xp_ref, wc1_ref, bc1_ref, BATCH, h1, IN_C, c1, 3)   # (512, 8)
    p1 = _maxpool2x2(a1, BATCH, h1, c1)                                  # (128, 8)

    # Zero-padded canvas for conv block 2 (scratch VMEM is uninitialized, so the
    # borders are explicitly zeroed before the interior store).
    pad2_ref[...] = jnp.zeros_like(pad2_ref)
    pad2_ref[:, 1:1 + h2, 1:1 + h2, :] = p1.reshape(BATCH, h2, h2, c1)

    # ---- conv block 2 ----
    a2 = _conv_relu(pad2_ref, wc2_ref, bc2_ref, BATCH, h2, c1, c2, 3)    # (128, 16)
    p2 = _maxpool2x2(a2, BATCH, h2, c2)                                   # (32, 16)

    # ---- dense head: Linear + BN1d(folded) + ReLU + Dropout(eval) + Linear ----
    # The flatten is folded into an accumulation over the 16 spatial positions;
    # wd1 rows were permuted on the host so feature order matches (y, x, c).
    p2_3d = p2.reshape(BATCH, h3 * h3, c2)                               # (2, 16, 16)
    hd = None
    for s in range(h3 * h3):
        xs = jax.lax.slice_in_dim(p2_3d, s, s + 1, axis=1).reshape(BATCH, c2)
        part = jnp.dot(xs, wd1_ref[s * c2:(s + 1) * c2, :],
                       preferred_element_type=jnp.float32)
        hd = part if hd is None else hd + part
    hd = jnp.maximum(hd + bd1_ref[...], 0.0)
    # TODO(synk): Dropout(0.5) is identity in eval mode; training-mode masking not emitted.
    out_ref[...] = (jnp.dot(hd, wd2_ref[...], preferred_element_type=jnp.float32)
                    + bd2_ref[...])


def _vmem():
    return pl.BlockSpec(memory_space=pltpu.MemorySpace.VMEM)


@jax.jit
def cnn_forward(x_nchw, params):
    """x_nchw: (N, C, H, W) float32. params: prepared (BN-folded) weights."""
    # NCHW (PyTorch) -> NHWC and a one-time zero pad on the host (tiny glue);
    # everything else runs inside a single fused Pallas kernel.
    pad = CONV_LAYERS[0][1] // 2
    x = jnp.transpose(x_nchw, (0, 2, 3, 1))
    xp = jnp.pad(x, ((0, 0), (pad, pad), (pad, pad), (0, 0)))

    c1 = CONV_LAYERS[0][0]
    h2 = IN_H // POOL

    return pl.pallas_call(
        _cnn_fused_kernel,
        out_shape=jax.ShapeDtypeStruct((BATCH, NUM_CLASSES), jnp.float32),
        in_specs=[_vmem()] * 9,
        out_specs=_vmem(),
        scratch_shapes=[
            pltpu.VMEM((BATCH, h2 + 2, h2 + 2, c1), jnp.float32),
        ],
    )(xp, *params)


# ---------------------------------------------------------------------------
# Parameter initialization (PyTorch layouts) + host-side preparation
# ---------------------------------------------------------------------------

def init_torch_style_params(key):
    """Deterministic params in PyTorch layouts: Conv2d (C_out,C_in,k,k),
    Linear (out,in); BatchNorm carries eval-mode running statistics."""
    convs = []
    c_in = IN_C
    for (c_out, k) in CONV_LAYERS:
        key, k1, k2, k3, k4, k5 = jax.random.split(key, 6)
        w = 0.1 * jax.random.normal(k1, (c_out, c_in, k, k), jnp.float32)
        b = 0.05 * jax.random.normal(k2, (c_out,), jnp.float32)
        gamma = 1.0 + 0.1 * jax.random.normal(k3, (c_out,), jnp.float32)
        beta = 0.1 * jax.random.normal(k4, (c_out,), jnp.float32)
        mean = 0.1 * jax.random.normal(k5, (c_out,), jnp.float32)
        var = jnp.ones((c_out,), jnp.float32)
        convs.append((w, b, gamma, beta, mean, var))
        c_in = c_out

    side = IN_H // (POOL ** len(CONV_LAYERS))
    flattened = c_in * side * side
    key, k1, k2, k3, k4, k5, k6, k7 = jax.random.split(key, 8)
    w1 = 0.05 * jax.random.normal(k1, (HIDDEN, flattened), jnp.float32)
    b1 = 0.05 * jax.random.normal(k2, (HIDDEN,), jnp.float32)
    gamma1 = 1.0 + 0.1 * jax.random.normal(k3, (HIDDEN,), jnp.float32)
    beta1 = 0.1 * jax.random.normal(k4, (HIDDEN,), jnp.float32)
    mean1 = 0.1 * jax.random.normal(k5, (HIDDEN,), jnp.float32)
    var1 = jnp.ones((HIDDEN,), jnp.float32)
    w2 = 0.1 * jax.random.normal(k6, (NUM_CLASSES, HIDDEN), jnp.float32)
    b2 = 0.05 * jax.random.normal(k7, (NUM_CLASSES,), jnp.float32)
    fc = (w1, b1, gamma1, beta1, mean1, var1, w2, b2)
    return convs, fc


def prepare_kernel_params(convs, fc):
    """Host-side prep: fold eval-mode BatchNorm into weights/bias, reshape conv
    weights to the im2col (tap-major) layout, and absorb the NCHW-flatten
    permutation into the first dense weight so the kernel consumes NHWC-flat
    activations."""
    prepped = []
    for (w, b, gamma, beta, mean, var) in convs:
        c_out, c_in, kh, kw = w.shape
        scale = gamma * jax.lax.rsqrt(var + EPS)                       # (C_out,)
        w2d = jnp.transpose(w, (2, 3, 1, 0)).reshape(kh * kw * c_in, c_out)
        w2d = w2d * scale[None, :]
        bias = (b - mean) * scale + beta
        prepped += [w2d, bias.reshape(1, c_out)]

    (w1, b1, gamma1, beta1, mean1, var1, w2, b2) = fc
    side = IN_H // (POOL ** len(CONV_LAYERS))                          # 4
    c_last = CONV_LAYERS[-1][0]                                        # 16
    hw = side * side                                                   # 16
    # PyTorch NCHW flatten: feature = c*hw + (y*side + x).  Kernel produces
    # NHWC-flat features: feature = (y*side + x)*c_last + c.  Permute rows.
    w1p = jnp.transpose(w1.reshape(HIDDEN, c_last, hw), (2, 1, 0))     # (hw,c,out)
    w1p = w1p.reshape(hw * c_last, HIDDEN)
    scale1 = gamma1 * jax.lax.rsqrt(var1 + EPS)
    w1p = w1p * scale1[None, :]
    b1f = (b1 - mean1) * scale1 + beta1
    prepped += [w1p, b1f.reshape(1, HIDDEN),
                jnp.transpose(w2, (1, 0)), b2.reshape(1, NUM_CLASSES)]
    return tuple(prepped)


# ---------------------------------------------------------------------------
# Main
# ---------------------------------------------------------------------------

if __name__ == "__main__":
    key = jax.random.PRNGKey(0)
    key, xk = jax.random.split(key)
    x = jax.random.normal(xk, (BATCH, IN_C, IN_H, IN_W), jnp.float32)

    convs, fc = init_torch_style_params(key)
    params = prepare_kernel_params(convs, fc)

    out = cnn_forward(x, params)
    out = jax.block_until_ready(out)
    assert out.shape == (BATCH, NUM_CLASSES), out.shape
    assert bool(jnp.all(jnp.isfinite(out)))
    print("KERNEL_OK")
</pallas_src>

<mosaic_0001>
module attributes {stable_mosaic.version = 11 : i64} {
  func.func @_cnn_fused_kernel(%arg0: memref<2x18x18x4xf32, #tpu.memory_space<vmem>>, %arg1: memref<36x8xf32, #tpu.memory_space<vmem>>, %arg2: memref<1x8xf32, #tpu.memory_space<vmem>>, %arg3: memref<72x16xf32, #tpu.memory_space<vmem>>, %arg4: memref<1x16xf32, #tpu.memory_space<vmem>>, %arg5: memref<256x128xf32, #tpu.memory_space<vmem>>, %arg6: memref<1x128xf32, #tpu.memory_space<vmem>>, %arg7: memref<128x3xf32, #tpu.memory_space<vmem>>, %arg8: memref<1x3xf32, #tpu.memory_space<vmem>>, %arg9: memref<2x3xf32, #tpu.memory_space<vmem>>, %arg10: memref<2x10x10x8xf32, #tpu.memory_space<vmem>>) attributes {dimension_semantics = [], scalar_prefetch = 0 : i64, scratch_operands = 1 : i64, tpu.core_type = #tpu.core_type<tc>} {
    %c0 = arith.constant 0 : index
    %c0_0 = arith.constant 0 : index
    %c0_1 = arith.constant 0 : index
    %c0_2 = arith.constant 0 : index
    %0 = vector.load %arg0[%c0, %c0_0, %c0_1, %c0_2] : memref<2x18x18x4xf32, #tpu.memory_space<vmem>>, vector<2x16x16x4xf32>
    %1 = vector.shape_cast %0 : vector<2x16x16x4xf32> to vector<512x4xf32>
    %c0_3 = arith.constant 0 : index
    %c0_4 = arith.constant 0 : index
    %2 = vector.load %arg1[%c0_3, %c0_4] : memref<36x8xf32, #tpu.memory_space<vmem>>, vector<4x8xf32>
    %cst = arith.constant dense<0.000000e+00> : vector<512x8xf32>
    %3 = tpu.matmul %1, %2, %cst {dimension_numbers = #tpu.dot_dimension_numbers<[1], [0], [0], [1], [0, 0, 1, 1], [], []>} : vector<512x4xf32>, vector<4x8xf32>, vector<512x8xf32> -> vector<512x8xf32>
    %c0_5 = arith.constant 0 : index
    %c0_6 = arith.constant 0 : index
    %c1 = arith.constant 1 : index
    %c0_7 = arith.constant 0 : index
    %4 = vector.load %arg0[%c0_5, %c0_6, %c1, %c0_7] : memref<2x18x18x4xf32, #tpu.memory_space<vmem>>, vector<2x16x16x4xf32>
    %5 = vector.shape_cast %4 : vector<2x16x16x4xf32> to vector<512x4xf32>
    %c4 = arith.constant 4 : index
    %c0_8 = arith.constant 0 : index
    %6 = vector.load %arg1[%c4, %c0_8] : memref<36x8xf32, #tpu.memory_space<vmem>>, vector<4x8xf32>
    %cst_9 = arith.constant dense<0.000000e+00> : vector<512x8xf32>
    %7 = tpu.matmul %5, %6, %cst_9 {dimension_numbers = #tpu.dot_dimension_numbers<[1], [0], [0], [1], [0, 0, 1, 1], [], []>} : vector<512x4xf32>, vector<4x8xf32>, vector<512x8xf32> -> vector<512x8xf32>
    %8 = arith.addf %3, %7 : vector<512x8xf32>
    %c0_10 = arith.constant 0 : index
    %c0_11 = arith.constant 0 : index
    %c2 = arith.constant 2 : index
    %c0_12 = arith.constant 0 : index
    %9 = vector.load %arg0[%c0_10, %c0_11, %c2, %c0_12] : memref<2x18x18x4xf32, #tpu.memory_space<vmem>>, vector<2x16x16x4xf32>
    %10 = vector.shape_cast %9 : vector<2x16x16x4xf32> to vector<512x4xf32>
    %c8 = arith.constant 8 : index
    %c0_13 = arith.constant 0 : index
    %11 = vector.load %arg1[%c8, %c0_13] : memref<36x8xf32, #tpu.memory_space<vmem>>, vector<4x8xf32>
    %cst_14 = arith.constant dense<0.000000e+00> : vector<512x8xf32>
    %12 = tpu.matmul %10, %11, %cst_14 {dimension_numbers = #tpu.dot_dimension_numbers<[1], [0], [0], [1], [0, 0, 1, 1], [], []>} : vector<512x4xf32>, vector<4x8xf32>, vector<512x8xf32> -> vector<512x8xf32>
    %13 = arith.addf %8, %12 : vector<512x8xf32>
    %c0_15 = arith.constant 0 : index
    %c1_16 = arith.constant 1 : index
    %c0_17 = arith.constant 0 : index
    %c0_18 = arith.constant 0 : index
    %14 = vector.load %arg0[%c0_15, %c1_16, %c0_17, %c0_18] : memref<2x18x18x4xf32, #tpu.memory_space<vmem>>, vector<2x16x16x4xf32>
    %15 = vector.shape_cast %14 : vector<2x16x16x4xf32> to vector<512x4xf32>
    %c12 = arith.constant 12 : index
    %c0_19 = arith.constant 0 : index
    %16 = vector.load %arg1[%c12, %c0_19] : memref<36x8xf32, #tpu.memory_space<vmem>>, vector<4x8xf32>
    %cst_20 = arith.constant dense<0.000000e+00> : vector<512x8xf32>
    %17 = tpu.matmul %15, %16, %cst_20 {dimension_numbers = #tpu.dot_dimension_numbers<[1], [0], [0], [1], [0, 0, 1, 1], [], []>} : vector<512x4xf32>, vector<4x8xf32>, vector<512x8xf32> -> vector<512x8xf32>
    %18 = arith.addf %13, %17 : vector<512x8xf32>
    %c0_21 = arith.constant 0 : index
    %c1_22 = arith.constant 1 : index
    %c1_23 = arith.constant 1 : index
    %c0_24 = arith.constant 0 : index
    %19 = vector.load %arg0[%c0_21, %c1_22, %c1_23, %c0_24] : memref<2x18x18x4xf32, #tpu.memory_space<vmem>>, vector<2x16x16x4xf32>
    %20 = vector.shape_cast %19 : vector<2x16x16x4xf32> to vector<512x4xf32>
    %c16 = arith.constant 16 : index
    %c0_25 = arith.constant 0 : index
    %21 = vector.load %arg1[%c16, %c0_25] : memref<36x8xf32, #tpu.memory_space<vmem>>, vector<4x8xf32>
    %cst_26 = arith.constant dense<0.000000e+00> : vector<512x8xf32>
    %22 = tpu.matmul %20, %21, %cst_26 {dimension_numbers = #tpu.dot_dimension_numbers<[1], [0], [0], [1], [0, 0, 1, 1], [], []>} : vector<512x4xf32>, vector<4x8xf32>, vector<512x8xf32> -> vector<512x8xf32>
    %23 = arith.addf %18, %22 : vector<512x8xf32>
    %c0_27 = arith.constant 0 : index
    %c1_28 = arith.constant 1 : index
    %c2_29 = arith.constant 2 : index
    %c0_30 = arith.constant 0 : index
    %24 = vector.load %arg0[%c0_27, %c1_28, %c2_29, %c0_30] : memref<2x18x18x4xf32, #tpu.memory_space<vmem>>, vector<2x16x16x4xf32>
    %25 = vector.shape_cast %24 : vector<2x16x16x4xf32> to vector<512x4xf32>
    %c20 = arith.constant 20 : index
    %c0_31 = arith.constant 0 : index
    %26 = vector.load %arg1[%c20, %c0_31] : memref<36x8xf32, #tpu.memory_space<vmem>>, vector<4x8xf32>
    %cst_32 = arith.constant dense<0.000000e+00> : vector<512x8xf32>
    %27 = tpu.matmul %25, %26, %cst_32 {dimension_numbers = #tpu.dot_dimension_numbers<[1], [0], [0], [1], [0, 0, 1, 1], [], []>} : vector<512x4xf32>, vector<4x8xf32>, vector<512x8xf32> -> vector<512x8xf32>
    %28 = arith.addf %23, %27 : vector<512x8xf32>
    %c0_33 = arith.constant 0 : index
    %c2_34 = arith.constant 2 : index
    %c0_35 = arith.constant 0 : index
    %c0_36 = arith.constant 0 : index
    %29 = vector.load %arg0[%c0_33, %c2_34, %c0_35, %c0_36] : memref<2x18x18x4xf32, #tpu.memory_space<vmem>>, vector<2x16x16x4xf32>
    %30 = vector.shape_cast %29 : vector<2x16x16x4xf32> to vector<512x4xf32>
    %c24 = arith.constant 24 : index
    %c0_37 = arith.constant 0 : index
    %31 = vector.load %arg1[%c24, %c0_37] : memref<36x8xf32, #tpu.memory_space<vmem>>, vector<4x8xf32>
    %cst_38 = arith.constant dense<0.000000e+00> : vector<512x8xf32>
    %32 = tpu.matmul %30, %31, %cst_38 {dimension_numbers = #tpu.dot_dimension_numbers<[1], [0], [0], [1], [0, 0, 1, 1], [], []>} : vector<512x4xf32>, vector<4x8xf32>, vector<512x8xf32> -> vector<512x8xf32>
    %33 = arith.addf %28, %32 : vector<512x8xf32>
    %c0_39 = arith.constant 0 : index
    %c2_40 = arith.constant 2 : index
    %c1_41 = arith.constant 1 : index
    %c0_42 = arith.constant 0 : index
    %34 = vector.load %arg0[%c0_39, %c2_40, %c1_41, %c0_42] : memref<2x18x18x4xf32, #tpu.memory_space<vmem>>, vector<2x16x16x4xf32>
    %35 = vector.shape_cast %34 : vector<2x16x16x4xf32> to vector<512x4xf32>
    %c28 = arith.constant 28 : index
    %c0_43 = arith.constant 0 : index
    %36 = vector.load %arg1[%c28, %c0_43] : memref<36x8xf32, #tpu.memory_space<vmem>>, vector<4x8xf32>
    %cst_44 = arith.constant dense<0.000000e+00> : vector<512x8xf32>
    %37 = tpu.matmul %35, %36, %cst_44 {dimension_numbers = #tpu.dot_dimension_numbers<[1], [0], [0], [1], [0, 0, 1, 1], [], []>} : vector<512x4xf32>, vector<4x8xf32>, vector<512x8xf32> -> vector<512x8xf32>
    %38 = arith.addf %33, %37 : vector<512x8xf32>
    %c0_45 = arith.constant 0 : index
    %c2_46 = arith.constant 2 : index
    %c2_47 = arith.constant 2 : index
    %c0_48 = arith.constant 0 : index
    %39 = vector.load %arg0[%c0_45, %c2_46, %c2_47, %c0_48] : memref<2x18x18x4xf32, #tpu.memory_space<vmem>>, vector<2x16x16x4xf32>
    %40 = vector.shape_cast %39 : vector<2x16x16x4xf32> to vector<512x4xf32>
    %c32 = arith.constant 32 : index
    %c0_49 = arith.constant 0 : index
    %41 = vector.load %arg1[%c32, %c0_49] : memref<36x8xf32, #tpu.memory_space<vmem>>, vector<4x8xf32>
    %cst_50 = arith.constant dense<0.000000e+00> : vector<512x8xf32>
    %42 = tpu.matmul %40, %41, %cst_50 {dimension_numbers = #tpu.dot_dimension_numbers<[1], [0], [0], [1], [0, 0, 1, 1], [], []>} : vector<512x4xf32>, vector<4x8xf32>, vector<512x8xf32> -> vector<512x8xf32>
    %43 = arith.addf %38, %42 : vector<512x8xf32>
    %c0_51 = arith.constant 0 : index
    %c0_52 = arith.constant 0 : index
    %44 = vector.load %arg2[%c0_51, %c0_52] : memref<1x8xf32, #tpu.memory_space<vmem>>, vector<1x8xf32>
    %45 = vector.broadcast %44 : vector<1x8xf32> to vector<512x8xf32>
    %46 = arith.addf %43, %45 : vector<512x8xf32>
    %cst_53 = arith.constant 0.000000e+00 : f32
    %47 = vector.broadcast %cst_53 : f32 to vector<512x8xf32>
    %48 = arith.maximumf %46, %47 : vector<512x8xf32>
    %49 = vector.shape_cast %48 : vector<512x8xf32> to vector<256x2x8xf32>
    %50 = vector.extract_strided_slice %49 {offsets = [0, 0, 0], sizes = [256, 1, 8], strides = [1, 1, 1]} : vector<256x2x8xf32> to vector<256x1x8xf32>
    %51 = vector.extract_strided_slice %49 {offsets = [0, 1, 0], sizes = [256, 1, 8], strides = [1, 1, 1]} : vector<256x2x8xf32> to vector<256x1x8xf32>
    %52 = arith.maximumf %50, %51 : vector<256x1x8xf32>
    %53 = vector.shape_cast %52 : vector<256x1x8xf32> to vector<256x8xf32>
    %54 = vector.shape_cast %53 : vector<256x8xf32> to vector<16x2x8x8xf32>
    %55 = vector.extract_strided_slice %54 {offsets = [0, 0, 0, 0], sizes = [16, 1, 8, 8], strides = [1, 1, 1, 1]} : vector<16x2x8x8xf32> to vector<16x1x8x8xf32>
    %56 = vector.extract_strided_slice %54 {offsets = [0, 1, 0, 0], sizes = [16, 1, 8, 8], strides = [1, 1, 1, 1]} : vector<16x2x8x8xf32> to vector<16x1x8x8xf32>
    %57 = arith.maximumf %55, %56 : vector<16x1x8x8xf32>
    %58 = vector.shape_cast %57 : vector<16x1x8x8xf32> to vector<128x8xf32>
    %cst_54 = arith.constant 0.000000e+00 : f32
    %59 = vector.broadcast %cst_54 : f32 to vector<2x10x10x8xf32>
    %c0_55 = arith.constant 0 : index
    %c0_56 = arith.constant 0 : index
    %c0_57 = arith.constant 0 : index
    %c0_58 = arith.constant 0 : index
    %60 = vector.load %arg10[%c0_55, %c0_56, %c0_57, %c0_58] : memref<2x10x10x8xf32, #tpu.memory_space<vmem>>, vector<2x10x10x8xf32>
    tpu.vector_store %arg10[%c0_55, %c0_56, %c0_57, %c0_58], %59 {strides = array<i32>} : memref<2x10x10x8xf32, #tpu.memory_space<vmem>>, vector<2x10x10x8xf32>,
    %61 = vector.shape_cast %58 : vector<128x8xf32> to vector<2x8x8x8xf32>
    %c0_59 = arith.constant 0 : index
    %c1_60 = arith.constant 1 : index
    %c1_61 = arith.constant 1 : index
    %c0_62 = arith.constant 0 : index
    %62 = vector.load %arg10[%c0_59, %c1_60, %c1_61, %c0_62] : memref<2x10x10x8xf32, #tpu.memory_space<vmem>>, vector<2x8x8x8xf32>
    tpu.vector_store %arg10[%c0_59, %c1_60, %c1_61, %c0_62], %61 {strides = array<i32>} : memref<2x10x10x8xf32, #tpu.memory_space<vmem>>, vector<2x8x8x8xf32>,
    %c0_63 = arith.constant 0 : index
    %c0_64 = arith.constant 0 : index
    %c0_65 = arith.constant 0 : index
    %c0_66 = arith.constant 0 : index
    %63 = vector.load %arg10[%c0_63, %c0_64, %c0_65, %c0_66] : memref<2x10x10x8xf32, #tpu.memory_space<vmem>>, vector<2x8x8x8xf32>
    %64 = vector.shape_cast %63 : vector<2x8x8x8xf32> to vector<128x8xf32>
    %c0_67 = arith.constant 0 : index
    %c0_68 = arith.constant 0 : index
    %65 = vector.load %arg3[%c0_67, %c0_68] : memref<72x16xf32, #tpu.memory_space<vmem>>, vector<8x16xf32>
    %cst_69 = arith.constant dense<0.000000e+00> : vector<128x16xf32>
    %66 = tpu.matmul %64, %65, %cst_69 {dimension_numbers = #tpu.dot_dimension_numbers<[1], [0], [0], [1], [0, 0, 1, 1], [], []>} : vector<128x8xf32>, vector<8x16xf32>, vector<128x16xf32> -> vector<128x16xf32>
    %c0_70 = arith.constant 0 : index
    %c0_71 = arith.constant 0 : index
    %c1_72 = arith.constant 1 : index
    %c0_73 = arith.constant 0 : index
    %67 = vector.load %arg10[%c0_70, %c0_71, %c1_72, %c0_73] : memref<2x10x10x8xf32, #tpu.memory_space<vmem>>, vector<2x8x8x8xf32>
    %68 = vector.shape_cast %67 : vector<2x8x8x8xf32> to vector<128x8xf32>
    %c8_74 = arith.constant 8 : index
    %c0_75 = arith.constant 0 : index
    %69 = vector.load %arg3[%c8_74, %c0_75] : memref<72x16xf32, #tpu.memory_space<vmem>>, vector<8x16xf32>
    %cst_76 = arith.constant dense<0.000000e+00> : vector<128x16xf32>
    %70 = tpu.matmul %68, %69, %cst_76 {dimension_numbers = #tpu.dot_dimension_numbers<[1], [0], [0], [1], [0, 0, 1, 1], [], []>} : vector<128x8xf32>, vector<8x16xf32>, vector<128x16xf32> -> vector<128x16xf32>
    %71 = arith.addf %66, %70 : vector<128x16xf32>
    %c0_77 = arith.constant 0 : index
    %c0_78 = arith.constant 0 : index
    %c2_79 = arith.constant 2 : index
    %c0_80 = arith.constant 0 : index
    %72 = vector.load %arg10[%c0_77, %c0_78, %c2_79, %c0_80] : memref<2x10x10x8xf32, #tpu.memory_space<vmem>>, vector<2x8x8x8xf32>
    %73 = vector.shape_cast %72 : vector<2x8x8x8xf32> to vector<128x8xf32>
    %c16_81 = arith.constant 16 : index
    %c0_82 = arith.constant 0 : index
    %74 = vector.load %arg3[%c16_81, %c0_82] : memref<72x16xf32, #tpu.memory_space<vmem>>, vector<8x16xf32>
    %cst_83 = arith.constant dense<0.000000e+00> : vector<128x16xf32>
    %75 = tpu.matmul %73, %74, %cst_83 {dimension_numbers = #tpu.dot_dimension_numbers<[1], [0], [0], [1], [0, 0, 1, 1], [], []>} : vector<128x8xf32>, vector<8x16xf32>, vector<128x16xf32> -> vector<128x16xf32>
    %76 = arith.addf %71, %75 : vector<128x16xf32>
    %c0_84 = arith.constant 0 : index
    %c1_85 = arith.constant 1 : index
    %c0_86 = arith.constant 0 : index
    %c0_87 = arith.constant 0 : index
    %77 = vector.load %arg10[%c0_84, %c1_85, %c0_86, %c0_87] : memref<2x10x10x8xf32, #tpu.memory_space<vmem>>, vector<2x8x8x8xf32>
    %78 = vector.shape_cast %77 : vector<2x8x8x8xf32> to vector<128x8xf32>
    %c24_88 = arith.constant 24 : index
    %c0_89 = arith.constant 0 : index
    %79 = vector.load %arg3[%c24_88, %c0_89] : memref<72x16xf32, #tpu.memory_space<vmem>>, vector<8x16xf32>
    %cst_90 = arith.constant dense<0.000000e+00> : vector<128x16xf32>
    %80 = tpu.matmul %78, %79, %cst_90 {dimension_numbers = #tpu.dot_dimension_numbers<[1], [0], [0], [1], [0, 0, 1, 1], [], []>} : vector<128x8xf32>, vector<8x16xf32>, vector<128x16xf32> -> vector<128x16xf32>
    %81 = arith.addf %76, %80 : vector<128x16xf32>
    %c0_91 = arith.constant 0 : index
    %c1_92 = arith.constant 1 : index
    %c1_93 = arith.constant 1 : index
    %c0_94 = arith.constant 0 : index
    %82 = vector.load %arg10[%c0_91, %c1_92, %c1_93, %c0_94] : memref<2x10x10x8xf32, #tpu.memory_space<vmem>>, vector<2x8x8x8xf32>
    %83 = vector.shape_cast %82 : vector<2x8x8x8xf32> to vector<128x8xf32>
    %c32_95 = arith.constant 32 : index
    %c0_96 = arith.constant 0 : index
    %84 = vector.load %arg3[%c32_95, %c0_96] : memref<72x16xf32, #tpu.memory_space<vmem>>, vector<8x16xf32>
    %cst_97 = arith.constant dense<0.000000e+00> : vector<128x16xf32>
    %85 = tpu.matmul %83, %84, %cst_97 {dimension_numbers = #tpu.dot_dimension_numbers<[1], [0], [0], [1], [0, 0, 1, 1], [], []>} : vector<128x8xf32>, vector<8x16xf32>, vector<128x16xf32> -> vector<128x16xf32>
    %86 = arith.addf %81, %85 : vector<128x16xf32>
    %c0_98 = arith.constant 0 : index
    %c1_99 = arith.constant 1 : index
    %c2_100 = arith.constant 2 : index
    %c0_101 = arith.constant 0 : index
    %87 = vector.load %arg10[%c0_98, %c1_99, %c2_100, %c0_101] : memref<2x10x10x8xf32, #tpu.memory_space<vmem>>, vector<2x8x8x8xf32>
    %88 = vector.shape_cast %87 : vector<2x8x8x8xf32> to vector<128x8xf32>
    %c40 = arith.constant 40 : index
    %c0_102 = arith.constant 0 : index
    %89 = vector.load %arg3[%c40, %c0_102] : memref<72x16xf32, #tpu.memory_space<vmem>>, vector<8x16xf32>
    %cst_103 = arith.constant dense<0.000000e+00> : vector<128x16xf32>
    %90 = tpu.matmul %88, %89, %cst_103 {dimension_numbers = #tpu.dot_dimension_numbers<[1], [0], [0], [1], [0, 0, 1, 1], [], []>} : vector<128x8xf32>, vector<8x16xf32>, vector<128x16xf32> -> vector<128x16xf32>
    %91 = arith.addf %86, %90 : vector<128x16xf32>
    %c0_104 = arith.constant 0 : index
    %c2_105 = arith.constant 2 : index
    %c0_106 = arith.constant 0 : index
    %c0_107 = arith.constant 0 : index
    %92 = vector.load %arg10[%c0_104, %c2_105, %c0_106, %c0_107] : memref<2x10x10x8xf32, #tpu.memory_space<vmem>>, vector<2x8x8x8xf32>
    %93 = vector.shape_cast %92 : vector<2x8x8x8xf32> to vector<128x8xf32>
    %c48 = arith.constant 48 : index
    %c0_108 = arith.constant 0 : index
    %94 = vector.load %arg3[%c48, %c0_108] : memref<72x16xf32, #tpu.memory_space<vmem>>, vector<8x16xf32>
    %cst_109 = arith.constant dense<0.000000e+00> : vector<128x16xf32>
    %95 = tpu.matmul %93, %94, %cst_109 {dimension_numbers = #tpu.dot_dimension_numbers<[1], [0], [0], [1], [0, 0, 1, 1], [], []>} : vector<128x8xf32>, vector<8x16xf32>, vector<128x16xf32> -> vector<128x16xf32>
    %96 = arith.addf %91, %95 : vector<128x16xf32>
    %c0_110 = arith.constant 0 : index
    %c2_111 = arith.constant 2 : index
    %c1_112 = arith.constant 1 : index
    %c0_113 = arith.constant 0 : index
    %97 = vector.load %arg10[%c0_110, %c2_111, %c1_112, %c0_113] : memref<2x10x10x8xf32, #tpu.memory_space<vmem>>, vector<2x8x8x8xf32>
    %98 = vector.shape_cast %97 : vector<2x8x8x8xf32> to vector<128x8xf32>
    %c56 = arith.constant 56 : index
    %c0_114 = arith.constant 0 : index
    %99 = vector.load %arg3[%c56, %c0_114] : memref<72x16xf32, #tpu.memory_space<vmem>>, vector<8x16xf32>
    %cst_115 = arith.constant dense<0.000000e+00> : vector<128x16xf32>
    %100 = tpu.matmul %98, %99, %cst_115 {dimension_numbers = #tpu.dot_dimension_numbers<[1], [0], [0], [1], [0, 0, 1, 1], [], []>} : vector<128x8xf32>, vector<8x16xf32>, vector<128x16xf32> -> vector<128x16xf32>
    %101 = arith.addf %96, %100 : vector<128x16xf32>
    %c0_116 = arith.constant 0 : index
    %c2_117 = arith.constant 2 : index
    %c2_118 = arith.constant 2 : index
    %c0_119 = arith.constant 0 : index
    %102 = vector.load %arg10[%c0_116, %c2_117, %c2_118, %c0_119] : memref<2x10x10x8xf32, #tpu.memory_space<vmem>>, vector<2x8x8x8xf32>
    %103 = vector.shape_cast %102 : vector<2x8x8x8xf32> to vector<128x8xf32>
    %c64 = arith.constant 64 : index
    %c0_120 = arith.constant 0 : index
    %104 = vector.load %arg3[%c64, %c0_120] : memref<72x16xf32, #tpu.memory_space<vmem>>, vector<8x16xf32>
    %cst_121 = arith.constant dense<0.000000e+00> : vector<128x16xf32>
    %105 = tpu.matmul %103, %104, %cst_121 {dimension_numbers = #tpu.dot_dimension_numbers<[1], [0], [0], [1], [0, 0, 1, 1], [], []>} : vector<128x8xf32>, vector<8x16xf32>, vector<128x16xf32> -> vector<128x16xf32>
    %106 = arith.addf %101, %105 : vector<128x16xf32>
    %c0_122 = arith.constant 0 : index
    %c0_123 = arith.constant 0 : index
    %107 = vector.load %arg4[%c0_122, %c0_123] : memref<1x16xf32, #tpu.memory_space<vmem>>, vector<1x16xf32>
    %108 = vector.broadcast %107 : vector<1x16xf32> to vector<128x16xf32>
    %109 = arith.addf %106, %108 : vector<128x16xf32>
    %cst_124 = arith.constant 0.000000e+00 : f32
    %110 = vector.broadcast %cst_124 : f32 to vector<128x16xf32>
    %111 = arith.maximumf %109, %110 : vector<128x16xf32>
    %112 = vector.shape_cast %111 : vector<128x16xf32> to vector<64x2x16xf32>
    %113 = vector.extract_strided_slice %112 {offsets = [0, 0, 0], sizes = [64, 1, 16], strides = [1, 1, 1]} : vector<64x2x16xf32> to vector<64x1x16xf32>
    %114 = vector.extract_strided_slice %112 {offsets = [0, 1, 0], sizes = [64, 1, 16], strides = [1, 1, 1]} : vector<64x2x16xf32> to vector<64x1x16xf32>
    %115 = arith.maximumf %113, %114 : vector<64x1x16xf32>
    %116 = vector.shape_cast %115 : vector<64x1x16xf32> to vector<64x16xf32>
    %117 = vector.shape_cast %116 : vector<64x16xf32> to vector<8x2x4x16xf32>
    %118 = vector.extract_strided_slice %117 {offsets = [0, 0, 0, 0], sizes = [8, 1, 4, 16], strides = [1, 1, 1, 1]} : vector<8x2x4x16xf32> to vector<8x1x4x16xf32>
    %119 = vector.extract_strided_slice %117 {offsets = [0, 1, 0, 0], sizes = [8, 1, 4, 16], strides = [1, 1, 1, 1]} : vector<8x2x4x16xf32> to vector<8x1x4x16xf32>
    %120 = arith.maximumf %118, %119 : vector<8x1x4x16xf32>
    %121 = vector.shape_cast %120 : vector<8x1x4x16xf32> to vector<32x16xf32>
    %122 = vector.shape_cast %121 : vector<32x16xf32> to vector<2x16x16xf32>
    %123 = vector.extract_strided_slice %122 {offsets = [0, 0, 0], sizes = [2, 1, 16], strides = [1, 1, 1]} : vector<2x16x16xf32> to vector<2x1x16xf32>
    %124 = vector.shape_cast %123 : vector<2x1x16xf32> to vector<2x16xf32>
    %c0_125 = arith.constant 0 : index
    %c0_126 = arith.constant 0 : index
    %125 = vector.load %arg5[%c0_125, %c0_126] : memref<256x128xf32, #tpu.memory_space<vmem>>, vector<16x128xf32>
    %cst_127 = arith.constant dense<0.000000e+00> : vector<2x128xf32>
    %126 = tpu.matmul %124, %125, %cst_127 {dimension_numbers = #tpu.dot_dimension_numbers<[1], [0], [0], [1], [0, 0, 1, 1], [], []>} : vector<2x16xf32>, vector<16x128xf32>, vector<2x128xf32> -> vector<2x128xf32>
    %127 = vector.extract_strided_slice %122 {offsets = [0, 1, 0], sizes = [2, 1, 16], strides = [1, 1, 1]} : vector<2x16x16xf32> to vector<2x1x16xf32>
    %128 = vector.shape_cast %127 : vector<2x1x16xf32> to vector<2x16xf32>
    %c16_128 = arith.constant 16 : index
    %c0_129 = arith.constant 0 : index
    %129 = vector.load %arg5[%c16_128, %c0_129] : memref<256x128xf32, #tpu.memory_space<vmem>>, vector<16x128xf32>
    %cst_130 = arith.constant dense<0.000000e+00> : vector<2x128xf32>
    %130 = tpu.matmul %128, %129, %cst_130 {dimension_numbers = #tpu.dot_dimension_numbers<[1], [0], [0], [1], [0, 0, 1, 1], [], []>} : vector<2x16xf32>, vector<16x128xf32>, vector<2x128xf32> -> vector<2x128xf32>
    %131 = arith.addf %126, %130 : vector<2x128xf32>
    %132 = vector.extract_strided_slice %122 {offsets = [0, 2, 0], sizes = [2, 1, 16], strides = [1, 1, 1]} : vector<2x16x16xf32> to vector<2x1x16xf32>
    %133 = vector.shape_cast %132 : vector<2x1x16xf32> to vector<2x16xf32>
    %c32_131 = arith.constant 32 : index
    %c0_132 = arith.constant 0 : index
    %134 = vector.load %arg5[%c32_131, %c0_132] : memref<256x128xf32, #tpu.memory_space<vmem>>, vector<16x128xf32>
    %cst_133 = arith.constant dense<0.000000e+00> : vector<2x128xf32>
    %135 = tpu.matmul %133, %134, %cst_133 {dimension_numbers = #tpu.dot_dimension_numbers<[1], [0], [0], [1], [0, 0, 1, 1], [], []>} : vector<2x16xf32>, vector<16x128xf32>, vector<2x128xf32> -> vector<2x128xf32>
    %136 = arith.addf %131, %135 : vector<2x128xf32>
    %137 = vector.extract_strided_slice %122 {offsets = [0, 3, 0], sizes = [2, 1, 16], strides = [1, 1, 1]} : vector<2x16x16xf32> to vector<2x1x16xf32>
    %138 = vector.shape_cast %137 : vector<2x1x16xf32> to vector<2x16xf32>
    %c48_134 = arith.constant 48 : index
    %c0_135 = arith.constant 0 : index
    %139 = vector.load %arg5[%c48_134, %c0_135] : memref<256x128xf32, #tpu.memory_space<vmem>>, vector<16x128xf32>
    %cst_136 = arith.constant dense<0.000000e+00> : vector<2x128xf32>
    %140 = tpu.matmul %138, %139, %cst_136 {dimension_numbers = #tpu.dot_dimension_numbers<[1], [0], [0], [1], [0, 0, 1, 1], [], []>} : vector<2x16xf32>, vector<16x128xf32>, vector<2x128xf32> -> vector<2x128xf32>
    %141 = arith.addf %136, %140 : vector<2x128xf32>
    %142 = vector.extract_strided_slice %122 {offsets = [0, 4, 0], sizes = [2, 1, 16], strides = [1, 1, 1]} : vector<2x16x16xf32> to vector<2x1x16xf32>
    %143 = vector.shape_cast %142 : vector<2x1x16xf32> to vector<2x16xf32>
    %c64_137 = arith.constant 64 : index
    %c0_138 = arith.constant 0 : index
    %144 = vector.load %arg5[%c64_137, %c0_138] : memref<256x128xf32, #tpu.memory_space<vmem>>, vector<16x128xf32>
    %cst_139 = arith.constant dense<0.000000e+00> : vector<2x128xf32>
    %145 = tpu.matmul %143, %144, %cst_139 {dimension_numbers = #tpu.dot_dimension_numbers<[1], [0], [0], [1], [0, 0, 1, 1], [], []>} : vector<2x16xf32>, vector<16x128xf32>, vector<2x128xf32> -> vector<2x128xf32>
    %146 = arith.addf %141, %145 : vector<2x128xf32>
    %147 = vector.extract_strided_slice %122 {offsets = [0, 5, 0], sizes = [2, 1, 16], strides = [1, 1, 1]} : vector<2x16x16xf32> to vector<2x1x16xf32>
    %148 = vector.shape_cast %147 : vector<2x1x16xf32> to vector<2x16xf32>
    %c80 = arith.constant 80 : index
    %c0_140 = arith.constant 0 : index
    %149 = vector.load %arg5[%c80, %c0_140] : memref<256x128xf32, #tpu.memory_space<vmem>>, vector<16x128xf32>
    %cst_141 = arith.constant dense<0.000000e+00> : vector<2x128xf32>
    %150 = tpu.matmul %148, %149, %cst_141 {dimension_numbers = #tpu.dot_dimension_numbers<[1], [0], [0], [1], [0, 0, 1, 1], [], []>} : vector<2x16xf32>, vector<16x128xf32>, vector<2x128xf32> -> vector<2x128xf32>
    %151 = arith.addf %146, %150 : vector<2x128xf32>
    %152 = vector.extract_strided_slice %122 {offsets = [0, 6, 0], sizes = [2, 1, 16], strides = [1, 1, 1]} : vector<2x16x16xf32> to vector<2x1x16xf32>
    %153 = vector.shape_cast %152 : vector<2x1x16xf32> to vector<2x16xf32>
    %c96 = arith.constant 96 : index
    %c0_142 = arith.constant 0 : index
    %154 = vector.load %arg5[%c96, %c0_142] : memref<256x128xf32, #tpu.memory_space<vmem>>, vector<16x128xf32>
    %cst_143 = arith.constant dense<0.000000e+00> : vector<2x128xf32>
    %155 = tpu.matmul %153, %154, %cst_143 {dimension_numbers = #tpu.dot_dimension_numbers<[1], [0], [0], [1], [0, 0, 1, 1], [], []>} : vector<2x16xf32>, vector<16x128xf32>, vector<2x128xf32> -> vector<2x128xf32>
    %156 = arith.addf %151, %155 : vector<2x128xf32>
    %157 = vector.extract_strided_slice %122 {offsets = [0, 7, 0], sizes = [2, 1, 16], strides = [1, 1, 1]} : vector<2x16x16xf32> to vector<2x1x16xf32>
    %158 = vector.shape_cast %157 : vector<2x1x16xf32> to vector<2x16xf32>
    %c112 = arith.constant 112 : index
    %c0_144 = arith.constant 0 : index
    %159 = vector.load %arg5[%c112, %c0_144] : memref<256x128xf32, #tpu.memory_space<vmem>>, vector<16x128xf32>
    %cst_145 = arith.constant dense<0.000000e+00> : vector<2x128xf32>
    %160 = tpu.matmul %158, %159, %cst_145 {dimension_numbers = #tpu.dot_dimension_numbers<[1], [0], [0], [1], [0, 0, 1, 1], [], []>} : vector<2x16xf32>, vector<16x128xf32>, vector<2x128xf32> -> vector<2x128xf32>
    %161 = arith.addf %156, %160 : vector<2x128xf32>
    %162 = vector.extract_strided_slice %122 {offsets = [0, 8, 0], sizes = [2, 1, 16], strides = [1, 1, 1]} : vector<2x16x16xf32> to vector<2x1x16xf32>
    %163 = vector.shape_cast %162 : vector<2x1x16xf32> to vector<2x16xf32>
    %c128 = arith.constant 128 : index
    %c0_146 = arith.constant 0 : index
    %164 = vector.load %arg5[%c128, %c0_146] : memref<256x128xf32, #tpu.memory_space<vmem>>, vector<16x128xf32>
    %cst_147 = arith.constant dense<0.000000e+00> : vector<2x128xf32>
    %165 = tpu.matmul %163, %164, %cst_147 {dimension_numbers = #tpu.dot_dimension_numbers<[1], [0], [0], [1], [0, 0, 1, 1], [], []>} : vector<2x16xf32>, vector<16x128xf32>, vector<2x128xf32> -> vector<2x128xf32>
    %166 = arith.addf %161, %165 : vector<2x128xf32>
    %167 = vector.extract_strided_slice %122 {offsets = [0, 9, 0], sizes = [2, 1, 16], strides = [1, 1, 1]} : vector<2x16x16xf32> to vector<2x1x16xf32>
    %168 = vector.shape_cast %167 : vector<2x1x16xf32> to vector<2x16xf32>
    %c144 = arith.constant 144 : index
    %c0_148 = arith.constant 0 : index
    %169 = vector.load %arg5[%c144, %c0_148] : memref<256x128xf32, #tpu.memory_space<vmem>>, vector<16x128xf32>
    %cst_149 = arith.constant dense<0.000000e+00> : vector<2x128xf32>
    %170 = tpu.matmul %168, %169, %cst_149 {dimension_numbers = #tpu.dot_dimension_numbers<[1], [0], [0], [1], [0, 0, 1, 1], [], []>} : vector<2x16xf32>, vector<16x128xf32>, vector<2x128xf32> -> vector<2x128xf32>
    %171 = arith.addf %166, %170 : vector<2x128xf32>
    %172 = vector.extract_strided_slice %122 {offsets = [0, 10, 0], sizes = [2, 1, 16], strides = [1, 1, 1]} : vector<2x16x16xf32> to vector<2x1x16xf32>
    %173 = vector.shape_cast %172 : vector<2x1x16xf32> to vector<2x16xf32>
    %c160 = arith.constant 160 : index
    %c0_150 = arith.constant 0 : index
    %174 = vector.load %arg5[%c160, %c0_150] : memref<256x128xf32, #tpu.memory_space<vmem>>, vector<16x128xf32>
    %cst_151 = arith.constant dense<0.000000e+00> : vector<2x128xf32>
    %175 = tpu.matmul %173, %174, %cst_151 {dimension_numbers = #tpu.dot_dimension_numbers<[1], [0], [0], [1], [0, 0, 1, 1], [], []>} : vector<2x16xf32>, vector<16x128xf32>, vector<2x128xf32> -> vector<2x128xf32>
    %176 = arith.addf %171, %175 : vector<2x128xf32>
    %177 = vector.extract_strided_slice %122 {offsets = [0, 11, 0], sizes = [2, 1, 16], strides = [1, 1, 1]} : vector<2x16x16xf32> to vector<2x1x16xf32>
    %178 = vector.shape_cast %177 : vector<2x1x16xf32> to vector<2x16xf32>
    %c176 = arith.constant 176 : index
    %c0_152 = arith.constant 0 : index
    %179 = vector.load %arg5[%c176, %c0_152] : memref<256x128xf32, #tpu.memory_space<vmem>>, vector<16x128xf32>
    %cst_153 = arith.constant dense<0.000000e+00> : vector<2x128xf32>
    %180 = tpu.matmul %178, %179, %cst_153 {dimension_numbers = #tpu.dot_dimension_numbers<[1], [0], [0], [1], [0, 0, 1, 1], [], []>} : vector<2x16xf32>, vector<16x128xf32>, vector<2x128xf32> -> vector<2x128xf32>
    %181 = arith.addf %176, %180 : vector<2x128xf32>
    %182 = vector.extract_strided_slice %122 {offsets = [0, 12, 0], sizes = [2, 1, 16], strides = [1, 1, 1]} : vector<2x16x16xf32> to vector<2x1x16xf32>
    %183 = vector.shape_cast %182 : vector<2x1x16xf32> to vector<2x16xf32>
    %c192 = arith.constant 192 : index
    %c0_154 = arith.constant 0 : index
    %184 = vector.load %arg5[%c192, %c0_154] : memref<256x128xf32, #tpu.memory_space<vmem>>, vector<16x128xf32>
    %cst_155 = arith.constant dense<0.000000e+00> : vector<2x128xf32>
    %185 = tpu.matmul %183, %184, %cst_155 {dimension_numbers = #tpu.dot_dimension_numbers<[1], [0], [0], [1], [0, 0, 1, 1], [], []>} : vector<2x16xf32>, vector<16x128xf32>, vector<2x128xf32> -> vector<2x128xf32>
    %186 = arith.addf %181, %185 : vector<2x128xf32>
    %187 = vector.extract_strided_slice %122 {offsets = [0, 13, 0], sizes = [2, 1, 16], strides = [1, 1, 1]} : vector<2x16x16xf32> to vector<2x1x16xf32>
    %188 = vector.shape_cast %187 : vector<2x1x16xf32> to vector<2x16xf32>
    %c208 = arith.constant 208 : index
    %c0_156 = arith.constant 0 : index
    %189 = vector.load %arg5[%c208, %c0_156] : memref<256x128xf32, #tpu.memory_space<vmem>>, vector<16x128xf32>
    %cst_157 = arith.constant dense<0.000000e+00> : vector<2x128xf32>
    %190 = tpu.matmul %188, %189, %cst_157 {dimension_numbers = #tpu.dot_dimension_numbers<[1], [0], [0], [1], [0, 0, 1, 1], [], []>} : vector<2x16xf32>, vector<16x128xf32>, vector<2x128xf32> -> vector<2x128xf32>
    %191 = arith.addf %186, %190 : vector<2x128xf32>
    %192 = vector.extract_strided_slice %122 {offsets = [0, 14, 0], sizes = [2, 1, 16], strides = [1, 1, 1]} : vector<2x16x16xf32> to vector<2x1x16xf32>
    %193 = vector.shape_cast %192 : vector<2x1x16xf32> to vector<2x16xf32>
    %c224 = arith.constant 224 : index
    %c0_158 = arith.constant 0 : index
    %194 = vector.load %arg5[%c224, %c0_158] : memref<256x128xf32, #tpu.memory_space<vmem>>, vector<16x128xf32>
    %cst_159 = arith.constant dense<0.000000e+00> : vector<2x128xf32>
    %195 = tpu.matmul %193, %194, %cst_159 {dimension_numbers = #tpu.dot_dimension_numbers<[1], [0], [0], [1], [0, 0, 1, 1], [], []>} : vector<2x16xf32>, vector<16x128xf32>, vector<2x128xf32> -> vector<2x128xf32>
    %196 = arith.addf %191, %195 : vector<2x128xf32>
    %197 = vector.extract_strided_slice %122 {offsets = [0, 15, 0], sizes = [2, 1, 16], strides = [1, 1, 1]} : vector<2x16x16xf32> to vector<2x1x16xf32>
    %198 = vector.shape_cast %197 : vector<2x1x16xf32> to vector<2x16xf32>
    %c240 = arith.constant 240 : index
    %c0_160 = arith.constant 0 : index
    %199 = vector.load %arg5[%c240, %c0_160] : memref<256x128xf32, #tpu.memory_space<vmem>>, vector<16x128xf32>
    %cst_161 = arith.constant dense<0.000000e+00> : vector<2x128xf32>
    %200 = tpu.matmul %198, %199, %cst_161 {dimension_numbers = #tpu.dot_dimension_numbers<[1], [0], [0], [1], [0, 0, 1, 1], [], []>} : vector<2x16xf32>, vector<16x128xf32>, vector<2x128xf32> -> vector<2x128xf32>
    %201 = arith.addf %196, %200 : vector<2x128xf32>
    %c0_162 = arith.constant 0 : index
    %c0_163 = arith.constant 0 : index
    %202 = vector.load %arg6[%c0_162, %c0_163] : memref<1x128xf32, #tpu.memory_space<vmem>>, vector<1x128xf32>
    %203 = vector.broadcast %202 : vector<1x128xf32> to vector<2x128xf32>
    %204 = arith.addf %201, %203 : vector<2x128xf32>
    %cst_164 = arith.constant 0.000000e+00 : f32
    %205 = vector.broadcast %cst_164 : f32 to vector<2x128xf32>
    %206 = arith.maximumf %204, %205 : vector<2x128xf32>
    %c0_165 = arith.constant 0 : index
    %c0_166 = arith.constant 0 : index
    %207 = vector.load %arg7[%c0_165, %c0_166] : memref<128x3xf32, #tpu.memory_space<vmem>>, vector<128x3xf32>
    %cst_167 = arith.constant dense<0.000000e+00> : vector<2x3xf32>
    %208 = tpu.matmul %206, %207, %cst_167 {dimension_numbers = #tpu.dot_dimension_numbers<[1], [0], [0], [1], [0, 0, 1, 1], [], []>} : vector<2x128xf32>, vector<128x3xf32>, vector<2x3xf32> -> vector<2x3xf32>
    %c0_168 = arith.constant 0 : index
    %c0_169 = arith.constant 0 : index
    %209 = vector.load %arg8[%c0_168, %c0_169] : memref<1x3xf32, #tpu.memory_space<vmem>>, vector<1x3xf32>
    %210 = vector.broadcast %209 : vector<1x3xf32> to vector<2x3xf32>
    %211 = arith.addf %208, %210 : vector<2x3xf32>
    %c0_170 = arith.constant 0 : index
    %c0_171 = arith.constant 0 : index
    %212 = vector.load %arg9[%c0_170, %c0_171] : memref<2x3xf32, #tpu.memory_space<vmem>>, vector<2x3xf32>
    tpu.vector_store %arg9[%c0_170, %c0_171], %211 {strides = array<i32>} : memref<2x3xf32, #tpu.memory_space<vmem>>, vector<2x3xf32>,
    return
  }
}

</mosaic_0001>

<bundles_post_ra>
// kernel: cnn_forward.1
= control target key start
LH: loop header
LB: loop body
LE: loop exit
PB: predicated region body
PF: predicated region fallthrough
CT: control target
= control target key end

     0   :  { %vm356_vm0 = vcmask 1043456   ;;  %vm163_vm1 = vcmask 31744   ;;  %s23399_s0 = inlined_call_operand.vmem [shape: f32[2,18,18,4], index: 0, kind: input, shape index: {}]   ;;  %s23400_s1 = inlined_call_operand.vmem [shape: f32[36,8], index: 1, kind: input, shape index: {}]   ;;  %s23401_s2 = inlined_call_operand.vmem [shape: f32[1,8], index: 2, kind: input, shape index: {}]   ;;  %s23402_s3 = inlined_call_operand.vmem [shape: f32[72,16], index: 3, kind: input, shape index: {}]   ;;  %s23403_s4 = inlined_call_operand.vmem [shape: f32[1,16], index: 4, kind: input, shape index: {}]   ;;  %s23404_s5 = inlined_call_operand.vmem [shape: f32[256,128], index: 5, kind: input, shape index: {}]   ;;  %s23405_s6 = inlined_call_operand.vmem [shape: f32[1,128], index: 6, kind: input, shape index: {}]   ;;  %s23406_s7 = inlined_call_operand.vmem [shape: f32[128,3], index: 7, kind: input, shape index: {}]   ;;  %s23407_s8 = inlined_call_operand.vmem [shape: f32[1,3], index: 8, kind: input, shape index: {}]   ;;  %s23408_s9 = inlined_call_operand.hbm [shape: f32[2,3], index: 9, kind: output, shape index: {}]  }
   0x1   :  { %v162_v0 = vld [vmem:[%s23400_s1 + $0x4] sm:$0xf]  ;;  %v154_v2 = vld [vmem:[%s23399_s0 + $0x2d1] sm:$0xff]  ;;  %v99_v3 = vld [vmem:[%s23399_s0 + $0x9] sm:$0xff] }
   0x2   :  { %v98_v1 = vld [vmem:[%s23399_s0 + $0x1] sm:$0xff]  ;;  %16250 = vmatprep.subr.msk.mxu0 %vm356_vm0, %v162_v0  ;;  %17513 = vmatprep.subr.msk.mxu1 %vm356_vm0, %v162_v0  ;;  %v155_v4 = vld [vmem:[%s23399_s0 + $0x2d9] sm:$0xff]  ;;  %v156_v7 = vld [vmem:[%s23399_s0 + $0x2e9] sm:$0xff] }
   0x3   :  { %16251 = vmatpush3.msk.msra.mxu0 %vm356_vm0, %v162_v0  ;;  %17514 = vmatpush3.msk.msra.mxu1 %vm356_vm0, %v162_v0  ;;  %v1389_v5 = vld [vmem:[%s23400_s1 + $0x8] sm:$0xf]  ;;  %v100_v6 = vld [vmem:[%s23399_s0 + $0x19] sm:$0xff]  ;;  %v157_v9 = vld [vmem:[%s23399_s0 + $0x2f1] sm:$0xff] }
   0x4   :  { %16252 = vmatprep.mubr.msk.f32.mxu0 %vm163_vm1, %v98_v1  ;;  %16336 = vmatprep.mubr.msk.f32.mxu1 %vm163_vm1, %v154_v2  ;;  %v101_v8 = vld [vmem:[%s23399_s0 + $0x21] sm:$0xff]  ;;  %v102_v10 = vld [vmem:[%s23399_s0 + $0x31] sm:$0xff]  ;;  %v103_v13 = vld [vmem:[%s23399_s0 + $0x39] sm:$0xff] }
   0x5   :  { %16253 = vmatmul.mubr.msk.f32.vlgmr.msra.gmra.mxu0 %vm163_vm1, %v99_v3  ;;  %16337 = vmatmul.mubr.msk.f32.vlgmr.msra.gmra.mxu1 %vm163_vm1, %v155_v4  ;;  %v158_v11 = vld [vmem:[%s23399_s0 + $0x301] sm:$0xff]  ;;  %v159_v14 = vld [vmem:[%s23399_s0 + $0x309] sm:$0xff]  ;;  %v160_v16 = vld [vmem:[%s23399_s0 + $0x319] sm:$0xff] }
   0x6   :  { %16446 = vmatprep.subr.msk.mxu0 %vm356_vm0, %v1389_v5  ;;  %16255 = vmatprep.mubr.msk.f32.mxu0 %vm163_vm1, %v100_v6  ;;  %v97_v12 = vld [vmem:[%s23400_s1] sm:$0xf]  ;;  %v104_v15 = vld [vmem:[%s23399_s0 + $0x49] sm:$0xff]  ;;  %v105_v17 = vld [vmem:[%s23399_s0 + $0x51] sm:$0xff] }
   0x7   :  { %16447 = vmatpush3.msk.msra.mxu0 %vm356_vm0, %v1389_v5  ;;  %16339 = vmatprep.mubr.msk.f32.mxu1 %vm163_vm1, %v156_v7  ;;  %v161_v18 = vld [vmem:[%s23399_s0 + $0x321] sm:$0xff]  ;;  %v107_v21 = vld [vmem:[%s23399_s0 + $0x69] sm:$0xff]  ;;  %v108_v23 = vld [vmem:[%s23399_s0 + $0x79] sm:$0xff] }
   0x8   :  { %16348 = vmatprep.subr.msk.mxu1 %vm356_vm0, %v97_v12  ;;  %v106_v19 = vld [vmem:[%s23399_s0 + $0x61] sm:$0xff]  ;;  %v17701_v24 = vld [vmem:[%s23399_s0 + $0x18] sm:$0xff]  ;;  %v17722_v28 = vld [vmem:[%s23399_s0 + $0x30] sm:$0xff] }
   0x9   :  { %16256 = vmatmul.mubr.msk.f32.gmra.mxu0 %vm163_vm1, %v101_v8  ;;  %16340 = vmatmul.mubr.msk.f32.gmra.mxu1 %vm163_vm1, %v157_v9  ;;  %v33_v20 = vld [vmem:[%s23399_s0] sm:$0xff]  ;;  %v34_v22 = vld [vmem:[%s23399_s0 + $0x8] sm:$0xff]  ;;  %v110_v27 = vld [vmem:[%s23399_s0 + $0x91] sm:$0xff] }
   0xa   :  { %16258 = vmatprep.mubr.msk.f32.mxu0 %vm163_vm1, %v102_v10  ;;  %16342 = vmatprep.mubr.msk.f32.mxu1 %vm163_vm1, %v158_v11  ;;  %v109_v25 = vld [vmem:[%s23399_s0 + $0x81] sm:$0xff]  ;;  %v111_v29 = vld [vmem:[%s23399_s0 + $0x99] sm:$0xff]  ;;  %v112_v31 = vld [vmem:[%s23399_s0 + $0xa9] sm:$0xff] }
   0xb   :  { %16349 = vmatpush3.msk.msra.mxu1 %vm356_vm0, %v97_v12  ;;  %v17714_v26 = vld [vmem:[%s23399_s0 + $0x20] sm:$0xff]  ;;  %v17736_v30 = vld [vmem:[%s23399_s0 + $0x38] sm:$0xff]  ;;  %v17744_v32 = vld [vmem:[%s23399_s0 + $0x48] sm:$0xff] }
   0xc   :  { %v113_v33 = vld [vmem:[%s23399_s0 + $0xb1] sm:$0xff]  ;;  %v114_v35 = vld [vmem:[%s23399_s0 + $0xc1] sm:$0xff]  ;;  %v115_v37 = vld [vmem:[%s23399_s0 + $0xc9] sm:$0xff] }
   0xd   :  { %16259 = vmatmul.mubr.msk.f32.gmra.mxu0 %vm163_vm1, %v103_v13  ;;  %16343 = vmatmul.mubr.msk.f32.gmra.mxu1 %vm163_vm1, %v159_v14  ;;  %v17758_v34 = vld [vmem:[%s23399_s0 + $0x50] sm:$0xff]  ;;  %v17766_v36 = vld [vmem:[%s23399_s0 + $0x60] sm:$0xff]  ;;  %v17780_v38 = vld [vmem:[%s23399_s0 + $0x68] sm:$0xff] }
   0xe   :  { %16261 = vmatprep.mubr.msk.f32.mxu0 %vm163_vm1, %v104_v15  ;;  %16345 = vmatprep.mubr.msk.f32.mxu1 %vm163_vm1, %v160_v16  ;;  %v116_v39 = vld [vmem:[%s23399_s0 + $0xd9] sm:$0xff]  ;;  %v117_v41 = vld [vmem:[%s23399_s0 + $0xe1] sm:$0xff]  ;;  %v118_v43 = vld [vmem:[%s23399_s0 + $0xf1] sm:$0xff] }
   0xf   :  { %v17788_v40 = vld [vmem:[%s23399_s0 + $0x78] sm:$0xff]  ;;  %v17802_v42 = vld [vmem:[%s23399_s0 + $0x80] sm:$0xff]  ;;  %v17810_v44 = vld [vmem:[%s23399_s0 + $0x90] sm:$0xff] }
  0x10   :  { %v2099_v45 = vld [vmem:[%s23400_s1 + $0xc] sm:$0xf]  ;;  %v17822_v46 = vld [vmem:[%s23400_s1 + $0x10] sm:$0xf]  ;;  %v119_v47 = vld [vmem:[%s23399_s0 + $0xf9] sm:$0xff] }
  0x11   :  { %16262 = vmatmul.mubr.msk.f32.gmra.mxu0 %vm163_vm1, %v105_v17  ;;  %16346 = vmatmul.mubr.msk.f32.gmra.mxu1 %vm163_vm1, %v161_v18  ;;  %v17833_v48 = vld [vmem:[%s23399_s0 + $0x98] sm:$0xff]  ;;  %v120_v49 = vld [vmem:[%s23399_s0 + $0x109] sm:$0xff]  ;;  %v122_v53 = vld [vmem:[%s23399_s0 + $0x121] sm:$0xff] }
  0x12   :  { %16264 = vmatprep.mubr.msk.f32.mxu0 %vm163_vm1, %v106_v19  ;;  %16350 = vmatprep.mubr.msk.f32.mxu1 %vm163_vm1, %v33_v20  ;;  %v17841_v50 = vld [vmem:[%s23399_s0 + $0xa8] sm:$0xff]  ;;  %v121_v51 = vld [vmem:[%s23399_s0 + $0x111] sm:$0xff]  ;;  %v17866_v54 = vld [vmem:[%s23399_s0 + $0xc0] sm:$0xff] }
  0x13   :  { %16544 = vmatprep.subr.msk.mxu1 %vm356_vm0, %v2099_v45  ;;  %16642 = vmatprep.subr.msk.mxu0 %vm356_vm0, %v17822_v46  ;;  %v17858_v52 = vld [vmem:[%s23399_s0 + $0xb0] sm:$0xff]  ;;  %v17880_v56 = vld [vmem:[%s23399_s0 + $0xc8] sm:$0xff]  ;;  %v124_v57 = vld [vmem:[%s23399_s0 + $0x139] sm:$0xff] }
  0x14   :  { %v123_v55 = vld [vmem:[%s23399_s0 + $0x129] sm:$0xff]  ;;  %v17888_v58 = vld [vmem:[%s23399_s0 + $0xd8] sm:$0xff]  ;;  %v125_v59 = vld [vmem:[%s23399_s0 + $0x141] sm:$0xff] }
  0x15   :  { %16265 = vmatmul.mubr.msk.f32.gmra.mxu0 %vm163_vm1, %v107_v21  ;;  %16351 = vmatmul.mubr.msk.f32.vlgmr.msra.gmra.mxu1 %vm163_vm1, %v34_v22  ;;  %v17902_v60 = vld [vmem:[%s23399_s0 + $0xe0] sm:$0xff]  ;;  %v126_v61 = vld [vmem:[%s23399_s0 + $0x151] sm:$0xff] }
  0x16   :  { %16267 = vmatprep.mubr.msk.f32.mxu0 %vm163_vm1, %v108_v23  ;;  %16353 = vmatprep.mubr.msk.f32.mxu1 %vm163_vm1, %v17701_v24  ;;  %v17910_v62 = vld [vmem:[%s23399_s0 + $0xf0] sm:$0xff] }
  0x17   :  { %16545 = vmatpush3.msk.msra.mxu1 %vm356_vm0, %v2099_v45 }
  0x19   :  { %16268 = vmatmul.mubr.msk.f32.gmra.mxu0 %vm163_vm1, %v109_v25  ;;  %16354 = vmatmul.mubr.msk.f32.gmra.mxu1 %vm163_vm1, %v17714_v26 }
  0x1a   :  { %16270 = vmatprep.mubr.msk.f32.mxu0 %vm163_vm1, %v110_v27  ;;  %16356 = vmatprep.mubr.msk.f32.mxu1 %vm163_vm1, %v17722_v28 }
  0x1d   :  { %16271 = vmatmul.mubr.msk.f32.gmra.mxu0 %vm163_vm1, %v111_v29  ;;  %16357 = vmatmul.mubr.msk.f32.gmra.mxu1 %vm163_vm1, %v17736_v30 }
  0x1e   :  { %16273 = vmatprep.mubr.msk.f32.mxu0 %vm163_vm1, %v112_v31  ;;  %16359 = vmatprep.mubr.msk.f32.mxu1 %vm163_vm1, %v17744_v32 }
  0x21   :  { %16274 = vmatmul.mubr.msk.f32.gmra.mxu0 %vm163_vm1, %v113_v33  ;;  %16360 = vmatmul.mubr.msk.f32.gmra.mxu1 %vm163_vm1, %v17758_v34 }
  0x22   :  { %16276 = vmatprep.mubr.msk.f32.mxu0 %vm163_vm1, %v114_v35  ;;  %16362 = vmatprep.mubr.msk.f32.mxu1 %vm163_vm1, %v17766_v36 }
  0x25   :  { %16277 = vmatmul.mubr.msk.f32.gmra.mxu0 %vm163_vm1, %v115_v37  ;;  %16363 = vmatmul.mubr.msk.f32.gmra.mxu1 %vm163_vm1, %v17780_v38 }
  0x26   :  { %16279 = vmatprep.mubr.msk.f32.mxu0 %vm163_vm1, %v116_v39  ;;  %16365 = vmatprep.mubr.msk.f32.mxu1 %vm163_vm1, %v17788_v40 }
  0x29   :  { %16280 = vmatmul.mubr.msk.f32.gmra.mxu0 %vm163_vm1, %v117_v41  ;;  %16366 = vmatmul.mubr.msk.f32.gmra.mxu1 %vm163_vm1, %v17802_v42 }
  0x2a   :  { %16282 = vmatprep.mubr.msk.f32.mxu0 %vm163_vm1, %v118_v43  ;;  %16368 = vmatprep.mubr.msk.f32.mxu1 %vm163_vm1, %v17810_v44 }
  0x2d   :  { %16283 = vmatmul.mubr.msk.f32.gmra.mxu0 %vm163_vm1, %v119_v47  ;;  %16369 = vmatmul.mubr.msk.f32.gmra.mxu1 %vm163_vm1, %v17833_v48 }
  0x2e   :  { %16285 = vmatprep.mubr.msk.f32.mxu0 %vm163_vm1, %v120_v49  ;;  %16371 = vmatprep.mubr.msk.f32.mxu1 %vm163_vm1, %v17841_v50 }
  0x31   :  { %16286 = vmatmul.mubr.msk.f32.gmra.mxu0 %vm163_vm1, %v121_v51  ;;  %16372 = vmatmul.mubr.msk.f32.gmra.mxu1 %vm163_vm1, %v17858_v52 }
  0x32   :  { %16288 = vmatprep.mubr.msk.f32.mxu0 %vm163_vm1, %v122_v53  ;;  %16374 = vmatprep.mubr.msk.f32.mxu1 %vm163_vm1, %v17866_v54 }
  0x35   :  { %16289 = vmatmul.mubr.msk.f32.gmra.mxu0 %vm163_vm1, %v123_v55  ;;  %16375 = vmatmul.mubr.msk.f32.gmra.mxu1 %vm163_vm1, %v17880_v56 }
  0x36   :  { %16291 = vmatprep.mubr.msk.f32.mxu0 %vm163_vm1, %v124_v57  ;;  %16377 = vmatprep.mubr.msk.f32.mxu1 %vm163_vm1, %v17888_v58 }
  0x39   :  { %16292 = vmatmul.mubr.msk.f32.gmra.mxu0 %vm163_vm1, %v125_v59  ;;  %16378 = vmatmul.mubr.msk.f32.gmra.mxu1 %vm163_vm1, %v17902_v60 }
  0x3a   :  { %14 = vsyncpa [#allocation4], 0  ;;  %16294 = vmatprep.mubr.msk.f32.mxu0 %vm163_vm1, %v126_v61  ;;  %16380 = vmatprep.mubr.msk.f32.mxu1 %vm163_vm1, %v17910_v62  ;;  %v127_v63 = vld [vmem:[%s23399_s0 + $0x159] sm:$0xff]  ;;  %v128_v1 = vld [vmem:[%s23399_s0 + $0x169] sm:$0xff]  ;;  %vm8985_vm2 = vcmask 64512   ;;  %vm8987_vm3 = vcmask 58368  }
  0x3b   :  { %v17924_v0 = vld [vmem:[%s23399_s0 + $0xf8] sm:$0xff]  ;;  %v17932_v2 = vld [vmem:[%s23399_s0 + $0x108] sm:$0xff]  ;;  %v17946_v4 = vld [vmem:[%s23399_s0 + $0x110] sm:$0xff]  ;;  %vm9667_vm4 = vcmask 1041409   ;;  %vm9669_vm5 = vcmask 1042434   ;;  %vm9671_vm6 = vcmask 1043459  }
  0x3c   :  { %v129_v3 = vld [vmem:[%s23399_s0 + $0x171] sm:$0xff]  ;;  %v17954_v6 = vld [vmem:[%s23399_s0 + $0x120] sm:$0xff]  ;;  %v17968_v8 = vld [vmem:[%s23399_s0 + $0x128] sm:$0xff]  ;;  %vm9673_vm7 = vcmask 1044484   ;;  %vm9675_vm8 = vcmask 1045509   ;;  %vm9677_vm9 = vcmask 1046534  }
  0x3d   :  { %16295 = vmatmul.mubr.msk.f32.gmra.mxu0 %vm163_vm1, %v127_v63  ;;  %16381 = vmatmul.mubr.msk.f32.gmra.mxu1 %vm163_vm1, %v17924_v0  ;;  %v130_v5 = vld [vmem:[%s23399_s0 + $0x1b1] sm:$0xff]  ;;  %v131_v7 = vld [vmem:[%s23399_s0 + $0x1b9] sm:$0xff]  ;;  %v132_v9 = vld [vmem:[%s23399_s0 + $0x1c9] sm:$0xff]  ;;  %vm9679_vm10 = vcmask 1047559   ;;  %vm17548_vm11 = vmmov 0   ;;  %vm12516_vm12 = vcmask 130048  }
  0x3e   :  { %16297 = vmatprep.mubr.msk.f32.mxu0 %vm163_vm1, %v128_v1  ;;  %16383 = vmatprep.mubr.msk.f32.mxu1 %vm163_vm1, %v17932_v2  ;;  %v17976_v10 = vld [vmem:[%s23399_s0 + $0x138] sm:$0xff]  ;;  %v17990_v12 = vld [vmem:[%s23399_s0 + $0x140] sm:$0xff]  ;;  %v17998_v14 = vld [vmem:[%s23399_s0 + $0x150] sm:$0xff]  ;;  %s17549_s13 = smov [#allocation3]   ;;  %vm13978_vm13 = vcmask 17408  }
  0x3f   :  { %v133_v11 = vld [vmem:[%s23399_s0 + $0x1d1] sm:$0xff]  ;;  %v134_v13 = vld [vmem:[%s23399_s0 + $0x1e1] sm:$0xff]  ;;  %v135_v15 = vld [vmem:[%s23399_s0 + $0x1e9] sm:$0xff]  ;;  %s13986_s14 = sshll.u32 %s17549_s13, 4  ;;  %s13987_s14 = int_to_ptr.vmem [resolvable:$true] %s13986_s14 }
  0x40   :  { %v18012_v16 = vld [vmem:[%s23399_s0 + $0x158] sm:$0xff]  ;;  %v18020_v18 = vld [vmem:[%s23399_s0 + $0x168] sm:$0xff]  ;;  %v18034_v20 = vld [vmem:[%s23399_s0 + $0x170] sm:$0xff]  ;;  %s17524_s15 = scalar_lea.vmem %s13987_s14, 32  ;;  %p17529_p1 = scmp.lt.s32.totalorder %s13987_s14, %s13987_s14 }
  0x41   :  { %16298 = vmatmul.mubr.msk.f32.gmra.mxu0 %vm163_vm1, %v129_v3  ;;  %16384 = vmatmul.mubr.msk.f32.gmra.mxu1 %vm163_vm1, %v17946_v4  ;;  %v136_v17 = vld [vmem:[%s23399_s0 + $0x1f9] sm:$0xff]  ;;  %v137_v19 = vld [vmem:[%s23399_s0 + $0x201] sm:$0xff]  ;;  %v138_v21 = vld [vmem:[%s23399_s0 + $0x211] sm:$0xff]  ;;  %p17525_p0 = scmp.ne.s32.totalorder %s13987_s14, %s17524_s15  ;;  %p17530_p2 = scmp.lt.s32.totalorder %s17524_s15, %s17524_s15 }
  0x42   :  { %16300 = vmatprep.mubr.msk.f32.mxu0 %vm163_vm1, %v130_v5  ;;  %16386 = vmatprep.mubr.msk.f32.mxu1 %vm163_vm1, %v17954_v6  ;;  %v65_v22 = vld [vmem:[%s23399_s0 + $0x1b0] sm:$0xff]  ;;  %v139_v23 = vld [vmem:[%s23399_s0 + $0x219] sm:$0xff]  ;;  %v18059_v29 = vld [vmem:[%s23399_s0 + $0x1c8] sm:$0xff] }
  0x43   :  { %v66_v25 = vld [vmem:[%s23399_s0 + $0x1b8] sm:$0xff]  ;;  %v140_v27 = vld [vmem:[%s23399_s0 + $0x229] sm:$0xff]  ;;  %v142_v35 = vld [vmem:[%s23399_s0 + $0x241] sm:$0xff]  ;;  %p17531_p3 = por %p17530_p2, %p17529_p1 }
  0x44   :  { %v141_v31 = vld [vmem:[%s23399_s0 + $0x231] sm:$0xff]  ;;  %v18080_v37 = vld [vmem:[%s23399_s0 + $0x1e0] sm:$0xff]  ;;  %v143_v39 = vld [vmem:[%s23399_s0 + $0x249] sm:$0xff] }
  0x45   :  { %16301 = vmatmul.mubr.msk.f32.gmra.mxu0 %vm163_vm1, %v131_v7  ;;  %16387 = vmatmul.mubr.msk.f32.gmra.mxu1 %vm163_vm1, %v17968_v8  ;;  %v18072_v33 = vld [vmem:[%s23399_s0 + $0x1d0] sm:$0xff]  ;;  %v18094_v41 = vld [vmem:[%s23399_s0 + $0x1e8] sm:$0xff]  ;;  %v144_v43 = vld [vmem:[%s23399_s0 + $0x259] sm:$0xff]  ;;  %p17532_p4 = pnand %p17531_p3, %p17525_p0 }
  0x46   :  { %16303 = vmatprep.mubr.msk.f32.mxu0 %vm163_vm1, %v132_v9  ;;  %16389 = vmatprep.mubr.msk.f32.mxu1 %vm163_vm1, %v17976_v10  ;;  %v18102_v45 = vld [vmem:[%s23399_s0 + $0x1f8] sm:$0xff]  ;;  %v145_v47 = vld [vmem:[%s23399_s0 + $0x261] sm:$0xff]  ;;  %v18124_v53 = vld [vmem:[%s23399_s0 + $0x210] sm:$0xff] }
  0x47   :  { %v18116_v49 = vld [vmem:[%s23399_s0 + $0x200] sm:$0xff]  ;;  %v146_v51 = vld [vmem:[%s23399_s0 + $0x271] sm:$0xff]  ;;  %v148_v59 = vld [vmem:[%s23399_s0 + $0x289] sm:$0xff] }
  0x48   :  { %v147_v55 = vld [vmem:[%s23399_s0 + $0x279] sm:$0xff]  ;;  %v18146_v61 = vld [vmem:[%s23399_s0 + $0x228] sm:$0xff]  ;;  %v149_v63 = vld [vmem:[%s23399_s0 + $0x291] sm:$0xff] }
  0x49   :  { %16304 = vmatmul.mubr.msk.f32.gmra.mxu0 %vm163_vm1, %v133_v11  ;;  %16390 = vmatmul.mubr.msk.f32.gmra.mxu1 %vm163_vm1, %v17990_v12  ;;  %v18138_v57 = vld [vmem:[%s23399_s0 + $0x218] sm:$0xff]  ;;  %v18160_v1 = vld [vmem:[%s23399_s0 + $0x230] sm:$0xff]  ;;  %v150_v3 = vld [vmem:[%s23399_s0 + $0x2a1] sm:$0xff] }
  0x4a   :  { %16306 = vmatprep.mubr.msk.f32.mxu0 %vm163_vm1, %v134_v13  ;;  %16392 = vmatprep.mubr.msk.f32.mxu1 %vm163_vm1, %v17998_v14  ;;  %v18168_v5 = vld [vmem:[%s23399_s0 + $0x240] sm:$0xff]  ;;  %v151_v7 = vld [vmem:[%s23399_s0 + $0x2a9] sm:$0xff]  ;;  %v18190_v13 = vld [vmem:[%s23399_s0 + $0x258] sm:$0xff] }
  0x4b   :  { %v18182_v9 = vld [vmem:[%s23399_s0 + $0x248] sm:$0xff]  ;;  %v152_v11 = vld [vmem:[%s23399_s0 + $0x2b9] sm:$0xff] }
  0x4d   :  { %16307 = vmatmul.mubr.msk.f32.gmra.mxu0 %vm163_vm1, %v135_v15  ;;  %16393 = vmatmul.mubr.msk.f32.gmra.mxu1 %vm163_vm1, %v18012_v16  ;;  %v153_v15 = vld [vmem:[%s23399_s0 + $0x2c1] sm:$0xff] }
  0x4e   :  { %16309 = vmatprep.mubr.msk.f32.mxu0 %vm163_vm1, %v136_v17  ;;  %16395 = vmatprep.mubr.msk.f32.mxu1 %vm163_vm1, %v18020_v18  ;;  %v18204_v17 = vld [vmem:[%s23399_s0 + $0x260] sm:$0xff] }
  0x51   :  { %16310 = vmatmul.mubr.msk.f32.gmra.mxu0 %vm163_vm1, %v137_v19  ;;  %16396 = vmatmul.mubr.msk.f32.gmra.mxu1 %vm163_vm1, %v18034_v20  ;;  %v18209_v19 = vld [vmem:[%s23399_s0 + $0x270] sm:$0xff] }
  0x52   :  { %16312 = vmatprep.mubr.msk.f32.mxu0 %vm163_vm1, %v138_v21  ;;  %16398 = vmatprep.mubr.msk.f32.mxu1 %vm163_vm1, %v65_v22  ;;  %v1325_v21 = vld [vmem:[%s23399_s0 + $0x2] sm:$0xff]  ;;  %v18223_v22 = vld [vmem:[%s23399_s0 + $0x278] sm:$0xff] }
  0x55   :  { %16313 = vmatmul.mubr.msk.f32.gmra.mxu0 %vm163_vm1, %v139_v23  ;;  %16399 = vmatmul.mubr.msk.f32.gmra.mxu1 %vm163_vm1, %v66_v25  ;;  %v1326_v23 = vld [vmem:[%s23399_s0 + $0xa] sm:$0xff] }
  0x56   :  { %16315 = vmatprep.mubr.msk.f32.mxu0 %vm163_vm1, %v140_v27  ;;  %16401 = vmatprep.mubr.msk.f32.mxu1 %vm163_vm1, %v18059_v29  ;;  %v18231_v25 = vld [vmem:[%s23399_s0 + $0x288] sm:$0xff]  ;;  %v18236_v27 = vld [vmem:[%s23399_s0 + $0x1a] sm:$0xff] }
  0x57   :  { %23432 = vst [vmem:[#allocation6_spill] sm:$0xff] %v18236_v27 }
  0x59   :  { %16316 = vmatmul.mubr.msk.f32.gmra.mxu0 %vm163_vm1, %v141_v31  ;;  %16402 = vmatmul.mubr.msk.f32.gmra.mxu1 %vm163_vm1, %v18072_v33  ;;  %v18241_v31 = vld [vmem:[%s23400_s1 + $0x14] sm:$0xf] }
  0x5a   :  { %16318 = vmatprep.mubr.msk.f32.mxu0 %vm163_vm1, %v142_v35  ;;  %16404 = vmatprep.mubr.msk.f32.mxu1 %vm163_vm1, %v18080_v37  ;;  %v18253_v35 = vld [vmem:[%s23399_s0 + $0x290] sm:$0xff] }
  0x5b   :  { %16740 = vmatprep.subr.msk.mxu1 %vm356_vm0, %v18241_v31 }
  0x5d   :  { %16319 = vmatmul.mubr.msk.f32.gmra.mxu0 %vm163_vm1, %v143_v39  ;;  %16405 = vmatmul.mubr.msk.f32.gmra.mxu1 %vm163_vm1, %v18094_v41  ;;  %v18258_v39 = vld [vmem:[%s23399_s0 + $0x22] sm:$0xff] }
  0x5e   :  { %16321 = vmatprep.mubr.msk.f32.mxu0 %vm163_vm1, %v144_v43  ;;  %16407 = vmatprep.mubr.msk.f32.mxu1 %vm163_vm1, %v18102_v45  ;;  %23433 = vst [vmem:[#allocation7_spill] sm:$0xff] %v18258_v39  ;;  %v18263_v43 = vld [vmem:[%s23400_s1 + $0x18] sm:$0xf] }
  0x61   :  { %16322 = vmatmul.mubr.msk.f32.gmra.mxu0 %vm163_vm1, %v145_v47  ;;  %16408 = vmatmul.mubr.msk.f32.gmra.mxu1 %vm163_vm1, %v18116_v49  ;;  %v18275_v47 = vld [vmem:[%s23399_s0 + $0x32] sm:$0xff] }
  0x62   :  { %16324 = vmatprep.mubr.msk.f32.mxu0 %vm163_vm1, %v146_v51  ;;  %16410 = vmatprep.mubr.msk.f32.mxu1 %vm163_vm1, %v18124_v53  ;;  %23434 = vst [vmem:[#allocation8_spill] sm:$0xff] %v18275_v47  ;;  %v18292_v51 = vld [vmem:[%s23399_s0 + $0x2a8] sm:$0xff] }
  0x65   :  { %16325 = vmatmul.mubr.msk.f32.gmra.mxu0 %vm163_vm1, %v147_v55  ;;  %16411 = vmatmul.mubr.msk.f32.gmra.mxu1 %vm163_vm1, %v18138_v57  ;;  %v18297_v55 = vld [vmem:[%s23399_s0 + $0x3a] sm:$0xff] }
  0x66   :  { %16327 = vmatprep.mubr.msk.f32.mxu0 %vm163_vm1, %v148_v59  ;;  %16413 = vmatprep.mubr.msk.f32.mxu1 %vm163_vm1, %v18146_v61  ;;  %23435 = vst [vmem:[#allocation9_spill] sm:$0xff] %v18297_v55  ;;  %v18302_v59 = vld [vmem:[%s23399_s0 + $0x2b8] sm:$0xff] }
  0x69   :  { %16328 = vmatmul.mubr.msk.f32.gmra.mxu0 %vm163_vm1, %v149_v63  ;;  %16414 = vmatmul.mubr.msk.f32.gmra.mxu1 %vm163_vm1, %v18160_v1  ;;  %v18307_v63 = vld [vmem:[%s23399_s0 + $0x4a] sm:$0xff] }
  0x6a   :  { %16330 = vmatprep.mubr.msk.f32.mxu0 %vm163_vm1, %v150_v3  ;;  %16416 = vmatprep.mubr.msk.f32.mxu1 %vm163_vm1, %v18168_v5  ;;  %23436 = vst [vmem:[#allocation10_spill] sm:$0xff] %v18307_v63  ;;  %v18320_v3 = vld [vmem:[%s23399_s0 + $0x2c0] sm:$0xff] }
  0x6d   :  { %16331 = vmatmul.mubr.msk.f32.gmra.mxu0 %vm163_vm1, %v151_v7  ;;  %16417 = vmatmul.mubr.msk.f32.gmra.mxu1 %vm163_vm1, %v18182_v9  ;;  %v18325_v7 = vld [vmem:[%s23399_s0 + $0x52] sm:$0xff] }
  0x6e   :  { %16333 = vmatprep.mubr.msk.f32.mxu0 %vm163_vm1, %v152_v11  ;;  %16419 = vmatprep.mubr.msk.f32.mxu1 %vm163_vm1, %v18190_v13  ;;  %23437 = vst [vmem:[#allocation11_spill] sm:$0xff] %v18325_v7  ;;  %v18330_v11 = vld [vmem:[%s23399_s0 + $0x2d0] sm:$0xff] }
  0x71   :  { %16334 = vmatmul.mubr.msk.f32.gmra.mxu0 %vm163_vm1, %v153_v15  ;;  %16420 = vmatmul.mubr.msk.f32.gmra.mxu1 %vm163_vm1, %v18204_v17  ;;  %v18335_v15 = vld [vmem:[%s23399_s0 + $0x62] sm:$0xff] }
  0x72   :  { %16422 = vmatprep.mubr.msk.f32.mxu1 %vm163_vm1, %v18209_v19  ;;  %16448 = vmatprep.mubr.msk.f32.mxu0 %vm163_vm1, %v1325_v21  ;;  %23438 = vst [vmem:[#allocation12_spill] sm:$0xff] %v18335_v15  ;;  %v18348_v21 = vld [vmem:[%s23399_s0 + $0x2d8] sm:$0xff] }
  0x75   :  { %16423 = vmatmul.mubr.msk.f32.gmra.mxu1 %vm163_vm1, %v18223_v22  ;;  %16449 = vmatmul.mubr.msk.f32.vlgmr.msra.gmra.mxu0 %vm163_vm1, %v1326_v23  ;;  %v18353_v23 = vld [vmem:[%s23399_s0 + $0x6a] sm:$0xff] }
  0x76   :  { %16643 = vmatpush3.msk.msra.mxu0 %vm356_vm0, %v17822_v46  ;;  %16425 = vmatprep.mubr.msk.f32.mxu1 %vm163_vm1, %v18231_v25  ;;  %v18270_v46 = vld [vmem:[%s23399_s0 + $0x2a0] sm:$0xff]  ;;  %23439 = vst [vmem:[#allocation13_spill] sm:$0xff] %v18353_v23 }
  0x77   :  { %16451 = vmatprep.mubr.msk.f32.mxu0 %vm163_vm1, %v18236_v27  ;;  %16838 = vmatprep.subr.msk.mxu0 %vm356_vm0, %v18263_v43  ;;  %v18419_v27 = vld [vmem:[%s23399_s0 + $0xaa] sm:$0xff] }
  0x78   :  { %23446 = vst [vmem:[#allocation20_spill] sm:$0xff] %v18419_v27 }
  0x79   :  { %16426 = vmatmul.mubr.msk.f32.gmra.mxu1 %vm163_vm1, %v18253_v35  ;;  %16452 = vmatmul.mubr.msk.f32.gmra.mxu0 %vm163_vm1, %v18258_v39  ;;  %v18409_v39 = vld [vmem:[%s23399_s0 + $0x9a] sm:$0xff] }
  0x7a   :  { %16428 = vmatprep.mubr.msk.f32.mxu1 %vm163_vm1, %v18270_v46  ;;  %16454 = vmatprep.mubr.msk.f32.mxu0 %vm163_vm1, %v18275_v47  ;;  %v18391_v47 = vld [vmem:[%s23399_s0 + $0x92] sm:$0xff]  ;;  %23444 = vst [vmem:[#allocation18_spill] sm:$0xff] %v18409_v39 }
  0x7b   :  { %23443 = vst [vmem:[#allocation17_spill] sm:$0xff] %v18391_v47 }
  0x7d   :  { %16429 = vmatmul.mubr.msk.f32.gmra.mxu1 %vm163_vm1, %v18292_v51  ;;  %16455 = vmatmul.mubr.msk.f32.gmra.mxu0 %vm163_vm1, %v18297_v55  ;;  %v18381_v55 = vld [vmem:[%s23399_s0 + $0x82] sm:$0xff] }
  0x7e   :  { %16431 = vmatprep.mubr.msk.f32.mxu1 %vm163_vm1, %v18302_v59  ;;  %16457 = vmatprep.mubr.msk.f32.mxu0 %vm163_vm1, %v18307_v63  ;;  %v18363_v63 = vld [vmem:[%s23399_s0 + $0x7a] sm:$0xff]  ;;  %23441 = vst [vmem:[#allocation15_spill] sm:$0xff] %v18381_v55 }
  0x7f   :  { %23440 = vst [vmem:[#allocation14_spill] sm:$0xff] %v18363_v63 }
  0x81   :  { %16432 = vmatmul.mubr.msk.f32.gmra.mxu1 %vm163_vm1, %v18320_v3  ;;  %16458 = vmatmul.mubr.msk.f32.gmra.mxu0 %vm163_vm1, %v18325_v7  ;;  %v18358_v7 = vld [vmem:[%s23399_s0 + $0x2e8] sm:$0xff] }
  0x82   :  { %16434 = vmatprep.mubr.msk.f32.mxu1 %vm163_vm1, %v18330_v11  ;;  %16460 = vmatprep.mubr.msk.f32.mxu0 %vm163_vm1, %v18335_v15  ;;  %v18376_v15 = vld [vmem:[%s23399_s0 + $0x2f0] sm:$0xff] }
  0x85   :  { %16435 = vmatmul.mubr.msk.f32.gmra.mxu1 %vm163_vm1, %v18348_v21  ;;  %16461 = vmatmul.mubr.msk.f32.gmra.mxu0 %vm163_vm1, %v18353_v23  ;;  %v18386_v23 = vld [vmem:[%s23399_s0 + $0x300] sm:$0xff] }
  0x86   :  { %16437 = vmatprep.mubr.msk.f32.mxu1 %vm163_vm1, %v18358_v7  ;;  %16463 = vmatprep.mubr.msk.f32.mxu0 %vm163_vm1, %v18363_v63  ;;  %23442 = vst [vmem:[#allocation16_spill] sm:$0xff] %v18386_v23  ;;  %v18404_v63 = vld [vmem:[%s23399_s0 + $0x308] sm:$0xff] }
  0x89   :  { %16438 = vmatmul.mubr.msk.f32.gmra.mxu1 %vm163_vm1, %v18376_v15  ;;  %16464 = vmatmul.mubr.msk.f32.gmra.mxu0 %vm163_vm1, %v18381_v55  ;;  %v18414_v55 = vld [vmem:[%s23399_s0 + $0x318] sm:$0xff] }
  0x8a   :  { %16440 = vmatprep.mubr.msk.f32.mxu1 %vm163_vm1, %v18386_v23  ;;  %16466 = vmatprep.mubr.msk.f32.mxu0 %vm163_vm1, %v18391_v47  ;;  %23445 = vst [vmem:[#allocation19_spill] sm:$0xff] %v18414_v55  ;;  %v18432_v47 = vld [vmem:[%s23399_s0 + $0x320] sm:$0xff]  ;;  %v18437_v23 = vld [vmem:[%s23399_s0 + $0xb2] sm:$0xff] }
  0x8d   :  { %16441 = vmatmul.mubr.msk.f32.gmra.mxu1 %vm163_vm1, %v18404_v63  ;;  %16467 = vmatmul.mubr.msk.f32.gmra.mxu0 %vm163_vm1, %v18409_v39  ;;  %v18442_v39 = vld [vmem:[%s23399_s0 + $0xc2] sm:$0xff] }
  0x8e   :  { %16443 = vmatprep.mubr.msk.f32.mxu1 %vm163_vm1, %v18414_v55  ;;  %16469 = vmatprep.mubr.msk.f32.mxu0 %vm163_vm1, %v18419_v27  ;;  %23447 = vst [vmem:[#allocation21_spill] sm:$0xff] %v18442_v39  ;;  %v18455_v27 = vld [vmem:[%s23399_s0 + $0xca] sm:$0xff]  ;;  %v18460_v55 = vld [vmem:[%s23399_s0 + $0xda] sm:$0xff] }
  0x91   :  { %16444 = vmatmul.mubr.msk.f32.gmra.mxu1 %vm163_vm1, %v18432_v47  ;;  %16470 = vmatmul.mubr.msk.f32.gmra.mxu0 %vm163_vm1, %v18437_v23 }
  0x92   :  { %16472 = vmatprep.mubr.msk.f32.mxu0 %vm163_vm1, %v18442_v39  ;;  %16546 = vmatprep.mubr.msk.f32.mxu1 %vm163_vm1, %v17701_v24  ;;  %v18473_v24 = vld [vmem:[%s23399_s0 + $0xe2] sm:$0xff]  ;;  %v18478_v39 = vld [vmem:[%s23399_s0 + $0xf2] sm:$0xff] }
  0x95   :  { %16473 = vmatmul.mubr.msk.f32.gmra.mxu0 %vm163_vm1, %v18455_v27  ;;  %16547 = vmatmul.mubr.msk.f32.vlgmr.msra.gmra.mxu1 %vm163_vm1, %v17714_v26  ;;  %v18493_v26 = vld [vmem:[%s23399_s0 + $0xfa] sm:$0xff] }
  0x96   :  { %16475 = vmatprep.mubr.msk.f32.mxu0 %vm163_vm1, %v18460_v55  ;;  %16549 = vmatprep.mubr.msk.f32.mxu1 %vm163_vm1, %v17722_v28  ;;  %v18498_v28 = vld [vmem:[%s23399_s0 + $0x10a] sm:$0xff] }
  0x97   :  { %16741 = vmatpush3.msk.msra.mxu1 %vm356_vm0, %v18241_v31 }
  0x99   :  { %16476 = vmatmul.mubr.msk.f32.gmra.mxu0 %vm163_vm1, %v18473_v24  ;;  %16550 = vmatmul.mubr.msk.f32.gmra.mxu1 %vm163_vm1, %v17736_v30  ;;  %v18511_v30 = vld [vmem:[%s23399_s0 + $0x112] sm:$0xff] }
  0x9a   :  { %16478 = vmatprep.mubr.msk.f32.mxu0 %vm163_vm1, %v18478_v39  ;;  %16552 = vmatprep.mubr.msk.f32.mxu1 %vm163_vm1, %v17744_v32  ;;  %v18516_v32 = vld [vmem:[%s23399_s0 + $0x122] sm:$0xff] }
  0x9d   :  { %16479 = vmatmul.mubr.msk.f32.gmra.mxu0 %vm163_vm1, %v18493_v26  ;;  %16553 = vmatmul.mubr.msk.f32.gmra.mxu1 %vm163_vm1, %v17758_v34  ;;  %v18529_v34 = vld [vmem:[%s23399_s0 + $0x12a] sm:$0xff] }
  0x9e   :  { %16481 = vmatprep.mubr.msk.f32.mxu0 %vm163_vm1, %v18498_v28  ;;  %16555 = vmatprep.mubr.msk.f32.mxu1 %vm163_vm1, %v17766_v36  ;;  %v18534_v36 = vld [vmem:[%s23399_s0 + $0x13a] sm:$0xff] }
  0xa1   :  { %16482 = vmatmul.mubr.msk.f32.gmra.mxu0 %vm163_vm1, %v18511_v30  ;;  %16556 = vmatmul.mubr.msk.f32.gmra.mxu1 %vm163_vm1, %v17780_v38  ;;  %v1352_v38 = vld [vmem:[%s23399_s0 + $0x142] sm:$0xff] }
  0xa2   :  { %16484 = vmatprep.mubr.msk.f32.mxu0 %vm163_vm1, %v18516_v32  ;;  %16558 = vmatprep.mubr.msk.f32.mxu1 %vm163_vm1, %v17788_v40  ;;  %v1353_v40 = vld [vmem:[%s23399_s0 + $0x152] sm:$0xff] }
  0xa5   :  { %16485 = vmatmul.mubr.msk.f32.gmra.mxu0 %vm163_vm1, %v18529_v34  ;;  %16559 = vmatmul.mubr.msk.f32.gmra.mxu1 %vm163_vm1, %v17802_v42  ;;  %v1354_v42 = vld [vmem:[%s23399_s0 + $0x15a] sm:$0xff] }
  0xa6   :  { %16487 = vmatprep.mubr.msk.f32.mxu0 %vm163_vm1, %v18534_v36  ;;  %16561 = vmatprep.mubr.msk.f32.mxu1 %vm163_vm1, %v17810_v44  ;;  %v1355_v44 = vld [vmem:[%s23399_s0 + $0x16a] sm:$0xff] }
  0xa9   :  { %16488 = vmatmul.mubr.msk.f32.gmra.mxu0 %vm163_vm1, %v1352_v38  ;;  %16562 = vmatmul.mubr.msk.f32.gmra.mxu1 %vm163_vm1, %v17833_v48  ;;  %v1356_v48 = vld [vmem:[%s23399_s0 + $0x172] sm:$0xff] }
  0xaa   :  { %16490 = vmatprep.mubr.msk.f32.mxu0 %vm163_vm1, %v1353_v40  ;;  %16564 = vmatprep.mubr.msk.f32.mxu1 %vm163_vm1, %v17841_v50  ;;  %v1357_v50 = vld [vmem:[%s23399_s0 + $0x1b2] sm:$0xff] }
  0xad   :  { %16491 = vmatmul.mubr.msk.f32.gmra.mxu0 %vm163_vm1, %v1354_v42  ;;  %16565 = vmatmul.mubr.msk.f32.gmra.mxu1 %vm163_vm1, %v17858_v52  ;;  %v1358_v52 = vld [vmem:[%s23399_s0 + $0x1ba] sm:$0xff]  ;;  %v1369_v42 = vld [vmem:[%s23399_s0 + $0x242] sm:$0xff] }
  0xae   :  { %16493 = vmatprep.mubr.msk.f32.mxu0 %vm163_vm1, %v1355_v44  ;;  %16567 = vmatprep.mubr.msk.f32.mxu1 %vm163_vm1, %v17866_v54  ;;  %v1359_v54 = vld [vmem:[%s23399_s0 + $0x1ca] sm:$0xff] }
  0xb1   :  { %16494 = vmatmul.mubr.msk.f32.gmra.mxu0 %vm163_vm1, %v1356_v48  ;;  %16568 = vmatmul.mubr.msk.f32.gmra.mxu1 %vm163_vm1, %v17880_v56  ;;  %v1360_v56 = vld [vmem:[%s23399_s0 + $0x1d2] sm:$0xff] }
  0xb2   :  { %16496 = vmatprep.mubr.msk.f32.mxu0 %vm163_vm1, %v1357_v50  ;;  %16570 = vmatprep.mubr.msk.f32.mxu1 %vm163_vm1, %v17888_v58  ;;  %v1361_v58 = vld [vmem:[%s23399_s0 + $0x1e2] sm:$0xff] }
  0xb5   :  { %16497 = vmatmul.mubr.msk.f32.gmra.mxu0 %vm163_vm1, %v1358_v52  ;;  %16571 = vmatmul.mubr.msk.f32.gmra.mxu1 %vm163_vm1, %v17902_v60  ;;  %v1362_v60 = vld [vmem:[%s23399_s0 + $0x1ea] sm:$0xff]  ;;  %v1371_v52 = vld [vmem:[%s23399_s0 + $0x25a] sm:$0xff] }
  0xb6   :  { %16499 = vmatprep.mubr.msk.f32.mxu0 %vm163_vm1, %v1359_v54  ;;  %16573 = vmatprep.mubr.msk.f32.mxu1 %vm163_vm1, %v17910_v62  ;;  %v1363_v62 = vld [vmem:[%s23399_s0 + $0x1fa] sm:$0xff] }
  0xb9   :  { %16500 = vmatmul.mubr.msk.f32.gmra.mxu0 %vm163_vm1, %v1360_v56  ;;  %16574 = vmatmul.mubr.msk.f32.gmra.mxu1 %vm163_vm1, %v17924_v0  ;;  %v1364_v0 = vld [vmem:[%s23399_s0 + $0x202] sm:$0xff] }
  0xba   :  { %16502 = vmatprep.mubr.msk.f32.mxu0 %vm163_vm1, %v1361_v58  ;;  %16576 = vmatprep.mubr.msk.f32.mxu1 %vm163_vm1, %v17932_v2  ;;  %v1365_v2 = vld [vmem:[%s23399_s0 + $0x212] sm:$0xff]  ;;  %v14220_v58 = vld [vmem:[%s23399_s0 + $0x188] sm:$0xff] }
  0xbd   :  { %16503 = vmatmul.mubr.msk.f32.gmra.mxu0 %vm163_vm1, %v1362_v60  ;;  %16577 = vmatmul.mubr.msk.f32.gmra.mxu1 %vm163_vm1, %v17946_v4  ;;  %v1366_v4 = vld [vmem:[%s23399_s0 + $0x21a] sm:$0xff] }
  0xbe   :  { %16505 = vmatprep.mubr.msk.f32.mxu0 %vm163_vm1, %v1363_v62  ;;  %16579 = vmatprep.mubr.msk.f32.mxu1 %vm163_vm1, %v17954_v6  ;;  %v1367_v6 = vld [vmem:[%s23399_s0 + $0x22a] sm:$0xff] }
  0xc1   :  { %16506 = vmatmul.mubr.msk.f32.gmra.mxu0 %vm163_vm1, %v1364_v0  ;;  %16580 = vmatmul.mubr.msk.f32.gmra.mxu1 %vm163_vm1, %v17968_v8  ;;  %v1368_v8 = vld [vmem:[%s23399_s0 + $0x232] sm:$0xff] }
  0xc2   :  { %16508 = vmatprep.mubr.msk.f32.mxu0 %vm163_vm1, %v1365_v2  ;;  %16582 = vmatprep.mubr.msk.f32.mxu1 %vm163_vm1, %v17976_v10  ;;  %v1373_v0 = vld [vmem:[%s23399_s0 + $0x272] sm:$0xff] }
  0xc5   :  { %v16254_v31 = vpop.f32.mrf.mxu0  ;;  %v18634_v38 = vpop.f32.mrf.mxu1  ;;  %16509 = vmatmul.mubr.msk.f32.gmra.mxu0 %vm163_vm1, %v1366_v4  ;;  %16583 = vmatmul.mubr.msk.f32.gmra.mxu1 %vm163_vm1, %v17990_v12  ;;  %v1370_v12 = vld [vmem:[%s23399_s0 + $0x24a] sm:$0xff]  ;;  %v1374_v4 = vld [vmem:[%s23399_s0 + $0x27a] sm:$0xff] }
  0xc6   :  { %23448 = vst [vmem:[#allocation22_spill] sm:$0xff] %v18634_v38  ;;  %16511 = vmatprep.mubr.msk.f32.mxu0 %vm163_vm1, %v1367_v6  ;;  %16585 = vmatprep.mubr.msk.f32.mxu1 %vm163_vm1, %v17998_v14  ;;  %v23464_v38 = vld [vmem:[#allocation10_spill] sm:$0xff] }
  0xc7   :  { %v426_v10 = vpop.f32.mrf.mxu0  ;;  %v18645_v40 = vpop.f32.mrf.mxu1 }
  0xc8   :  { %23449 = vst [vmem:[#allocation23_spill] sm:$0xff] %v18645_v40  ;;  %v14337_v40 = vld [vmem:[%s23399_s0 + $0xf9] sm:$0xff] }
  0xc9   :  { %v16257_v44 = vpop.f32.mrf.mxu0  ;;  %v18650_v48 = vpop.f32.mrf.mxu1  ;;  %16512 = vmatmul.mubr.msk.f32.gmra.mxu0 %vm163_vm1, %v1368_v8  ;;  %16586 = vmatmul.mubr.msk.f32.gmra.mxu1 %vm163_vm1, %v18012_v16  ;;  %v14219_v16 = vld [vmem:[%s23399_s0 + $0x180] sm:$0xff] }
  0xca   :  { %23450 = vst [vmem:[#allocation24_spill] sm:$0xff] %v18650_v48  ;;  %16514 = vmatprep.mubr.msk.f32.mxu0 %vm163_vm1, %v1369_v42  ;;  %16588 = vmatprep.mubr.msk.f32.mxu1 %vm163_vm1, %v18020_v18  ;;  %v1372_v18 = vld [vmem:[%s23399_s0 + $0x262] sm:$0xff]  ;;  %v1375_v42 = vld [vmem:[%s23399_s0 + $0x28a] sm:$0xff] }
  0xcb   :  { %v436_v14 = vpop.f32.mrf.mxu0  ;;  %v18661_v50 = vpop.f32.mrf.mxu1 }
  0xcc   :  { %23451 = vst [vmem:[#allocation25_spill] sm:$0xff] %v18661_v50  ;;  %v14335_v50 = vld [vmem:[%s23399_s0 + $0xe1] sm:$0xff] }
  0xcd   :  { %v16260_v54 = vpop.f32.mrf.mxu0  ;;  %v18669_v56 = vpop.f32.mrf.mxu1  ;;  %16515 = vmatmul.mubr.msk.f32.gmra.mxu0 %vm163_vm1, %v1370_v12  ;;  %16589 = vmatmul.mubr.msk.f32.gmra.mxu1 %vm163_vm1, %v18034_v20 }
  0xce   :  { %23452 = vst [vmem:[#allocation26_spill] sm:$0xff] %v18669_v56  ;;  %16517 = vmatprep.mubr.msk.f32.mxu0 %vm163_vm1, %v1371_v52  ;;  %16591 = vmatprep.mubr.msk.f32.mxu1 %vm163_vm1, %v14219_v16 }
  0xcf   :  { %v446_v60 = vpop.f32.mrf.mxu0  ;;  %v18682_v62 = vpop.f32.mrf.mxu1 }
  0xd0   :  { %23453 = vst [vmem:[#allocation27_spill] sm:$0xff] %v18682_v62  ;;  %v14251_v62 = vld [vmem:[%s23399_s0 + $0x330] sm:$0xff] }
  0xd1   :  { %v16263_v20 = vpop.f32.mrf.mxu0  ;;  %v18687_v2 = vpop.f32.mrf.mxu1  ;;  %16518 = vmatmul.mubr.msk.f32.gmra.mxu0 %vm163_vm1, %v1372_v18  ;;  %16592 = vmatmul.mubr.msk.f32.gmra.mxu1 %vm163_vm1, %v14220_v58 }
  0xd2   :  { %23454 = vst [vmem:[#allocation28_spill] sm:$0xff] %v18687_v2  ;;  %16520 = vmatprep.mubr.msk.f32.mxu0 %vm163_vm1, %v1373_v0  ;;  %16594 = vmatprep.mubr.msk.f32.mxu1 %vm163_vm1, %v18059_v29  ;;  %v1376_v29 = vld [vmem:[%s23399_s0 + $0x292] sm:$0xff]  ;;  %v1377_v0 = vld [vmem:[%s23399_s0 + $0x2a2] sm:$0xff] }
  0xd3   :  { %v456_v6 = vpop.f32.mrf.mxu0  ;;  %v18697_v8 = vpop.f32.mrf.mxu1  ;;  %v14330_v2 = vld [vmem:[%s23399_s0 + $0xa9] sm:$0xff] }
  0xd4   :  { %23455 = vst [vmem:[#allocation29_spill] sm:$0xff] %v18697_v8  ;;  %v14324_v8 = vld [vmem:[%s23399_s0 + $0x61] sm:$0xff] }
  0xd5   :  { %v16266_v12 = vpop.f32.mrf.mxu0  ;;  %v16352_v52 = vpop.f32.mrf.mxu1  ;;  %16521 = vmatmul.mubr.msk.f32.gmra.mxu0 %vm163_vm1, %v1374_v4  ;;  %16595 = vmatmul.mubr.msk.f32.gmra.mxu1 %vm163_vm1, %v18072_v33 }
  0xd6   :  { %v18705_v16 = vadd.f32 %v16352_v52, %v16254_v31  ;;  %16523 = vmatprep.mubr.msk.f32.mxu0 %vm163_vm1, %v1375_v42  ;;  %16597 = vmatprep.mubr.msk.f32.mxu1 %vm163_vm1, %v18080_v37  ;;  %v1378_v42 = vld [vmem:[%s23399_s0 + $0x2aa] sm:$0xff] }
  0xd7   :  { %v466_v18 = vpop.f32.mrf.mxu0  ;;  %v1006_v58 = vpop.f32.mrf.mxu1 }
  0xd8   :  { %v18716_v4 = vadd.f32 %v1006_v58, %v426_v10 }
  0xd9   :  { %v16269_v33 = vpop.f32.mrf.mxu0  ;;  %v16355_v31 = vpop.f32.mrf.mxu1  ;;  %16524 = vmatmul.mubr.msk.f32.gmra.mxu0 %vm163_vm1, %v1376_v29  ;;  %16598 = vmatmul.mubr.msk.f32.gmra.mxu1 %vm163_vm1, %v18094_v41  ;;  %v1379_v29 = vld [vmem:[%s23399_s0 + $0x2ba] sm:$0xff] }
  0xda   :  { %v18721_v37 = vadd.f32 %v16355_v31, %v16257_v44  ;;  %16526 = vmatprep.mubr.msk.f32.mxu0 %vm163_vm1, %v1377_v0  ;;  %16600 = vmatprep.mubr.msk.f32.mxu1 %vm163_vm1, %v18102_v45  ;;  %v1380_v0 = vld [vmem:[%s23399_s0 + $0x2c2] sm:$0xff] }
  0xdb   :  { %v476_v10 = vpop.f32.mrf.mxu0  ;;  %v1016_v52 = vpop.f32.mrf.mxu1 }
  0xdc   :  { %v18732_v58 = vadd.f32 %v1016_v52, %v436_v14 }
  0xdd   :  { %v16272_v41 = vpop.f32.mrf.mxu0  ;;  %v16358_v44 = vpop.f32.mrf.mxu1  ;;  %16527 = vmatmul.mubr.msk.f32.gmra.mxu0 %vm163_vm1, %v1378_v42  ;;  %16601 = vmatmul.mubr.msk.f32.gmra.mxu1 %vm163_vm1, %v18116_v49  ;;  %v1381_v42 = vld [vmem:[%s23399_s0 + $0x2d2] sm:$0xff] }
  0xde   :  { %v18737_v45 = vadd.f32 %v16358_v44, %v16260_v54  ;;  %16529 = vmatprep.mubr.msk.f32.mxu0 %vm163_vm1, %v1379_v29  ;;  %16603 = vmatprep.mubr.msk.f32.mxu1 %vm163_vm1, %v18124_v53  ;;  %v1382_v29 = vld [vmem:[%s23399_s0 + $0x2da] sm:$0xff] }
  0xdf   :  { %v486_v14 = vpop.f32.mrf.mxu0  ;;  %v1026_v31 = vpop.f32.mrf.mxu1 }
  0xe0   :  { %v18748_v52 = vadd.f32 %v1026_v31, %v446_v60 }
  0xe1   :  { %v16275_v49 = vpop.f32.mrf.mxu0  ;;  %v16361_v54 = vpop.f32.mrf.mxu1  ;;  %16530 = vmatmul.mubr.msk.f32.gmra.mxu0 %vm163_vm1, %v1380_v0  ;;  %16604 = vmatmul.mubr.msk.f32.gmra.mxu1 %vm163_vm1, %v18138_v57  ;;  %v1383_v0 = vld [vmem:[%s23399_s0 + $0x2ea] sm:$0xff] }
  0xe2   :  { %v18753_v53 = vadd.f32 %v16361_v54, %v16263_v20  ;;  %16532 = vmatprep.mubr.msk.f32.mxu0 %vm163_vm1, %v1381_v42  ;;  %16606 = vmatprep.mubr.msk.f32.mxu1 %vm163_vm1, %v18146_v61  ;;  %v1384_v42 = vld [vmem:[%s23399_s0 + $0x2f2] sm:$0xff] }
  0xe3   :  { %v496_v60 = vpop.f32.mrf.mxu0  ;;  %v1036_v44 = vpop.f32.mrf.mxu1 }
  0xe4   :  { %v18764_v31 = vadd.f32 %v1036_v44, %v456_v6 }
  0xe5   :  { %v16278_v57 = vpop.f32.mrf.mxu0  ;;  %v16364_v20 = vpop.f32.mrf.mxu1  ;;  %16533 = vmatmul.mubr.msk.f32.gmra.mxu0 %vm163_vm1, %v1382_v29  ;;  %16607 = vmatmul.mubr.msk.f32.gmra.mxu1 %vm163_vm1, %v18160_v1  ;;  %v1385_v29 = vld [vmem:[%s23399_s0 + $0x302] sm:$0xff] }
  0xe6   :  { %v18769_v61 = vadd.f32 %v16364_v20, %v16266_v12  ;;  %16535 = vmatprep.mubr.msk.f32.mxu0 %vm163_vm1, %v1383_v0  ;;  %16609 = vmatprep.mubr.msk.f32.mxu1 %vm163_vm1, %v18168_v5  ;;  %v1386_v0 = vld [vmem:[%s23399_s0 + $0x30a] sm:$0xff] }
  0xe7   :  { %v506_v6 = vpop.f32.mrf.mxu0  ;;  %v1046_v54 = vpop.f32.mrf.mxu1 }
  0xe8   :  { %v18780_v44 = vadd.f32 %v1046_v54, %v466_v18 }
  0xe9   :  { %v16281_v1 = vpop.f32.mrf.mxu0  ;;  %v16367_v12 = vpop.f32.mrf.mxu1  ;;  %16536 = vmatmul.mubr.msk.f32.gmra.mxu0 %vm163_vm1, %v1384_v42  ;;  %16610 = vmatmul.mubr.msk.f32.gmra.mxu1 %vm163_vm1, %v18182_v9  ;;  %v1387_v42 = vld [vmem:[%s23399_s0 + $0x31a] sm:$0xff] }
  0xea   :  { %v18785_v5 = vadd.f32 %v16367_v12, %v16269_v33  ;;  %16538 = vmatprep.mubr.msk.f32.mxu0 %vm163_vm1, %v1385_v29  ;;  %16612 = vmatprep.mubr.msk.f32.mxu1 %vm163_vm1, %v18190_v13  ;;  %v1388_v29 = vld [vmem:[%s23399_s0 + $0x322] sm:$0xff] }
  0xeb   :  { %v516_v18 = vpop.f32.mrf.mxu0  ;;  %v1056_v20 = vpop.f32.mrf.mxu1 }
  0xec   :  { %v18796_v54 = vadd.f32 %v1056_v20, %v476_v10 }
  0xed   :  { %v16284_v9 = vpop.f32.mrf.mxu0  ;;  %v16370_v33 = vpop.f32.mrf.mxu1  ;;  %16539 = vmatmul.mubr.msk.f32.gmra.mxu0 %vm163_vm1, %v1386_v0  ;;  %16613 = vmatmul.mubr.msk.f32.gmra.mxu1 %vm163_vm1, %v18204_v17  ;;  %v14318_v0 = vld [vmem:[%s23399_s0 + $0x19] sm:$0xff] }
  0xee   :  { %v18801_v13 = vadd.f32 %v16370_v33, %v16272_v41  ;;  %16541 = vmatprep.mubr.msk.f32.mxu0 %vm163_vm1, %v1387_v42  ;;  %16615 = vmatprep.mubr.msk.f32.mxu1 %vm163_vm1, %v18209_v19  ;;  %v14319_v42 = vld [vmem:[%s23399_s0 + $0x21] sm:$0xff] }
  0xef   :  { %v526_v10 = vpop.f32.mrf.mxu0  ;;  %v1066_v12 = vpop.f32.mrf.mxu1 }
  0xf0   :  { %v18812_v20 = vadd.f32 %v1066_v12, %v486_v14 }
  0xf1   :  { %v16287_v17 = vpop.f32.mrf.mxu0  ;;  %v16373_v41 = vpop.f32.mrf.mxu1  ;;  %16542 = vmatmul.mubr.msk.f32.gmra.mxu0 %vm163_vm1, %v1388_v29  ;;  %16616 = vmatmul.mubr.msk.f32.gmra.mxu1 %vm163_vm1, %v18223_v22  ;;  %v14320_v29 = vld [vmem:[%s23399_s0 + $0x31] sm:$0xff]  ;;  %v18833_v22 = vld [vmem:[%s23400_s1 + $0x1c] sm:$0xf] }
  0xf2   :  { %v18817_v19 = vadd.f32 %v16373_v41, %v16275_v49  ;;  %16618 = vmatprep.mubr.msk.f32.mxu1 %vm163_vm1, %v18231_v25  ;;  %16644 = vmatprep.mubr.msk.f32.mxu0 %vm163_vm1, %v14318_v0  ;;  %v18850_v41 = vld [vmem:[%s23400_s1 + $0x20] sm:$0xf] }
  0xf3   :  { %v536_v14 = vpop.f32.mrf.mxu0  ;;  %v1076_v33 = vpop.f32.mrf.mxu1  ;;  %16936 = vmatprep.subr.msk.mxu1 %vm356_vm0, %v18833_v22 }
  0xf4   :  { %v18825_v12 = vadd.f32 %v1076_v33, %v496_v60  ;;  %v14321_v60 = vld [vmem:[%s23399_s0 + $0x39] sm:$0xff] }
  0xf5   :  { %v16290_v25 = vpop.f32.mrf.mxu0  ;;  %v16376_v49 = vpop.f32.mrf.mxu1  ;;  %16619 = vmatmul.mubr.msk.f32.gmra.mxu1 %vm163_vm1, %v18253_v35  ;;  %16645 = vmatmul.mubr.msk.f32.vlgmr.msra.gmra.mxu0 %vm163_vm1, %v14319_v42 }
  0xf6   :  { %v18838_v0 = vadd.f32 %v16376_v49, %v16278_v57  ;;  %16839 = vmatpush3.msk.msra.mxu0 %vm356_vm0, %v18263_v43  ;;  %16621 = vmatprep.mubr.msk.f32.mxu1 %vm163_vm1, %v18270_v46  ;;  %v14322_v43 = vld [vmem:[%s23399_s0 + $0x49] sm:$0xff] }
  0xf7   :  { %v546_v35 = vpop.f32.mrf.mxu0  ;;  %v1086_v33 = vpop.f32.mrf.mxu1  ;;  %16647 = vmatprep.mubr.msk.f32.mxu0 %vm163_vm1, %v14320_v29  ;;  %17034 = vmatprep.subr.msk.mxu0 %vm356_vm0, %v18850_v41 }
  0xf8   :  { %v18858_v46 = vadd.f32 %v1086_v33, %v506_v6  ;;  %v14323_v6 = vld [vmem:[%s23399_s0 + $0x51] sm:$0xff] }
  0xf9   :  { %v16293_v57 = vpop.f32.mrf.mxu0  ;;  %v16379_v42 = vpop.f32.mrf.mxu1  ;;  %16622 = vmatmul.mubr.msk.f32.gmra.mxu1 %vm163_vm1, %v18292_v51  ;;  %16648 = vmatmul.mubr.msk.f32.gmra.mxu0 %vm163_vm1, %v14321_v60 }
  0xfa   :  { %v18865_v29 = vadd.f32 %v16379_v42, %v16281_v1  ;;  %16624 = vmatprep.mubr.msk.f32.mxu1 %vm163_vm1, %v18302_v59  ;;  %16650 = vmatprep.mubr.msk.f32.mxu0 %vm163_vm1, %v14322_v43  ;;  %v14325_v43 = vld [vmem:[%s23399_s0 + $0x69] sm:$0xff] }
  0xfb   :  { %v556_v49 = vpop.f32.mrf.mxu0  ;;  %v1096_v33 = vpop.f32.mrf.mxu1 }
  0xfc   :  { %v18876_v51 = vadd.f32 %v1096_v33, %v516_v18  ;;  %v14326_v33 = vld [vmem:[%s23399_s0 + $0x79] sm:$0xff] }
  0xfd   :  { %v16296_v60 = vpop.f32.mrf.mxu0  ;;  %v16382_v1 = vpop.f32.mrf.mxu1  ;;  %16625 = vmatmul.mubr.msk.f32.gmra.mxu1 %vm163_vm1, %v18320_v3  ;;  %16651 = vmatmul.mubr.msk.f32.gmra.mxu0 %vm163_vm1, %v14323_v6 }
  0xfe   :  { %v18881_v59 = vadd.f32 %v16382_v1, %v16284_v9  ;;  %16627 = vmatprep.mubr.msk.f32.mxu1 %vm163_vm1, %v18330_v11  ;;  %16653 = vmatprep.mubr.msk.f32.mxu0 %vm163_vm1, %v14324_v8  ;;  %v14327_v8 = vld [vmem:[%s23399_s0 + $0x81] sm:$0xff] }
  0xff   :  { %v566_v18 = vpop.f32.mrf.mxu0  ;;  %v1106_v42 = vpop.f32.mrf.mxu1 }
 0x100   :  { %v18892_v3 = vadd.f32 %v1106_v42, %v526_v10  ;;  %v14328_v42 = vld [vmem:[%s23399_s0 + $0x91] sm:$0xff] }
 0x101   :  { %v16299_v6 = vpop.f32.mrf.mxu0  ;;  %v16385_v9 = vpop.f32.mrf.mxu1  ;;  %16628 = vmatmul.mubr.msk.f32.gmra.mxu1 %vm163_vm1, %v18348_v21  ;;  %16654 = vmatmul.mubr.msk.f32.gmra.mxu0 %vm163_vm1, %v14325_v43 }
 0x102   :  { %v18897_v11 = vadd.f32 %v16385_v9, %v16287_v17  ;;  %16630 = vmatprep.mubr.msk.f32.mxu1 %vm163_vm1, %v18358_v7  ;;  %16656 = vmatprep.mubr.msk.f32.mxu0 %vm163_vm1, %v14326_v33  ;;  %v23456_v33 = vld [vmem:[#allocation16_spill] sm:$0xff] }
 0x103   :  { %v576_v10 = vpop.f32.mrf.mxu0  ;;  %v1116_v1 = vpop.f32.mrf.mxu1  ;;  %v14329_v9 = vld [vmem:[%s23399_s0 + $0x99] sm:$0xff] }
 0x104   :  { %v18908_v21 = vadd.f32 %v1116_v1, %v536_v14 }
 0x105   :  { %v16302_v43 = vpop.f32.mrf.mxu0  ;;  %v16388_v17 = vpop.f32.mrf.mxu1  ;;  %16631 = vmatmul.mubr.msk.f32.gmra.mxu1 %vm163_vm1, %v18376_v15  ;;  %16657 = vmatmul.mubr.msk.f32.gmra.mxu0 %vm163_vm1, %v14327_v8 }
 0x106   :  { %v18913_v7 = vadd.f32 %v16388_v17, %v16290_v25  ;;  %16633 = vmatprep.mubr.msk.f32.mxu1 %vm163_vm1, %v23456_v33  ;;  %16659 = vmatprep.mubr.msk.f32.mxu0 %vm163_vm1, %v14328_v42  ;;  %v23457_v17 = vld [vmem:[#allocation19_spill] sm:$0xff] }
 0x107   :  { %v586_v14 = vpop.f32.mrf.mxu0  ;;  %v1126_v1 = vpop.f32.mrf.mxu1  ;;  %v14331_v33 = vld [vmem:[%s23399_s0 + $0xb1] sm:$0xff] }
 0x108   :  { %v18924_v15 = vadd.f32 %v1126_v1, %v546_v35 }
 0x109   :  { %v16305_v8 = vpop.f32.mrf.mxu0  ;;  %v16391_v25 = vpop.f32.mrf.mxu1  ;;  %16634 = vmatmul.mubr.msk.f32.gmra.mxu1 %vm163_vm1, %v18404_v63  ;;  %16660 = vmatmul.mubr.msk.f32.gmra.mxu0 %vm163_vm1, %v14329_v9  ;;  %v14332_v63 = vld [vmem:[%s23399_s0 + $0xc1] sm:$0xff] }
 0x10a   :  { %v18929_v42 = vadd.f32 %v16391_v25, %v16293_v57  ;;  %16636 = vmatprep.mubr.msk.f32.mxu1 %vm163_vm1, %v23457_v17  ;;  %16662 = vmatprep.mubr.msk.f32.mxu0 %vm163_vm1, %v14330_v2  ;;  %v14252_v17 = vld [vmem:[%s23399_s0 + $0x338] sm:$0xff] }
 0x10b   :  { %v596_v35 = vpop.f32.mrf.mxu0  ;;  %v1136_v1 = vpop.f32.mrf.mxu1 }
 0x10c   :  { %v18943_v57 = vadd.f32 %v1136_v1, %v556_v49  ;;  %v14333_v49 = vld [vmem:[%s23399_s0 + $0xc9] sm:$0xff] }
 0x10d   :  { %v16308_v9 = vpop.f32.mrf.mxu0  ;;  %v16394_v25 = vpop.f32.mrf.mxu1  ;;  %16637 = vmatmul.mubr.msk.f32.gmra.mxu1 %vm163_vm1, %v18432_v47  ;;  %16663 = vmatmul.mubr.msk.f32.gmra.mxu0 %vm163_vm1, %v14331_v33  ;;  %v14334_v47 = vld [vmem:[%s23399_s0 + $0xd9] sm:$0xff] }
 0x10e   :  { %v18948_v2 = vadd.f32 %v16394_v25, %v16296_v60  ;;  %16639 = vmatprep.mubr.msk.f32.mxu1 %vm163_vm1, %v14251_v62  ;;  %16665 = vmatprep.mubr.msk.f32.mxu0 %vm163_vm1, %v14332_v63  ;;  %v23458_v25 = vld [vmem:[#allocation6_spill] sm:$0xff] }
 0x10f   :  { %v606_v1 = vpop.f32.mrf.mxu0  ;;  %v1146_v56 = vpop.f32.mrf.mxu1 }
 0x110   :  { %v18961_v60 = vadd.f32 %v1146_v56, %v566_v18  ;;  %v14336_v18 = vld [vmem:[%s23399_s0 + $0xf1] sm:$0xff] }
 0x111   :  { %v16311_v33 = vpop.f32.mrf.mxu0  ;;  %v16397_v62 = vpop.f32.mrf.mxu1  ;;  %16640 = vmatmul.mubr.msk.f32.gmra.mxu1 %vm163_vm1, %v14252_v17  ;;  %16666 = vmatmul.mubr.msk.f32.gmra.mxu0 %vm163_vm1, %v14333_v49 }
 0x112   :  { %v18965_v63 = vadd.f32 %v16397_v62, %v16299_v6  ;;  %16668 = vmatprep.mubr.msk.f32.mxu0 %vm163_vm1, %v14334_v47  ;;  %16742 = vmatprep.mubr.msk.f32.mxu1 %vm163_vm1, %v23458_v25  ;;  %v23459_v47 = vld [vmem:[#allocation7_spill] sm:$0xff]  ;;  %v23460_v25 = vld [vmem:[#allocation8_spill] sm:$0xff] }
 0x113   :  { %v616_v48 = vpop.f32.mrf.mxu0  ;;  %v1156_v56 = vpop.f32.mrf.mxu1 }
 0x114   :  { %v18976_v17 = vadd.f32 %v1156_v56, %v576_v10 }
 0x115   :  { %v16314_v49 = vpop.f32.mrf.mxu0  ;;  %v16400_v6 = vpop.f32.mrf.mxu1  ;;  %16669 = vmatmul.mubr.msk.f32.gmra.mxu0 %vm163_vm1, %v14335_v50  ;;  %16743 = vmatmul.mubr.msk.f32.vlgmr.msra.gmra.mxu1 %vm163_vm1, %v23459_v47  ;;  %v14338_v50 = vld [vmem:[%s23399_s0 + $0x109] sm:$0xff]  ;;  %v23462_v47 = vld [vmem:[#allocation9_spill] sm:$0xff] }
 0x116   :  { %v18981_v62 = vadd.f32 %v16400_v6, %v16302_v43  ;;  %16671 = vmatprep.mubr.msk.f32.mxu0 %vm163_vm1, %v14336_v18  ;;  %16745 = vmatprep.mubr.msk.f32.mxu1 %vm163_vm1, %v23460_v25 }
 0x117   :  { %v626_v10 = vpop.f32.mrf.mxu0  ;;  %v1166_v56 = vpop.f32.mrf.mxu1  ;;  %16937 = vmatpush3.msk.msra.mxu1 %vm356_vm0, %v18833_v22  ;;  %v14339_v22 = vld [vmem:[%s23399_s0 + $0x111] sm:$0xff] }
 0x118   :  { %v18994_v43 = vadd.f32 %v1166_v56, %v586_v14 }
 0x119   :  { %v16317_v6 = vpop.f32.mrf.mxu0  ;;  %v16403_v18 = vpop.f32.mrf.mxu1  ;;  %16672 = vmatmul.mubr.msk.f32.gmra.mxu0 %vm163_vm1, %v14337_v40  ;;  %16746 = vmatmul.mubr.msk.f32.gmra.mxu1 %vm163_vm1, %v23462_v47  ;;  %v14340_v40 = vld [vmem:[%s23399_s0 + $0x121] sm:$0xff] }
 0x11a   :  { %23461 = vst [vmem:[#allocation16_spill] sm:$0xff] %v18994_v43  ;;  %v18999_v25 = vadd.f32 %v16403_v18, %v16305_v8  ;;  %16674 = vmatprep.mubr.msk.f32.mxu0 %vm163_vm1, %v14338_v50  ;;  %16748 = vmatprep.mubr.msk.f32.mxu1 %vm163_vm1, %v23464_v38  ;;  %v23466_v50 = vld [vmem:[#allocation11_spill] sm:$0xff]  ;;  %v23468_v18 = vld [vmem:[#allocation12_spill] sm:$0xff] }
 0x11b   :  { %v636_v14 = vpop.f32.mrf.mxu0  ;;  %v1176_v56 = vpop.f32.mrf.mxu1 }
 0x11c   :  { %23463 = vst [vmem:[#allocation19_spill] sm:$0xff] %v18999_v25  ;;  %v19010_v43 = vadd.f32 %v1176_v56, %v596_v35  ;;  %v14341_v25 = vld [vmem:[%s23399_s0 + $0x129] sm:$0xff] }
 0x11d   :  { %v16320_v47 = vpop.f32.mrf.mxu0  ;;  %v16406_v8 = vpop.f32.mrf.mxu1  ;;  %16675 = vmatmul.mubr.msk.f32.gmra.mxu0 %vm163_vm1, %v14339_v22  ;;  %16749 = vmatmul.mubr.msk.f32.gmra.mxu1 %vm163_vm1, %v23466_v50  ;;  %v14342_v22 = vld [vmem:[%s23399_s0 + $0x139] sm:$0xff] }
 0x11e   :  { %23465 = vst [vmem:[#allocation6_spill] sm:$0xff] %v19010_v43  ;;  %v19015_v38 = vadd.f32 %v16406_v8, %v16308_v9  ;;  %16677 = vmatprep.mubr.msk.f32.mxu0 %vm163_vm1, %v14340_v40  ;;  %16751 = vmatprep.mubr.msk.f32.mxu1 %vm163_vm1, %v23468_v18  ;;  %v23470_v40 = vld [vmem:[#allocation13_spill] sm:$0xff]  ;;  %v23472_v18 = vld [vmem:[#allocation14_spill] sm:$0xff] }
 0x11f   :  { %v646_v35 = vpop.f32.mrf.mxu0  ;;  %v1186_v56 = vpop.f32.mrf.mxu1 }
 0x120   :  { %23467 = vst [vmem:[#allocation7_spill] sm:$0xff] %v19015_v38  ;;  %v19026_v43 = vadd.f32 %v1186_v56, %v606_v1  ;;  %v14343_v38 = vld [vmem:[%s23399_s0 + $0x141] sm:$0xff] }
 0x121   :  { %v16323_v50 = vpop.f32.mrf.mxu0  ;;  %v16409_v9 = vpop.f32.mrf.mxu1  ;;  %16678 = vmatmul.mubr.msk.f32.gmra.mxu0 %vm163_vm1, %v14341_v25  ;;  %16752 = vmatmul.mubr.msk.f32.gmra.mxu1 %vm163_vm1, %v23470_v40  ;;  %v14344_v25 = vld [vmem:[%s23399_s0 + $0x151] sm:$0xff] }
 0x122   :  { %23469 = vst [vmem:[#allocation8_spill] sm:$0xff] %v19026_v43  ;;  %v19031_v8 = vadd.f32 %v16409_v9, %v16311_v33  ;;  %16680 = vmatprep.mubr.msk.f32.mxu0 %vm163_vm1, %v14342_v22  ;;  %16754 = vmatprep.mubr.msk.f32.mxu1 %vm163_vm1, %v23472_v18  ;;  %v23474_v22 = vld [vmem:[#allocation15_spill] sm:$0xff]  ;;  %v23476_v18 = vld [vmem:[#allocation17_spill] sm:$0xff] }
 0x123   :  { %v656_v1 = vpop.f32.mrf.mxu0  ;;  %v1196_v56 = vpop.f32.mrf.mxu1 }
 0x124   :  { %23471 = vst [vmem:[#allocation9_spill] sm:$0xff] %v19031_v8  ;;  %v19042_v43 = vadd.f32 %v1196_v56, %v616_v48  ;;  %v14345_v8 = vld [vmem:[%s23399_s0 + $0x159] sm:$0xff] }
 0x125   :  { %v16326_v40 = vpop.f32.mrf.mxu0  ;;  %v16412_v33 = vpop.f32.mrf.mxu1  ;;  %16681 = vmatmul.mubr.msk.f32.gmra.mxu0 %vm163_vm1, %v14343_v38  ;;  %16755 = vmatmul.mubr.msk.f32.gmra.mxu1 %vm163_vm1, %v23474_v22  ;;  %v14346_v38 = vld [vmem:[%s23399_s0 + $0x169] sm:$0xff] }
 0x126   :  { %23473 = vst [vmem:[#allocation10_spill] sm:$0xff] %v19042_v43  ;;  %v19047_v9 = vadd.f32 %v16412_v33, %v16314_v49  ;;  %16683 = vmatprep.mubr.msk.f32.mxu0 %vm163_vm1, %v14344_v25  ;;  %16757 = vmatprep.mubr.msk.f32.mxu1 %vm163_vm1, %v23476_v18  ;;  %v23478_v25 = vld [vmem:[#allocation18_spill] sm:$0xff]  ;;  %v23479_v18 = vld [vmem:[#allocation20_spill] sm:$0xff] }
 0x127   :  { %v666_v48 = vpop.f32.mrf.mxu0  ;;  %v1206_v56 = vpop.f32.mrf.mxu1 }
 0x128   :  { %23475 = vst [vmem:[#allocation11_spill] sm:$0xff] %v19047_v9  ;;  %v19058_v43 = vadd.f32 %v1206_v56, %v626_v10  ;;  %v14347_v9 = vld [vmem:[%s23399_s0 + $0x171] sm:$0xff] }
 0x129   :  { %v16329_v22 = vpop.f32.mrf.mxu0  ;;  %v16415_v49 = vpop.f32.mrf.mxu1  ;;  %16684 = vmatmul.mubr.msk.f32.gmra.mxu0 %vm163_vm1, %v14345_v8  ;;  %16758 = vmatmul.mubr.msk.f32.gmra.mxu1 %vm163_vm1, %v23478_v25  ;;  %v14348_v8 = vld [vmem:[%s23399_s0 + $0x181] sm:$0xff] }
 0x12a   :  { %23477 = vst [vmem:[#allocation12_spill] sm:$0xff] %v19058_v43  ;;  %v19063_v33 = vadd.f32 %v16415_v49, %v16317_v6  ;;  %16686 = vmatprep.mubr.msk.f32.mxu0 %vm163_vm1, %v14346_v38  ;;  %16760 = vmatprep.mubr.msk.f32.mxu1 %vm163_vm1, %v23479_v18  ;;  %v23481_v49 = vld [vmem:[#allocation21_spill] sm:$0xff]  ;;  %v14349_v18 = vld [vmem:[%s23399_s0 + $0x189] sm:$0xff] }
 0x12b   :  { %v676_v10 = vpop.f32.mrf.mxu0  ;;  %v1216_v56 = vpop.f32.mrf.mxu1 }
 0x12c   :  { %v19074_v43 = vadd.f32 %v1216_v56, %v636_v14 }
 0x12d   :  { %v16332_v25 = vpop.f32.mrf.mxu0  ;;  %v16418_v6 = vpop.f32.mrf.mxu1  ;;  %16687 = vmatmul.mubr.msk.f32.gmra.mxu0 %vm163_vm1, %v14347_v9  ;;  %16761 = vmatmul.mubr.msk.f32.gmra.mxu1 %vm163_vm1, %v18437_v23  ;;  %v14350_v9 = vld [vmem:[%s23399_s0 + $0x1c9] sm:$0xff] }
 0x12e   :  { %23480 = vst [vmem:[#allocation13_spill] sm:$0xff] %v19074_v43  ;;  %v19079_v38 = vadd.f32 %v16418_v6, %v16320_v47  ;;  %16689 = vmatprep.mubr.msk.f32.mxu0 %vm163_vm1, %v14348_v8  ;;  %16763 = vmatprep.mubr.msk.f32.mxu1 %vm163_vm1, %v23481_v49  ;;  %v14351_v6 = vld [vmem:[%s23399_s0 + $0x1d1] sm:$0xff] }
 0x12f   :  { %v686_v14 = vpop.f32.mrf.mxu0  ;;  %v1226_v56 = vpop.f32.mrf.mxu1 }
 0x130   :  { %v19090_v43 = vadd.f32 %v1226_v56, %v646_v35 }
 0x131   :  { %v16335_v23 = vpop.f32.mrf.mxu0  ;;  %v16421_v47 = vpop.f32.mrf.mxu1  ;;  %16690 = vmatmul.mubr.msk.f32.gmra.mxu0 %vm163_vm1, %v14349_v18  ;;  %16764 = vmatmul.mubr.msk.f32.gmra.mxu1 %vm163_vm1, %v18455_v27  ;;  %v14352_v18 = vld [vmem:[%s23399_s0 + $0x1e1] sm:$0xff] }
 0x132   :  { %v19095_v8 = vadd.f32 %v16421_v47, %v16323_v50  ;;  %16692 = vmatprep.mubr.msk.f32.mxu0 %vm163_vm1, %v14350_v9  ;;  %16766 = vmatprep.mubr.msk.f32.mxu1 %vm163_vm1, %v18460_v55 }
 0x133   :  { %v696_v35 = vpop.f32.mrf.mxu0  ;;  %v1236_v49 = vpop.f32.mrf.mxu1 }
 0x134   :  { %v19106_v56 = vadd.f32 %v1236_v49, %v656_v1  ;;  %v14353_v1 = vld [vmem:[%s23399_s0 + $0x1e9] sm:$0xff] }
 0x135   :  { %v16424_v27 = vpop.f32.mrf.mxu1  ;;  %v16450_v50 = vpop.f32.mrf.mxu0  ;;  %16693 = vmatmul.mubr.msk.f32.gmra.mxu0 %vm163_vm1, %v14351_v6  ;;  %16767 = vmatmul.mubr.msk.f32.gmra.mxu1 %vm163_vm1, %v18473_v24  ;;  %v14354_v24 = vld [vmem:[%s23399_s0 + $0x1f9] sm:$0xff] }
 0x136   :  { %v19111_v55 = vadd.f32 %v16424_v27, %v16326_v40  ;;  %v19114_v9 = vadd.f32 %v16450_v50, %v18705_v16  ;;  %16695 = vmatprep.mubr.msk.f32.mxu0 %vm163_vm1, %v14352_v18  ;;  %16769 = vmatprep.mubr.msk.f32.mxu1 %vm163_vm1, %v18478_v39 }
 0x137   :  { %v1246_v47 = vpop.f32.mrf.mxu1  ;;  %v1651_v49 = vpop.f32.mrf.mxu0 }
 0x138   :  { %v19125_v40 = vadd.f32 %v1246_v47, %v666_v48  ;;  %v19128_v16 = vadd.f32 %v1651_v49, %v18716_v4  ;;  %v14355_v4 = vld [vmem:[%s23399_s0 + $0x201] sm:$0xff] }
 0x139   :  { %v16427_v6 = vpop.f32.mrf.mxu1  ;;  %v16453_v18 = vpop.f32.mrf.mxu0  ;;  %16696 = vmatmul.mubr.msk.f32.gmra.mxu0 %vm163_vm1, %v14353_v1  ;;  %16770 = vmatmul.mubr.msk.f32.gmra.mxu1 %vm163_vm1, %v18493_v26  ;;  %v14356_v26 = vld [vmem:[%s23399_s0 + $0x211] sm:$0xff] }
 0x13a   :  { %v19133_v39 = vadd.f32 %v16427_v6, %v16329_v22  ;;  %v19136_v27 = vadd.f32 %v16453_v18, %v18721_v37  ;;  %16698 = vmatprep.mubr.msk.f32.mxu0 %vm163_vm1, %v14354_v24  ;;  %16772 = vmatprep.mubr.msk.f32.mxu1 %vm163_vm1, %v18498_v28 }
 0x13b   :  { %v1256_v48 = vpop.f32.mrf.mxu1  ;;  %v1661_v50 = vpop.f32.mrf.mxu0 }
 0x13c   :  { %v19147_v22 = vadd.f32 %v1256_v48, %v676_v10  ;;  %v19150_v37 = vadd.f32 %v1661_v50, %v18732_v58  ;;  %v14357_v58 = vld [vmem:[%s23399_s0 + $0x219] sm:$0xff] }
 0x13d   :  { %v16430_v1 = vpop.f32.mrf.mxu1  ;;  %v16456_v47 = vpop.f32.mrf.mxu0  ;;  %16699 = vmatmul.mubr.msk.f32.gmra.mxu0 %vm163_vm1, %v14355_v4  ;;  %16773 = vmatmul.mubr.msk.f32.gmra.mxu1 %vm163_vm1, %v18511_v30  ;;  %v14358_v30 = vld [vmem:[%s23399_s0 + $0x229] sm:$0xff] }
 0x13e   :  { %v19155_v28 = vadd.f32 %v16430_v1, %v16332_v25  ;;  %v19158_v49 = vadd.f32 %v16456_v47, %v18737_v45  ;;  %16701 = vmatprep.mubr.msk.f32.mxu0 %vm163_vm1, %v14356_v26  ;;  %16775 = vmatprep.mubr.msk.f32.mxu1 %vm163_vm1, %v18516_v32 }
 0x13f   :  { %v1266_v10 = vpop.f32.mrf.mxu1  ;;  %v1671_v24 = vpop.f32.mrf.mxu0 }
 0x140   :  { %v19169_v25 = vadd.f32 %v1266_v10, %v686_v14  ;;  %v19172_v45 = vadd.f32 %v1671_v24, %v18748_v52  ;;  %v14359_v52 = vld [vmem:[%s23399_s0 + $0x231] sm:$0xff]  ;;  %v14472_v14 = vld [vmem:[%s23399_s0 + $0x142] sm:$0xff] }
 0x141   :  { %v16433_v6 = vpop.f32.mrf.mxu1  ;;  %v16459_v18 = vpop.f32.mrf.mxu0  ;;  %16702 = vmatmul.mubr.msk.f32.gmra.mxu0 %vm163_vm1, %v14357_v58  ;;  %16776 = vmatmul.mubr.msk.f32.gmra.mxu1 %vm163_vm1, %v18529_v34  ;;  %v14475_v24 = vld [vmem:[%s23399_s0 + $0x16a] sm:$0xff] }
 0x142   :  { %v19177_v32 = vadd.f32 %v16433_v6, %v16335_v23  ;;  %v19180_v4 = vadd.f32 %v16459_v18, %v18753_v53  ;;  %16704 = vmatprep.mubr.msk.f32.mxu0 %vm163_vm1, %v14358_v30  ;;  %16778 = vmatprep.mubr.msk.f32.mxu1 %vm163_vm1, %v18534_v36  ;;  %v14360_v53 = vld [vmem:[%s23399_s0 + $0x241] sm:$0xff]  ;;  %v14473_v23 = vld [vmem:[%s23399_s0 + $0x152] sm:$0xff] }
 0x143   :  { %v1276_v48 = vpop.f32.mrf.mxu1  ;;  %v1681_v34 = vpop.f32.mrf.mxu0 }
 0x144   :  { %v19197_v50 = vadd.f32 %v1276_v48, %v696_v35  ;;  %v19200_v36 = vadd.f32 %v1681_v34, %v18764_v31  ;;  %v14361_v35 = vld [vmem:[%s23399_s0 + $0x249] sm:$0xff]  ;;  %v14474_v31 = vld [vmem:[%s23399_s0 + $0x15a] sm:$0xff] }
 0x145   :  { %v19202_v26 = vpop.f32.mrf.mxu1  ;;  %v16462_v1 = vpop.f32.mrf.mxu0  ;;  %16705 = vmatmul.mubr.msk.f32.gmra.mxu0 %vm163_vm1, %v14359_v52  ;;  %16779 = vmatmul.mubr.msk.f32.gmra.mxu1 %vm163_vm1, %v14472_v14  ;;  %v14363_v14 = vld [vmem:[%s23399_s0 + $0x261] sm:$0xff] }
 0x146   :  { %v19207_v47 = vadd.f32 %v16462_v1, %v18769_v61  ;;  %16707 = vmatprep.mubr.msk.f32.mxu0 %vm163_vm1, %v14360_v53  ;;  %16781 = vmatprep.mubr.msk.f32.mxu1 %vm163_vm1, %v14473_v23  ;;  %v14362_v61 = vld [vmem:[%s23399_s0 + $0x259] sm:$0xff]  ;;  %v14477_v53 = vld [vmem:[%s23399_s0 + $0x182] sm:$0xff] }
 0x147   :  { %v19217_v58 = vpop.f32.mrf.mxu1  ;;  %v1691_v10 = vpop.f32.mrf.mxu0 }
 0x148   :  { %v19226_v30 = vadd.f32 %v1691_v10, %v18780_v44  ;;  %v14476_v44 = vld [vmem:[%s23399_s0 + $0x172] sm:$0xff] }
 0x149   :  { %v19228_v6 = vpop.f32.mrf.mxu1  ;;  %v16465_v18 = vpop.f32.mrf.mxu0  ;;  %16708 = vmatmul.mubr.msk.f32.gmra.mxu0 %vm163_vm1, %v14361_v35  ;;  %16782 = vmatmul.mubr.msk.f32.gmra.mxu1 %vm163_vm1, %v14474_v31  ;;  %v14365_v10 = vld [vmem:[%s23399_s0 + $0x279] sm:$0xff] }
 0x14a   :  { %v19233_v52 = vadd.f32 %v16465_v18, %v18785_v5  ;;  %16710 = vmatprep.mubr.msk.f32.mxu0 %vm163_vm1, %v14362_v61  ;;  %16784 = vmatprep.mubr.msk.f32.mxu1 %vm163_vm1, %v14475_v24  ;;  %v14364_v5 = vld [vmem:[%s23399_s0 + $0x271] sm:$0xff] }
 0x14b   :  { %v19243_v48 = vpop.f32.mrf.mxu1  ;;  %v1701_v34 = vpop.f32.mrf.mxu0  ;;  %v14479_v18 = vld [vmem:[%s23399_s0 + $0x1ca] sm:$0xff] }
 0x14c   :  { %v19252_v23 = vadd.f32 %v1701_v34, %v18796_v54  ;;  %v14478_v54 = vld [vmem:[%s23399_s0 + $0x18a] sm:$0xff] }
 0x14d   :  { %v19254_v1 = vpop.f32.mrf.mxu1  ;;  %v16468_v35 = vpop.f32.mrf.mxu0  ;;  %16711 = vmatmul.mubr.msk.f32.gmra.mxu0 %vm163_vm1, %v14363_v14  ;;  %16785 = vmatmul.mubr.msk.f32.gmra.mxu1 %vm163_vm1, %v14476_v44 }
 0x14e   :  { %v19259_v31 = vadd.f32 %v16468_v35, %v18801_v13  ;;  %16713 = vmatprep.mubr.msk.f32.mxu0 %vm163_vm1, %v14364_v5  ;;  %16787 = vmatprep.mubr.msk.f32.mxu1 %vm163_vm1, %v14477_v53  ;;  %v14366_v13 = vld [vmem:[%s23399_s0 + $0x289] sm:$0xff]  ;;  %v14367_v53 = vld [vmem:[%s23399_s0 + $0x291] sm:$0xff] }
 0x14f   :  { %v19269_v61 = vpop.f32.mrf.mxu1  ;;  %v1711_v24 = vpop.f32.mrf.mxu0 }
 0x150   :  { %v19278_v14 = vadd.f32 %v1711_v24, %v18812_v20  ;;  %v14480_v20 = vld [vmem:[%s23399_s0 + $0x1d2] sm:$0xff] }
 0x151   :  { %v19280_v44 = vpop.f32.mrf.mxu1  ;;  %v16471_v34 = vpop.f32.mrf.mxu0  ;;  %16714 = vmatmul.mubr.msk.f32.gmra.mxu0 %vm163_vm1, %v14365_v10  ;;  %16788 = vmatmul.mubr.msk.f32.gmra.mxu1 %vm163_vm1, %v14478_v54  ;;  %v14481_v54 = vld [vmem:[%s23399_s0 + $0x1e2] sm:$0xff] }
 0x152   :  { %23482 = vst [vmem:[#allocation14_spill] sm:$0xff] %v19280_v44  ;;  %v19285_v5 = vadd.f32 %v16471_v34, %v18817_v19  ;;  %16716 = vmatprep.mubr.msk.f32.mxu0 %vm163_vm1, %v14366_v13  ;;  %16790 = vmatprep.mubr.msk.f32.mxu1 %vm163_vm1, %v14479_v18  ;;  %v14368_v19 = vld [vmem:[%s23399_s0 + $0x2a1] sm:$0xff] }
 0x153   :  { %v19295_v35 = vpop.f32.mrf.mxu1  ;;  %v1721_v10 = vpop.f32.mrf.mxu0 }
 0x154   :  { %23483 = vst [vmem:[#allocation15_spill] sm:$0xff] %v19295_v35  ;;  %v19304_v24 = vadd.f32 %v1721_v10, %v18825_v12  ;;  %v14369_v12 = vld [vmem:[%s23399_s0 + $0x2a9] sm:$0xff] }
 0x155   :  { %v16474_v13 = vpop.f32.mrf.mxu0  ;;  %v16548_v18 = vpop.f32.mrf.mxu1  ;;  %16717 = vmatmul.mubr.msk.f32.gmra.mxu0 %vm163_vm1, %v14367_v53  ;;  %16791 = vmatmul.mubr.msk.f32.gmra.mxu1 %vm163_vm1, %v14480_v20  ;;  %v14482_v53 = vld [vmem:[%s23399_s0 + $0x1ea] sm:$0xff] }
 0x156   :  { %v19309_v34 = vadd.f32 %v16474_v13, %v18838_v0  ;;  %v19312_v35 = vadd.f32 %v16548_v18, %v19114_v9  ;;  %16719 = vmatprep.mubr.msk.f32.mxu0 %vm163_vm1, %v14368_v19  ;;  %16793 = vmatprep.mubr.msk.f32.mxu1 %vm163_vm1, %v14481_v54  ;;  %v14370_v0 = vld [vmem:[%s23399_s0 + $0x2b9] sm:$0xff] }
 0x157   :  { %v1731_v10 = vpop.f32.mrf.mxu0  ;;  %v2361_v20 = vpop.f32.mrf.mxu1  ;;  %v14483_v9 = vld [vmem:[%s23399_s0 + $0x1fa] sm:$0xff] }
 0x158   :  { %23484 = vst [vmem:[#allocation17_spill] sm:$0xff] %v19312_v35  ;;  %v19329_v19 = vadd.f32 %v1731_v10, %v18858_v46  ;;  %v19332_v54 = vadd.f32 %v2361_v20, %v19128_v16  ;;  %v14371_v46 = vld [vmem:[%s23399_s0 + $0x2c1] sm:$0xff] }
 0x159   :  { %v16477_v13 = vpop.f32.mrf.mxu0  ;;  %v16551_v18 = vpop.f32.mrf.mxu1  ;;  %16720 = vmatmul.mubr.msk.f32.gmra.mxu0 %vm163_vm1, %v14369_v12  ;;  %16794 = vmatmul.mubr.msk.f32.gmra.mxu1 %vm163_vm1, %v14482_v53  ;;  %v14484_v16 = vld [vmem:[%s23399_s0 + $0x202] sm:$0xff] }
 0x15a   :  { %v19337_v35 = vadd.f32 %v16477_v13, %v18865_v29  ;;  %v19340_v44 = vadd.f32 %v16551_v18, %v19136_v27  ;;  %16722 = vmatprep.mubr.msk.f32.mxu0 %vm163_vm1, %v14370_v0  ;;  %16796 = vmatprep.mubr.msk.f32.mxu1 %vm163_vm1, %v14483_v9  ;;  %v14372_v29 = vld [vmem:[%s23399_s0 + $0x2d1] sm:$0xff] }
 0x15b   :  { %v1741_v12 = vpop.f32.mrf.mxu0  ;;  %v2371_v53 = vpop.f32.mrf.mxu1  ;;  %v14485_v27 = vld [vmem:[%s23399_s0 + $0x212] sm:$0xff] }
 0x15c   :  { %v19357_v10 = vadd.f32 %v1741_v12, %v18876_v51  ;;  %v19360_v20 = vadd.f32 %v2371_v53, %v19150_v37  ;;  %v14373_v51 = vld [vmem:[%s23399_s0 + $0x2d9] sm:$0xff] }
 0x15d   :  { %v16480_v0 = vpop.f32.mrf.mxu0  ;;  %v16554_v9 = vpop.f32.mrf.mxu1  ;;  %16723 = vmatmul.mubr.msk.f32.gmra.mxu0 %vm163_vm1, %v14371_v46  ;;  %16797 = vmatmul.mubr.msk.f32.gmra.mxu1 %vm163_vm1, %v14484_v16  ;;  %v14486_v37 = vld [vmem:[%s23399_s0 + $0x21a] sm:$0xff] }
 0x15e   :  { %v19365_v13 = vadd.f32 %v16480_v0, %v18881_v59  ;;  %v19368_v18 = vadd.f32 %v16554_v9, %v19158_v49  ;;  %16725 = vmatprep.mubr.msk.f32.mxu0 %vm163_vm1, %v14372_v29  ;;  %16799 = vmatprep.mubr.msk.f32.mxu1 %vm163_vm1, %v14485_v27  ;;  %v14374_v59 = vld [vmem:[%s23399_s0 + $0x2e9] sm:$0xff] }
 0x15f   :  { %v1751_v46 = vpop.f32.mrf.mxu0  ;;  %v2381_v16 = vpop.f32.mrf.mxu1  ;;  %v14487_v49 = vld [vmem:[%s23399_s0 + $0x22a] sm:$0xff] }
 0x160   :  { %v19385_v12 = vadd.f32 %v1751_v46, %v18892_v3  ;;  %v19388_v53 = vadd.f32 %v2381_v16, %v19172_v45  ;;  %v14375_v3 = vld [vmem:[%s23399_s0 + $0x2f1] sm:$0xff] }
 0x161   :  { %v16483_v29 = vpop.f32.mrf.mxu0  ;;  %v16557_v27 = vpop.f32.mrf.mxu1  ;;  %16726 = vmatmul.mubr.msk.f32.gmra.mxu0 %vm163_vm1, %v14373_v51  ;;  %16800 = vmatmul.mubr.msk.f32.gmra.mxu1 %vm163_vm1, %v14486_v37  ;;  %v14488_v45 = vld [vmem:[%s23399_s0 + $0x232] sm:$0xff] }
 0x162   :  { %v19393_v0 = vadd.f32 %v16483_v29, %v18897_v11  ;;  %v19396_v9 = vadd.f32 %v16557_v27, %v19180_v4  ;;  %16728 = vmatprep.mubr.msk.f32.mxu0 %vm163_vm1, %v14374_v59  ;;  %16802 = vmatprep.mubr.msk.f32.mxu1 %vm163_vm1, %v14487_v49  ;;  %v14376_v11 = vld [vmem:[%s23399_s0 + $0x301] sm:$0xff] }
 0x163   :  { %v1761_v51 = vpop.f32.mrf.mxu0  ;;  %v2391_v37 = vpop.f32.mrf.mxu1  ;;  %v14489_v4 = vld [vmem:[%s23399_s0 + $0x242] sm:$0xff] }
 0x164   :  { %v19413_v46 = vadd.f32 %v1761_v51, %v18908_v21  ;;  %v19416_v16 = vadd.f32 %v2391_v37, %v19200_v36  ;;  %v14377_v21 = vld [vmem:[%s23399_s0 + $0x309] sm:$0xff] }
 0x165   :  { %v16486_v59 = vpop.f32.mrf.mxu0  ;;  %v16560_v49 = vpop.f32.mrf.mxu1  ;;  %16729 = vmatmul.mubr.msk.f32.gmra.mxu0 %vm163_vm1, %v14375_v3  ;;  %16803 = vmatmul.mubr.msk.f32.gmra.mxu1 %vm163_vm1, %v14488_v45  ;;  %v14490_v36 = vld [vmem:[%s23399_s0 + $0x24a] sm:$0xff] }
 0x166   :  { %v19421_v29 = vadd.f32 %v16486_v59, %v18913_v7  ;;  %v19424_v27 = vadd.f32 %v16560_v49, %v19207_v47  ;;  %16731 = vmatprep.mubr.msk.f32.mxu0 %vm163_vm1, %v14376_v11  ;;  %16805 = vmatprep.mubr.msk.f32.mxu1 %vm163_vm1, %v14489_v4  ;;  %v14378_v7 = vld [vmem:[%s23399_s0 + $0x319] sm:$0xff] }
 0x167   :  { %v1771_v3 = vpop.f32.mrf.mxu0  ;;  %v2401_v45 = vpop.f32.mrf.mxu1  ;;  %v14491_v47 = vld [vmem:[%s23399_s0 + $0x25a] sm:$0xff] }
 0x168   :  { %v19441_v51 = vadd.f32 %v1771_v3, %v18924_v15  ;;  %v19444_v37 = vadd.f32 %v2401_v45, %v19226_v30  ;;  %v14379_v15 = vld [vmem:[%s23399_s0 + $0x321] sm:$0xff] }
 0x169   :  { %v16489_v11 = vpop.f32.mrf.mxu0  ;;  %v16563_v4 = vpop.f32.mrf.mxu1  ;;  %16732 = vmatmul.mubr.msk.f32.gmra.mxu0 %vm163_vm1, %v14377_v21  ;;  %16806 = vmatmul.mubr.msk.f32.gmra.mxu1 %vm163_vm1, %v14490_v36  ;;  %v14492_v30 = vld [vmem:[%s23399_s0 + $0x262] sm:$0xff] }
 0x16a   :  { %v19449_v59 = vadd.f32 %v16489_v11, %v18929_v42  ;;  %v19452_v49 = vadd.f32 %v16563_v4, %v19233_v52  ;;  %16734 = vmatprep.mubr.msk.f32.mxu0 %vm163_vm1, %v14378_v7  ;;  %16808 = vmatprep.mubr.msk.f32.mxu1 %vm163_vm1, %v14491_v47  ;;  %v14380_v42 = vld [vmem:[%s23399_s0 + $0x331] sm:$0xff] }
 0x16b   :  { %v1781_v21 = vpop.f32.mrf.mxu0  ;;  %v2411_v36 = vpop.f32.mrf.mxu1  ;;  %v14493_v52 = vld [vmem:[%s23399_s0 + $0x272] sm:$0xff] }
 0x16c   :  { %v19469_v3 = vadd.f32 %v1781_v21, %v18943_v57  ;;  %v19472_v45 = vadd.f32 %v2411_v36, %v19252_v23  ;;  %v14381_v57 = vld [vmem:[%s23399_s0 + $0x339] sm:$0xff] }
 0x16d   :  { %v16492_v7 = vpop.f32.mrf.mxu0  ;;  %v16566_v47 = vpop.f32.mrf.mxu1  ;;  %16735 = vmatmul.mubr.msk.f32.gmra.mxu0 %vm163_vm1, %v14379_v15  ;;  %16809 = vmatmul.mubr.msk.f32.gmra.mxu1 %vm163_vm1, %v14492_v30  ;;  %v14494_v23 = vld [vmem:[%s23399_s0 + $0x27a] sm:$0xff] }
 0x16e   :  { %v19477_v11 = vadd.f32 %v16492_v7, %v18948_v2  ;;  %v19480_v4 = vadd.f32 %v16566_v47, %v19259_v31  ;;  %16737 = vmatprep.mubr.msk.f32.mxu0 %vm163_vm1, %v14380_v42  ;;  %16811 = vmatprep.mubr.msk.f32.mxu1 %vm163_vm1, %v14493_v52  ;;  %v14495_v2 = vld [vmem:[%s23399_s0 + $0x28a] sm:$0xff] }
 0x16f   :  { %v1791_v15 = vpop.f32.mrf.mxu0  ;;  %v2421_v30 = vpop.f32.mrf.mxu1  ;;  %v14576_v31 = vld [vmem:[%s23399_s0 + $0x30] sm:$0xff] }
 0x170   :  { %v19497_v21 = vadd.f32 %v1791_v15, %v18961_v60  ;;  %v19500_v36 = vadd.f32 %v2421_v30, %v19278_v14  ;;  %v14496_v60 = vld [vmem:[%s23399_s0 + $0x292] sm:$0xff]  ;;  %v14578_v30 = vld [vmem:[%s23399_s0 + $0x48] sm:$0xff] }
 0x171   :  { %v16495_v42 = vpop.f32.mrf.mxu0  ;;  %v16569_v52 = vpop.f32.mrf.mxu1  ;;  %16738 = vmatmul.mubr.msk.f32.gmra.mxu0 %vm163_vm1, %v14381_v57  ;;  %16812 = vmatmul.mubr.msk.f32.gmra.mxu1 %vm163_vm1, %v14494_v23  ;;  %v14577_v14 = vld [vmem:[%s23399_s0 + $0x38] sm:$0xff] }
 0x172   :  { %v19505_v7 = vadd.f32 %v16495_v42, %v18965_v63  ;;  %v19508_v47 = vadd.f32 %v16569_v52, %v19285_v5  ;;  %16814 = vmatprep.mubr.msk.f32.mxu1 %vm163_vm1, %v14495_v2  ;;  %16840 = vmatprep.mubr.msk.f32.mxu0 %vm163_vm1, %v14576_v31  ;;  %v14497_v63 = vld [vmem:[%s23399_s0 + $0x2a2] sm:$0xff] }
 0x173   :  { %v1801_v57 = vpop.f32.mrf.mxu0  ;;  %v2431_v23 = vpop.f32.mrf.mxu1 }
 0x174   :  { %v19522_v5 = vadd.f32 %v1801_v57, %v18976_v17  ;;  %v19525_v15 = vadd.f32 %v2431_v23, %v19304_v24  ;;  %v14498_v17 = vld [vmem:[%s23399_s0 + $0x2aa] sm:$0xff] }
 0x175   :  { %v16498_v2 = vpop.f32.mrf.mxu0  ;;  %v16572_v31 = vpop.f32.mrf.mxu1  ;;  %16815 = vmatmul.mubr.msk.f32.gmra.mxu1 %vm163_vm1, %v14496_v60  ;;  %16841 = vmatmul.mubr.msk.f32.vlgmr.msra.gmra.mxu0 %vm163_vm1, %v14577_v14  ;;  %v14579_v24 = vld [vmem:[%s23399_s0 + $0x50] sm:$0xff] }
 0x176   :  { %v19533_v42 = vadd.f32 %v16498_v2, %v18981_v62  ;;  %v19536_v52 = vadd.f32 %v16572_v31, %v19309_v34  ;;  %17035 = vmatpush3.msk.msra.mxu0 %vm356_vm0, %v18850_v41  ;;  %16817 = vmatprep.mubr.msk.f32.mxu1 %vm163_vm1, %v14497_v63  ;;  %v14499_v62 = vld [vmem:[%s23399_s0 + $0x2ba] sm:$0xff]  ;;  %v23486_v34 = vld [vmem:[#allocation16_spill] sm:$0xff] }
 0x177   :  { %v1811_v60 = vpop.f32.mrf.mxu0  ;;  %v2441_v14 = vpop.f32.mrf.mxu1  ;;  %16843 = vmatprep.mubr.msk.f32.mxu0 %vm163_vm1, %v14578_v30  ;;  %v14580_v41 = vld [vmem:[%s23399_s0 + $0x60] sm:$0xff]  ;;  %v23488_v30 = vld [vmem:[#allocation19_spill] sm:$0xff] }
 0x178   :  { %23485 = vst [vmem:[#allocation18_spill] sm:$0xff] %v19536_v52  ;;  %v19555_v57 = vadd.f32 %v1811_v60, %v23486_v34  ;;  %v19558_v23 = vadd.f32 %v2441_v14, %v19329_v19  ;;  %v14500_v19 = vld [vmem:[%s23399_s0 + $0x2c2] sm:$0xff]  ;;  %v14501_v14 = vld [vmem:[%s23399_s0 + $0x2d2] sm:$0xff] }
 0x179   :  { %v16501_v63 = vpop.f32.mrf.mxu0  ;;  %v16575_v2 = vpop.f32.mrf.mxu1  ;;  %16818 = vmatmul.mubr.msk.f32.gmra.mxu1 %vm163_vm1, %v14498_v17  ;;  %16844 = vmatmul.mubr.msk.f32.gmra.mxu0 %vm163_vm1, %v14579_v24  ;;  %v14581_v17 = vld [vmem:[%s23399_s0 + $0x68] sm:$0xff] }
 0x17a   :  { %23487 = vst [vmem:[#allocation20_spill] sm:$0xff] %v19558_v23  ;;  %v19563_v31 = vadd.f32 %v16501_v63, %v23488_v30  ;;  %v19566_v52 = vadd.f32 %v16575_v2, %v19337_v35  ;;  %16820 = vmatprep.mubr.msk.f32.mxu1 %vm163_vm1, %v14499_v62  ;;  %16846 = vmatprep.mubr.msk.f32.mxu0 %vm163_vm1, %v14580_v41  ;;  %v14582_v35 = vld [vmem:[%s23399_s0 + $0x78] sm:$0xff]  ;;  %v23490_v62 = vld [vmem:[#allocation6_spill] sm:$0xff]  ;;  %v23492_v30 = vld [vmem:[#allocation7_spill] sm:$0xff] }
 0x17b   :  { %v1821_v60 = vpop.f32.mrf.mxu0  ;;  %v2451_v24 = vpop.f32.mrf.mxu1 }
 0x17c   :  { %23489 = vst [vmem:[#allocation21_spill] sm:$0xff] %v19566_v52  ;;  %v19583_v41 = vadd.f32 %v1821_v60, %v23490_v62  ;;  %v19586_v34 = vadd.f32 %v2451_v24, %v19357_v10  ;;  %v14502_v10 = vld [vmem:[%s23399_s0 + $0x2da] sm:$0xff]  ;;  %v14503_v24 = vld [vmem:[%s23399_s0 + $0x2ea] sm:$0xff] }
 0x17d   :  { %v16504_v63 = vpop.f32.mrf.mxu0  ;;  %v16578_v2 = vpop.f32.mrf.mxu1  ;;  %16821 = vmatmul.mubr.msk.f32.gmra.mxu1 %vm163_vm1, %v14500_v19  ;;  %16847 = vmatmul.mubr.msk.f32.gmra.mxu0 %vm163_vm1, %v14581_v17  ;;  %v14583_v19 = vld [vmem:[%s23399_s0 + $0x80] sm:$0xff] }
 0x17e   :  { %23491 = vst [vmem:[#allocation16_spill] sm:$0xff] %v19586_v34  ;;  %v19591_v52 = vadd.f32 %v16504_v63, %v23492_v30  ;;  %v19594_v23 = vadd.f32 %v16578_v2, %v19365_v13  ;;  %16823 = vmatprep.mubr.msk.f32.mxu1 %vm163_vm1, %v14501_v14  ;;  %16849 = vmatprep.mubr.msk.f32.mxu0 %vm163_vm1, %v14582_v35  ;;  %v14584_v13 = vld [vmem:[%s23399_s0 + $0x90] sm:$0xff]  ;;  %v23496_v30 = vld [vmem:[#allocation9_spill] sm:$0xff] }
 0x17f   :  { %v1831_v60 = vpop.f32.mrf.mxu0  ;;  %v2461_v17 = vpop.f32.mrf.mxu1  ;;  %v23494_v14 = vld [vmem:[#allocation8_spill] sm:$0xff] }
 0x180   :  { %23493 = vst [vmem:[#allocation19_spill] sm:$0xff] %v19594_v23  ;;  %v19611_v35 = vadd.f32 %v1831_v60, %v23494_v14  ;;  %v19614_v62 = vadd.f32 %v2461_v17, %v19385_v12  ;;  %v14504_v12 = vld [vmem:[%s23399_s0 + $0x2f2] sm:$0xff]  ;;  %v14505_v17 = vld [vmem:[%s23399_s0 + $0x302] sm:$0xff] }
 0x181   :  { %v16507_v63 = vpop.f32.mrf.mxu0  ;;  %v16581_v2 = vpop.f32.mrf.mxu1  ;;  %16824 = vmatmul.mubr.msk.f32.gmra.mxu1 %vm163_vm1, %v14502_v10  ;;  %16850 = vmatmul.mubr.msk.f32.gmra.mxu0 %vm163_vm1, %v14583_v19  ;;  %v14585_v10 = vld [vmem:[%s23399_s0 + $0x98] sm:$0xff] }
 0x182   :  { %23495 = vst [vmem:[#allocation6_spill] sm:$0xff] %v19614_v62  ;;  %v19619_v23 = vadd.f32 %v16507_v63, %v23496_v30  ;;  %v19622_v34 = vadd.f32 %v16581_v2, %v19393_v0  ;;  %16826 = vmatprep.mubr.msk.f32.mxu1 %vm163_vm1, %v14503_v24  ;;  %16852 = vmatprep.mubr.msk.f32.mxu0 %vm163_vm1, %v14584_v13  ;;  %v14586_v0 = vld [vmem:[%s23399_s0 + $0xa8] sm:$0xff] }
 0x183   :  { %v1841_v60 = vpop.f32.mrf.mxu0  ;;  %v2471_v19 = vpop.f32.mrf.mxu1  ;;  %v23498_v24 = vld [vmem:[#allocation10_spill] sm:$0xff]  ;;  %v23499_v30 = vld [vmem:[#allocation11_spill] sm:$0xff] }
 0x184   :  { %23497 = vst [vmem:[#allocation7_spill] sm:$0xff] %v19622_v34  ;;  %v19639_v13 = vadd.f32 %v1841_v60, %v23498_v24  ;;  %v19642_v14 = vadd.f32 %v2471_v19, %v19413_v46  ;;  %v14506_v46 = vld [vmem:[%s23399_s0 + $0x30a] sm:$0xff]  ;;  %v14507_v19 = vld [vmem:[%s23399_s0 + $0x31a] sm:$0xff] }
 0x185   :  { %v16510_v63 = vpop.f32.mrf.mxu0  ;;  %v16584_v2 = vpop.f32.mrf.mxu1  ;;  %16827 = vmatmul.mubr.msk.f32.gmra.mxu1 %vm163_vm1, %v14504_v12  ;;  %16853 = vmatmul.mubr.msk.f32.gmra.mxu0 %vm163_vm1, %v14585_v10  ;;  %v14587_v12 = vld [vmem:[%s23399_s0 + $0xb0] sm:$0xff] }
 0x186   :  { %v19647_v34 = vadd.f32 %v16510_v63, %v23499_v30  ;;  %v19650_v62 = vadd.f32 %v16584_v2, %v19421_v29  ;;  %16829 = vmatprep.mubr.msk.f32.mxu1 %vm163_vm1, %v14505_v17  ;;  %16855 = vmatprep.mubr.msk.f32.mxu0 %vm163_vm1, %v14586_v0  ;;  %v14588_v29 = vld [vmem:[%s23399_s0 + $0xc0] sm:$0xff]  ;;  %v23501_v17 = vld [vmem:[#allocation12_spill] sm:$0xff] }
 0x187   :  { %v1851_v60 = vpop.f32.mrf.mxu0  ;;  %v2481_v10 = vpop.f32.mrf.mxu1 }
 0x188   :  { %23500 = vst [vmem:[#allocation8_spill] sm:$0xff] %v19650_v62  ;;  %v19667_v0 = vadd.f32 %v1851_v60, %v23501_v17  ;;  %v19670_v24 = vadd.f32 %v2481_v10, %v19441_v51  ;;  %v14508_v51 = vld [vmem:[%s23399_s0 + $0x322] sm:$0xff]  ;;  %v23503_v10 = vld [vmem:[#allocation13_spill] sm:$0xff] }
 0x189   :  { %v16513_v63 = vpop.f32.mrf.mxu0  ;;  %v16587_v2 = vpop.f32.mrf.mxu1  ;;  %16830 = vmatmul.mubr.msk.f32.gmra.mxu1 %vm163_vm1, %v14506_v46  ;;  %16856 = vmatmul.mubr.msk.f32.gmra.mxu0 %vm163_vm1, %v14587_v12  ;;  %v14589_v46 = vld [vmem:[%s23399_s0 + $0xc8] sm:$0xff] }
 0x18a   :  { %v19675_v30 = vadd.f32 %v16513_v63, %v19063_v33  ;;  %v19678_v62 = vadd.f32 %v16587_v2, %v19449_v59  ;;  %16832 = vmatprep.mubr.msk.f32.mxu1 %vm163_vm1, %v14507_v19  ;;  %16858 = vmatprep.mubr.msk.f32.mxu0 %vm163_vm1, %v14588_v29  ;;  %v14509_v33 = vld [vmem:[%s23399_s0 + $0x332] sm:$0xff] }
 0x18b   :  { %v1861_v60 = vpop.f32.mrf.mxu0  ;;  %v2491_v12 = vpop.f32.mrf.mxu1  ;;  %v14590_v59 = vld [vmem:[%s23399_s0 + $0xd8] sm:$0xff] }
 0x18c   :  { %23502 = vst [vmem:[#allocation9_spill] sm:$0xff] %v19678_v62  ;;  %v19695_v19 = vadd.f32 %v1861_v60, %v23503_v10  ;;  %v19698_v29 = vadd.f32 %v2491_v12, %v19469_v3  ;;  %v14510_v3 = vld [vmem:[%s23399_s0 + $0x33a] sm:$0xff] }
 0x18d   :  { %v16516_v17 = vpop.f32.mrf.mxu0  ;;  %v16590_v63 = vpop.f32.mrf.mxu1  ;;  %16833 = vmatmul.mubr.msk.f32.gmra.mxu1 %vm163_vm1, %v14508_v51  ;;  %16859 = vmatmul.mubr.msk.f32.gmra.mxu0 %vm163_vm1, %v14589_v46  ;;  %v14591_v51 = vld [vmem:[%s23399_s0 + $0xe0] sm:$0xff] }
 0x18e   :  { %v19703_v2 = vadd.f32 %v16516_v17, %v19079_v38  ;;  %v19706_v62 = vadd.f32 %v16590_v63, %v19477_v11  ;;  %16835 = vmatprep.mubr.msk.f32.mxu1 %vm163_vm1, %v14509_v33  ;;  %16861 = vmatprep.mubr.msk.f32.mxu0 %vm163_vm1, %v14590_v59  ;;  %v14592_v38 = vld [vmem:[%s23399_s0 + $0xf0] sm:$0xff] }
 0x18f   :  { %v1871_v60 = vpop.f32.mrf.mxu0  ;;  %v2501_v46 = vpop.f32.mrf.mxu1  ;;  %v14705_v11 = vld [vmem:[%s23399_s0 + $0x31] sm:$0xff] }
 0x190   :  { %v19723_v12 = vadd.f32 %v1871_v60, %v19090_v43  ;;  %v19726_v33 = vadd.f32 %v2501_v46, %v19497_v21  ;;  %v14593_v43 = vld [vmem:[%s23399_s0 + $0xf8] sm:$0xff] }
 0x191   :  { %v16519_v59 = vpop.f32.mrf.mxu0  ;;  %v16593_v10 = vpop.f32.mrf.mxu1  ;;  %16836 = vmatmul.mubr.msk.f32.gmra.mxu1 %vm163_vm1, %v14510_v3  ;;  %16862 = vmatmul.mubr.msk.f32.gmra.mxu0 %vm163_vm1, %v14591_v51  ;;  %v14706_v21 = vld [vmem:[%s23399_s0 + $0x39] sm:$0xff] }
 0x192   :  { %v19731_v17 = vadd.f32 %v16519_v59, %v19095_v8  ;;  %v19734_v63 = vadd.f32 %v16593_v10, %v19505_v7  ;;  %16864 = vmatprep.mubr.msk.f32.mxu0 %vm163_vm1, %v14592_v38  ;;  %16938 = vmatprep.mubr.msk.f32.mxu1 %vm163_vm1, %v14705_v11  ;;  %v14594_v8 = vld [vmem:[%s23399_s0 + $0x108] sm:$0xff] }
 0x193   :  { %v1881_v3 = vpop.f32.mrf.mxu0  ;;  %v2511_v51 = vpop.f32.mrf.mxu1  ;;  %v14707_v7 = vld [vmem:[%s23399_s0 + $0x49] sm:$0xff] }
 0x194   :  { %v19751_v60 = vadd.f32 %v1881_v3, %v19106_v56  ;;  %v19754_v46 = vadd.f32 %v2511_v51, %v19522_v5  ;;  %v14595_v56 = vld [vmem:[%s23399_s0 + $0x110] sm:$0xff] }
 0x195   :  { %v16522_v38 = vpop.f32.mrf.mxu0  ;;  %v16596_v11 = vpop.f32.mrf.mxu1  ;;  %16865 = vmatmul.mubr.msk.f32.gmra.mxu0 %vm163_vm1, %v14593_v43  ;;  %16939 = vmatmul.mubr.msk.f32.vlgmr.msra.gmra.mxu1 %vm163_vm1, %v14706_v21  ;;  %v14708_v5 = vld [vmem:[%s23399_s0 + $0x51] sm:$0xff] }
 0x196   :  { %v19759_v59 = vadd.f32 %v16522_v38, %v19111_v55  ;;  %v19762_v10 = vadd.f32 %v16596_v11, %v19533_v42  ;;  %16867 = vmatprep.mubr.msk.f32.mxu0 %vm163_vm1, %v14594_v8  ;;  %16941 = vmatprep.mubr.msk.f32.mxu1 %vm163_vm1, %v14707_v7  ;;  %v14596_v55 = vld [vmem:[%s23399_s0 + $0x120] sm:$0xff] }
 0x197   :  { %v1891_v43 = vpop.f32.mrf.mxu0  ;;  %v2521_v21 = vpop.f32.mrf.mxu1  ;;  %v14709_v42 = vld [vmem:[%s23399_s0 + $0x61] sm:$0xff] }
 0x198   :  { %v19779_v3 = vadd.f32 %v1891_v43, %v19125_v40  ;;  %v19782_v51 = vadd.f32 %v2521_v21, %v19555_v57  ;;  %v14597_v40 = vld [vmem:[%s23399_s0 + $0x128] sm:$0xff] }
 0x199   :  { %v16525_v8 = vpop.f32.mrf.mxu0  ;;  %v16599_v7 = vpop.f32.mrf.mxu1  ;;  %16868 = vmatmul.mubr.msk.f32.gmra.mxu0 %vm163_vm1, %v14595_v56  ;;  %16942 = vmatmul.mubr.msk.f32.gmra.mxu1 %vm163_vm1, %v14708_v5  ;;  %v14710_v57 = vld [vmem:[%s23399_s0 + $0x69] sm:$0xff] }
 0x19a   :  { %v19787_v38 = vadd.f32 %v16525_v8, %v19133_v39  ;;  %v19790_v11 = vadd.f32 %v16599_v7, %v19563_v31  ;;  %16870 = vmatprep.mubr.msk.f32.mxu0 %vm163_vm1, %v14596_v55  ;;  %16944 = vmatprep.mubr.msk.f32.mxu1 %vm163_vm1, %v14709_v42  ;;  %v14598_v39 = vld [vmem:[%s23399_s0 + $0x138] sm:$0xff] }
 0x19b   :  { %v1901_v56 = vpop.f32.mrf.mxu0  ;;  %v2531_v5 = vpop.f32.mrf.mxu1  ;;  %v14711_v31 = vld [vmem:[%s23399_s0 + $0x79] sm:$0xff] }
 0x19c   :  { %v19807_v43 = vadd.f32 %v1901_v56, %v19147_v22  ;;  %v19810_v21 = vadd.f32 %v2531_v5, %v19583_v41  ;;  %v14599_v22 = vld [vmem:[%s23399_s0 + $0x140] sm:$0xff] }
 0x19d   :  { %v16528_v55 = vpop.f32.mrf.mxu0  ;;  %v16602_v42 = vpop.f32.mrf.mxu1  ;;  %16871 = vmatmul.mubr.msk.f32.gmra.mxu0 %vm163_vm1, %v14597_v40  ;;  %16945 = vmatmul.mubr.msk.f32.gmra.mxu1 %vm163_vm1, %v14710_v57  ;;  %v14712_v41 = vld [vmem:[%s23399_s0 + $0x81] sm:$0xff] }
 0x19e   :  { %23504 = vst [vmem:[#allocation10_spill] sm:$0xff] %v19810_v21  ;;  %v19815_v8 = vadd.f32 %v16528_v55, %v19155_v28  ;;  %v19818_v7 = vadd.f32 %v16602_v42, %v19591_v52  ;;  %16873 = vmatprep.mubr.msk.f32.mxu0 %vm163_vm1, %v14598_v39  ;;  %16947 = vmatprep.mubr.msk.f32.mxu1 %vm163_vm1, %v14711_v31  ;;  %v14600_v28 = vld [vmem:[%s23399_s0 + $0x150] sm:$0xff] }
 0x19f   :  { %v1911_v40 = vpop.f32.mrf.mxu0  ;;  %v2541_v57 = vpop.f32.mrf.mxu1  ;;  %v14713_v52 = vld [vmem:[%s23399_s0 + $0x91] sm:$0xff] }
 0x1a0   :  { %23505 = vst [vmem:[#allocation11_spill] sm:$0xff] %v19818_v7  ;;  %v19835_v56 = vadd.f32 %v1911_v40, %v19169_v25  ;;  %v19838_v5 = vadd.f32 %v2541_v57, %v19611_v35  ;;  %v14601_v25 = vld [vmem:[%s23399_s0 + $0x158] sm:$0xff]  ;;  %v23508_v40 = vld [vmem:[#allocation22_spill] sm:$0xff] }
 0x1a1   :  { %v16531_v39 = vpop.f32.mrf.mxu0  ;;  %v16605_v31 = vpop.f32.mrf.mxu1  ;;  %16874 = vmatmul.mubr.msk.f32.gmra.mxu0 %vm163_vm1, %v14599_v22  ;;  %16948 = vmatmul.mubr.msk.f32.gmra.mxu1 %vm163_vm1, %v14712_v41  ;;  %v14714_v35 = vld [vmem:[%s23399_s0 + $0x99] sm:$0xff]  ;;  %v1292_v57 = vadd.f32 %v19202_v26, %v23508_v40  ;;  %v14716_v26 = vld [vmem:[%s23399_s0 + $0xb1] sm:$0xff] }
 0x1a2   :  { %23506 = vst [vmem:[#allocation12_spill] sm:$0xff] %v19838_v5  ;;  %v19843_v55 = vadd.f32 %v16531_v39, %v19177_v32  ;;  %v19846_v42 = vadd.f32 %v16605_v31, %v19619_v23  ;;  %16876 = vmatprep.mubr.msk.f32.mxu0 %vm163_vm1, %v14600_v28  ;;  %16950 = vmatprep.mubr.msk.f32.mxu1 %vm163_vm1, %v14713_v52  ;;  %v14602_v32 = vld [vmem:[%s23399_s0 + $0x168] sm:$0xff]  ;;  %v23511_v40 = vld [vmem:[#allocation25_spill] sm:$0xff] }
 0x1a3   :  { %v1921_v22 = vpop.f32.mrf.mxu0  ;;  %v2551_v41 = vpop.f32.mrf.mxu1  ;;  %v14715_v23 = vld [vmem:[%s23399_s0 + $0xa9] sm:$0xff] }
 0x1a4   :  { %23507 = vst [vmem:[#allocation13_spill] sm:$0xff] %v19846_v42  ;;  %v19865_v28 = vadd.f32 %v1921_v22, %v19197_v50  ;;  %v19868_v52 = vadd.f32 %v2551_v41, %v19639_v13  ;;  %v23509_v42 = vld [vmem:[#allocation23_spill] sm:$0xff] }
 0x1a5   :  { %v16534_v39 = vpop.f32.mrf.mxu0  ;;  %v16608_v31 = vpop.f32.mrf.mxu1  ;;  %16877 = vmatmul.mubr.msk.f32.gmra.mxu0 %vm163_vm1, %v14601_v25  ;;  %16951 = vmatmul.mubr.msk.f32.gmra.mxu1 %vm163_vm1, %v14714_v35  ;;  %v1287_v5 = vadd.f32 %v19217_v58, %v23509_v42  ;;  %v14603_v50 = vld [vmem:[%s23399_s0 + $0x170] sm:$0xff]  ;;  %v14604_v58 = vld [vmem:[%s23399_s0 + $0x180] sm:$0xff] }
 0x1a6   :  { %v19874_v7 = vadd.f32 %v16534_v39, %v1292_v57  ;;  %v19877_v21 = vadd.f32 %v16608_v31, %v19647_v34  ;;  %16879 = vmatprep.mubr.msk.f32.mxu0 %vm163_vm1, %v14602_v32  ;;  %16953 = vmatprep.mubr.msk.f32.mxu1 %vm163_vm1, %v14715_v23  ;;  %v14717_v34 = vld [vmem:[%s23399_s0 + $0xc1] sm:$0xff]  ;;  %v23510_v42 = vld [vmem:[#allocation24_spill] sm:$0xff]  ;;  %v1297_v57 = vadd.f32 %v19243_v48, %v23511_v40 }
 0x1a7   :  { %v1931_v13 = vpop.f32.mrf.mxu0  ;;  %v2561_v25 = vpop.f32.mrf.mxu1  ;;  %v1302_v35 = vadd.f32 %v19228_v6, %v23510_v42  ;;  %v14605_v6 = vld [vmem:[%s23399_s0 + $0x188] sm:$0xff]  ;;  %v14606_v48 = vld [vmem:[%s23399_s0 + $0x198] sm:$0xff] }
 0x1a8   :  { %v19895_v22 = vadd.f32 %v1931_v13, %v1287_v5  ;;  %v19898_v41 = vadd.f32 %v2561_v25, %v19667_v0  ;;  %v14718_v0 = vld [vmem:[%s23399_s0 + $0xc9] sm:$0xff] }
 0x1a9   :  { %v16537_v32 = vpop.f32.mrf.mxu0  ;;  %v16611_v23 = vpop.f32.mrf.mxu1  ;;  %16880 = vmatmul.mubr.msk.f32.gmra.mxu0 %vm163_vm1, %v14603_v50  ;;  %16954 = vmatmul.mubr.msk.f32.gmra.mxu1 %vm163_vm1, %v14716_v26  ;;  %v23512_v26 = vld [vmem:[#allocation26_spill] sm:$0xff] }
 0x1aa   :  { %v19904_v39 = vadd.f32 %v16537_v32, %v1302_v35  ;;  %v19907_v31 = vadd.f32 %v16611_v23, %v19675_v30  ;;  %16882 = vmatprep.mubr.msk.f32.mxu0 %vm163_vm1, %v14604_v58  ;;  %16956 = vmatprep.mubr.msk.f32.mxu1 %vm163_vm1, %v14717_v34  ;;  %v14719_v30 = vld [vmem:[%s23399_s0 + $0xd9] sm:$0xff]  ;;  %v1312_v13 = vadd.f32 %v19254_v1, %v23512_v26  ;;  %v23514_v35 = vld [vmem:[#allocation27_spill] sm:$0xff] }
 0x1ab   :  { %v1941_v5 = vpop.f32.mrf.mxu0  ;;  %v2571_v50 = vpop.f32.mrf.mxu1  ;;  %v1307_v32 = vadd.f32 %v19269_v61, %v23514_v35  ;;  %v14607_v1 = vld [vmem:[%s23399_s0 + $0x1a0] sm:$0xff] }
 0x1ac   :  { %v19925_v25 = vadd.f32 %v1941_v5, %v1297_v57  ;;  %v19928_v58 = vadd.f32 %v2571_v50, %v19695_v19  ;;  %v14720_v19 = vld [vmem:[%s23399_s0 + $0xe1] sm:$0xff] }
 0x1ad   :  { %v16540_v34 = vpop.f32.mrf.mxu0  ;;  %v16614_v42 = vpop.f32.mrf.mxu1  ;;  %16883 = vmatmul.mubr.msk.f32.gmra.mxu0 %vm163_vm1, %v14605_v6  ;;  %16957 = vmatmul.mubr.msk.f32.gmra.mxu1 %vm163_vm1, %v14718_v0  ;;  %v14608_v61 = vld [vmem:[%s23399_s0 + $0x1e0] sm:$0xff]  ;;  %v23516_v0 = vld [vmem:[#allocation28_spill] sm:$0xff] }
 0x1ae   :  { %23513 = vst [vmem:[#allocation22_spill] sm:$0xff] %v19928_v58  ;;  %v19934_v23 = vadd.f32 %v16540_v34, %v1312_v13  ;;  %v19937_v40 = vadd.f32 %v16614_v42, %v19703_v2  ;;  %16885 = vmatprep.mubr.msk.f32.mxu0 %vm163_vm1, %v14606_v48  ;;  %16959 = vmatprep.mubr.msk.f32.mxu1 %vm163_vm1, %v14719_v30  ;;  %v14721_v2 = vld [vmem:[%s23399_s0 + $0xf1] sm:$0xff]  ;;  %v23517_v5 = vld [vmem:[#allocation14_spill] sm:$0xff]  ;;  %v23518_v34 = vld [vmem:[#allocation29_spill] sm:$0xff] }
 0x1af   :  { %v1951_v57 = vpop.f32.mrf.mxu0  ;;  %v2581_v6 = vpop.f32.mrf.mxu1  ;;  %v1322_v50 = vadd.f32 %v23517_v5, %v23516_v0  ;;  %v23519_v42 = vld [vmem:[#allocation15_spill] sm:$0xff] }
 0x1b0   :  { %23515 = vst [vmem:[#allocation23_spill] sm:$0xff] %v19937_v40  ;;  %v19955_v48 = vadd.f32 %v1951_v57, %v1307_v32  ;;  %v19958_v30 = vadd.f32 %v2581_v6, %v19723_v12  ;;  %v1317_v35 = vadd.f32 %v23519_v42, %v23518_v34  ;;  %v14609_v12 = vld [vmem:[%s23399_s0 + $0x1e8] sm:$0xff]  ;;  %v14722_v32 = vld [vmem:[%s23399_s0 + $0xf9] sm:$0xff] }
 0x1b1   :  { %v16543_v26 = vpop.f32.mrf.mxu0  ;;  %v16617_v13 = vpop.f32.mrf.mxu1  ;;  %16886 = vmatmul.mubr.msk.f32.gmra.mxu0 %vm163_vm1, %v14607_v1  ;;  %16960 = vmatmul.mubr.msk.f32.gmra.mxu1 %vm163_vm1, %v14720_v19  ;;  %v14610_v57 = vld [vmem:[%s23399_s0 + $0x1f8] sm:$0xff] }
 0x1b2   :  { %v19964_v40 = vadd.f32 %v16543_v26, %v1322_v50  ;;  %v19967_v58 = vadd.f32 %v16617_v13, %v19731_v17  ;;  %16888 = vmatprep.mubr.msk.f32.mxu0 %vm163_vm1, %v14608_v61  ;;  %16962 = vmatprep.mubr.msk.f32.mxu1 %vm163_vm1, %v14721_v2  ;;  %v14723_v17 = vld [vmem:[%s23399_s0 + $0x109] sm:$0xff]  ;;  %v23520_v50 = vld [vmem:[#allocation17_spill] sm:$0xff]  ;;  %v14724_v13 = vld [vmem:[%s23399_s0 + $0x111] sm:$0xff] }
 0x1b3   :  { %v1961_v1 = vpop.f32.mrf.mxu0  ;;  %v2591_v19 = vpop.f32.mrf.mxu1 }
 0x1b4   :  { %v19983_v6 = vadd.f32 %v1961_v1, %v1317_v35  ;;  %v19986_v61 = vadd.f32 %v2591_v19, %v19751_v60  ;;  %v14611_v60 = vld [vmem:[%s23399_s0 + $0x200] sm:$0xff] }
 0x1b5   :  { %v16620_v2 = vpop.f32.mrf.mxu1  ;;  %v16646_v0 = vpop.f32.mrf.mxu0  ;;  %16889 = vmatmul.mubr.msk.f32.gmra.mxu0 %vm163_vm1, %v14609_v12  ;;  %16963 = vmatmul.mubr.msk.f32.gmra.mxu1 %vm163_vm1, %v14722_v32  ;;  %v14725_v35 = vld [vmem:[%s23399_s0 + $0x121] sm:$0xff] }
 0x1b6   :  { %v19991_v5 = vadd.f32 %v16620_v2, %v19759_v59  ;;  %v19994_v26 = vadd.f32 %v16646_v0, %v23520_v50  ;;  %16891 = vmatprep.mubr.msk.f32.mxu0 %vm163_vm1, %v14610_v57  ;;  %16965 = vmatprep.mubr.msk.f32.mxu1 %vm163_vm1, %v14723_v17  ;;  %v14612_v59 = vld [vmem:[%s23399_s0 + $0x210] sm:$0xff] }
 0x1b7   :  { %v2601_v34 = vpop.f32.mrf.mxu1  ;;  %v3070_v42 = vpop.f32.mrf.mxu0 }
 0x1b8   :  { %v20011_v12 = vadd.f32 %v2601_v34, %v19779_v3  ;;  %v20014_v32 = vadd.f32 %v3070_v42, %v19332_v54  ;;  %v14613_v54 = vld [vmem:[%s23399_s0 + $0x218] sm:$0xff]  ;;  %v14726_v3 = vld [vmem:[%s23399_s0 + $0x129] sm:$0xff] }
 0x1b9   :  { %v16623_v1 = vpop.f32.mrf.mxu1  ;;  %v16649_v19 = vpop.f32.mrf.mxu0  ;;  %16892 = vmatmul.mubr.msk.f32.gmra.mxu0 %vm163_vm1, %v14611_v60  ;;  %16966 = vmatmul.mubr.msk.f32.gmra.mxu1 %vm163_vm1, %v14724_v13 }
 0x1ba   :  { %v20019_v57 = vadd.f32 %v16623_v1, %v19787_v38  ;;  %v20022_v17 = vadd.f32 %v16649_v19, %v19340_v44  ;;  %16894 = vmatprep.mubr.msk.f32.mxu0 %vm163_vm1, %v14612_v59  ;;  %16968 = vmatprep.mubr.msk.f32.mxu1 %vm163_vm1, %v14725_v35  ;;  %v14614_v38 = vld [vmem:[%s23399_s0 + $0x228] sm:$0xff]  ;;  %v14727_v44 = vld [vmem:[%s23399_s0 + $0x139] sm:$0xff] }
 0x1bb   :  { %v2611_v2 = vpop.f32.mrf.mxu1  ;;  %v3080_v0 = vpop.f32.mrf.mxu0 }
 0x1bc   :  { %v20039_v50 = vadd.f32 %v2611_v2, %v19807_v43  ;;  %v20042_v60 = vadd.f32 %v3080_v0, %v19360_v20  ;;  %v14615_v20 = vld [vmem:[%s23399_s0 + $0x230] sm:$0xff]  ;;  %v14728_v43 = vld [vmem:[%s23399_s0 + $0x141] sm:$0xff] }
 0x1bd   :  { %v16626_v13 = vpop.f32.mrf.mxu1  ;;  %v16652_v34 = vpop.f32.mrf.mxu0  ;;  %16895 = vmatmul.mubr.msk.f32.gmra.mxu0 %vm163_vm1, %v14613_v54  ;;  %16969 = vmatmul.mubr.msk.f32.gmra.mxu1 %vm163_vm1, %v14726_v3 }
 0x1be   :  { %v20047_v42 = vadd.f32 %v16626_v13, %v19815_v8  ;;  %v20050_v59 = vadd.f32 %v16652_v34, %v19368_v18  ;;  %16897 = vmatprep.mubr.msk.f32.mxu0 %vm163_vm1, %v14614_v38  ;;  %16971 = vmatprep.mubr.msk.f32.mxu1 %vm163_vm1, %v14727_v44  ;;  %v14616_v8 = vld [vmem:[%s23399_s0 + $0x240] sm:$0xff]  ;;  %v14729_v18 = vld [vmem:[%s23399_s0 + $0x151] sm:$0xff] }
 0x1bf   :  { %v2621_v35 = vpop.f32.mrf.mxu1  ;;  %v3090_v1 = vpop.f32.mrf.mxu0 }
 0x1c0   :  { %v20067_v19 = vadd.f32 %v2621_v35, %v19835_v56  ;;  %v20070_v54 = vadd.f32 %v3090_v1, %v19388_v53  ;;  %v14617_v53 = vld [vmem:[%s23399_s0 + $0x248] sm:$0xff]  ;;  %v14730_v56 = vld [vmem:[%s23399_s0 + $0x159] sm:$0xff] }
 0x1c1   :  { %v16629_v3 = vpop.f32.mrf.mxu1  ;;  %v16655_v2 = vpop.f32.mrf.mxu0  ;;  %16898 = vmatmul.mubr.msk.f32.gmra.mxu0 %vm163_vm1, %v14615_v20  ;;  %16972 = vmatmul.mubr.msk.f32.gmra.mxu1 %vm163_vm1, %v14728_v43 }
 0x1c2   :  { %v20075_v0 = vadd.f32 %v16629_v3, %v19843_v55  ;;  %v20078_v38 = vadd.f32 %v16655_v2, %v19396_v9  ;;  %16900 = vmatprep.mubr.msk.f32.mxu0 %vm163_vm1, %v14616_v8  ;;  %16974 = vmatprep.mubr.msk.f32.mxu1 %vm163_vm1, %v14729_v18  ;;  %v14618_v55 = vld [vmem:[%s23399_s0 + $0x258] sm:$0xff]  ;;  %v14731_v9 = vld [vmem:[%s23399_s0 + $0x169] sm:$0xff] }
 0x1c3   :  { %v2631_v44 = vpop.f32.mrf.mxu1  ;;  %v3100_v13 = vpop.f32.mrf.mxu0 }
 0x1c4   :  { %v20095_v34 = vadd.f32 %v2631_v44, %v19865_v28  ;;  %v20098_v20 = vadd.f32 %v3100_v13, %v19416_v16  ;;  %v14619_v16 = vld [vmem:[%s23399_s0 + $0x260] sm:$0xff]  ;;  %v14732_v28 = vld [vmem:[%s23399_s0 + $0x171] sm:$0xff] }
 0x1c5   :  { %v16632_v43 = vpop.f32.mrf.mxu1  ;;  %v16658_v35 = vpop.f32.mrf.mxu0  ;;  %16901 = vmatmul.mubr.msk.f32.gmra.mxu0 %vm163_vm1, %v14617_v53  ;;  %16975 = vmatmul.mubr.msk.f32.gmra.mxu1 %vm163_vm1, %v14730_v56 }
 0x1c6   :  { %v20103_v1 = vadd.f32 %v16632_v43, %v19874_v7  ;;  %v20106_v8 = vadd.f32 %v16658_v35, %v19424_v27  ;;  %16903 = vmatprep.mubr.msk.f32.mxu0 %vm163_vm1, %v14618_v55  ;;  %16977 = vmatprep.mubr.msk.f32.mxu1 %vm163_vm1, %v14731_v9  ;;  %v14620_v7 = vld [vmem:[%s23399_s0 + $0x270] sm:$0xff]  ;;  %v14733_v27 = vld [vmem:[%s23399_s0 + $0x181] sm:$0xff] }
 0x1c7   :  { %v2641_v18 = vpop.f32.mrf.mxu1  ;;  %v3110_v3 = vpop.f32.mrf.mxu0 }
 0x1c8   :  { %v20123_v2 = vadd.f32 %v2641_v18, %v19895_v22  ;;  %v20126_v53 = vadd.f32 %v3110_v3, %v19444_v37  ;;  %v14621_v37 = vld [vmem:[%s23399_s0 + $0x278] sm:$0xff]  ;;  %v14734_v22 = vld [vmem:[%s23399_s0 + $0x189] sm:$0xff] }
 0x1c9   :  { %v16635_v56 = vpop.f32.mrf.mxu1  ;;  %v16661_v44 = vpop.f32.mrf.mxu0  ;;  %16904 = vmatmul.mubr.msk.f32.gmra.mxu0 %vm163_vm1, %v14619_v16  ;;  %16978 = vmatmul.mubr.msk.f32.gmra.mxu1 %vm163_vm1, %v14732_v28 }
 0x1ca   :  { %v20131_v13 = vadd.f32 %v16635_v56, %v19904_v39  ;;  %v20134_v55 = vadd.f32 %v16661_v44, %v19452_v49  ;;  %16906 = vmatprep.mubr.msk.f32.mxu0 %vm163_vm1, %v14620_v7  ;;  %16980 = vmatprep.mubr.msk.f32.mxu1 %vm163_vm1, %v14733_v27  ;;  %v14622_v39 = vld [vmem:[%s23399_s0 + $0x288] sm:$0xff]  ;;  %v14735_v49 = vld [vmem:[%s23399_s0 + $0x199] sm:$0xff] }
 0x1cb   :  { %v2651_v9 = vpop.f32.mrf.mxu1  ;;  %v3120_v43 = vpop.f32.mrf.mxu0 }
 0x1cc   :  { %v20151_v35 = vadd.f32 %v2651_v9, %v19925_v25  ;;  %v20154_v16 = vadd.f32 %v3120_v43, %v19472_v45  ;;  %v14623_v45 = vld [vmem:[%s23399_s0 + $0x290] sm:$0xff]  ;;  %v14736_v25 = vld [vmem:[%s23399_s0 + $0x1a1] sm:$0xff] }
 0x1cd   :  { %v16638_v28 = vpop.f32.mrf.mxu1  ;;  %v16664_v18 = vpop.f32.mrf.mxu0  ;;  %16907 = vmatmul.mubr.msk.f32.gmra.mxu0 %vm163_vm1, %v14621_v37  ;;  %16981 = vmatmul.mubr.msk.f32.gmra.mxu1 %vm163_vm1, %v14734_v22 }
 0x1ce   :  { %v20159_v3 = vadd.f32 %v16638_v28, %v19934_v23  ;;  %v20162_v7 = vadd.f32 %v16664_v18, %v19480_v4  ;;  %16909 = vmatprep.mubr.msk.f32.mxu0 %vm163_vm1, %v14622_v39  ;;  %16983 = vmatprep.mubr.msk.f32.mxu1 %vm163_vm1, %v14735_v49  ;;  %v14624_v23 = vld [vmem:[%s23399_s0 + $0x2a0] sm:$0xff] }
 0x1cf   :  { %v2661_v27 = vpop.f32.mrf.mxu1  ;;  %v3130_v56 = vpop.f32.mrf.mxu0  ;;  %v14737_v4 = vld [vmem:[%s23399_s0 + $0x1e1] sm:$0xff] }
 0x1d0   :  { %v20179_v44 = vadd.f32 %v2661_v27, %v19955_v48  ;;  %v20182_v37 = vadd.f32 %v3130_v56, %v19500_v36  ;;  %v14625_v36 = vld [vmem:[%s23399_s0 + $0x2a8] sm:$0xff] }
 0x1d1   :  { %v16641_v22 = vpop.f32.mrf.mxu1  ;;  %v16667_v9 = vpop.f32.mrf.mxu0  ;;  %16910 = vmatmul.mubr.msk.f32.gmra.mxu0 %vm163_vm1, %v14623_v45  ;;  %16984 = vmatmul.mubr.msk.f32.gmra.mxu1 %vm163_vm1, %v14736_v25  ;;  %v14738_v48 = vld [vmem:[%s23399_s0 + $0x1e9] sm:$0xff] }
 0x1d2   :  { %v20187_v43 = vadd.f32 %v16641_v22, %v19964_v40  ;;  %v20190_v39 = vadd.f32 %v16667_v9, %v19508_v47  ;;  %16912 = vmatprep.mubr.msk.f32.mxu0 %vm163_vm1, %v14624_v23  ;;  %16986 = vmatprep.mubr.msk.f32.mxu1 %vm163_vm1, %v14737_v4  ;;  %v14626_v40 = vld [vmem:[%s23399_s0 + $0x2b8] sm:$0xff]  ;;  %v23521_v56 = vld [vmem:[#allocation18_spill] sm:$0xff] }
 0x1d3   :  { %v2671_v49 = vpop.f32.mrf.mxu1  ;;  %v3140_v28 = vpop.f32.mrf.mxu0  ;;  %v14739_v47 = vld [vmem:[%s23399_s0 + $0x1f9] sm:$0xff] }
 0x1d4   :  { %v20207_v18 = vadd.f32 %v2671_v49, %v19983_v6  ;;  %v20210_v45 = vadd.f32 %v3140_v28, %v19525_v15  ;;  %v14627_v15 = vld [vmem:[%s23399_s0 + $0x2c0] sm:$0xff] }
 0x1d5   :  { %v16670_v25 = vpop.f32.mrf.mxu0  ;;  %v16744_v27 = vpop.f32.mrf.mxu1  ;;  %16913 = vmatmul.mubr.msk.f32.gmra.mxu0 %vm163_vm1, %v14625_v36  ;;  %16987 = vmatmul.mubr.msk.f32.gmra.mxu1 %vm163_vm1, %v14738_v48  ;;  %v14740_v6 = vld [vmem:[%s23399_s0 + $0x201] sm:$0xff]  ;;  %v14628_v36 = vld [vmem:[%s23399_s0 + $0x2d0] sm:$0xff] }
 0x1d6   :  { %v20215_v23 = vadd.f32 %v16670_v25, %v23521_v56  ;;  %v20218_v4 = vadd.f32 %v16744_v27, %v19994_v26  ;;  %16915 = vmatprep.mubr.msk.f32.mxu0 %vm163_vm1, %v14626_v40  ;;  %16989 = vmatprep.mubr.msk.f32.mxu1 %vm163_vm1, %v14739_v47  ;;  %v14741_v26 = vld [vmem:[%s23399_s0 + $0x211] sm:$0xff]  ;;  %v23524_v25 = vld [vmem:[#allocation21_spill] sm:$0xff] }
 0x1d7   :  { %v3150_v22 = vpop.f32.mrf.mxu0  ;;  %v3779_v9 = vpop.f32.mrf.mxu1  ;;  %v23522_v48 = vld [vmem:[#allocation20_spill] sm:$0xff] }
 0x1d8   :  { %v20235_v49 = vadd.f32 %v3150_v22, %v23522_v48  ;;  %v20238_v28 = vadd.f32 %v3779_v9, %v20014_v32  ;;  %v14629_v32 = vld [vmem:[%s23399_s0 + $0x2d8] sm:$0xff]  ;;  %v14630_v9 = vld [vmem:[%s23399_s0 + $0x2e8] sm:$0xff] }
 0x1d9   :  { %v16673_v40 = vpop.f32.mrf.mxu0  ;;  %v16747_v47 = vpop.f32.mrf.mxu1  ;;  %16916 = vmatmul.mubr.msk.f32.gmra.mxu0 %vm163_vm1, %v14627_v15  ;;  %16990 = vmatmul.mubr.msk.f32.gmra.mxu1 %vm163_vm1, %v14740_v6  ;;  %v14742_v15 = vld [vmem:[%s23399_s0 + $0x219] sm:$0xff] }
 0x1da   :  { %23523 = vst [vmem:[#allocation24_spill] sm:$0xff] %v20235_v49  ;;  %v20243_v27 = vadd.f32 %v16673_v40, %v23524_v25  ;;  %v20246_v56 = vadd.f32 %v16747_v47, %v20022_v17  ;;  %16918 = vmatprep.mubr.msk.f32.mxu0 %vm163_vm1, %v14628_v36  ;;  %16992 = vmatprep.mubr.msk.f32.mxu1 %vm163_vm1, %v14741_v26  ;;  %v14743_v17 = vld [vmem:[%s23399_s0 + $0x229] sm:$0xff]  ;;  %v23526_v36 = vld [vmem:[#allocation16_spill] sm:$0xff] }
 0x1db   :  { %v3160_v22 = vpop.f32.mrf.mxu0  ;;  %v3789_v6 = vpop.f32.mrf.mxu1  ;;  %v23528_v25 = vld [vmem:[#allocation19_spill] sm:$0xff] }
 0x1dc   :  { %23525 = vst [vmem:[#allocation25_spill] sm:$0xff] %v20246_v56  ;;  %v20263_v26 = vadd.f32 %v3160_v22, %v23526_v36  ;;  %v20266_v48 = vadd.f32 %v3789_v6, %v20042_v60  ;;  %v14631_v60 = vld [vmem:[%s23399_s0 + $0x2f0] sm:$0xff]  ;;  %v14632_v6 = vld [vmem:[%s23399_s0 + $0x300] sm:$0xff] }
 0x1dd   :  { %v16676_v40 = vpop.f32.mrf.mxu0  ;;  %v16750_v47 = vpop.f32.mrf.mxu1  ;;  %16919 = vmatmul.mubr.msk.f32.gmra.mxu0 %vm163_vm1, %v14629_v32  ;;  %16993 = vmatmul.mubr.msk.f32.gmra.mxu1 %vm163_vm1, %v14742_v15  ;;  %v14744_v32 = vld [vmem:[%s23399_s0 + $0x231] sm:$0xff] }
 0x1de   :  { %23527 = vst [vmem:[#allocation26_spill] sm:$0xff] %v20263_v26  ;;  %v20271_v49 = vadd.f32 %v16676_v40, %v23528_v25  ;;  %v20274_v56 = vadd.f32 %v16750_v47, %v20050_v59  ;;  %16921 = vmatprep.mubr.msk.f32.mxu0 %vm163_vm1, %v14630_v9  ;;  %16995 = vmatprep.mubr.msk.f32.mxu1 %vm163_vm1, %v14743_v17  ;;  %v14745_v59 = vld [vmem:[%s23399_s0 + $0x241] sm:$0xff]  ;;  %v23532_v25 = vld [vmem:[#allocation7_spill] sm:$0xff] }
 0x1df   :  { %v3170_v22 = vpop.f32.mrf.mxu0  ;;  %v3799_v15 = vpop.f32.mrf.mxu1  ;;  %v23530_v9 = vld [vmem:[#allocation6_spill] sm:$0xff] }
 0x1e0   :  { %23529 = vst [vmem:[#allocation27_spill] sm:$0xff] %v20274_v56  ;;  %v20291_v17 = vadd.f32 %v3170_v22, %v23530_v9  ;;  %v20294_v36 = vadd.f32 %v3799_v15, %v20070_v54  ;;  %v14633_v54 = vld [vmem:[%s23399_s0 + $0x308] sm:$0xff]  ;;  %v14634_v15 = vld [vmem:[%s23399_s0 + $0x318] sm:$0xff] }
 0x1e1   :  { %v16679_v40 = vpop.f32.mrf.mxu0  ;;  %v16753_v47 = vpop.f32.mrf.mxu1  ;;  %16922 = vmatmul.mubr.msk.f32.gmra.mxu0 %vm163_vm1, %v14631_v60  ;;  %16996 = vmatmul.mubr.msk.f32.gmra.mxu1 %vm163_vm1, %v14744_v32  ;;  %v14746_v60 = vld [vmem:[%s23399_s0 + $0x249] sm:$0xff] }
 0x1e2   :  { %23531 = vst [vmem:[#allocation28_spill] sm:$0xff] %v20291_v17  ;;  %v20299_v26 = vadd.f32 %v16679_v40, %v23532_v25  ;;  %v20302_v56 = vadd.f32 %v16753_v47, %v20078_v38  ;;  %16924 = vmatprep.mubr.msk.f32.mxu0 %vm163_vm1, %v14632_v6  ;;  %16998 = vmatprep.mubr.msk.f32.mxu1 %vm163_vm1, %v14745_v59  ;;  %v14747_v38 = vld [vmem:[%s23399_s0 + $0x259] sm:$0xff] }
 0x1e3   :  { %v3180_v22 = vpop.f32.mrf.mxu0  ;;  %v3809_v32 = vpop.f32.mrf.mxu1  ;;  %v23534_v47 = vld [vmem:[#allocation8_spill] sm:$0xff] }
 0x1e4   :  { %v20319_v6 = vadd.f32 %v3180_v22, %v19642_v14  ;;  %v20322_v59 = vadd.f32 %v3809_v32, %v20098_v20  ;;  %v14635_v14 = vld [vmem:[%s23399_s0 + $0x320] sm:$0xff]  ;;  %v14636_v22 = vld [vmem:[%s23399_s0 + $0x330] sm:$0xff] }
 0x1e5   :  { %v16682_v9 = vpop.f32.mrf.mxu0  ;;  %v16756_v40 = vpop.f32.mrf.mxu1  ;;  %16925 = vmatmul.mubr.msk.f32.gmra.mxu0 %vm163_vm1, %v14633_v54  ;;  %16999 = vmatmul.mubr.msk.f32.gmra.mxu1 %vm163_vm1, %v14746_v60  ;;  %v14748_v20 = vld [vmem:[%s23399_s0 + $0x261] sm:$0xff] }
 0x1e6   :  { %23533 = vst [vmem:[#allocation14_spill] sm:$0xff] %v20319_v6  ;;  %v20327_v25 = vadd.f32 %v16682_v9, %v23534_v47  ;;  %v20330_v17 = vadd.f32 %v16756_v40, %v20106_v8  ;;  %16927 = vmatprep.mubr.msk.f32.mxu0 %vm163_vm1, %v14634_v15  ;;  %17001 = vmatprep.mubr.msk.f32.mxu1 %vm163_vm1, %v14747_v38  ;;  %v14749_v8 = vld [vmem:[%s23399_s0 + $0x271] sm:$0xff]  ;;  %v23535_v40 = vld [vmem:[#allocation9_spill] sm:$0xff] }
 0x1e7   :  { %v3190_v54 = vpop.f32.mrf.mxu0  ;;  %v3819_v60 = vpop.f32.mrf.mxu1 }
 0x1e8   :  { %v20347_v32 = vadd.f32 %v3190_v54, %v19670_v24  ;;  %v20350_v15 = vadd.f32 %v3819_v60, %v20126_v53  ;;  %v14637_v24 = vld [vmem:[%s23399_s0 + $0x338] sm:$0xff]  ;;  %v14638_v54 = vld [vmem:[%s23399_s0 + $0x348] sm:$0xff] }
 0x1e9   :  { %v16685_v38 = vpop.f32.mrf.mxu0  ;;  %v16759_v9 = vpop.f32.mrf.mxu1  ;;  %16928 = vmatmul.mubr.msk.f32.gmra.mxu0 %vm163_vm1, %v14635_v14  ;;  %17002 = vmatmul.mubr.msk.f32.gmra.mxu1 %vm163_vm1, %v14748_v20  ;;  %v14750_v53 = vld [vmem:[%s23399_s0 + $0x279] sm:$0xff] }
 0x1ea   :  { %v20355_v47 = vadd.f32 %v16685_v38, %v23535_v40  ;;  %v20358_v6 = vadd.f32 %v16759_v9, %v20134_v55  ;;  %16930 = vmatprep.mubr.msk.f32.mxu0 %vm163_vm1, %v14636_v22  ;;  %17004 = vmatprep.mubr.msk.f32.mxu1 %vm163_vm1, %v14749_v8  ;;  %v14751_v55 = vld [vmem:[%s23399_s0 + $0x289] sm:$0xff] }
 0x1eb   :  { %v3200_v14 = vpop.f32.mrf.mxu0  ;;  %v3829_v20 = vpop.f32.mrf.mxu1 }
 0x1ec   :  { %v20375_v60 = vadd.f32 %v3200_v14, %v19698_v29  ;;  %v20378_v22 = vadd.f32 %v3829_v20, %v20154_v16  ;;  %v14639_v29 = vld [vmem:[%s23399_s0 + $0x350] sm:$0xff] }
 0x1ed   :  { %v16688_v8 = vpop.f32.mrf.mxu0  ;;  %v16762_v38 = vpop.f32.mrf.mxu1  ;;  %16931 = vmatmul.mubr.msk.f32.gmra.mxu0 %vm163_vm1, %v14637_v24  ;;  %17005 = vmatmul.mubr.msk.f32.gmra.mxu1 %vm163_vm1, %v14750_v53  ;;  %v14752_v16 = vld [vmem:[%s23399_s0 + $0x291] sm:$0xff] }
 0x1ee   :  { %23536 = vst [vmem:[#allocation29_spill] sm:$0xff] %v20375_v60  ;;  %v20383_v9 = vadd.f32 %v16688_v8, %v19706_v62  ;;  %v20386_v40 = vadd.f32 %v16762_v38, %v20162_v7  ;;  %16933 = vmatprep.mubr.msk.f32.mxu0 %vm163_vm1, %v14638_v54  ;;  %17007 = vmatprep.mubr.msk.f32.mxu1 %vm163_vm1, %v14751_v55  ;;  %v14753_v62 = vld [vmem:[%s23399_s0 + $0x2a1] sm:$0xff]  ;;  %v14834_v7 = vld [vmem:[%s23399_s0 + $0x32] sm:$0xff] }
 0x1ef   :  { %v3210_v24 = vpop.f32.mrf.mxu0  ;;  %v3839_v53 = vpop.f32.mrf.mxu1 }
 0x1f0   :  { %v20403_v14 = vadd.f32 %v3210_v24, %v19726_v33  ;;  %v20406_v20 = vadd.f32 %v3839_v53, %v20182_v37  ;;  %v14754_v33 = vld [vmem:[%s23399_s0 + $0x2a9] sm:$0xff]  ;;  %v14835_v37 = vld [vmem:[%s23399_s0 + $0x3a] sm:$0xff] }
 0x1f1   :  { %v16691_v54 = vpop.f32.mrf.mxu0  ;;  %v16765_v55 = vpop.f32.mrf.mxu1  ;;  %16934 = vmatmul.mubr.msk.f32.gmra.mxu0 %vm163_vm1, %v14639_v29  ;;  %17008 = vmatmul.mubr.msk.f32.gmra.mxu1 %vm163_vm1, %v14752_v16 }
 0x1f2   :  { %23537 = vst [vmem:[#allocation15_spill] sm:$0xff] %v20403_v14  ;;  %v20411_v8 = vadd.f32 %v16691_v54, %v19734_v63  ;;  %v20414_v38 = vadd.f32 %v16765_v55, %v20190_v39  ;;  %17010 = vmatprep.mubr.msk.f32.mxu1 %vm163_vm1, %v14753_v62  ;;  %17036 = vmatprep.mubr.msk.f32.mxu0 %vm163_vm1, %v14834_v7  ;;  %v14755_v63 = vld [vmem:[%s23399_s0 + $0x2b9] sm:$0xff]  ;;  %v14836_v39 = vld [vmem:[%s23399_s0 + $0x4a] sm:$0xff] }
 0x1f3   :  { %v3220_v29 = vpop.f32.mrf.mxu0  ;;  %v3849_v16 = vpop.f32.mrf.mxu1 }
 0x1f4   :  { %v20431_v24 = vadd.f32 %v3220_v29, %v19754_v46  ;;  %v20434_v53 = vadd.f32 %v3849_v16, %v20210_v45  ;;  %v14756_v46 = vld [vmem:[%s23399_s0 + $0x2c1] sm:$0xff]  ;;  %v14837_v45 = vld [vmem:[%s23399_s0 + $0x52] sm:$0xff] }
 0x1f5   :  { %v16694_v62 = vpop.f32.mrf.mxu0  ;;  %v16768_v7 = vpop.f32.mrf.mxu1  ;;  %17011 = vmatmul.mubr.msk.f32.gmra.mxu1 %vm163_vm1, %v14754_v33  ;;  %17037 = vmatmul.mubr.msk.f32.vlgmr.msra.gmra.mxu0 %vm163_vm1, %v14835_v37 }
 0x1f6   :  { %23538 = vst [vmem:[#allocation17_spill] sm:$0xff] %v20431_v24  ;;  %v20439_v54 = vadd.f32 %v16694_v62, %v19762_v10  ;;  %v20442_v55 = vadd.f32 %v16768_v7, %v20215_v23  ;;  %17013 = vmatprep.mubr.msk.f32.mxu1 %vm163_vm1, %v14755_v63  ;;  %17039 = vmatprep.mubr.msk.f32.mxu0 %vm163_vm1, %v14836_v39  ;;  %v14757_v10 = vld [vmem:[%s23399_s0 + $0x2d1] sm:$0xff]  ;;  %v14838_v23 = vld [vmem:[%s23399_s0 + $0x62] sm:$0xff] }
 0x1f7   :  { %v3230_v33 = vpop.f32.mrf.mxu0  ;;  %v20452_v37 = vpop.f32.mrf.mxu1  ;;  %v14839_v7 = vld [vmem:[%s23399_s0 + $0x6a] sm:$0xff] }
 0x1f8   :  { %v20461_v29 = vadd.f32 %v3230_v33, %v19782_v51  ;;  %v14758_v51 = vld [vmem:[%s23399_s0 + $0x2d9] sm:$0xff]  ;;  %v23540_v33 = vld [vmem:[#allocation10_spill] sm:$0xff] }
 0x1f9   :  { %v16697_v16 = vpop.f32.mrf.mxu0  ;;  %v16771_v63 = vpop.f32.mrf.mxu1  ;;  %17014 = vmatmul.mubr.msk.f32.gmra.mxu1 %vm163_vm1, %v14756_v46  ;;  %17040 = vmatmul.mubr.msk.f32.gmra.mxu0 %vm163_vm1, %v14837_v45 }
 0x1fa   :  { %23539 = vst [vmem:[#allocation18_spill] sm:$0xff] %v20461_v29  ;;  %v20466_v39 = vadd.f32 %v16697_v16, %v19790_v11  ;;  %v20469_v62 = vadd.f32 %v16771_v63, %v20243_v27  ;;  %17016 = vmatprep.mubr.msk.f32.mxu1 %vm163_vm1, %v14757_v10  ;;  %17042 = vmatprep.mubr.msk.f32.mxu0 %vm163_vm1, %v14838_v23  ;;  %v14759_v11 = vld [vmem:[%s23399_s0 + $0x2e9] sm:$0xff]  ;;  %v14840_v27 = vld [vmem:[%s23399_s0 + $0x7a] sm:$0xff] }
 0x1fb   :  { %v3240_v46 = vpop.f32.mrf.mxu0  ;;  %v20479_v45 = vpop.f32.mrf.mxu1  ;;  %v23542_v63 = vld [vmem:[#allocation11_spill] sm:$0xff] }
 0x1fc   :  { %v20488_v10 = vadd.f32 %v3240_v46, %v23540_v33  ;;  %v14760_v46 = vld [vmem:[%s23399_s0 + $0x2f1] sm:$0xff] }
 0x1fd   :  { %v16700_v23 = vpop.f32.mrf.mxu0  ;;  %v16774_v16 = vpop.f32.mrf.mxu1  ;;  %17017 = vmatmul.mubr.msk.f32.gmra.mxu1 %vm163_vm1, %v14758_v51  ;;  %17043 = vmatmul.mubr.msk.f32.gmra.mxu0 %vm163_vm1, %v14839_v7  ;;  %v14841_v51 = vld [vmem:[%s23399_s0 + $0x82] sm:$0xff] }
 0x1fe   :  { %23541 = vst [vmem:[#allocation20_spill] sm:$0xff] %v20488_v10  ;;  %v20493_v29 = vadd.f32 %v16700_v23, %v23542_v63  ;;  %v20496_v24 = vadd.f32 %v16774_v16, %v20271_v49  ;;  %17019 = vmatprep.mubr.msk.f32.mxu1 %vm163_vm1, %v14759_v11  ;;  %17045 = vmatprep.mubr.msk.f32.mxu0 %vm163_vm1, %v14840_v27  ;;  %v14761_v49 = vld [vmem:[%s23399_s0 + $0x301] sm:$0xff]  ;;  %v14842_v11 = vld [vmem:[%s23399_s0 + $0x92] sm:$0xff] }
 0x1ff   :  { %v3250_v33 = vpop.f32.mrf.mxu0  ;;  %v20506_v7 = vpop.f32.mrf.mxu1  ;;  %v23543_v27 = vld [vmem:[#allocation12_spill] sm:$0xff]  ;;  %v23545_v10 = vld [vmem:[#allocation13_spill] sm:$0xff] }
 0x200   :  { %v20515_v23 = vadd.f32 %v3250_v33, %v23543_v27  ;;  %v14762_v33 = vld [vmem:[%s23399_s0 + $0x309] sm:$0xff] }
 0x201   :  { %v16703_v16 = vpop.f32.mrf.mxu0  ;;  %v16777_v63 = vpop.f32.mrf.mxu1  ;;  %17020 = vmatmul.mubr.msk.f32.gmra.mxu1 %vm163_vm1, %v14760_v46  ;;  %17046 = vmatmul.mubr.msk.f32.gmra.mxu0 %vm163_vm1, %v14841_v51  ;;  %v14843_v46 = vld [vmem:[%s23399_s0 + $0x9a] sm:$0xff] }
 0x202   :  { %23544 = vst [vmem:[#allocation21_spill] sm:$0xff] %v20515_v23  ;;  %v20520_v14 = vadd.f32 %v16703_v16, %v23545_v10  ;;  %v20523_v60 = vadd.f32 %v16777_v63, %v20299_v26  ;;  %17022 = vmatprep.mubr.msk.f32.mxu1 %vm163_vm1, %v14761_v49  ;;  %17048 = vmatprep.mubr.msk.f32.mxu0 %vm163_vm1, %v14842_v11  ;;  %v14763_v26 = vld [vmem:[%s23399_s0 + $0x319] sm:$0xff]  ;;  %v14844_v10 = vld [vmem:[%s23399_s0 + $0xaa] sm:$0xff] }
 0x203   :  { %v3260_v27 = vpop.f32.mrf.mxu0  ;;  %v20533_v51 = vpop.f32.mrf.mxu1 }
 0x204   :  { %v20542_v49 = vadd.f32 %v3260_v27, %v19868_v52  ;;  %v14764_v52 = vld [vmem:[%s23399_s0 + $0x321] sm:$0xff] }
 0x205   :  { %v16706_v11 = vpop.f32.mrf.mxu0  ;;  %v16780_v16 = vpop.f32.mrf.mxu1  ;;  %17023 = vmatmul.mubr.msk.f32.gmra.mxu1 %vm163_vm1, %v14762_v33  ;;  %17049 = vmatmul.mubr.msk.f32.gmra.mxu0 %vm163_vm1, %v14843_v46  ;;  %v14845_v33 = vld [vmem:[%s23399_s0 + $0xb2] sm:$0xff] }
 0x206   :  { %23546 = vst [vmem:[#allocation16_spill] sm:$0xff] %v20542_v49  ;;  %v20547_v63 = vadd.f32 %v16706_v11, %v19877_v21  ;;  %v20550_v23 = vadd.f32 %v16780_v16, %v20327_v25  ;;  %17025 = vmatprep.mubr.msk.f32.mxu1 %vm163_vm1, %v14763_v26  ;;  %17051 = vmatprep.mubr.msk.f32.mxu0 %vm163_vm1, %v14844_v10  ;;  %v14765_v21 = vld [vmem:[%s23399_s0 + $0x331] sm:$0xff]  ;;  %v14846_v25 = vld [vmem:[%s23399_s0 + $0xc2] sm:$0xff] }
 0x207   :  { %v3270_v27 = vpop.f32.mrf.mxu0  ;;  %v20560_v46 = vpop.f32.mrf.mxu1 }
 0x208   :  { %23547 = vst [vmem:[#allocation19_spill] sm:$0xff] %v20560_v46  ;;  %v20569_v26 = vadd.f32 %v3270_v27, %v19898_v41  ;;  %v14766_v41 = vld [vmem:[%s23399_s0 + $0x339] sm:$0xff] }
 0x209   :  { %v16709_v10 = vpop.f32.mrf.mxu0  ;;  %v16783_v11 = vpop.f32.mrf.mxu1  ;;  %17026 = vmatmul.mubr.msk.f32.gmra.mxu1 %vm163_vm1, %v14764_v52  ;;  %17052 = vmatmul.mubr.msk.f32.gmra.mxu0 %vm163_vm1, %v14845_v33  ;;  %v14847_v52 = vld [vmem:[%s23399_s0 + $0xca] sm:$0xff] }
 0x20a   :  { %23548 = vst [vmem:[#allocation6_spill] sm:$0xff] %v20569_v26  ;;  %v20574_v16 = vadd.f32 %v16709_v10, %v19907_v31  ;;  %v20577_v49 = vadd.f32 %v16783_v11, %v20355_v47  ;;  %17028 = vmatprep.mubr.msk.f32.mxu1 %vm163_vm1, %v14765_v21  ;;  %17054 = vmatprep.mubr.msk.f32.mxu0 %vm163_vm1, %v14846_v25  ;;  %v14767_v31 = vld [vmem:[%s23399_s0 + $0x349] sm:$0xff]  ;;  %v14848_v47 = vld [vmem:[%s23399_s0 + $0xda] sm:$0xff] }
 0x20b   :  { %v3280_v27 = vpop.f32.mrf.mxu0  ;;  %v20587_v33 = vpop.f32.mrf.mxu1  ;;  %v23550_v21 = vld [vmem:[#allocation22_spill] sm:$0xff]  ;;  %v23552_v26 = vld [vmem:[#allocation23_spill] sm:$0xff] }
 0x20c   :  { %23549 = vst [vmem:[#allocation7_spill] sm:$0xff] %v20587_v33  ;;  %v20596_v25 = vadd.f32 %v3280_v27, %v23550_v21  ;;  %v14768_v27 = vld [vmem:[%s23399_s0 + $0x351] sm:$0xff] }
 0x20d   :  { %v16712_v10 = vpop.f32.mrf.mxu0  ;;  %v16786_v11 = vpop.f32.mrf.mxu1  ;;  %17029 = vmatmul.mubr.msk.f32.gmra.mxu1 %vm163_vm1, %v14766_v41  ;;  %17055 = vmatmul.mubr.msk.f32.gmra.mxu0 %vm163_vm1, %v14847_v52  ;;  %v14849_v41 = vld [vmem:[%s23399_s0 + $0xe2] sm:$0xff] }
 0x20e   :  { %23551 = vst [vmem:[#allocation8_spill] sm:$0xff] %v20596_v25  ;;  %v20601_v46 = vadd.f32 %v16712_v10, %v23552_v26  ;;  %v20604_v33 = vadd.f32 %v16786_v11, %v20383_v9  ;;  %17031 = vmatprep.mubr.msk.f32.mxu1 %vm163_vm1, %v14767_v31  ;;  %17057 = vmatprep.mubr.msk.f32.mxu0 %vm163_vm1, %v14848_v47  ;;  %v14850_v9 = vld [vmem:[%s23399_s0 + $0xf2] sm:$0xff]  ;;  %v14851_v25 = vld [vmem:[%s23399_s0 + $0xfa] sm:$0xff] }
 0x20f   :  { %v3290_v21 = vpop.f32.mrf.mxu0  ;;  %v20614_v52 = vpop.f32.mrf.mxu1 }
 0x210   :  { %v20620_v26 = vadd.f32 %v3290_v21, %v19958_v30 }
 0x211   :  { %v16715_v31 = vpop.f32.mrf.mxu0  ;;  %v16789_v47 = vpop.f32.mrf.mxu1  ;;  %17032 = vmatmul.mubr.msk.f32.gmra.mxu1 %vm163_vm1, %v14768_v27  ;;  %17058 = vmatmul.mubr.msk.f32.gmra.mxu0 %vm163_vm1, %v14849_v41  ;;  %v14852_v27 = vld [vmem:[%s23399_s0 + $0x10a] sm:$0xff] }
 0x212   :  { %23553 = vst [vmem:[#allocation9_spill] sm:$0xff] %v20620_v26  ;;  %v20625_v10 = vadd.f32 %v16715_v31, %v19967_v58  ;;  %v20628_v11 = vadd.f32 %v16789_v47, %v20411_v8  ;;  %17060 = vmatprep.mubr.msk.f32.mxu0 %vm163_vm1, %v14850_v9  ;;  %v14853_v47 = vld [vmem:[%s23399_s0 + $0x112] sm:$0xff] }
 0x213   :  { %v3300_v30 = vpop.f32.mrf.mxu0  ;;  %v20634_v21 = vpop.f32.mrf.mxu1 }
 0x214   :  { %23554 = vst [vmem:[#allocation10_spill] sm:$0xff] %v20634_v21  ;;  %v20640_v41 = vadd.f32 %v3300_v30, %v19986_v61  ;;  %v14854_v61 = vld [vmem:[%s23399_s0 + $0x122] sm:$0xff] }
 0x215   :  { %v16718_v58 = vpop.f32.mrf.mxu0  ;;  %v16792_v31 = vpop.f32.mrf.mxu1  ;;  %17061 = vmatmul.mubr.msk.f32.gmra.mxu0 %vm163_vm1, %v14851_v25 }
 0x216   :  { %23555 = vst [vmem:[#allocation11_spill] sm:$0xff] %v20640_v41  ;;  %v20644_v8 = vadd.f32 %v16718_v58, %v19991_v5  ;;  %v20647_v9 = vadd.f32 %v16792_v31, %v20439_v54  ;;  %17063 = vmatprep.mubr.msk.f32.mxu0 %vm163_vm1, %v14852_v27  ;;  %v14855_v58 = vld [vmem:[%s23399_s0 + $0x12a] sm:$0xff] }
 0x217   :  { %v3310_v26 = vpop.f32.mrf.mxu0  ;;  %v20653_v21 = vpop.f32.mrf.mxu1 }
 0x218   :  { %v20659_v25 = vadd.f32 %v3310_v26, %v20011_v12  ;;  %v14856_v12 = vld [vmem:[%s23399_s0 + $0x13a] sm:$0xff] }
 0x219   :  { %v16721_v5 = vpop.f32.mrf.mxu0  ;;  %v16795_v30 = vpop.f32.mrf.mxu1  ;;  %17064 = vmatmul.mubr.msk.f32.gmra.mxu0 %vm163_vm1, %v14853_v47 }
 0x21a   :  { %23556 = vst [vmem:[#allocation12_spill] sm:$0xff] %v20659_v25  ;;  %v20663_v54 = vadd.f32 %v16721_v5, %v20019_v57  ;;  %v20666_v27 = vadd.f32 %v16795_v30, %v20466_v39  ;;  %17066 = vmatprep.mubr.msk.f32.mxu0 %vm163_vm1, %v14854_v61  ;;  %v14857_v5 = vld [vmem:[%s23399_s0 + $0x142] sm:$0xff] }
 0x21b   :  { %v3320_v31 = vpop.f32.mrf.mxu0  ;;  %v20672_v41 = vpop.f32.mrf.mxu1 }
 0x21c   :  { %v20678_v26 = vadd.f32 %v3320_v31, %v20039_v50  ;;  %v14858_v50 = vld [vmem:[%s23399_s0 + $0x152] sm:$0xff] }
 0x21d   :  { %v16724_v57 = vpop.f32.mrf.mxu0  ;;  %v16798_v47 = vpop.f32.mrf.mxu1  ;;  %17067 = vmatmul.mubr.msk.f32.gmra.mxu0 %vm163_vm1, %v14855_v58 }
 0x21e   :  { %23557 = vst [vmem:[#allocation13_spill] sm:$0xff] %v20678_v26  ;;  %v20682_v39 = vadd.f32 %v16724_v57, %v20047_v42  ;;  %v20685_v61 = vadd.f32 %v16798_v47, %v20493_v29  ;;  %17069 = vmatprep.mubr.msk.f32.mxu0 %vm163_vm1, %v14856_v12  ;;  %v14859_v57 = vld [vmem:[%s23399_s0 + $0x15a] sm:$0xff] }
 0x21f   :  { %v3330_v30 = vpop.f32.mrf.mxu0  ;;  %v20691_v25 = vpop.f32.mrf.mxu1 }
 0x220   :  { %v20697_v58 = vadd.f32 %v3330_v30, %v20067_v19  ;;  %v14860_v19 = vld [vmem:[%s23399_s0 + $0x16a] sm:$0xff] }
 0x221   :  { %v16727_v42 = vpop.f32.mrf.mxu0  ;;  %v16801_v31 = vpop.f32.mrf.mxu1  ;;  %17070 = vmatmul.mubr.msk.f32.gmra.mxu0 %vm163_vm1, %v14857_v5 }
 0x222   :  { %23558 = vst [vmem:[#allocation22_spill] sm:$0xff] %v20697_v58  ;;  %v20701_v29 = vadd.f32 %v16727_v42, %v20075_v0  ;;  %v20704_v12 = vadd.f32 %v16801_v31, %v20520_v14  ;;  %17072 = vmatprep.mubr.msk.f32.mxu0 %vm163_vm1, %v14858_v50  ;;  %v14861_v42 = vld [vmem:[%s23399_s0 + $0x172] sm:$0xff] }
 0x223   :  { %v3340_v47 = vpop.f32.mrf.mxu0  ;;  %v20710_v26 = vpop.f32.mrf.mxu1 }
 0x224   :  { %v20716_v5 = vadd.f32 %v3340_v47, %v20095_v34  ;;  %v14862_v34 = vld [vmem:[%s23399_s0 + $0x182] sm:$0xff] }
 0x225   :  { %v16730_v0 = vpop.f32.mrf.mxu0  ;;  %v16804_v30 = vpop.f32.mrf.mxu1  ;;  %17073 = vmatmul.mubr.msk.f32.gmra.mxu0 %vm163_vm1, %v14859_v57 }
 0x226   :  { %23559 = vst [vmem:[#allocation23_spill] sm:$0xff] %v20716_v5  ;;  %v20720_v14 = vadd.f32 %v16730_v0, %v20103_v1  ;;  %v20723_v50 = vadd.f32 %v16804_v30, %v20547_v63  ;;  %17075 = vmatprep.mubr.msk.f32.mxu0 %vm163_vm1, %v14860_v19  ;;  %v14863_v0 = vld [vmem:[%s23399_s0 + $0x18a] sm:$0xff] }
 0x227   :  { %v3350_v31 = vpop.f32.mrf.mxu0  ;;  %v20729_v58 = vpop.f32.mrf.mxu1 }
 0x228   :  { %v20735_v57 = vadd.f32 %v3350_v31, %v20123_v2  ;;  %v14864_v2 = vld [vmem:[%s23399_s0 + $0x19a] sm:$0xff] }
 0x229   :  { %v16733_v1 = vpop.f32.mrf.mxu0  ;;  %v16807_v47 = vpop.f32.mrf.mxu1  ;;  %17076 = vmatmul.mubr.msk.f32.gmra.mxu0 %vm163_vm1, %v14861_v42 }
 0x22a   :  { %23560 = vst [vmem:[#allocation30_spill] sm:$0xff] %v20735_v57  ;;  %v20739_v63 = vadd.f32 %v16733_v1, %v20131_v13  ;;  %v20742_v19 = vadd.f32 %v16807_v47, %v20574_v16  ;;  %17078 = vmatprep.mubr.msk.f32.mxu0 %vm163_vm1, %v14862_v34  ;;  %v14865_v1 = vld [vmem:[%s23399_s0 + $0x1a2] sm:$0xff] }
 0x22b   :  { %v3360_v30 = vpop.f32.mrf.mxu0  ;;  %v20748_v5 = vpop.f32.mrf.mxu1 }
 0x22c   :  { %v20754_v42 = vadd.f32 %v3360_v30, %v20151_v35  ;;  %v14866_v35 = vld [vmem:[%s23399_s0 + $0x1e2] sm:$0xff] }
 0x22d   :  { %v16736_v13 = vpop.f32.mrf.mxu0  ;;  %v16810_v31 = vpop.f32.mrf.mxu1  ;;  %17079 = vmatmul.mubr.msk.f32.gmra.mxu0 %vm163_vm1, %v14863_v0 }
 0x22e   :  { %23561 = vst [vmem:[#allocation31_spill] sm:$0xff] %v20754_v42  ;;  %v20758_v16 = vadd.f32 %v16736_v13, %v20159_v3  ;;  %v20761_v34 = vadd.f32 %v16810_v31, %v20601_v46  ;;  %17081 = vmatprep.mubr.msk.f32.mxu0 %vm163_vm1, %v14864_v2  ;;  %v14867_v13 = vld [vmem:[%s23399_s0 + $0x1ea] sm:$0xff] }
 0x22f   :  { %v3370_v47 = vpop.f32.mrf.mxu0  ;;  %v20767_v57 = vpop.f32.mrf.mxu1 }
 0x230   :  { %v20773_v0 = vadd.f32 %v3370_v47, %v20179_v44  ;;  %v9852_v44 = vld [vmem:[%s23402_s3 + $0x8] sm:$0xff] }
 0x231   :  { %v16739_v3 = vpop.f32.mrf.mxu0  ;;  %v16813_v30 = vpop.f32.mrf.mxu1  ;;  %17082 = vmatmul.mubr.msk.f32.gmra.mxu0 %vm163_vm1, %v14865_v1  ;;  %17132 = vmatprep.subr.mxu1 %v9852_v44 }
 0x232   :  { %23562 = vst [vmem:[#allocation32_spill] sm:$0xff] %v20773_v0  ;;  %v20777_v46 = vadd.f32 %v16739_v3, %v20187_v43  ;;  %v20780_v2 = vadd.f32 %v16813_v30, %v20625_v10  ;;  %17084 = vmatprep.mubr.msk.f32.mxu0 %vm163_vm1, %v14866_v35  ;;  %v14868_v43 = vld [vmem:[%s23399_s0 + $0x1fa] sm:$0xff]  ;;  %17133 = vmatpush3.msra.mxu1 %v9852_v44  ;;  %v14869_v0 = vld [vmem:[%s23399_s0 + $0x202] sm:$0xff]  ;;  %v14870_v44 = vld [vmem:[%s23399_s0 + $0x212] sm:$0xff] }
 0x233   :  { %v3380_v31 = vpop.f32.mrf.mxu0  ;;  %v20789_v47 = vpop.f32.mrf.mxu1 }
 0x234   :  { %v20795_v10 = vadd.f32 %v3380_v31, %v20207_v18 }
 0x235   :  { %v16816_v1 = vpop.f32.mrf.mxu1  ;;  %v16842_v35 = vpop.f32.mrf.mxu0  ;;  %17085 = vmatmul.mubr.msk.f32.gmra.mxu0 %vm163_vm1, %v14867_v13 }
 0x236   :  { %23563 = vst [vmem:[#allocation33_spill] sm:$0xff] %v20795_v10  ;;  %v20799_v3 = vadd.f32 %v16816_v1, %v20644_v8  ;;  %v20802_v30 = vadd.f32 %v16842_v35, %v20218_v4  ;;  %17087 = vmatprep.mubr.msk.f32.mxu0 %vm163_vm1, %v14868_v43  ;;  %v23565_v43 = vld [vmem:[#allocation25_spill] sm:$0xff] }
 0x237   :  { %v20808_v42 = vpop.f32.mrf.mxu1  ;;  %v4489_v18 = vpop.f32.mrf.mxu0  ;;  %v14871_v35 = vld [vmem:[%s23399_s0 + $0x21a] sm:$0xff] }
 0x238   :  { %v20814_v13 = vadd.f32 %v4489_v18, %v20238_v28  ;;  %v14872_v18 = vld [vmem:[%s23399_s0 + $0x22a] sm:$0xff] }
 0x239   :  { %v16819_v8 = vpop.f32.mrf.mxu1  ;;  %v16845_v31 = vpop.f32.mrf.mxu0  ;;  %17088 = vmatmul.mubr.msk.f32.gmra.mxu0 %vm163_vm1, %v14869_v0 }
 0x23a   :  { %23564 = vst [vmem:[#allocation34_spill] sm:$0xff] %v20814_v13  ;;  %v20818_v4 = vadd.f32 %v16819_v8, %v20663_v54  ;;  %v20821_v1 = vadd.f32 %v16845_v31, %v23565_v43  ;;  %17090 = vmatprep.mubr.msk.f32.mxu0 %vm163_vm1, %v14870_v44  ;;  %v23567_v31 = vld [vmem:[#allocation27_spill] sm:$0xff] }
 0x23b   :  { %v20827_v10 = vpop.f32.mrf.mxu1  ;;  %v4499_v28 = vpop.f32.mrf.mxu0 }
 0x23c   :  { %23566 = vst [vmem:[#allocation25_spill] sm:$0xff] %v20821_v1  ;;  %v20833_v0 = vadd.f32 %v4499_v28, %v20266_v48  ;;  %v14873_v1 = vld [vmem:[%s23399_s0 + $0x232] sm:$0xff]  ;;  %v14874_v28 = vld [vmem:[%s23399_s0 + $0x242] sm:$0xff] }
 0x23d   :  { %v16822_v54 = vpop.f32.mrf.mxu1  ;;  %v16848_v8 = vpop.f32.mrf.mxu0  ;;  %17091 = vmatmul.mubr.msk.f32.gmra.mxu0 %vm163_vm1, %v14871_v35 }
 0x23e   :  { %v20837_v44 = vadd.f32 %v16822_v54, %v20682_v39  ;;  %v20840_v43 = vadd.f32 %v16848_v8, %v23567_v31  ;;  %17093 = vmatprep.mubr.msk.f32.mxu0 %vm163_vm1, %v14872_v18  ;;  %v14875_v31 = vld [vmem:[%s23399_s0 + $0x24a] sm:$0xff] }
 0x23f   :  { %v20846_v13 = vpop.f32.mrf.mxu1  ;;  %v4509_v48 = vpop.f32.mrf.mxu0 }
 0x240   :  { %23568 = vst [vmem:[#allocation27_spill] sm:$0xff] %v20840_v43  ;;  %v20852_v35 = vadd.f32 %v4509_v48, %v20294_v36  ;;  %v14876_v48 = vld [vmem:[%s23399_s0 + $0x25a] sm:$0xff] }
 0x241   :  { %v16825_v39 = vpop.f32.mrf.mxu1  ;;  %v16851_v54 = vpop.f32.mrf.mxu0  ;;  %17094 = vmatmul.mubr.msk.f32.gmra.mxu0 %vm163_vm1, %v14873_v1 }
 0x242   :  { %v20856_v18 = vadd.f32 %v16825_v39, %v20701_v29  ;;  %v20859_v8 = vadd.f32 %v16851_v54, %v20302_v56  ;;  %17096 = vmatprep.mubr.msk.f32.mxu0 %vm163_vm1, %v14874_v28  ;;  %v14877_v54 = vld [vmem:[%s23399_s0 + $0x262] sm:$0xff] }
 0x243   :  { %v20865_v43 = vpop.f32.mrf.mxu1  ;;  %v4519_v36 = vpop.f32.mrf.mxu0 }
 0x244   :  { %23569 = vst [vmem:[#allocation35_spill] sm:$0xff] %v20859_v8  ;;  %v20871_v1 = vadd.f32 %v4519_v36, %v20322_v59  ;;  %v14878_v36 = vld [vmem:[%s23399_s0 + $0x272] sm:$0xff] }
 0x245   :  { %v16828_v29 = vpop.f32.mrf.mxu1  ;;  %v16854_v39 = vpop.f32.mrf.mxu0  ;;  %17097 = vmatmul.mubr.msk.f32.gmra.mxu0 %vm163_vm1, %v14875_v31 }
 0x246   :  { %v20875_v56 = vadd.f32 %v16828_v29, %v20720_v14  ;;  %v20878_v28 = vadd.f32 %v16854_v39, %v20330_v17  ;;  %17099 = vmatprep.mubr.msk.f32.mxu0 %vm163_vm1, %v14876_v48  ;;  %v14879_v39 = vld [vmem:[%s23399_s0 + $0x27a] sm:$0xff] }
 0x247   :  { %v20884_v8 = vpop.f32.mrf.mxu1  ;;  %v4529_v59 = vpop.f32.mrf.mxu0 }
 0x248   :  { %23570 = vst [vmem:[#allocation36_spill] sm:$0xff] %v20878_v28  ;;  %v20890_v31 = vadd.f32 %v4529_v59, %v20350_v15  ;;  %v14880_v59 = vld [vmem:[%s23399_s0 + $0x28a] sm:$0xff] }
 0x249   :  { %v16831_v14 = vpop.f32.mrf.mxu1  ;;  %v16857_v29 = vpop.f32.mrf.mxu0  ;;  %17100 = vmatmul.mubr.msk.f32.gmra.mxu0 %vm163_vm1, %v14877_v54 }
 0x24a   :  { %23571 = vst [vmem:[#allocation37_spill] sm:$0xff] %v20890_v31  ;;  %v20894_v17 = vadd.f32 %v16831_v14, %v20739_v63  ;;  %v20897_v48 = vadd.f32 %v16857_v29, %v20358_v6  ;;  %17102 = vmatprep.mubr.msk.f32.mxu0 %vm163_vm1, %v14878_v36  ;;  %v14881_v29 = vld [vmem:[%s23399_s0 + $0x292] sm:$0xff] }
 0x24b   :  { %v20903_v28 = vpop.f32.mrf.mxu1  ;;  %v4539_v15 = vpop.f32.mrf.mxu0 }
 0x24c   :  { %23572 = vst [vmem:[#allocation38_spill] sm:$0xff] %v20897_v48  ;;  %v20909_v54 = vadd.f32 %v4539_v15, %v20378_v22  ;;  %v14882_v15 = vld [vmem:[%s23399_s0 + $0x2a2] sm:$0xff] }
 0x24d   :  { %v16834_v63 = vpop.f32.mrf.mxu1  ;;  %v16860_v14 = vpop.f32.mrf.mxu0  ;;  %17103 = vmatmul.mubr.msk.f32.gmra.mxu0 %vm163_vm1, %v14879_v39 }
 0x24e   :  { %23573 = vst [vmem:[#allocation39_spill] sm:$0xff] %v20909_v54  ;;  %v20913_v6 = vadd.f32 %v16834_v63, %v20758_v16  ;;  %v20916_v36 = vadd.f32 %v16860_v14, %v20386_v40  ;;  %17105 = vmatprep.mubr.msk.f32.mxu0 %vm163_vm1, %v14880_v59  ;;  %v14883_v14 = vld [vmem:[%s23399_s0 + $0x2aa] sm:$0xff] }
 0x24f   :  { %v20922_v48 = vpop.f32.mrf.mxu1  ;;  %v4549_v22 = vpop.f32.mrf.mxu0 }
 0x250   :  { %23574 = vst [vmem:[#allocation40_spill] sm:$0xff] %v20913_v6  ;;  %23575 = vst [vmem:[#allocation41_spill] sm:$0xff] %v20916_v36  ;;  %v20928_v39 = vadd.f32 %v4549_v22, %v20406_v20  ;;  %v23425_v20 = vmov 0.0  }
 0x251   :  { %v16837_v16 = vpop.f32.mrf.mxu1  ;;  %v16863_v63 = vpop.f32.mrf.mxu0  ;;  %17106 = vmatmul.mubr.msk.f32.gmra.mxu0 %vm163_vm1, %v14881_v29  ;;  %8989 = vst.msk [vmem:[#allocation2 + $0x10] sm:$0xff] %vm8985_vm2, %v23425_v20  ;;  %8986 = vst.msk [vmem:[#allocation2] sm:$0xff] %vm8985_vm2, %v23425_v20  ;;  %v14884_v29 = vld [vmem:[%s23399_s0 + $0x2ba] sm:$0xff] }
 0x252   :  { %23576 = vst [vmem:[#allocation42_spill] sm:$0xff] %v20928_v39  ;;  %v20932_v40 = vadd.f32 %v16837_v16, %v20777_v46  ;;  %v20935_v59 = vadd.f32 %v16863_v63, %v20414_v38  ;;  %17108 = vmatprep.mubr.msk.f32.mxu0 %vm163_vm1, %v14882_v15  ;;  %8990 = vst.msk [vmem:[#allocation2 + $0x18] sm:$0x3] %vm8987_vm3, %v23425_v20 }
 0x253   :  { %8988 = vst.msk [vmem:[#allocation2 + $0x8] sm:$0x3] %vm8987_vm3, %v23425_v20  ;;  %8992 = vst.msk [vmem:[#allocation2 + $0x28] sm:$0x3] %vm8987_vm3, %v23425_v20  ;;  %v21021_v38 = vpop.f32.mrf.mxu1  ;;  %v4559_v46 = vpop.f32.mrf.mxu0 }
 0x254   :  { %23577 = vst [vmem:[#allocation43_spill] sm:$0xff] %v20932_v40  ;;  %23578 = vst [vmem:[#allocation44_spill] sm:$0xff] %v20935_v59  ;;  %v21027_v22 = vadd.f32 %v4559_v46, %v20434_v53  ;;  %v14886_v53 = vld [vmem:[%s23399_s0 + $0x2d2] sm:$0xff] }
 0x255   :  { %8991 = vst.msk [vmem:[#allocation2 + $0x20] sm:$0xff] %vm8985_vm2, %v23425_v20  ;;  %8993 = vst.msk [vmem:[#allocation2 + $0x30] sm:$0xff] %vm8985_vm2, %v23425_v20  ;;  %v16866_v15 = vpop.f32.mrf.mxu0  ;;  %v21029_v16 = vpop.f32.mrf.mxu1  ;;  %17109 = vmatmul.mubr.msk.f32.gmra.mxu0 %vm163_vm1, %v14883_v14  ;;  %v14887_v14 = vld [vmem:[%s23399_s0 + $0x2da] sm:$0xff] }
 0x256   :  { %8994 = vst.msk [vmem:[#allocation2 + $0x38] sm:$0x3] %vm8987_vm3, %v23425_v20  ;;  %8996 = vst.msk [vmem:[#allocation2 + $0x48] sm:$0x3] %vm8987_vm3, %v23425_v20  ;;  %v21033_v63 = vadd.f32 %v16866_v15, %v20442_v55  ;;  %17111 = vmatprep.mubr.msk.f32.mxu0 %vm163_vm1, %v14884_v29 }
 0x257   :  { %8995 = vst.msk [vmem:[#allocation2 + $0x40] sm:$0xff] %vm8985_vm2, %v23425_v20  ;;  %8997 = vst.msk [vmem:[#allocation2 + $0x50] sm:$0xff] %vm8985_vm2, %v23425_v20  ;;  %v21041_v40 = vpop.f32.mrf.mxu1 }
 0x258   :  { %8998 = vst.msk [vmem:[#allocation2 + $0x58] sm:$0x3] %vm8987_vm3, %v23425_v20  ;;  %9000 = vst.msk [vmem:[#allocation2 + $0x68] sm:$0x3] %vm8987_vm3, %v23425_v20 }
 0x259   :  { %8999 = vst.msk [vmem:[#allocation2 + $0x60] sm:$0xff] %vm8985_vm2, %v23425_v20  ;;  %9001 = vst.msk [vmem:[#allocation2 + $0x70] sm:$0xff] %vm8985_vm2, %v23425_v20 }
 0x25a   :  { %9002 = vst.msk [vmem:[#allocation2 + $0x78] sm:$0x3] %vm8987_vm3, %v23425_v20  ;;  %9004 = vst.msk [vmem:[#allocation2 + $0x88] sm:$0x3] %vm8987_vm3, %v23425_v20 }
 0x25b   :  { %9003 = vst.msk [vmem:[#allocation2 + $0x80] sm:$0xff] %vm8985_vm2, %v23425_v20  ;;  %9005 = vst.msk [vmem:[#allocation2 + $0x90] sm:$0xff] %vm8985_vm2, %v23425_v20 }
 0x25c   :  { %9006 = vst.msk [vmem:[#allocation2 + $0x98] sm:$0x3] %vm8987_vm3, %v23425_v20  ;;  %9008 = vst.msk [vmem:[#allocation2 + $0xa8] sm:$0x3] %vm8987_vm3, %v23425_v20 }
 0x25d   :  { %9007 = vst.msk [vmem:[#allocation2 + $0xa0] sm:$0xff] %vm8985_vm2, %v23425_v20  ;;  %9009 = vst.msk [vmem:[#allocation2 + $0xb0] sm:$0xff] %vm8985_vm2, %v23425_v20 }
 0x25e   :  { %9010 = vst.msk [vmem:[#allocation2 + $0xb8] sm:$0x3] %vm8987_vm3, %v23425_v20  ;;  %9012 = vst.msk [vmem:[#allocation2 + $0xc8] sm:$0x3] %vm8987_vm3, %v23425_v20 }
 0x25f   :  { %9011 = vst.msk [vmem:[#allocation2 + $0xc0] sm:$0xff] %vm8985_vm2, %v23425_v20  ;;  %9013 = vst.msk [vmem:[#allocation2 + $0xd0] sm:$0xff] %vm8985_vm2, %v23425_v20 }
 0x260   :  { %9014 = vst.msk [vmem:[#allocation2 + $0xd8] sm:$0x3] %vm8987_vm3, %v23425_v20  ;;  %9016 = vst.msk [vmem:[#allocation2 + $0xe8] sm:$0x3] %vm8987_vm3, %v23425_v20 }
 0x261   :  { %9015 = vst.msk [vmem:[#allocation2 + $0xe0] sm:$0xff] %vm8985_vm2, %v23425_v20  ;;  %9017 = vst.msk [vmem:[#allocation2 + $0xf0] sm:$0xff] %vm8985_vm2, %v23425_v20 }
 0x262   :  { %9018 = vst.msk [vmem:[#allocation2 + $0xf8] sm:$0x3] %vm8987_vm3, %v23425_v20  ;;  %9020 = vst.msk [vmem:[#allocation2 + $0x108] sm:$0x3] %vm8987_vm3, %v23425_v20 }
 0x263   :  { %9019 = vst.msk [vmem:[#allocation2 + $0x100] sm:$0xff] %vm8985_vm2, %v23425_v20  ;;  %9021 = vst.msk [vmem:[#allocation2 + $0x110] sm:$0xff] %vm8985_vm2, %v23425_v20 }
 0x264   :  { %9022 = vst.msk [vmem:[#allocation2 + $0x118] sm:$0x3] %vm8987_vm3, %v23425_v20  ;;  %9024 = vst.msk [vmem:[#allocation2 + $0x128] sm:$0x3] %vm8987_vm3, %v23425_v20 }
 0x265   :  { %9023 = vst.msk [vmem:[#allocation2 + $0x120] sm:$0xff] %vm8985_vm2, %v23425_v20  ;;  %9025 = vst.msk [vmem:[#allocation2 + $0x130] sm:$0xff] %vm8985_vm2, %v23425_v20 }
 0x266   :  { %9026 = vst.msk [vmem:[#allocation2 + $0x138] sm:$0x3] %vm8987_vm3, %v23425_v20  ;;  %23579 = vst [vmem:[#allocation45_spill] sm:$0xff] %v21021_v38  ;;  %v14885_v20 = vld [vmem:[%s23399_s0 + $0x2c2] sm:$0xff]  ;;  %v21039_v38 = vpop.f32.mrf.mxu0 }
 0x267   :  { %23580 = vst [vmem:[#allocation46_spill] sm:$0xff] %v21027_v22  ;;  %23581 = vst [vmem:[#allocation47_spill] sm:$0xff] %v21033_v63  ;;  %v21046_v22 = vpop.f32.mrf.mxu1  ;;  %17112 = vmatmul.mubr.msk.f32.gmra.mxu0 %vm163_vm1, %v14885_v20  ;;  %v14888_v63 = vld [vmem:[%s23399_s0 + $0x2ea] sm:$0xff]  ;;  %v14889_v20 = vld [vmem:[%s23399_s0 + $0x2f2] sm:$0xff] }
 0x268   :  { %v16869_v46 = vpop.f32.mrf.mxu0  ;;  %17114 = vmatprep.mubr.msk.f32.mxu0 %vm163_vm1, %v14886_v53 }
 0x269   :  { %v21050_v55 = vadd.f32 %v16869_v46, %v20469_v62  ;;  %v21058_v15 = vpop.f32.mrf.mxu1 }
 0x26a   :  { %v21056_v29 = vpop.f32.mrf.mxu0 }
 0x26b   :  { %23582 = vst [vmem:[#allocation48_spill] sm:$0xff] %v21050_v55  ;;  %v21063_v39 = vpop.f32.mrf.mxu1  ;;  %17115 = vmatmul.mubr.msk.f32.gmra.mxu0 %vm163_vm1, %v14887_v14  ;;  %v14890_v55 = vld [vmem:[%s23399_s0 + $0x302] sm:$0xff] }
 0x26c   :  { %v16872_v59 = vpop.f32.mrf.mxu0  ;;  %17117 = vmatprep.mubr.msk.f32.mxu0 %vm163_vm1, %v14888_v63 }
 0x26d   :  { %v21067_v62 = vadd.f32 %v16872_v59, %v20496_v24  ;;  %v21075_v46 = vpop.f32.mrf.mxu1  ;;  %v14891_v59 = vld [vmem:[%s23399_s0 + $0x30a] sm:$0xff] }
 0x26e   :  { %v21073_v53 = vpop.f32.mrf.mxu0 }
 0x26f   :  { %23583 = vst [vmem:[#allocation49_spill] sm:$0xff] %v21067_v62  ;;  %v21080_v36 = vpop.f32.mrf.mxu1  ;;  %17118 = vmatmul.mubr.msk.f32.gmra.mxu0 %vm163_vm1, %v14889_v20  ;;  %v14892_v62 = vld [vmem:[%s23399_s0 + $0x31a] sm:$0xff] }
 0x270   :  { %v16875_v6 = vpop.f32.mrf.mxu0  ;;  %17120 = vmatprep.mubr.msk.f32.mxu0 %vm163_vm1, %v14890_v55 }
 0x271   :  { %v21084_v24 = vadd.f32 %v16875_v6, %v20523_v60  ;;  %v21092_v14 = vpop.f32.mrf.mxu1  ;;  %v14893_v6 = vld [vmem:[%s23399_s0 + $0x322] sm:$0xff] }
 0x272   :  { %v21090_v63 = vpop.f32.mrf.mxu0  ;;  %23585 = vst [vmem:[#allocation51_spill] sm:$0xff] %v21092_v14 }
 0x273   :  { %23584 = vst [vmem:[#allocation50_spill] sm:$0xff] %v21084_v24  ;;  %v21097_v31 = vpop.f32.mrf.mxu1  ;;  %17121 = vmatmul.mubr.msk.f32.gmra.mxu0 %vm163_vm1, %v14891_v59  ;;  %v14894_v24 = vld [vmem:[%s23399_s0 + $0x332] sm:$0xff] }
 0x274   :  { %v16878_v54 = vpop.f32.mrf.mxu0  ;;  %23586 = vst [vmem:[#allocation52_spill] sm:$0xff] %v21097_v31  ;;  %17123 = vmatprep.mubr.msk.f32.mxu0 %vm163_vm1, %v14892_v62 }
 0x275   :  { %v21101_v60 = vadd.f32 %v16878_v54, %v20550_v23  ;;  %v21109_v20 = vpop.f32.mrf.mxu1  ;;  %v14895_v54 = vld [vmem:[%s23399_s0 + $0x33a] sm:$0xff] }
 0x276   :  { %v21107_v55 = vpop.f32.mrf.mxu0  ;;  %23588 = vst [vmem:[#allocation54_spill] sm:$0xff] %v21109_v20 }
 0x277   :  { %23587 = vst [vmem:[#allocation53_spill] sm:$0xff] %v21101_v60  ;;  %v21114_v14 = vpop.f32.mrf.mxu1  ;;  %17124 = vmatmul.mubr.msk.f32.gmra.mxu0 %vm163_vm1, %v14893_v6  ;;  %v14896_v60 = vld [vmem:[%s23399_s0 + $0x34a] sm:$0xff] }
 0x278   :  { %v16881_v31 = vpop.f32.mrf.mxu0  ;;  %23589 = vst [vmem:[#allocation55_spill] sm:$0xff] %v21114_v14  ;;  %17126 = vmatprep.mubr.msk.f32.mxu0 %vm163_vm1, %v14894_v24 }
 0x279   :  { %v21118_v23 = vadd.f32 %v16881_v31, %v20577_v49  ;;  %v21126_v59 = vpop.f32.mrf.mxu1  ;;  %v14897_v31 = vld [vmem:[%s23399_s0 + $0x352] sm:$0xff] }
 0x27a   :  { %v21124_v62 = vpop.f32.mrf.mxu0  ;;  %23592 = vst [vmem:[#allocation58_spill] sm:$0xff] %v21126_v59 }
 0x27b   :  { %23590 = vst [vmem:[#allocation56_spill] sm:$0xff] %v21118_v23  ;;  %23591 = vst [vmem:[#allocation57_spill] sm:$0xff] %v21124_v62  ;;  %v21131_v20 = vpop.f32.mrf.mxu1  ;;  %17127 = vmatmul.mubr.msk.f32.gmra.mxu0 %vm163_vm1, %v14895_v54 }
 0x27c   :  { %v16884_v14 = vpop.f32.mrf.mxu0  ;;  %23593 = vst [vmem:[#allocation59_spill] sm:$0xff] %v21131_v20  ;;  %17129 = vmatprep.mubr.msk.f32.mxu0 %vm163_vm1, %v14896_v60 }
 0x27d   :  { %v21135_v49 = vadd.f32 %v16884_v14, %v20604_v33  ;;  %v21143_v6 = vpop.f32.mrf.mxu1 }
 0x27e   :  { %v21141_v24 = vpop.f32.mrf.mxu0  ;;  %23596 = vst [vmem:[#allocation62_spill] sm:$0xff] %v21143_v6 }
 0x27f   :  { %23594 = vst [vmem:[#allocation60_spill] sm:$0xff] %v21135_v49  ;;  %23595 = vst [vmem:[#allocation61_spill] sm:$0xff] %v21141_v24  ;;  %v21145_v59 = vpop.f32.mrf.mxu1  ;;  %17130 = vmatmul.mubr.msk.f32.gmra.mxu0 %vm163_vm1, %v14897_v31 }
 0x280   :  { %v16887_v23 = vpop.f32.mrf.mxu0  ;;  %23597 = vst [vmem:[#allocation63_spill] sm:$0xff] %v21145_v59 }
 0x281   :  { %v21149_v54 = vadd.f32 %v16887_v23, %v20628_v11  ;;  %v21153_v14 = vpop.f32.mrf.mxu1 }
 0x282   :  { %v21151_v33 = vpop.f32.mrf.mxu0  ;;  %23599 = vst [vmem:[#allocation65_spill] sm:$0xff] %v21153_v14 }
 0x283   :  { %23598 = vst [vmem:[#allocation64_spill] sm:$0xff] %v21149_v54  ;;  %v21155_v49 = vpop.f32.mrf.mxu1 }
 0x284   :  { %v16890_v60 = vpop.f32.mrf.mxu0 }
 0x285   :  { %v21158_v20 = vadd.f32 %v16890_v60, %v20647_v9  ;;  %v21162_v6 = vpop.f32.mrf.mxu1 }
 0x286   :  { %v21160_v24 = vpop.f32.mrf.mxu0  ;;  %23602 = vst [vmem:[#allocation68_spill] sm:$0xff] %v21162_v6 }
 0x287   :  { %23600 = vst [vmem:[#allocation66_spill] sm:$0xff] %v21158_v20  ;;  %23601 = vst [vmem:[#allocation67_spill] sm:$0xff] %v21160_v24  ;;  %v21164_v62 = vpop.f32.mrf.mxu1 }
 0x288   :  { %v16893_v59 = vpop.f32.mrf.mxu0 }
 0x289   :  { %v21167_v11 = vadd.f32 %v16893_v59, %v20666_v27  ;;  %v21171_v31 = vpop.f32.mrf.mxu1 }
 0x28a   :  { %v21169_v23 = vpop.f32.mrf.mxu0  ;;  %23605 = vst [vmem:[#allocation71_spill] sm:$0xff] %v21171_v31 }
 0x28b   :  { %23603 = vst [vmem:[#allocation69_spill] sm:$0xff] %v21167_v11  ;;  %23604 = vst [vmem:[#allocation70_spill] sm:$0xff] %v21169_v23  ;;  %v21173_v14 = vpop.f32.mrf.mxu1 }
 0x28c   :  { %v16896_v54 = vpop.f32.mrf.mxu0 }
 0x28d   :  { %v21176_v9 = vadd.f32 %v16896_v54, %v20685_v61  ;;  %v21180_v20 = vpop.f32.mrf.mxu1 }
 0x28e   :  { %v21178_v60 = vpop.f32.mrf.mxu0  ;;  %23608 = vst [vmem:[#allocation74_spill] sm:$0xff] %v21180_v20 }
 0x28f   :  { %23606 = vst [vmem:[#allocation72_spill] sm:$0xff] %v21176_v9  ;;  %23607 = vst [vmem:[#allocation73_spill] sm:$0xff] %v21178_v60  ;;  %v21182_v24 = vpop.f32.mrf.mxu1 }
 0x290   :  { %v16899_v6 = vpop.f32.mrf.mxu0 }
 0x291   :  { %v21185_v27 = vadd.f32 %v16899_v6, %v20704_v12  ;;  %v21189_v11 = vpop.f32.mrf.mxu1 }
 0x292   :  { %v21187_v59 = vpop.f32.mrf.mxu0  ;;  %23611 = vst [vmem:[#allocation77_spill] sm:$0xff] %v21189_v11 }
 0x293   :  { %23609 = vst [vmem:[#allocation75_spill] sm:$0xff] %v21185_v27  ;;  %23610 = vst [vmem:[#allocation76_spill] sm:$0xff] %v21187_v59  ;;  %v21191_v23 = vpop.f32.mrf.mxu1 }
 0x294   :  { %v16902_v31 = vpop.f32.mrf.mxu0 }
 0x295   :  { %v21194_v61 = vadd.f32 %v16902_v31, %v20723_v50  ;;  %v21198_v9 = vpop.f32.mrf.mxu1 }
 0x296   :  { %v21196_v54 = vpop.f32.mrf.mxu0  ;;  %23614 = vst [vmem:[#allocation80_spill] sm:$0xff] %v21198_v9 }
 0x297   :  { %23612 = vst [vmem:[#allocation78_spill] sm:$0xff] %v21194_v61  ;;  %23613 = vst [vmem:[#allocation79_spill] sm:$0xff] %v21196_v54  ;;  %v21200_v60 = vpop.f32.mrf.mxu1 }
 0x298   :  { %v16905_v20 = vpop.f32.mrf.mxu0  ;;  %23615 = vst [vmem:[#allocation81_spill] sm:$0xff] %v21200_v60  ;;  %v23655_v60 = vld [vmem:[#allocation21_spill] sm:$0xff] }
 0x299   :  { %v21203_v12 = vadd.f32 %v16905_v20, %v20742_v19  ;;  %v21207_v27 = vpop.f32.mrf.mxu1 }
 0x29a   :  { %v21205_v6 = vpop.f32.mrf.mxu0  ;;  %23618 = vst [vmem:[#allocation84_spill] sm:$0xff] %v21207_v27 }
 0x29b   :  { %23616 = vst [vmem:[#allocation82_spill] sm:$0xff] %v21203_v12  ;;  %23617 = vst [vmem:[#allocation83_spill] sm:$0xff] %v21205_v6  ;;  %v21209_v59 = vpop.f32.mrf.mxu1 }
 0x29c   :  { %v16908_v11 = vpop.f32.mrf.mxu0  ;;  %23619 = vst [vmem:[#allocation85_spill] sm:$0xff] %v21209_v59  ;;  %v23650_v59 = vld [vmem:[#allocation15_spill] sm:$0xff] }
 0x29d   :  { %v21212_v50 = vadd.f32 %v16908_v11, %v20761_v34  ;;  %v21216_v61 = vpop.f32.mrf.mxu1 }
 0x29e   :  { %v21214_v31 = vpop.f32.mrf.mxu0  ;;  %23622 = vst [vmem:[#allocation88_spill] sm:$0xff] %v21216_v61 }
 0x29f   :  { %23620 = vst [vmem:[#allocation86_spill] sm:$0xff] %v21212_v50  ;;  %23621 = vst [vmem:[#allocation87_spill] sm:$0xff] %v21214_v31  ;;  %v21218_v54 = vpop.f32.mrf.mxu1 }
 0x2a0   :  { %v16911_v9 = vpop.f32.mrf.mxu0  ;;  %23623 = vst [vmem:[#allocation89_spill] sm:$0xff] %v21218_v54  ;;  %v23646_v54 = vld [vmem:[#allocation14_spill] sm:$0xff] }
 0x2a1   :  { %v21221_v19 = vadd.f32 %v16911_v9, %v20780_v2  ;;  %v21225_v12 = vpop.f32.mrf.mxu1 }
 0x2a2   :  { %v21223_v20 = vpop.f32.mrf.mxu0  ;;  %23626 = vst [vmem:[#allocation92_spill] sm:$0xff] %v21225_v12  ;;  %v9836_v12 = vld [vmem:[#allocation2 + $0x1] sm:$0xff] }
 0x2a3   :  { %23624 = vst [vmem:[#allocation90_spill] sm:$0xff] %v21221_v19  ;;  %23625 = vst [vmem:[#allocation91_spill] sm:$0xff] %v21223_v20  ;;  %v21227_v6 = vpop.f32.mrf.mxu1  ;;  %17134 = vmatprep.mubr.msk.f32.mxu1 %vm8985_vm2, %v9836_v12 }
 0x2a4   :  { %v16914_v27 = vpop.f32.mrf.mxu0  ;;  %23627 = vst [vmem:[#allocation93_spill] sm:$0xff] %v21227_v6 }
 0x2a5   :  { %v21230_v34 = vadd.f32 %v16914_v27, %v20799_v3  ;;  %v21234_v50 = vpop.f32.mrf.mxu1 }
 0x2a6   :  { %v21232_v11 = vpop.f32.mrf.mxu0  ;;  %23630 = vst [vmem:[#allocation96_spill] sm:$0xff] %v21234_v50 }
 0x2a7   :  { %23628 = vst [vmem:[#allocation94_spill] sm:$0xff] %v21230_v34  ;;  %23629 = vst [vmem:[#allocation95_spill] sm:$0xff] %v21232_v11  ;;  %v21236_v31 = vpop.f32.mrf.mxu1 }
 0x2a8   :  { %v16917_v61 = vpop.f32.mrf.mxu0  ;;  %23631 = vst [vmem:[#allocation97_spill] sm:$0xff] %v21236_v31  ;;  %v17547_v31 = vmov 1983009808  }
 0x2a9   :  { %v21239_v2 = vadd.f32 %v16917_v61, %v20818_v4  ;;  %v21243_v19 = vpop.f32.mrf.mxu1  ;;  %v6491_v4 = vunpack.c.l.s4 %v17547_v31  ;;  %v6493_v61 = vlaneseq }
 0x2aa   :  { %v21241_v9 = vpop.f32.mrf.mxu0  ;;  %23634 = vst [vmem:[#allocation100_spill] sm:$0xff] %v21243_v19  ;;  %v23640_v19 = vld [vmem:[#allocation24_spill] sm:$0xff] }
 0x2ab   :  { %23632 = vst [vmem:[#allocation98_spill] sm:$0xff] %v21239_v2  ;;  %23633 = vst [vmem:[#allocation99_spill] sm:$0xff] %v21241_v9  ;;  %v21246_v3 = vpop.f32.mrf.mxu1  ;;  %v4114_v11 = vadd.f32 %v20452_v37, %v23640_v19  ;;  %v6492_v31 = vunpack.c.0.s8 %v6491_v4  ;;  %v6494_v20 = vshrl.u32 %v6493_v61, 7  ;;  %v23647_v37 = vld [vmem:[#allocation19_spill] sm:$0xff]  ;;  %v23654_v4 = vld [vmem:[#allocation20_spill] sm:$0xff] }
 0x2ac   :  { %v16920_v6 = vpop.f32.mrf.mxu0  ;;  %23635 = vst [vmem:[#allocation101_spill] sm:$0xff] %v21246_v3  ;;  %v23642_v3 = vld [vmem:[#allocation26_spill] sm:$0xff]  ;;  %v4122_v19 = vadd.f32 %v23647_v37, %v20347_v32  ;;  %v4132_v61 = vadd.f32 %v20672_v41, %v23654_v4  ;;  %v23656_v37 = vld [vmem:[#allocation16_spill] sm:$0xff] }
 0x2ad   :  { %v21249_v27 = vadd.f32 %v16920_v6, %v20837_v44  ;;  %v21253_v50 = vpop.f32.mrf.mxu1  ;;  %v4116_v44 = vadd.f32 %v20479_v45, %v23642_v3  ;;  %v23643_v6 = vld [vmem:[#allocation28_spill] sm:$0xff]  ;;  %v4126_v45 = vadd.f32 %v20614_v52, %v23650_v59  ;;  %v23651_v3 = vld [vmem:[#allocation17_spill] sm:$0xff]  ;;  %v23657_v52 = vld [vmem:[#allocation6_spill] sm:$0xff] }
 0x2ae   :  { %v21251_v34 = vpop.f32.mrf.mxu0  ;;  %23638 = vst [vmem:[#allocation104_spill] sm:$0xff] %v21253_v50  ;;  %v21296_v59 = vadd.f32 %v20729_v58, %v23657_v52 }
 0x2af   :  { %23636 = vst [vmem:[#allocation102_spill] sm:$0xff] %v21249_v27  ;;  %23637 = vst [vmem:[#allocation103_spill] sm:$0xff] %v21251_v34  ;;  %v21255_v9 = vpop.f32.mrf.mxu1  ;;  %v4118_v27 = vadd.f32 %v20506_v7, %v23643_v6  ;;  %v23652_v7 = vld [vmem:[#allocation10_spill] sm:$0xff] }
 0x2b0   :  { %v16923_v2 = vpop.f32.mrf.mxu0  ;;  %23639 = vst [vmem:[#allocation105_spill] sm:$0xff] %v21255_v9  ;;  %v4120_v9 = vadd.f32 %v20533_v51, %v23646_v54  ;;  %v4128_v6 = vadd.f32 %v23652_v7, %v23651_v3  ;;  %v21286_v51 = vadd.f32 %v20691_v25, %v23655_v60  ;;  %v23660_v25 = vld [vmem:[#allocation9_spill] sm:$0xff] }
 0x2b1   :  { %v21260_v12 = vadd.f32 %v16923_v2, %v20856_v18  ;;  %v21268_v50 = vpop.f32.mrf.mxu1  ;;  %v23648_v18 = vld [vmem:[#allocation29_spill] sm:$0xff]  ;;  %v23649_v2 = vld [vmem:[#allocation7_spill] sm:$0xff]  ;;  %v21307_v60 = vadd.f32 %v20767_v57, %v23660_v25  ;;  %v23665_v57 = vld [vmem:[#allocation22_spill] sm:$0xff] }
 0x2b2   :  { %v21266_v34 = vpop.f32.mrf.mxu0  ;;  %23645 = vst [vmem:[#allocation28_spill] sm:$0xff] %v21268_v50  ;;  %v23668_v25 = vld [vmem:[#allocation31_spill] sm:$0xff] }
 0x2b3   :  { %23641 = vst [vmem:[#allocation24_spill] sm:$0xff] %v21260_v12  ;;  %23644 = vst [vmem:[#allocation26_spill] sm:$0xff] %v21266_v34  ;;  %v4124_v12 = vadd.f32 %v23649_v2, %v23648_v18  ;;  %v23653_v34 = vld [vmem:[#allocation18_spill] sm:$0xff]  ;;  %v21288_v54 = vpop.f32.mrf.mxu1  ;;  %v21292_v18 = vadd.f32 %v20710_v26, %v23656_v37  ;;  %v23658_v2 = vld [vmem:[#allocation8_spill] sm:$0xff]  ;;  %v21329_v37 = vadd.f32 %v20846_v13, %v23665_v57 }
 0x2b4   :  { %v4130_v50 = vadd.f32 %v20653_v21, %v23653_v34  ;;  %v16926_v32 = vpop.f32.mrf.mxu0  ;;  %v21300_v21 = vadd.f32 %v20748_v5, %v23658_v2  ;;  %v23661_v34 = vld [vmem:[#allocation11_spill] sm:$0xff]  ;;  %v23662_v26 = vld [vmem:[#allocation12_spill] sm:$0xff]  ;;  %v21321_v5 = vsub.s32 %v6492_v31, %v6494_v20  ;;  %v21341_v31 = vadd.f32 %v20903_v28, %v23668_v25  ;;  %v23672_v57 = vld [vmem:[#allocation34_spill] sm:$0xff] }
 0x2b5   :  { %v21303_v41 = vadd.f32 %v16926_v32, %v20875_v56  ;;  %v21311_v3 = vadd.f32 %v20789_v47, %v23661_v34  ;;  %v21315_v7 = vadd.f32 %v20808_v42, %v23662_v26  ;;  %v21319_v4 = vpop.f32.mrf.mxu1  ;;  %v23664_v56 = vld [vmem:[#allocation13_spill] sm:$0xff]  ;;  %v23666_v47 = vld [vmem:[#allocation23_spill] sm:$0xff]  ;;  %v23667_v42 = vld [vmem:[#allocation30_spill] sm:$0xff]  ;;  %v21349_v13 = vadd.f32 %v21029_v16, %v20802_v30 }
 0x2b6   :  { %v21317_v58 = vpop.f32.mrf.mxu0  ;;  %23663 = vst [vmem:[#allocation19_spill] sm:$0xff] %v21321_v5  ;;  %v21325_v32 = vadd.f32 %v20827_v10, %v23664_v56  ;;  %v21333_v52 = vadd.f32 %v20865_v43, %v23666_v47  ;;  %v21337_v2 = vadd.f32 %v20884_v8, %v23667_v42  ;;  %v23669_v34 = vld [vmem:[#allocation32_spill] sm:$0xff]  ;;  %v21353_v43 = vsub.s32 0, %v6494_v20  ;;  %v23673_v28 = vld [vmem:[#allocation25_spill] sm:$0xff]  ;;  %v23675_v20 = vld [vmem:[#allocation27_spill] sm:$0xff] }
 0x2b7   :  { %23659 = vst [vmem:[#allocation14_spill] sm:$0xff] %v21303_v41  ;;  %v21345_v10 = vadd.f32 %v20922_v48, %v23669_v34  ;;  %v21351_v56 = vpop.f32.mrf.mxu1  ;;  %v4824_v8 = vadd.f32 %v21039_v38, %v4114_v11  ;;  %v21358_v47 = vadd.f32 %v21041_v40, %v23672_v57  ;;  %v21362_v42 = vadd.f32 %v21046_v22, %v23673_v28  ;;  %v23676_v22 = vld [vmem:[#allocation35_spill] sm:$0xff]  ;;  %v23681_v57 = vld [vmem:[#allocation54_spill] sm:$0xff] }
 0x2b8   :  { %v16929_v26 = vpop.f32.mrf.mxu0  ;;  %23671 = vst [vmem:[#allocation7_spill] sm:$0xff] %v21353_v43  ;;  %v4826_v30 = vadd.f32 %v21056_v29, %v4116_v44  ;;  %v21370_v16 = vadd.f32 %v21058_v15, %v20833_v0  ;;  %v21374_v38 = vadd.f32 %v21063_v39, %v23675_v20  ;;  %v4828_v40 = vadd.f32 %v21073_v53, %v4118_v27  ;;  %v23677_v15 = vld [vmem:[#allocation51_spill] sm:$0xff]  ;;  %v23678_v44 = vld [vmem:[#allocation36_spill] sm:$0xff]  ;;  %v23695_v41 = vld [vmem:[#allocation62_spill] sm:$0xff] }
 0x2b9   :  { %23670 = vst [vmem:[#allocation29_spill] sm:$0xff] %v21345_v10  ;;  %v21365_v48 = vadd.f32 %v16929_v26, %v20894_v17  ;;  %v21379_v25 = vpop.f32.mrf.mxu1  ;;  %v21383_v17 = vadd.f32 %v21075_v46, %v20852_v35  ;;  %v21387_v29 = vadd.f32 %v21080_v36, %v23676_v22  ;;  %v4830_v0 = vadd.f32 %v21090_v63, %v4120_v9  ;;  %v23679_v53 = vld [vmem:[#allocation52_spill] sm:$0xff]  ;;  %v23680_v26 = vld [vmem:[#allocation37_spill] sm:$0xff]  ;;  %v23682_v46 = vld [vmem:[#allocation38_spill] sm:$0xff] }
 0x2ba   :  { %v21377_v11 = vpop.f32.mrf.mxu0  ;;  %v21392_v39 = vadd.f32 %v23677_v15, %v20871_v1  ;;  %v21396_v27 = vadd.f32 %v23679_v53, %v23678_v44  ;;  %v4832_v34 = vadd.f32 %v21107_v55, %v4122_v19  ;;  %v21401_v35 = vadd.f32 %v23681_v57, %v23680_v26  ;;  %v23683_v28 = vld [vmem:[#allocation55_spill] sm:$0xff]  ;;  %v23684_v9 = vld [vmem:[#allocation57_spill] sm:$0xff]  ;;  %v23686_v15 = vld [vmem:[#allocation58_spill] sm:$0xff] }
 0x2bb   :  { %23674 = vst [vmem:[#allocation15_spill] sm:$0xff] %v21365_v48  ;;  %v21405_v36 = vadd.f32 %v23683_v28, %v23682_v46  ;;  %v21407_v63 = vpop.f32.mrf.mxu1  ;;  %v4834_v1 = vadd.f32 %v23684_v9, %v4124_v12  ;;  %v23685_v22 = vld [vmem:[#allocation39_spill] sm:$0xff]  ;;  %v23688_v44 = vld [vmem:[#allocation41_spill] sm:$0xff]  ;;  %v23691_v19 = vld [vmem:[#allocation40_spill] sm:$0xff] }
 0x2bc   :  { %v16932_v20 = vpop.f32.mrf.mxu0  ;;  %v21412_v10 = vadd.f32 %v23686_v15, %v23685_v22  ;;  %v23689_v53 = vld [vmem:[#allocation59_spill] sm:$0xff]  ;;  %v10707_v57 = vld [vmem:[%s23402_s3 + $0x20] sm:$0xff]  ;;  %v23697_v9 = vld [vmem:[#allocation44_spill] sm:$0xff] }
 0x2bd   :  { %v21416_v55 = vadd.f32 %v23689_v53, %v23688_v44  ;;  %v21419_v26 = vadd.f32 %v16932_v20, %v23691_v19  ;;  %v23693_v46 = vld [vmem:[#allocation61_spill] sm:$0xff]  ;;  %v23694_v48 = vld [vmem:[#allocation42_spill] sm:$0xff]  ;;  %v23698_v22 = vld [vmem:[#allocation63_spill] sm:$0xff]  ;;  %v4838_v44 = vadd.f32 %v21151_v33, %v4128_v6  ;;  %v21436_v20 = vpop.f32.mrf.mxu1  ;;  %17236 = vmatprep.subr.mxu0 %v10707_v57 }
 0x2be   :  { %23687 = vst [vmem:[#allocation17_spill] sm:$0xff] %v21412_v10  ;;  %v4836_v28 = vadd.f32 %v23693_v46, %v4126_v45  ;;  %v21427_v12 = vadd.f32 %v23695_v41, %v23694_v48  ;;  %v21431_v15 = vadd.f32 %v23698_v22, %v23697_v9  ;;  %v21434_v53 = vpop.f32.mrf.mxu0  ;;  %v23701_v19 = vld [vmem:[#allocation46_spill] sm:$0xff]  ;;  %v23703_v45 = vld [vmem:[#allocation47_spill] sm:$0xff]  ;;  %17237 = vmatpush3.msra.mxu0 %v10707_v57  ;;  %v23706_v33 = vld [vmem:[#allocation48_spill] sm:$0xff] }
 0x2bf   :  { %23690 = vst [vmem:[#allocation10_spill] sm:$0xff] %v21416_v55  ;;  %23692 = vst [vmem:[#allocation18_spill] sm:$0xff] %v21419_v26  ;;  %v23702_v26 = vld [vmem:[#allocation65_spill] sm:$0xff]  ;;  %v21444_v46 = vadd.f32 %v21155_v49, %v23703_v45  ;;  %v23704_v41 = vld [vmem:[#allocation67_spill] sm:$0xff]  ;;  %v21452_v6 = vadd.f32 %v21164_v62, %v23706_v33 }
 0x2c0   :  { %23696 = vst [vmem:[#allocation20_spill] sm:$0xff] %v21427_v12  ;;  %23699 = vst [vmem:[#allocation21_spill] sm:$0xff] %v21431_v15  ;;  %v21440_v55 = vadd.f32 %v23702_v26, %v23701_v19  ;;  %v4840_v48 = vadd.f32 %v23704_v41, %v4130_v50  ;;  %v23705_v12 = vld [vmem:[#allocation68_spill] sm:$0xff]  ;;  %v23707_v22 = vld [vmem:[#allocation70_spill] sm:$0xff]  ;;  %v16935_v49 = vpop.f32.mrf.mxu0 }
 0x2c1   :  { %23700 = vst [vmem:[#allocation16_spill] sm:$0xff] %v21434_v53  ;;  %v21448_v9 = vadd.f32 %v23705_v12, %v4824_v8  ;;  %v4842_v53 = vadd.f32 %v23707_v22, %v4132_v61  ;;  %v23708_v15 = vld [vmem:[#allocation71_spill] sm:$0xff]  ;;  %v23709_v26 = vld [vmem:[#allocation49_spill] sm:$0xff]  ;;  %v23711_v8 = vld [vmem:[#allocation74_spill] sm:$0xff] }
 0x2c2   :  { %v21456_v10 = vadd.f32 %v23708_v15, %v4826_v30  ;;  %v21460_v19 = vadd.f32 %v21173_v14, %v23709_v26  ;;  %v23710_v50 = vld [vmem:[#allocation73_spill] sm:$0xff]  ;;  %v21465_v12 = vadd.f32 %v23711_v8, %v4828_v40  ;;  %v23712_v57 = vld [vmem:[#allocation50_spill] sm:$0xff]  ;;  %v23713_v41 = vld [vmem:[#allocation43_spill] sm:$0xff]  ;;  %v21485_v8 = vpop.f32.mrf.mxu0 }
 0x2c3   :  { %v4844_v45 = vadd.f32 %v23710_v50, %v21286_v51  ;;  %v21469_v62 = vadd.f32 %v21182_v24, %v23712_v57  ;;  %v21472_v61 = vadd.f32 %v16935_v49, %v23713_v41  ;;  %v23715_v30 = vld [vmem:[#allocation76_spill] sm:$0xff]  ;;  %v23716_v33 = vld [vmem:[#allocation77_spill] sm:$0xff]  ;;  %v23719_v51 = vld [vmem:[#allocation79_spill] sm:$0xff]  ;;  %v17009_v50 = vpop.f32.mrf.mxu1  ;;  %23720 = vst [vmem:[#allocation9_spill] sm:$0xff] %v21485_v8 }
 0x2c4   :  { %v4846_v15 = vadd.f32 %v23715_v30, %v21292_v18  ;;  %v21477_v14 = vadd.f32 %v23716_v33, %v4830_v0  ;;  %v23717_v22 = vld [vmem:[#allocation53_spill] sm:$0xff]  ;;  %v4848_v40 = vadd.f32 %v23719_v51, %v21296_v59  ;;  %v23721_v24 = vld [vmem:[#allocation80_spill] sm:$0xff]  ;;  %v23725_v18 = vld [vmem:[#allocation83_spill] sm:$0xff] }
 0x2c5   :  { %23714 = vst [vmem:[#allocation6_spill] sm:$0xff] %v21472_v61  ;;  %v21481_v26 = vadd.f32 %v21191_v23, %v23717_v22  ;;  %v21488_v57 = vadd.f32 %v23721_v24, %v4832_v34  ;;  %v23723_v49 = vld [vmem:[#allocation56_spill] sm:$0xff]  ;;  %v23724_v41 = vld [vmem:[#allocation81_spill] sm:$0xff]  ;;  %v4850_v0 = vadd.f32 %v23725_v18, %v21300_v21  ;;  %v23731_v59 = vld [vmem:[#allocation87_spill] sm:$0xff] }
 0x2c6   :  { %v21492_v61 = vadd.f32 %v23724_v41, %v23723_v49  ;;  %v23726_v30 = vld [vmem:[#allocation84_spill] sm:$0xff]  ;;  %v23729_v22 = vld [vmem:[#allocation85_spill] sm:$0xff]  ;;  %v4852_v51 = vadd.f32 %v23731_v59, %v21307_v60  ;;  %v17038_v41 = vpop.f32.mrf.mxu0  ;;  %v23739_v60 = vld [vmem:[#allocation66_spill] sm:$0xff] }
 0x2c7   :  { %23718 = vst [vmem:[#allocation8_spill] sm:$0xff] %v21481_v26  ;;  %23722 = vst [vmem:[#allocation11_spill] sm:$0xff] %v21488_v57  ;;  %v21497_v33 = vadd.f32 %v23726_v30, %v4834_v1  ;;  %v23728_v23 = vld [vmem:[#allocation60_spill] sm:$0xff]  ;;  %v23735_v57 = vld [vmem:[#allocation89_spill] sm:$0xff] }
 0x2c8   :  { %v21501_v26 = vadd.f32 %v23729_v22, %v23728_v23  ;;  %v23732_v8 = vld [vmem:[#allocation88_spill] sm:$0xff]  ;;  %v21515_v21 = vld [vmem:[%s23401_s2] ss:$0 sm:$0xff]  ;;  %v23737_v1 = vld [vmem:[#allocation91_spill] sm:$0xff] }
 0x2c9   :  { %23727 = vst [vmem:[#allocation12_spill] sm:$0xff] %v21497_v33  ;;  %v21506_v34 = vadd.f32 %v23732_v8, %v4836_v28  ;;  %v23734_v24 = vld [vmem:[#allocation64_spill] sm:$0xff]  ;;  %v4854_v18 = vadd.f32 %v23737_v1, %v21311_v3  ;;  %v23740_v22 = vld [vmem:[#allocation93_spill] sm:$0xff]  ;;  %v6227_v8 = vadd.f32 %v17038_v41, %v21349_v13  ;;  %v23747_v3 = vld [vmem:[#allocation99_spill] sm:$0xff]  ;;  %v5428_v1 = vpop.f32.mrf.mxu1 }
 0x2ca   :  { %23730 = vst [vmem:[#allocation13_spill] sm:$0xff] %v21501_v26  ;;  %v21510_v49 = vadd.f32 %v23735_v57, %v23734_v24  ;;  %v23738_v30 = vld [vmem:[#allocation92_spill] sm:$0xff]  ;;  %v21524_v28 = vadd.f32 %v23740_v22, %v23739_v60  ;;  %v23742_v57 = vld [vmem:[#allocation95_spill] sm:$0xff]  ;;  %v23745_v26 = vld [vmem:[#allocation97_spill] sm:$0xff] }
 0x2cb   :  { %23733 = vst [vmem:[#allocation22_spill] sm:$0xff] %v21506_v34  ;;  %v21520_v23 = vadd.f32 %v23738_v30, %v4838_v44  ;;  %v4856_v59 = vadd.f32 %v23742_v57, %v21315_v7  ;;  %v23743_v24 = vld [vmem:[#allocation96_spill] sm:$0xff]  ;;  %v23744_v34 = vld [vmem:[#allocation69_spill] sm:$0xff]  ;;  %v21538_v44 = vadd.f32 %v23747_v3, %v21325_v32  ;;  %v5907_v30 = vpop.f32.mrf.mxu0  ;;  %v6298_v7 = vadd.f32 %v21515_v21, %v6227_v8 }
 0x2cc   :  { %23736 = vst [vmem:[#allocation23_spill] sm:$0xff] %v21510_v49  ;;  %23741 = vst [vmem:[#allocation30_spill] sm:$0xff] %v21524_v28  ;;  %v21530_v49 = vadd.f32 %v23743_v24, %v4840_v48  ;;  %v21534_v33 = vadd.f32 %v23745_v26, %v23744_v34  ;;  %v23748_v60 = vld [vmem:[#allocation100_spill] sm:$0xff]  ;;  %v23750_v41 = vld [vmem:[#allocation101_spill] sm:$0xff]  ;;  %v6226_v48 = vadd.f32 %v5907_v30, %v21358_v47 }
 0x2cd   :  { %v21541_v22 = vadd.f32 %v23748_v60, %v4842_v53  ;;  %v23749_v13 = vld [vmem:[#allocation72_spill] sm:$0xff]  ;;  %v23751_v26 = vld [vmem:[#allocation103_spill] sm:$0xff]  ;;  %v23755_v3 = vld [vmem:[#allocation105_spill] sm:$0xff]  ;;  %v6362_v47 = vmax.f32 %v6298_v7, 0.0  ;;  %v17012_v7 = vpop.f32.mrf.mxu1 }
 0x2ce   :  { %23746 = vst [vmem:[#allocation31_spill] sm:$0xff] %v21534_v33  ;;  %v21545_v28 = vadd.f32 %v23750_v41, %v23749_v13  ;;  %v21551_v34 = vadd.f32 %v23751_v26, %v21329_v37  ;;  %v23752_v57 = vld [vmem:[#allocation104_spill] sm:$0xff]  ;;  %v23754_v24 = vld [vmem:[#allocation75_spill] sm:$0xff]  ;;  %v23757_v53 = vld [vmem:[#allocation26_spill] sm:$0xff]  ;;  %v17041_v13 = vpop.f32.mrf.mxu0  ;;  %v6297_v30 = vadd.f32 %v21515_v21, %v6226_v48 }
 0x2cf   :  { %v21554_v32 = vadd.f32 %v23752_v57, %v4844_v45  ;;  %v21558_v33 = vadd.f32 %v23755_v3, %v23754_v24  ;;  %v21562_v60 = vadd.f32 %v23757_v53, %v21333_v52  ;;  %v23758_v41 = vld [vmem:[#allocation28_spill] sm:$0xff]  ;;  %v6229_v37 = vadd.f32 %v17041_v13, %v21362_v42  ;;  %v23760_v26 = vld [vmem:[#allocation78_spill] sm:$0xff] }
 0x2d0   :  { %v21565_v8 = vadd.f32 %v23758_v41, %v4846_v15  ;;  %v21571_v45 = vadd.f32 %v21288_v54, %v23760_v26  ;;  %v21575_v57 = vadd.f32 %v21317_v58, %v21337_v2  ;;  %v21578_v52 = vadd.f32 %v21319_v4, %v4848_v40  ;;  %v23763_v24 = vld [vmem:[#allocation82_spill] sm:$0xff]  ;;  %v5917_v3 = vpop.f32.mrf.mxu0 }
 0x2d1   :  { %23753 = vst [vmem:[#allocation32_spill] sm:$0xff] %v21554_v32  ;;  %23756 = vst [vmem:[#allocation34_spill] sm:$0xff] %v21558_v33  ;;  %v21582_v15 = vadd.f32 %v21351_v56, %v23763_v24  ;;  %v6506_v48 = vcombine.high %v6362_v47, %v6362_v47  ;;  %v6513_v42 = vrot.slane %v6362_v47, %v21321_v5  ;;  %v6361_v53 = vmax.f32 %v6297_v30, 0.0  ;;  %v23767_v4 = vld [vmem:[#allocation86_spill] sm:$0xff] }
 0x2d2   :  { %23759 = vst [vmem:[#allocation25_spill] sm:$0xff] %v21565_v8  ;;  %23761 = vst [vmem:[#allocation27_spill] sm:$0xff] %v21571_v45  ;;  %v6300_v54 = vadd.f32 %v21515_v21, %v6229_v37  ;;  %v21588_v13 = vadd.f32 %v21377_v11, %v21341_v31  ;;  %v21591_v58 = vadd.f32 %v21379_v25, %v4850_v0  ;;  %v23770_v37 = vld [vmem:[#allocation90_spill] sm:$0xff]  ;;  %v5438_v11 = vpop.f32.mrf.mxu1 }
 0x2d3   :  { %23762 = vst [vmem:[#allocation35_spill] sm:$0xff] %v21578_v52  ;;  %23764 = vst [vmem:[#allocation51_spill] sm:$0xff] %v21582_v15  ;;  %v21595_v2 = vadd.f32 %v21407_v63, %v23767_v4  ;;  %v6228_v56 = vadd.f32 %v5917_v3, %v21370_v16  ;;  %v21599_v40 = vadd.f32 %v21436_v20, %v4852_v51  ;;  %v14968_v31 = vrot.slane %v6513_v42, 9 }
 0x2d4   :  { %23765 = vst [vmem:[#allocation36_spill] sm:$0xff] %v21588_v13  ;;  %23766 = vst [vmem:[#allocation52_spill] sm:$0xff] %v21591_v58  ;;  %v6520_v41 = vrot.slane %v6506_v48, %v21321_v5  ;;  %v6521_v47 = vcombine.high %v6513_v42, %v6513_v42  ;;  %v6489_v30 = vcombine.high %v6361_v53, %v6361_v53  ;;  %v6364_v0 = vmax.f32 %v6300_v54, 0.0 }
 0x2d5   :  { %23768 = vst [vmem:[#allocation37_spill] sm:$0xff] %v21595_v2  ;;  %23769 = vst [vmem:[#allocation54_spill] sm:$0xff] %v21599_v40  ;;  %v21603_v26 = vadd.f32 %v17009_v50, %v23770_v37  ;;  %v6496_v25 = vrot.slane %v6361_v53, %v21321_v5  ;;  %v6299_v16 = vadd.f32 %v21515_v21, %v6228_v56  ;;  %v23773_v40 = vld [vmem:[#allocation94_spill] sm:$0xff] }
 0x2d6   :  { %v6522_v24 = vcombine.high %v6520_v41, %v6520_v41  ;;  %v14969_v63 = vrot.slane %v6521_v47, 9  ;;  %v14970_v4 = vrot.slane %v6520_v41, 9  ;;  %v6503_v20 = vrot.slane %v6489_v30, %v21321_v5 }
 0x2d7   :  { %23771 = vst [vmem:[#allocation38_spill] sm:$0xff] %v21603_v26  ;;  %v6504_v51 = vcombine.high %v6496_v25, %v6496_v25  ;;  %v14964_v3 = vrot.slane %v6496_v25, 9  ;;  %v6540_v48 = vcombine.high %v6364_v0, %v6364_v0  ;;  %v21608_v13 = vadd.f32 %v5428_v1, %v4854_v18  ;;  %v17044_v1 = vpop.f32.mrf.mxu0 }
 0x2d8   :  { %v21611_v50 = vadd.f32 %v17012_v7, %v23773_v40  ;;  %v21613_v37 = vadd.f32 %v5438_v11, %v4856_v59  ;;  %v6547_v53 = vrot.slane %v6364_v0, %v21321_v5  ;;  %v14971_v54 = vrot.slane %v6522_v24, 9  ;;  %v17015_v59 = vpop.f32.mrf.mxu1 }
 0x2d9   :  { %23772 = vst [vmem:[#allocation55_spill] sm:$0xff] %v21608_v13  ;;  %v21616_v26 = vmax.f32 %v6513_v42, %v14968_v31  ;;  %v21618_v2 = vmax.f32 %v6521_v47, %v14969_v63  ;;  %v21620_v56 = vmax.f32 %v6520_v41, %v14970_v4  ;;  %v6505_v30 = vcombine.high %v6503_v20, %v6503_v20 }
 0x2da   :  { %23774 = vst [vmem:[#allocation57_spill] sm:$0xff] %v21611_v50  ;;  %23775 = vst [vmem:[#allocation39_spill] sm:$0xff] %v21613_v37  ;;  %v6554_v58 = vrot.slane %v6540_v48, %v21321_v5  ;;  %v6555_v15 = vcombine.high %v6547_v53, %v6547_v53  ;;  %v14976_v18 = vrot.slane %v6547_v53, 9  ;;  %v14965_v13 = vrot.slane %v6504_v51, 9 }
 0x2db   :  { %v14966_v7 = vrot.slane %v6503_v20, 9  ;;  %v8601_v40 = vmax.f32 %v6496_v25, %v14964_v3  ;;  %v6363_v11 = vmax.f32 %v6299_v16, 0.0  ;;  %v21623_v31 = vmax.f32 %v6522_v24, %v14971_v54  ;;  %v5448_v25 = vpop.f32.mrf.mxu1 }
 0x2dc   :  { %v6556_v37 = vcombine.high %v6554_v58, %v6554_v58  ;;  %v14977_v0 = vrot.slane %v6555_v15, 9  ;;  %v14978_v50 = vrot.slane %v6554_v58, 9  ;;  %v8613_v42 = vmax.f32 %v6547_v53, %v14976_v18  ;;  %v5927_v53 = vpop.f32.mrf.mxu0 }
 0x2dd   :  { %v6523_v47 = vcombine.high %v6363_v11, %v6363_v11  ;;  %v6530_v41 = vrot.slane %v6363_v11, %v21321_v5  ;;  %v6231_v63 = vadd.f32 %v17044_v1, %v21374_v38  ;;  %v14967_v54 = vrot.slane %v6505_v30, 9 }
 0x2de   :  { %v14979_v4 = vrot.slane %v6556_v37, 9  ;;  %v8614_v48 = vmax.f32 %v6555_v15, %v14977_v0  ;;  %v8615_v52 = vmax.f32 %v6554_v58, %v14978_v50  ;;  %v8861_v45 = vmax.f32 %v21616_v26, %v8613_v42 }
 0x2df   :  { %v6537_v16 = vrot.slane %v6523_v47, %v21321_v5  ;;  %v6538_v3 = vcombine.high %v6530_v41, %v6530_v41  ;;  %v14972_v8 = vrot.slane %v6530_v41, 9  ;;  %v6302_v24 = vadd.f32 %v21515_v21, %v6231_v63 }
 0x2e0   :  { %v8616_v18 = vmax.f32 %v6556_v37, %v14979_v4  ;;  %v8862_v11 = vmax.f32 %v21618_v2, %v8614_v48  ;;  %v8863_v38 = vmax.f32 %v21620_v56, %v8615_v52  ;;  %v8602_v1 = vmax.f32 %v6504_v51, %v14965_v13  ;;  %v17018_v2 = vpop.f32.mrf.mxu1  ;;  %v17047_v4 = vpop.f32.mrf.mxu0  ;;  %v23776_v52 = vld [vmem:[#allocation98_spill] sm:$0xff] }
 0x2e1   :  { %v6539_v15 = vcombine.high %v6537_v16, %v6537_v16  ;;  %v14973_v58 = vrot.slane %v6538_v3, 9  ;;  %v14974_v26 = vrot.slane %v6537_v16, 9  ;;  %v8609_v50 = vmax.f32 %v6530_v41, %v14972_v8  ;;  %v23777_v41 = vld [vmem:[#allocation102_spill] sm:$0xff] }
 0x2e2   :  { %v8603_v0 = vmax.f32 %v6503_v20, %v14966_v7  ;;  %v8864_v42 = vmax.f32 %v21623_v31, %v8616_v18  ;;  %v6366_v47 = vmax.f32 %v6302_v24, 0.0  ;;  %v21634_v56 = vadd.f32 %v17015_v59, %v23776_v52 }
 0x2e3   :  { %v14975_v63 = vrot.slane %v6539_v15, 9  ;;  %v8610_v33 = vmax.f32 %v6538_v3, %v14973_v58  ;;  %v8611_v32 = vmax.f32 %v6537_v16, %v14974_v26  ;;  %v8857_v37 = vmax.f32 %v8601_v40, %v8609_v50  ;;  %v5937_v58 = vpop.f32.mrf.mxu0 }
 0x2e4   :  { %v21637_v48 = vadd.f32 %v5448_v25, %v21538_v44  ;;  %v6574_v8 = vcombine.high %v6366_v47, %v6366_v47  ;;  %v6581_v13 = vrot.slane %v6366_v47, %v21321_v5  ;;  %v8604_v20 = vmax.f32 %v6505_v30, %v14967_v54 }
 0x2e5   :  { %v8612_v51 = vmax.f32 %v6539_v15, %v14975_v63  ;;  %v8858_v7 = vmax.f32 %v8602_v1, %v8610_v33  ;;  %v8859_v31 = vmax.f32 %v8603_v0, %v8611_v32  ;;  %v21641_v16 = vadd.f32 %v17018_v2, %v23777_v41  ;;  %v17050_v2 = vpop.f32.mrf.mxu0 }
 0x2e6   :  { %v6588_v40 = vrot.slane %v6574_v8, %v21321_v5  ;;  %v6589_v3 = vcombine.high %v6581_v13, %v6581_v13  ;;  %v6230_v59 = vadd.f32 %v5927_v53, %v21383_v17  ;;  %v9158_v44 = vrot.slane %v8857_v37, %v21353_v43 }
 0x2e7   :  { %23778 = vst [vmem:[#allocation58_spill] sm:$0xff] %v21641_v16  ;;  %v8860_v24 = vmax.f32 %v8604_v20, %v8612_v51  ;;  %v9162_v25 = vrot.slane %v8858_v7, %v21353_v43  ;;  %v9166_v18 = vrot.slane %v8859_v31, %v21353_v43  ;;  %v9174_v30 = vrot.slane %v8861_v45, %v21353_v43 }
 0x2e8   :  { %v9178_v33 = vrot.slane %v8862_v11, %v21353_v43  ;;  %v6590_v32 = vcombine.high %v6588_v40, %v6588_v40  ;;  %v14984_v54 = vrot.slane %v6581_v13, 9  ;;  %v6301_v17 = vadd.f32 %v21515_v21, %v6230_v59 }
 0x2e9   :  { %v9170_v15 = vrot.slane %v8860_v24, %v21353_v43  ;;  %v9668_v26 = vsel %vm9667_vm4, %v9162_v25, %v9158_v44  ;;  %v6233_v53 = vadd.f32 %v17047_v4, %v21387_v29  ;;  %v9182_v50 = vrot.slane %v8863_v38, %v21353_v43 }
 0x2ea   :  { %v9186_v1 = vrot.slane %v8864_v42, %v21353_v43  ;;  %v9670_v0 = vsel %vm9669_vm5, %v9166_v18, %v9668_v26  ;;  %v14985_v47 = vrot.slane %v6589_v3, 9  ;;  %v14986_v11 = vrot.slane %v6588_v40, 9 }
 0x2eb   :  { %v9672_v45 = vsel %vm9671_vm6, %v9170_v15, %v9670_v0  ;;  %v6365_v63 = vmax.f32 %v6301_v17, 0.0  ;;  %v6304_v37 = vadd.f32 %v21515_v21, %v6233_v53  ;;  %v14987_v8 = vrot.slane %v6590_v32, 9 }
 0x2ec   :  { %v9674_v52 = vsel %vm9673_vm7, %v9174_v30, %v9672_v45  ;;  %v21660_v20 = vmax.f32 %v6581_v13, %v14984_v54  ;;  %v6232_v29 = vadd.f32 %v5937_v58, %v21392_v39  ;;  %v21666_v31 = vmax.f32 %v6589_v3, %v14985_v47 }
 0x2ed   :  { %v9676_v38 = vsel %vm9675_vm8, %v9178_v33, %v9674_v52  ;;  %v6557_v42 = vcombine.high %v6365_v63, %v6365_v63  ;;  %v6564_v4 = vrot.slane %v6365_v63, %v21321_v5  ;;  %v6368_v51 = vmax.f32 %v6304_v37, 0.0  ;;  %v5458_v33 = vpop.f32.mrf.mxu1 }
 0x2ee   :  { %v9678_v7 = vsel %vm9677_vm9, %v9182_v50, %v9676_v38  ;;  %v6303_v41 = vadd.f32 %v21515_v21, %v6232_v29  ;;  %v6235_v59 = vadd.f32 %v17050_v2, %v21396_v27  ;;  %v21673_v25 = vmax.f32 %v6588_v40, %v14986_v11  ;;  %v5947_v38 = vpop.f32.mrf.mxu0 }
 0x2ef   :  { %v9680_v24 = vsel %vm9679_vm10, %v9186_v1, %v9678_v7  ;;  %v6571_v13 = vrot.slane %v6557_v42, %v21321_v5  ;;  %v6572_v44 = vcombine.high %v6564_v4, %v6564_v4  ;;  %v14980_v39 = vrot.slane %v6564_v4, 9  ;;  %v17021_v2 = vpop.f32.mrf.mxu1 }
 0x2f0   :  { %9803 = vst.msk [vmem:[#allocation2 + $0x11] sm:$0xff] %vm8985_vm2, %v9680_v24  ;;  %v6608_v18 = vcombine.high %v6368_v51, %v6368_v51  ;;  %v6615_v58 = vrot.slane %v6368_v51, %v21321_v5  ;;  %v6367_v30 = vmax.f32 %v6303_v41, 0.0  ;;  %v21676_v3 = vmax.f32 %v6590_v32, %v14987_v8 }
 0x2f1   :  { %v6573_v54 = vcombine.high %v6571_v13, %v6571_v13  ;;  %v14981_v15 = vrot.slane %v6572_v44, 9  ;;  %v6306_v27 = vadd.f32 %v21515_v21, %v6235_v59  ;;  %v14982_v1 = vrot.slane %v6571_v13, 9 }
 0x2f2   :  { %v6622_v26 = vrot.slane %v6608_v18, %v21321_v5  ;;  %v6623_v17 = vcombine.high %v6615_v58, %v6615_v58  ;;  %v14992_v53 = vrot.slane %v6615_v58, 9  ;;  %v6591_v50 = vcombine.high %v6367_v30, %v6367_v30 }
 0x2f3   :  { %v14983_v0 = vrot.slane %v6573_v54, 9  ;;  %v8617_v40 = vmax.f32 %v6564_v4, %v14980_v39  ;;  %v6598_v47 = vrot.slane %v6367_v30, %v21321_v5  ;;  %v8618_v37 = vmax.f32 %v6572_v44, %v14981_v15  ;;  %v5468_v15 = vpop.f32.mrf.mxu1 }
 0x2f4   :  { %v6624_v45 = vcombine.high %v6622_v26, %v6622_v26  ;;  %v14993_v11 = vrot.slane %v6623_v17, 9  ;;  %v14994_v63 = vrot.slane %v6622_v26, 9  ;;  %v8629_v32 = vmax.f32 %v6615_v58, %v14992_v53 }
 0x2f5   :  { %v6605_v52 = vrot.slane %v6591_v50, %v21321_v5  ;;  %v6606_v8 = vcombine.high %v6598_v47, %v6598_v47  ;;  %v14988_v29 = vrot.slane %v6598_v47, 9  ;;  %v8619_v30 = vmax.f32 %v6571_v13, %v14982_v1 }
 0x2f6   :  { %v14995_v42 = vrot.slane %v6624_v45, 9  ;;  %v8630_v51 = vmax.f32 %v6623_v17, %v14993_v11  ;;  %v8631_v7 = vmax.f32 %v6622_v26, %v14994_v63  ;;  %v8869_v41 = vmax.f32 %v21660_v20, %v8629_v32  ;;  %v17053_v11 = vpop.f32.mrf.mxu0 }
 0x2f7   :  { %v6607_v59 = vcombine.high %v6605_v52, %v6605_v52  ;;  %v14989_v4 = vrot.slane %v6606_v8, 9  ;;  %v14990_v24 = vrot.slane %v6605_v52, 9  ;;  %v8625_v39 = vmax.f32 %v6598_v47, %v14988_v29  ;;  %v9837_v18 = vld [vmem:[#allocation2 + $0x11] sm:$0xff] }
 0x2f8   :  { %v8632_v16 = vmax.f32 %v6624_v45, %v14995_v42  ;;  %v8870_v44 = vmax.f32 %v21666_v31, %v8630_v51  ;;  %v8871_v58 = vmax.f32 %v21673_v25, %v8631_v7  ;;  %17135 = vmatmul.mubr.msk.f32.vlgmr.msra.gmra.mxu1 %vm8985_vm2, %v9837_v18  ;;  %17238 = vmatprep.mubr.msk.f32.mxu0 %vm8985_vm2, %v9837_v18  ;;  %v23779_v47 = vld [vmem:[#allocation24_spill] sm:$0xff]  ;;  %v6370_v1 = vmax.f32 %v6306_v27, 0.0 }
 0x2f9   :  { %v14991_v53 = vrot.slane %v6607_v59, 9  ;;  %v8626_v50 = vmax.f32 %v6606_v8, %v14989_v4  ;;  %v8627_v17 = vmax.f32 %v6605_v52, %v14990_v24  ;;  %v8865_v26 = vmax.f32 %v8617_v40, %v8625_v39 }
 0x2fa   :  { %v21688_v20 = vadd.f32 %v5458_v33, %v21551_v34  ;;  %v21691_v13 = vadd.f32 %v17021_v2, %v23779_v47  ;;  %v8872_v31 = vmax.f32 %v21676_v3, %v8632_v16  ;;  %v8620_v25 = vmax.f32 %v6573_v54, %v14983_v0  ;;  %v17024_v3 = vpop.f32.mrf.mxu1  ;;  %v5957_v54 = vpop.f32.mrf.mxu0 }
 0x2fb   :  { %v8628_v45 = vmax.f32 %v6607_v59, %v14991_v53  ;;  %v8866_v63 = vmax.f32 %v8618_v37, %v8626_v50  ;;  %v8867_v32 = vmax.f32 %v8619_v30, %v8627_v17  ;;  %v21695_v8 = vadd.f32 %v5468_v15, %v21562_v60 }
 0x2fc   :  { %v6642_v40 = vcombine.high %v6370_v1, %v6370_v1  ;;  %v6649_v52 = vrot.slane %v6370_v1, %v21321_v5  ;;  %v6234_v29 = vadd.f32 %v5947_v38, %v21401_v35  ;;  %v9190_v33 = vrot.slane %v8865_v26, %v21353_v43  ;;  %v5478_v18 = vpop.f32.mrf.mxu1  ;;  %v17056_v15 = vpop.f32.mrf.mxu0  ;;  %v23780_v1 = vld [vmem:[#allocation14_spill] sm:$0xff] }
 0x2fd   :  { %v8868_v34 = vmax.f32 %v8620_v25, %v8628_v45  ;;  %v9194_v2 = vrot.slane %v8866_v63, %v21353_v43  ;;  %v9198_v16 = vrot.slane %v8867_v32, %v21353_v43  ;;  %v9206_v27 = vrot.slane %v8869_v41, %v21353_v43  ;;  %v23781_v63 = vld [vmem:[#allocation17_spill] sm:$0xff] }
 0x2fe   :  { %v6656_v0 = vrot.slane %v6642_v40, %v21321_v5  ;;  %v6657_v60 = vcombine.high %v6649_v52, %v6649_v52  ;;  %v6305_v37 = vadd.f32 %v21515_v21, %v6234_v29  ;;  %v9210_v42 = vrot.slane %v8870_v44, %v21353_v43 }
 0x2ff   :  { %v9202_v35 = vrot.slane %v8868_v34, %v21353_v43  ;;  %v9681_v38 = vsel %vm9667_vm4, %v9194_v2, %v9190_v33  ;;  %v6237_v51 = vadd.f32 %v17053_v11, %v21405_v36  ;;  %v9214_v7 = vrot.slane %v8871_v58, %v21353_v43  ;;  %v21727_v2 = vpop.f32.mrf.mxu0 }
 0x300   :  { %v9218_v59 = vrot.slane %v8872_v31, %v21353_v43  ;;  %v9682_v4 = vsel %vm9669_vm5, %v9198_v16, %v9681_v38  ;;  %v6658_v41 = vcombine.high %v6656_v0, %v6656_v0  ;;  %v15000_v39 = vrot.slane %v6649_v52, 9 }
 0x301   :  { %v9683_v24 = vsel %vm9671_vm6, %v9202_v35, %v9682_v4  ;;  %v6369_v30 = vmax.f32 %v6305_v37, 0.0  ;;  %v6308_v44 = vadd.f32 %v21515_v21, %v6237_v51  ;;  %v15001_v50 = vrot.slane %v6657_v60, 9  ;;  %v23782_v37 = vld [vmem:[#allocation10_spill] sm:$0xff] }
 0x302   :  { %v9684_v53 = vsel %vm9673_vm7, %v9206_v27, %v9683_v24  ;;  %v15002_v17 = vrot.slane %v6656_v0, 9  ;;  %v15003_v36 = vrot.slane %v6658_v41, 9  ;;  %v21719_v25 = vadd.f32 %v17024_v3, %v23780_v1 }
 0x303   :  { %v9685_v58 = vsel %vm9675_vm8, %v9210_v42, %v9684_v53  ;;  %v6625_v26 = vcombine.high %v6369_v30, %v6369_v30  ;;  %v6632_v11 = vrot.slane %v6369_v30, %v21321_v5  ;;  %v6372_v47 = vmax.f32 %v6308_v44, 0.0  ;;  %v17059_v30 = vpop.f32.mrf.mxu0 }
 0x304   :  { %v9686_v31 = vsel %vm9677_vm9, %v9214_v7, %v9685_v58  ;;  %v21722_v45 = vadd.f32 %v5478_v18, %v21575_v57  ;;  %v6236_v32 = vadd.f32 %v5957_v54, %v23781_v63  ;;  %v8637_v29 = vmax.f32 %v6649_v52, %v15000_v39 }
 0x305   :  { %v9687_v40 = vsel %vm9679_vm10, %v9218_v59, %v9686_v31  ;;  %v6639_v34 = vrot.slane %v6625_v26, %v21321_v5  ;;  %v6640_v33 = vcombine.high %v6632_v11, %v6632_v11  ;;  %v6676_v16 = vcombine.high %v6372_v47, %v6372_v47 }
 0x306   :  { %9804 = vst.msk [vmem:[#allocation2 + $0x21] sm:$0xff] %vm8985_vm2, %v9687_v40  ;;  %v6683_v27 = vrot.slane %v6372_v47, %v21321_v5  ;;  %v6307_v3 = vadd.f32 %v21515_v21, %v6236_v32  ;;  %v6239_v57 = vadd.f32 %v17056_v15, %v23782_v37  ;;  %v8638_v42 = vmax.f32 %v6657_v60, %v15001_v50  ;;  %v5977_v40 = vpop.f32.mrf.mxu0 }
 0x307   :  { %v21733_v35 = vmax.f32 %v6656_v0, %v15002_v17  ;;  %v21735_v54 = vmax.f32 %v6658_v41, %v15003_v36  ;;  %v14996_v52 = vrot.slane %v6632_v11, 9  ;;  %v6690_v38 = vrot.slane %v6676_v16, %v21321_v5 }
 0x308   :  { %v6691_v51 = vcombine.high %v6683_v27, %v6683_v27  ;;  %v15008_v7 = vrot.slane %v6683_v27, 9  ;;  %v6371_v59 = vmax.f32 %v6307_v3, 0.0  ;;  %v6641_v4 = vcombine.high %v6639_v34, %v6639_v34 }
 0x309   :  { %v14997_v24 = vrot.slane %v6640_v33, 9  ;;  %v14998_v39 = vrot.slane %v6639_v34, 9  ;;  %v6310_v18 = vadd.f32 %v21515_v21, %v6239_v57  ;;  %v6692_v44 = vcombine.high %v6690_v38, %v6690_v38 }
 0x30a   :  { %v15009_v53 = vrot.slane %v6691_v51, 9  ;;  %v15010_v15 = vrot.slane %v6690_v38, 9  ;;  %v8645_v60 = vmax.f32 %v6683_v27, %v15008_v7  ;;  %v8633_v0 = vmax.f32 %v6632_v11, %v14996_v52 }
 0x30b   :  { %v6659_v50 = vcombine.high %v6371_v59, %v6371_v59  ;;  %v6666_v41 = vrot.slane %v6371_v59, %v21321_v5  ;;  %v6374_v17 = vmax.f32 %v6310_v18, 0.0  ;;  %v15011_v36 = vrot.slane %v6692_v44, 9 }
 0x30c   :  { %v8646_v58 = vmax.f32 %v6691_v51, %v15009_v53  ;;  %v8647_v26 = vmax.f32 %v6690_v38, %v15010_v15  ;;  %v8877_v47 = vmax.f32 %v8637_v29, %v8645_v60  ;;  %v14999_v31 = vrot.slane %v6641_v4, 9 }
 0x30d   :  { %v6673_v1 = vrot.slane %v6659_v50, %v21321_v5  ;;  %v6674_v63 = vcombine.high %v6666_v41, %v6666_v41  ;;  %v15004_v32 = vrot.slane %v6666_v41, 9  ;;  %v9838_v16 = vld [vmem:[#allocation2 + $0x21] sm:$0xff]  ;;  %v8648_v3 = vmax.f32 %v6692_v44, %v15011_v36 }
 0x30e   :  { %v8878_v37 = vmax.f32 %v8638_v42, %v8646_v58  ;;  %v8879_v27 = vmax.f32 %v21733_v35, %v8647_v26  ;;  %v6710_v11 = vcombine.high %v6374_v17, %v6374_v17  ;;  %17137 = vmatprep.mubr.msk.f32.mxu1 %vm8985_vm2, %v9838_v16  ;;  %17239 = vmatmul.mubr.msk.f32.vlgmr.msra.gmra.mxu0 %vm8985_vm2, %v9838_v16  ;;  %v17062_v35 = vpop.f32.mrf.mxu0 }
 0x30f   :  { %v6675_v57 = vcombine.high %v6673_v1, %v6673_v1  ;;  %v15005_v52 = vrot.slane %v6674_v63, 9  ;;  %v15006_v7 = vrot.slane %v6673_v1, 9  ;;  %v8641_v51 = vmax.f32 %v6666_v41, %v15004_v32 }
 0x310   :  { %v8634_v29 = vmax.f32 %v6640_v33, %v14997_v24  ;;  %v8635_v38 = vmax.f32 %v6639_v34, %v14998_v39  ;;  %v8880_v59 = vmax.f32 %v21735_v54, %v8648_v3  ;;  %v6717_v18 = vrot.slane %v6374_v17, %v21321_v5  ;;  %v23783_v3 = vld [vmem:[#allocation20_spill] sm:$0xff] }
 0x311   :  { %v15007_v53 = vrot.slane %v6675_v57, 9  ;;  %v8642_v44 = vmax.f32 %v6674_v63, %v15005_v52  ;;  %v8643_v42 = vmax.f32 %v6673_v1, %v15006_v7  ;;  %v8873_v15 = vmax.f32 %v8633_v0, %v8641_v51  ;;  %v23784_v7 = vld [vmem:[#allocation21_spill] sm:$0xff] }
 0x312   :  { %v8636_v60 = vmax.f32 %v6641_v4, %v14999_v31  ;;  %v9238_v50 = vrot.slane %v8877_v47, %v21353_v43  ;;  %v6724_v36 = vrot.slane %v6710_v11, %v21321_v5  ;;  %v6725_v58 = vcombine.high %v6717_v18, %v6717_v18  ;;  %v5987_v47 = vpop.f32.mrf.mxu0 }
 0x313   :  { %v8644_v41 = vmax.f32 %v6675_v57, %v15007_v53  ;;  %v8874_v26 = vmax.f32 %v8634_v29, %v8642_v44  ;;  %v8875_v32 = vmax.f32 %v8635_v38, %v8643_v42  ;;  %v15016_v33 = vrot.slane %v6717_v18, 9 }
 0x314   :  { %v9242_v34 = vrot.slane %v8878_v37, %v21353_v43  ;;  %v6726_v54 = vcombine.high %v6724_v36, %v6724_v36  ;;  %v15017_v24 = vrot.slane %v6725_v58, 9  ;;  %v15018_v39 = vrot.slane %v6724_v36, 9 }
 0x315   :  { %v8876_v17 = vmax.f32 %v8636_v60, %v8644_v41  ;;  %v9222_v1 = vrot.slane %v8873_v15, %v21353_v43  ;;  %v9226_v0 = vrot.slane %v8874_v26, %v21353_v43  ;;  %v9230_v4 = vrot.slane %v8875_v32, %v21353_v43 }
 0x316   :  { %v9246_v31 = vrot.slane %v8879_v27, %v21353_v43  ;;  %v9250_v63 = vrot.slane %v8880_v59, %v21353_v43  ;;  %v15019_v16 = vrot.slane %v6726_v54, 9  ;;  %v6238_v11 = vadd.f32 %v21727_v2, %v23783_v3 }
 0x317   :  { %v9234_v37 = vrot.slane %v8876_v17, %v21353_v43  ;;  %v9688_v57 = vsel %vm9667_vm4, %v9226_v0, %v9222_v1  ;;  %v21758_v52 = vmax.f32 %v6717_v18, %v15016_v33  ;;  %v6241_v51 = vadd.f32 %v17059_v30, %v23784_v7  ;;  %v17065_v18 = vpop.f32.mrf.mxu0 }
 0x318   :  { %v9689_v29 = vsel %vm9669_vm5, %v9230_v4, %v9688_v57  ;;  %v21762_v38 = vmax.f32 %v6725_v58, %v15017_v24  ;;  %v21764_v53 = vmax.f32 %v6724_v36, %v15018_v39  ;;  %v6309_v27 = vadd.f32 %v21515_v21, %v6238_v11 }
 0x319   :  { %v9690_v59 = vsel %vm9671_vm6, %v9234_v37, %v9689_v29  ;;  %v6312_v2 = vadd.f32 %v21515_v21, %v6241_v51  ;;  %v6240_v44 = vadd.f32 %v5977_v40, %v21440_v55  ;;  %v6243_v42 = vadd.f32 %v17062_v35, %v21444_v46 }
 0x31a   :  { %v9691_v15 = vsel %vm9673_vm7, %v9238_v50, %v9690_v59  ;;  %v21772_v30 = vmax.f32 %v6726_v54, %v15019_v16  ;;  %v6373_v60 = vmax.f32 %v6309_v27, 0.0  ;;  %v6242_v58 = vadd.f32 %v5987_v47, %v21448_v9 }
 0x31b   :  { %v9692_v36 = vsel %vm9675_vm8, %v9242_v34, %v9691_v15  ;;  %v6376_v41 = vmax.f32 %v6312_v2, 0.0  ;;  %v6311_v26 = vadd.f32 %v21515_v21, %v6240_v44  ;;  %v6314_v32 = vadd.f32 %v21515_v21, %v6243_v42 }
 0x31c   :  { %v9693_v33 = vsel %vm9677_vm9, %v9246_v31, %v9692_v36  ;;  %v6693_v55 = vcombine.high %v6373_v60, %v6373_v60  ;;  %v6700_v46 = vrot.slane %v6373_v60, %v21321_v5  ;;  %v21781_v40 = vadd.f32 %v17065_v18, %v21452_v6 }
 0x31d   :  { %v9694_v35 = vsel %vm9679_vm10, %v9250_v63, %v9693_v33  ;;  %v6744_v50 = vcombine.high %v6376_v41, %v6376_v41  ;;  %v6751_v9 = vrot.slane %v6376_v41, %v21321_v5  ;;  %v6375_v54 = vmax.f32 %v6311_v26, 0.0  ;;  %v5997_v33 = vpop.f32.mrf.mxu0 }
 0x31e   :  { %9805 = vst.msk [vmem:[#allocation2 + $0x31] sm:$0xff] %vm8985_vm2, %v9694_v35  ;;  %v6707_v34 = vrot.slane %v6693_v55, %v21321_v5  ;;  %v6708_v24 = vcombine.high %v6700_v46, %v6700_v46  ;;  %v15012_v39 = vrot.slane %v6700_v46, 9  ;;  %v6313_v17 = vadd.f32 %v21515_v21, %v6242_v58 }
 0x31f   :  { %v6758_v1 = vrot.slane %v6744_v50, %v21321_v5  ;;  %v6759_v0 = vcombine.high %v6751_v9, %v6751_v9  ;;  %v15024_v4 = vrot.slane %v6751_v9, 9  ;;  %v6378_v6 = vmax.f32 %v6314_v32, 0.0 }
 0x320   :  { %v6709_v47 = vcombine.high %v6707_v34, %v6707_v34  ;;  %v15013_v31 = vrot.slane %v6708_v24, 9  ;;  %v15014_v63 = vrot.slane %v6707_v34, 9  ;;  %v6727_v16 = vcombine.high %v6375_v54, %v6375_v54 }
 0x321   :  { %v6760_v3 = vcombine.high %v6758_v1, %v6758_v1  ;;  %v15025_v11 = vrot.slane %v6759_v0, 9  ;;  %v15026_v37 = vrot.slane %v6758_v1, 9  ;;  %v8661_v57 = vmax.f32 %v6751_v9, %v15024_v4 }
 0x322   :  { %v15015_v7 = vrot.slane %v6709_v47, 9  ;;  %v8649_v51 = vmax.f32 %v6700_v46, %v15012_v39  ;;  %v8650_v29 = vmax.f32 %v6708_v24, %v15013_v31  ;;  %v6734_v27 = vrot.slane %v6375_v54, %v21321_v5 }
 0x323   :  { %v15027_v59 = vrot.slane %v6760_v3, 9  ;;  %v8662_v2 = vmax.f32 %v6759_v0, %v15025_v11  ;;  %v8663_v44 = vmax.f32 %v6758_v1, %v15026_v37  ;;  %v8885_v42 = vmax.f32 %v21758_v52, %v8661_v57 }
 0x324   :  { %v8651_v18 = vmax.f32 %v6707_v34, %v15014_v63  ;;  %v6741_v15 = vrot.slane %v6727_v16, %v21321_v5  ;;  %v6742_v60 = vcombine.high %v6734_v27, %v6734_v27  ;;  %v15020_v58 = vrot.slane %v6734_v27, 9  ;;  %v17068_v63 = vpop.f32.mrf.mxu0 }
 0x325   :  { %v8652_v36 = vmax.f32 %v6709_v47, %v15015_v7  ;;  %v8664_v41 = vmax.f32 %v6760_v3, %v15027_v59  ;;  %v8886_v26 = vmax.f32 %v21762_v38, %v8662_v2  ;;  %v8887_v32 = vmax.f32 %v21764_v53, %v8663_v44  ;;  %v9839_v55 = vld [vmem:[#allocation2 + $0x31] sm:$0xff] }
 0x326   :  { %v6743_v46 = vcombine.high %v6741_v15, %v6741_v15  ;;  %v15021_v35 = vrot.slane %v6742_v60, 9  ;;  %v15022_v50 = vrot.slane %v6741_v15, 9  ;;  %v8657_v9 = vmax.f32 %v6734_v27, %v15020_v58  ;;  %17138 = vmatmul.mubr.msk.f32.gmra.mxu1 %vm8985_vm2, %v9839_v55  ;;  %17241 = vmatprep.mubr.msk.f32.mxu0 %vm8985_vm2, %v9839_v55 }
 0x327   :  { %v8888_v52 = vmax.f32 %v21772_v30, %v8664_v41  ;;  %v9270_v54 = vrot.slane %v8885_v42, %v21353_v43  ;;  %v9274_v34 = vrot.slane %v8886_v26, %v21353_v43  ;;  %v6778_v24 = vcombine.high %v6378_v6, %v6378_v6 }
 0x328   :  { %v15023_v38 = vrot.slane %v6743_v46, 9  ;;  %v8658_v39 = vmax.f32 %v6742_v60, %v15021_v35  ;;  %v8659_v53 = vmax.f32 %v6741_v15, %v15022_v50  ;;  %v8881_v1 = vmax.f32 %v8649_v51, %v8657_v9 }
 0x329   :  { %v9278_v0 = vrot.slane %v8887_v32, %v21353_v43  ;;  %v6785_v4 = vrot.slane %v6378_v6, %v21321_v5  ;;  %v6792_v47 = vrot.slane %v6778_v24, %v21321_v5  ;;  %v6377_v31 = vmax.f32 %v6313_v17, 0.0 }
 0x32a   :  { %v8660_v16 = vmax.f32 %v6743_v46, %v15023_v38  ;;  %v8882_v3 = vmax.f32 %v8650_v29, %v8658_v39  ;;  %v8883_v30 = vmax.f32 %v8651_v18, %v8659_v53  ;;  %v9254_v11 = vrot.slane %v8881_v1, %v21353_v43  ;;  %v6007_v29 = vpop.f32.mrf.mxu0 }
 0x32b   :  { %v6793_v37 = vcombine.high %v6785_v4, %v6785_v4  ;;  %v6794_v57 = vcombine.high %v6792_v47, %v6792_v47  ;;  %v15032_v7 = vrot.slane %v6785_v4, 9  ;;  %v15034_v27 = vrot.slane %v6792_v47, 9 }
 0x32c   :  { %v8884_v59 = vmax.f32 %v8652_v36, %v8660_v16  ;;  %v9258_v51 = vrot.slane %v8882_v3, %v21353_v43  ;;  %v9262_v2 = vrot.slane %v8883_v30, %v21353_v43  ;;  %v6761_v44 = vcombine.high %v6377_v31, %v6377_v31  ;;  %v17071_v53 = vpop.f32.mrf.mxu0 }
 0x32d   :  { %v9282_v6 = vrot.slane %v8888_v52, %v21353_v43  ;;  %v15033_v42 = vrot.slane %v6793_v37, 9  ;;  %v15035_v17 = vrot.slane %v6794_v57, 9  ;;  %v21806_v15 = vmax.f32 %v6785_v4, %v15032_v7 }
 0x32e   :  { %v9266_v18 = vrot.slane %v8884_v59, %v21353_v43  ;;  %v9695_v60 = vsel %vm9667_vm4, %v9258_v51, %v9254_v11  ;;  %v6768_v58 = vrot.slane %v6377_v31, %v21321_v5  ;;  %v6775_v36 = vrot.slane %v6761_v44, %v21321_v5 }
 0x32f   :  { %v9696_v41 = vsel %vm9669_vm5, %v9262_v2, %v9695_v60  ;;  %v8670_v26 = vmax.f32 %v6793_v37, %v15033_v42  ;;  %v21813_v32 = vmax.f32 %v6792_v47, %v15034_v27  ;;  %v6316_v55 = vadd.f32 %v21515_v21, %v21781_v40  ;;  %v6017_v27 = vpop.f32.mrf.mxu0 }
 0x330   :  { %v9697_v46 = vsel %vm9671_vm6, %v9266_v18, %v9696_v41  ;;  %v6776_v35 = vcombine.high %v6768_v58, %v6768_v58  ;;  %v6777_v50 = vcombine.high %v6775_v36, %v6775_v36  ;;  %v15028_v9 = vrot.slane %v6768_v58, 9 }
 0x331   :  { %v9698_v52 = vsel %vm9673_vm7, %v9270_v54, %v9697_v46  ;;  %v15030_v24 = vrot.slane %v6775_v36, 9  ;;  %v6380_v38 = vmax.f32 %v6316_v55, 0.0  ;;  %v6244_v39 = vadd.f32 %v5997_v33, %v21456_v10 }
 0x332   :  { %v9699_v1 = vsel %vm9675_vm8, %v9274_v34, %v9698_v52  ;;  %v21821_v4 = vmax.f32 %v6794_v57, %v15035_v17  ;;  %v15029_v47 = vrot.slane %v6776_v35, 9  ;;  %v15031_v31 = vrot.slane %v6777_v50, 9 }
 0x333   :  { %v9700_v40 = vsel %vm9677_vm9, %v9278_v0, %v9699_v1  ;;  %v8665_v16 = vmax.f32 %v6768_v58, %v15028_v9  ;;  %v6812_v3 = vcombine.high %v6380_v38, %v6380_v38  ;;  %v6819_v30 = vrot.slane %v6380_v38, %v21321_v5 }
 0x334   :  { %v9701_v11 = vsel %vm9679_vm10, %v9282_v6, %v9700_v40  ;;  %v8666_v54 = vmax.f32 %v6776_v35, %v15029_v47  ;;  %v8667_v37 = vmax.f32 %v6775_v36, %v15030_v24  ;;  %v6315_v7 = vadd.f32 %v21515_v21, %v6244_v39 }
 0x335   :  { %9806 = vst.msk [vmem:[#allocation2 + $0x41] sm:$0xff] %vm8985_vm2, %v9701_v11  ;;  %v6826_v10 = vrot.slane %v6812_v3, %v21321_v5  ;;  %v6827_v33 = vcombine.high %v6819_v30, %v6819_v30  ;;  %v15040_v34 = vrot.slane %v6819_v30, 9  ;;  %v6247_v57 = vadd.f32 %v17068_v63, %v21460_v19 }
 0x336   :  { %v8668_v0 = vmax.f32 %v6777_v50, %v15031_v31  ;;  %v6379_v59 = vmax.f32 %v6315_v7, 0.0  ;;  %v6246_v51 = vadd.f32 %v6007_v29, %v21465_v12  ;;  %v21832_v2 = vadd.f32 %v17071_v53, %v21469_v62 }
 0x337   :  { %v6828_v44 = vcombine.high %v6826_v10, %v6826_v10  ;;  %v15041_v6 = vrot.slane %v6827_v33, 9  ;;  %v15042_v42 = vrot.slane %v6826_v10, 9  ;;  %v8677_v17 = vmax.f32 %v6819_v30, %v15040_v34 }
 0x338   :  { %v6795_v18 = vcombine.high %v6379_v59, %v6379_v59  ;;  %v6802_v60 = vrot.slane %v6379_v59, %v21321_v5  ;;  %v6318_v58 = vadd.f32 %v21515_v21, %v6247_v57  ;;  %v21837_v36 = vadd.f32 %v6017_v27, %v21477_v14 }
 0x339   :  { %v15043_v19 = vrot.slane %v6828_v44, 9  ;;  %v8678_v63 = vmax.f32 %v6827_v33, %v15041_v6  ;;  %v8679_v41 = vmax.f32 %v6826_v10, %v15042_v42  ;;  %v8893_v12 = vmax.f32 %v21806_v15, %v8677_v17 }
 0x33a   :  { %v6809_v62 = vrot.slane %v6795_v18, %v21321_v5  ;;  %v6810_v29 = vcombine.high %v6802_v60, %v6802_v60  ;;  %v15036_v55 = vrot.slane %v6802_v60, 9  ;;  %v6382_v46 = vmax.f32 %v6318_v58, 0.0 }
 0x33b   :  { %v8680_v35 = vmax.f32 %v6828_v44, %v15043_v19  ;;  %v8894_v50 = vmax.f32 %v8670_v26, %v8678_v63  ;;  %v8895_v9 = vmax.f32 %v21813_v32, %v8679_v41  ;;  %v6317_v52 = vadd.f32 %v21515_v21, %v6246_v51 }
 0x33c   :  { %v6811_v24 = vcombine.high %v6809_v62, %v6809_v62  ;;  %v15037_v38 = vrot.slane %v6810_v29, 9  ;;  %v15038_v14 = vrot.slane %v6809_v62, 9  ;;  %v8673_v39 = vmax.f32 %v6802_v60, %v15036_v55  ;;  %v9840_v53 = vld [vmem:[#allocation2 + $0x41] sm:$0xff]  ;;  %v17074_v55 = vpop.f32.mrf.mxu0 }
 0x33d   :  { %v8896_v1 = vmax.f32 %v21821_v4, %v8680_v35  ;;  %v9302_v15 = vrot.slane %v8893_v12, %v21353_v43  ;;  %v9306_v47 = vrot.slane %v8894_v50, %v21353_v43  ;;  %v6846_v31 = vcombine.high %v6382_v46, %v6382_v46  ;;  %17140 = vmatprep.mubr.msk.f32.mxu1 %vm8985_vm2, %v9840_v53 }
 0x33e   :  { %v15039_v40 = vrot.slane %v6811_v24, 9  ;;  %v8674_v26 = vmax.f32 %v6810_v29, %v15037_v38  ;;  %v8675_v3 = vmax.f32 %v6809_v62, %v15038_v14  ;;  %v8889_v32 = vmax.f32 %v8665_v16, %v8673_v39  ;;  %17242 = vmatmul.mubr.msk.f32.gmra.mxu0 %vm8985_vm2, %v9840_v53  ;;  %v21869_v62 = vld [vmem:[%s23401_s2] ss:$0 sm:$0xff] }
 0x33f   :  { %v9310_v21 = vrot.slane %v8895_v9, %v21353_v43  ;;  %v6853_v30 = vrot.slane %v6382_v46, %v21321_v5  ;;  %v6860_v11 = vrot.slane %v6846_v31, %v21321_v5  ;;  %v6381_v4 = vmax.f32 %v6317_v52, 0.0 }
 0x340   :  { %v8676_v7 = vmax.f32 %v6811_v24, %v15039_v40  ;;  %v8890_v10 = vmax.f32 %v8666_v54, %v8674_v26  ;;  %v8891_v33 = vmax.f32 %v8667_v37, %v8675_v3  ;;  %v9286_v34 = vrot.slane %v8889_v32, %v21353_v43  ;;  %v6027_v32 = vpop.f32.mrf.mxu0 }
 0x341   :  { %v6861_v57 = vcombine.high %v6853_v30, %v6853_v30  ;;  %v6862_v27 = vcombine.high %v6860_v11, %v6860_v11  ;;  %v15048_v59 = vrot.slane %v6853_v30, 9  ;;  %v15050_v51 = vrot.slane %v6860_v11, 9 }
 0x342   :  { %v8892_v44 = vmax.f32 %v8668_v0, %v8676_v7  ;;  %v9290_v16 = vrot.slane %v8890_v10, %v21353_v43  ;;  %v9294_v6 = vrot.slane %v8891_v33, %v21353_v43  ;;  %v6829_v42 = vcombine.high %v6381_v4, %v6381_v4  ;;  %v23785_v10 = vld [vmem:[#allocation8_spill] sm:$0xff] }
 0x343   :  { %v9314_v17 = vrot.slane %v8896_v1, %v21353_v43  ;;  %v15049_v18 = vrot.slane %v6861_v57, 9  ;;  %v15051_v60 = vrot.slane %v6862_v27, 9  ;;  %v21855_v58 = vmax.f32 %v6853_v30, %v15048_v59 }
 0x344   :  { %v9298_v54 = vrot.slane %v8892_v44, %v21353_v43  ;;  %v9702_v37 = vsel %vm9667_vm4, %v9290_v16, %v9286_v34  ;;  %v6836_v19 = vrot.slane %v6381_v4, %v21321_v5  ;;  %v6843_v63 = vrot.slane %v6829_v42, %v21321_v5  ;;  %v17077_v42 = vpop.f32.mrf.mxu0 }
 0x345   :  { %v9703_v0 = vsel %vm9669_vm5, %v9294_v6, %v9702_v37  ;;  %v21862_v41 = vmax.f32 %v6861_v57, %v15049_v18  ;;  %v21864_v12 = vmax.f32 %v6860_v11, %v15050_v51  ;;  %v6320_v29 = vadd.f32 %v21869_v62, %v21832_v2 }
 0x346   :  { %v9704_v46 = vsel %vm9671_vm6, %v9298_v54, %v9703_v0  ;;  %v6844_v35 = vcombine.high %v6836_v19, %v6836_v19  ;;  %v6845_v50 = vcombine.high %v6843_v63, %v6843_v63  ;;  %v15044_v9 = vrot.slane %v6836_v19, 9 }
 0x347   :  { %v9705_v52 = vsel %vm9673_vm7, %v9302_v15, %v9704_v46  ;;  %v15046_v24 = vrot.slane %v6843_v63, 9  ;;  %v6384_v38 = vmax.f32 %v6320_v29, 0.0  ;;  %v6319_v14 = vadd.f32 %v21869_v62, %v21837_v36 }
 0x348   :  { %v9706_v39 = vsel %vm9675_vm8, %v9306_v47, %v9705_v52  ;;  %v21878_v53 = vmax.f32 %v6862_v27, %v15051_v60  ;;  %v15045_v1 = vrot.slane %v6844_v35, 9  ;;  %v15047_v31 = vrot.slane %v6845_v50, 9  ;;  %v23786_v27 = vld [vmem:[#allocation11_spill] sm:$0xff] }
 0x349   :  { %v9707_v2 = vsel %vm9677_vm9, %v9310_v21, %v9706_v39  ;;  %v8681_v40 = vmax.f32 %v6836_v19, %v15044_v9  ;;  %v6880_v26 = vcombine.high %v6384_v38, %v6384_v38  ;;  %v6887_v3 = vrot.slane %v6384_v38, %v21321_v5  ;;  %v6037_v38 = vpop.f32.mrf.mxu0 }
 0x34a   :  { %v9708_v15 = vsel %vm9679_vm10, %v9314_v17, %v9707_v2  ;;  %v8682_v30 = vmax.f32 %v6844_v35, %v15045_v1  ;;  %v8683_v11 = vmax.f32 %v6843_v63, %v15046_v24  ;;  %v6383_v4 = vmax.f32 %v6319_v14, 0.0 }
 0x34b   :  { %9807 = vst.msk [vmem:[#allocation2 + $0x51] sm:$0xff] %vm8985_vm2, %v9708_v15  ;;  %v6894_v36 = vrot.slane %v6880_v26, %v21321_v5  ;;  %v6895_v47 = vcombine.high %v6887_v3, %v6887_v3  ;;  %v15056_v7 = vrot.slane %v6887_v3, 9  ;;  %v6251_v33 = vadd.f32 %v17074_v55, %v23785_v10 }
 0x34c   :  { %v8684_v34 = vmax.f32 %v6845_v50, %v15047_v31  ;;  %v6863_v21 = vcombine.high %v6383_v4, %v6383_v4  ;;  %v6870_v57 = vrot.slane %v6383_v4, %v21321_v5  ;;  %v6250_v59 = vadd.f32 %v6027_v32, %v23786_v27 }
 0x34d   :  { %v6896_v51 = vcombine.high %v6894_v36, %v6894_v36  ;;  %v15057_v44 = vrot.slane %v6895_v47, 9  ;;  %v15058_v16 = vrot.slane %v6894_v36, 9  ;;  %v8693_v6 = vmax.f32 %v6887_v3, %v15056_v7 }
 0x34e   :  { %v6877_v17 = vrot.slane %v6863_v21, %v21321_v5  ;;  %v6878_v18 = vcombine.high %v6870_v57, %v6870_v57  ;;  %v15052_v60 = vrot.slane %v6870_v57, 9  ;;  %v6322_v54 = vadd.f32 %v21869_v62, %v6251_v33 }
 0x34f   :  { %v15059_v37 = vrot.slane %v6896_v51, 9  ;;  %v8694_v19 = vmax.f32 %v6895_v47, %v15057_v44  ;;  %v8695_v63 = vmax.f32 %v6894_v36, %v15058_v16  ;;  %v8901_v0 = vmax.f32 %v21855_v58, %v8693_v6  ;;  %v17080_v47 = vpop.f32.mrf.mxu0 }
 0x350   :  { %v6879_v29 = vcombine.high %v6877_v17, %v6877_v17  ;;  %v15053_v55 = vrot.slane %v6878_v18, 9  ;;  %v15054_v46 = vrot.slane %v6877_v17, 9  ;;  %v8689_v35 = vmax.f32 %v6870_v57, %v15052_v60 }
 0x351   :  { %v8696_v50 = vmax.f32 %v6896_v51, %v15059_v37  ;;  %v8902_v9 = vmax.f32 %v21862_v41, %v8694_v19  ;;  %v8903_v52 = vmax.f32 %v21864_v12, %v8695_v63  ;;  %v6253_v24 = vadd.f32 %v17077_v42, %v21492_v61  ;;  %v23787_v19 = vld [vmem:[#allocation12_spill] sm:$0xff] }
 0x352   :  { %v15055_v14 = vrot.slane %v6879_v29, 9  ;;  %v8690_v39 = vmax.f32 %v6878_v18, %v15053_v55  ;;  %v8691_v1 = vmax.f32 %v6877_v17, %v15054_v46  ;;  %v8897_v31 = vmax.f32 %v8681_v40, %v8689_v35  ;;  %v9841_v2 = vld [vmem:[#allocation2 + $0x51] sm:$0xff]  ;;  %v6047_v18 = vpop.f32.mrf.mxu0 }
 0x353   :  { %v8904_v26 = vmax.f32 %v21878_v53, %v8696_v50  ;;  %v9334_v58 = vrot.slane %v8901_v0, %v21353_v43  ;;  %v9338_v3 = vrot.slane %v8902_v9, %v21353_v43  ;;  %v6386_v32 = vmax.f32 %v6322_v54, 0.0  ;;  %17141 = vmatmul.mubr.msk.f32.gmra.mxu1 %vm8985_vm2, %v9841_v2  ;;  %17244 = vmatprep.mubr.msk.f32.mxu0 %vm8985_vm2, %v9841_v2 }
 0x354   :  { %v9342_v41 = vrot.slane %v8903_v52, %v21353_v43  ;;  %v8692_v61 = vmax.f32 %v6879_v29, %v15055_v14  ;;  %v8898_v12 = vmax.f32 %v8682_v30, %v8690_v39  ;;  %v8899_v15 = vmax.f32 %v8683_v11, %v8691_v1 }
 0x355   :  { %v9318_v4 = vrot.slane %v8897_v31, %v21353_v43  ;;  %v6914_v40 = vcombine.high %v6386_v32, %v6386_v32  ;;  %v6921_v36 = vrot.slane %v6386_v32, %v21321_v5  ;;  %v6321_v53 = vadd.f32 %v21869_v62, %v6250_v59  ;;  %v21919_v31 = vpop.f32.mrf.mxu0 }
 0x356   :  { %v8900_v7 = vmax.f32 %v8684_v34, %v8692_v61  ;;  %v9322_v10 = vrot.slane %v8898_v12, %v21353_v43  ;;  %v9326_v33 = vrot.slane %v8899_v15, %v21353_v43  ;;  %v6324_v21 = vadd.f32 %v21869_v62, %v6253_v24 }
 0x357   :  { %v6928_v57 = vrot.slane %v6914_v40, %v21321_v5  ;;  %v6929_v27 = vcombine.high %v6921_v36, %v6921_v36  ;;  %v15064_v30 = vrot.slane %v6921_v36, 9  ;;  %v6385_v11 = vmax.f32 %v6321_v53, 0.0 }
 0x358   :  { %v9346_v51 = vrot.slane %v8904_v26, %v21353_v43  ;;  %v9330_v44 = vrot.slane %v8900_v7, %v21353_v43  ;;  %v9709_v16 = vsel %vm9667_vm4, %v9322_v10, %v9318_v4  ;;  %v6388_v59 = vmax.f32 %v6324_v21, 0.0 }
 0x359   :  { %v9710_v34 = vsel %vm9669_vm5, %v9326_v33, %v9709_v16  ;;  %v6930_v6 = vcombine.high %v6928_v57, %v6928_v57  ;;  %v15065_v42 = vrot.slane %v6929_v27, 9  ;;  %v15066_v17 = vrot.slane %v6928_v57, 9  ;;  %v21927_v33 = vpop.f32.mrf.mxu0 }
 0x35a   :  { %v9711_v60 = vsel %vm9671_vm6, %v9330_v44, %v9710_v34  ;;  %v6897_v54 = vcombine.high %v6385_v11, %v6385_v11  ;;  %v6904_v37 = vrot.slane %v6385_v11, %v21321_v5  ;;  %v6252_v63 = vadd.f32 %v6037_v38, %v23787_v19  ;;  %v23789_v11 = vld [vmem:[#allocation22_spill] sm:$0xff] }
 0x35b   :  { %v9712_v0 = vsel %vm9673_vm7, %v9334_v58, %v9711_v60  ;;  %v15067_v29 = vrot.slane %v6930_v6, 9  ;;  %v8701_v55 = vmax.f32 %v6921_v36, %v15064_v30  ;;  %v8702_v46 = vmax.f32 %v6929_v27, %v15065_v42  ;;  %v23788_v27 = vld [vmem:[#allocation13_spill] sm:$0xff] }
 0x35c   :  { %v9713_v35 = vsel %vm9675_vm8, %v9338_v3, %v9712_v0  ;;  %v6911_v50 = vrot.slane %v6897_v54, %v21321_v5  ;;  %v6912_v9 = vcombine.high %v6904_v37, %v6904_v37  ;;  %v15060_v52 = vrot.slane %v6904_v37, 9  ;;  %v21934_v0 = vpop.f32.mrf.mxu0 }
 0x35d   :  { %v9714_v24 = vsel %vm9677_vm9, %v9342_v41, %v9713_v35  ;;  %v8703_v14 = vmax.f32 %v6928_v57, %v15066_v17  ;;  %v6948_v39 = vcombine.high %v6388_v59, %v6388_v59  ;;  %v6955_v1 = vrot.slane %v6388_v59, %v21321_v5 }
 0x35e   :  { %v9715_v38 = vsel %vm9679_vm10, %v9346_v51, %v9714_v24  ;;  %v6913_v2 = vcombine.high %v6911_v50, %v6911_v50  ;;  %v15061_v26 = vrot.slane %v6912_v9, 9  ;;  %v15062_v58 = vrot.slane %v6911_v50, 9 }
 0x35f   :  { %9808 = vst.msk [vmem:[#allocation2 + $0x61] sm:$0xff] %vm8985_vm2, %v9715_v38  ;;  %v8704_v3 = vmax.f32 %v6930_v6, %v15067_v29  ;;  %v6962_v32 = vrot.slane %v6948_v39, %v21321_v5  ;;  %v6963_v61 = vcombine.high %v6955_v1, %v6955_v1  ;;  %v15072_v12 = vrot.slane %v6955_v1, 9 }
 0x360   :  { %v15063_v15 = vrot.slane %v6913_v2, 9  ;;  %v8697_v41 = vmax.f32 %v6904_v37, %v15060_v52  ;;  %v21924_v4 = vmax.f32 %v6912_v9, %v15061_v26  ;;  %v6323_v40 = vadd.f32 %v21869_v62, %v6252_v63 }
 0x361   :  { %v6964_v36 = vcombine.high %v6962_v32, %v6962_v32  ;;  %v15073_v53 = vrot.slane %v6963_v61, 9  ;;  %v15074_v7 = vrot.slane %v6962_v32, 9  ;;  %v8709_v10 = vmax.f32 %v6955_v1, %v15072_v12 }
 0x362   :  { %v8699_v21 = vmax.f32 %v6911_v50, %v15062_v58  ;;  %v6387_v57 = vmax.f32 %v6323_v40, 0.0  ;;  %v6255_v30 = vadd.f32 %v17080_v47, %v23788_v27  ;;  %v6254_v51 = vadd.f32 %v6047_v18, %v23789_v11 }
 0x363   :  { %v15075_v44 = vrot.slane %v6964_v36, 9  ;;  %v8710_v16 = vmax.f32 %v6963_v61, %v15073_v53  ;;  %v8711_v59 = vmax.f32 %v6962_v32, %v15074_v7  ;;  %v8909_v34 = vmax.f32 %v8701_v55, %v8709_v10 }
 0x364   :  { %v6931_v6 = vcombine.high %v6387_v57, %v6387_v57  ;;  %v6938_v42 = vrot.slane %v6387_v57, %v21321_v5  ;;  %v6326_v17 = vadd.f32 %v21869_v62, %v6255_v30  ;;  %v6325_v60 = vadd.f32 %v21869_v62, %v6254_v51 }
 0x365   :  { %v8700_v54 = vmax.f32 %v6913_v2, %v15063_v15  ;;  %v8712_v37 = vmax.f32 %v6964_v36, %v15075_v44  ;;  %v8910_v19 = vmax.f32 %v8702_v46, %v8710_v16  ;;  %v8911_v63 = vmax.f32 %v8703_v14, %v8711_v59 }
 0x366   :  { %v6945_v47 = vrot.slane %v6931_v6, %v21321_v5  ;;  %v6946_v18 = vcombine.high %v6938_v42, %v6938_v42  ;;  %v15068_v29 = vrot.slane %v6938_v42, 9  ;;  %v6390_v35 = vmax.f32 %v6326_v17, 0.0  ;;  %v9842_v50 = vld [vmem:[#allocation2 + $0x61] sm:$0xff] }
 0x367   :  { %v8912_v55 = vmax.f32 %v8704_v3, %v8712_v37  ;;  %v9366_v9 = vrot.slane %v8909_v34, %v21353_v43  ;;  %v9370_v52 = vrot.slane %v8910_v19, %v21353_v43  ;;  %v6389_v24 = vmax.f32 %v6325_v60, 0.0  ;;  %17143 = vmatprep.mubr.msk.f32.mxu1 %vm8985_vm2, %v9842_v50  ;;  %17245 = vmatmul.mubr.msk.f32.gmra.mxu0 %vm8985_vm2, %v9842_v50  ;;  %v6067_v3 = vpop.f32.mrf.mxu0 }
 0x368   :  { %v6947_v46 = vcombine.high %v6945_v47, %v6945_v47  ;;  %v15069_v14 = vrot.slane %v6946_v18, 9  ;;  %v15070_v39 = vrot.slane %v6945_v47, 9  ;;  %v8705_v1 = vmax.f32 %v6938_v42, %v15068_v29 }
 0x369   :  { %v9374_v38 = vrot.slane %v8911_v63, %v21353_v43  ;;  %v6982_v2 = vcombine.high %v6390_v35, %v6390_v35  ;;  %v6989_v26 = vrot.slane %v6390_v35, %v21321_v5  ;;  %v6965_v58 = vcombine.high %v6389_v24, %v6389_v24  ;;  %v17089_v59 = vpop.f32.mrf.mxu0 }
 0x36a   :  { %v15071_v32 = vrot.slane %v6947_v46, 9  ;;  %v8706_v61 = vmax.f32 %v6946_v18, %v15069_v14  ;;  %v8707_v12 = vmax.f32 %v6945_v47, %v15070_v39  ;;  %v8905_v15 = vmax.f32 %v8697_v41, %v8705_v1  ;;  %v23790_v14 = vld [vmem:[#allocation23_spill] sm:$0xff] }
 0x36b   :  { %v6996_v40 = vrot.slane %v6982_v2, %v21321_v5  ;;  %v6997_v36 = vcombine.high %v6989_v26, %v6989_v26  ;;  %v15080_v53 = vrot.slane %v6989_v26, 9  ;;  %v6972_v7 = vrot.slane %v6389_v24, %v21321_v5  ;;  %v6077_v50 = vpop.f32.mrf.mxu0 }
 0x36c   :  { %v9378_v10 = vrot.slane %v8912_v55, %v21353_v43  ;;  %v8708_v57 = vmax.f32 %v6947_v46, %v15071_v32  ;;  %v8906_v27 = vmax.f32 %v21924_v4, %v8706_v61  ;;  %v8907_v30 = vmax.f32 %v8699_v21, %v8707_v12 }
 0x36d   :  { %v9350_v11 = vrot.slane %v8905_v15, %v21353_v43  ;;  %v6998_v51 = vcombine.high %v6996_v40, %v6996_v40  ;;  %v15081_v44 = vrot.slane %v6997_v36, 9  ;;  %v15082_v16 = vrot.slane %v6996_v40, 9  ;;  %v23791_v15 = vld [vmem:[#allocation30_spill] sm:$0xff] }
 0x36e   :  { %v8908_v34 = vmax.f32 %v8700_v54, %v8708_v57  ;;  %v9354_v41 = vrot.slane %v8906_v27, %v21353_v43  ;;  %v9358_v6 = vrot.slane %v8907_v30, %v21353_v43  ;;  %v6979_v42 = vrot.slane %v6965_v58, %v21321_v5  ;;  %v17092_v57 = vpop.f32.mrf.mxu0 }
 0x36f   :  { %v15083_v17 = vrot.slane %v6998_v51, 9  ;;  %v21951_v60 = vmax.f32 %v6989_v26, %v15080_v53  ;;  %v21953_v37 = vmax.f32 %v6997_v36, %v15081_v44  ;;  %v6980_v4 = vcombine.high %v6972_v7, %v6972_v7  ;;  %v23792_v53 = vld [vmem:[#allocation31_spill] sm:$0xff] }
 0x370   :  { %v9362_v21 = vrot.slane %v8908_v34, %v21353_v43  ;;  %v9716_v19 = vsel %vm9667_vm4, %v9354_v41, %v9350_v11  ;;  %v6981_v63 = vcombine.high %v6979_v42, %v6979_v42  ;;  %v15076_v47 = vrot.slane %v6972_v7, 9 }
 0x371   :  { %v9717_v54 = vsel %vm9669_vm5, %v9358_v6, %v9716_v19  ;;  %v21958_v18 = vmax.f32 %v6996_v40, %v15082_v16  ;;  %v15077_v29 = vrot.slane %v6980_v4, 9  ;;  %v15078_v35 = vrot.slane %v6979_v42, 9 }
 0x372   :  { %v9718_v55 = vsel %vm9671_vm6, %v9362_v21, %v9717_v54  ;;  %v21961_v24 = vmax.f32 %v6998_v51, %v15083_v17  ;;  %v15079_v46 = vrot.slane %v6981_v63, 9  ;;  %v6257_v39 = vadd.f32 %v21919_v31, %v23790_v14 }
 0x373   :  { %v9719_v1 = vsel %vm9673_vm7, %v9366_v9, %v9718_v55  ;;  %v21966_v2 = vmax.f32 %v6972_v7, %v15076_v47  ;;  %v21968_v26 = vmax.f32 %v6980_v4, %v15077_v29  ;;  %v6256_v58 = vadd.f32 %v21927_v33, %v21520_v23 }
 0x374   :  { %v9720_v32 = vsel %vm9675_vm8, %v9370_v52, %v9719_v1  ;;  %v21973_v61 = vmax.f32 %v6979_v42, %v15078_v35  ;;  %v6328_v12 = vadd.f32 %v21869_v62, %v6257_v39  ;;  %v6259_v40 = vadd.f32 %v21934_v0, %v23791_v15 }
 0x375   :  { %v9721_v31 = vsel %vm9677_vm9, %v9374_v38, %v9720_v32  ;;  %v6327_v9 = vadd.f32 %v21869_v62, %v6256_v58  ;;  %v6258_v36 = vadd.f32 %v6067_v3, %v21530_v49  ;;  %v6261_v7 = vadd.f32 %v17089_v59, %v23792_v53 }
 0x376   :  { %v9722_v23 = vsel %vm9679_vm10, %v9378_v10, %v9721_v31  ;;  %v6392_v33 = vmax.f32 %v6328_v12, 0.0  ;;  %v6330_v52 = vadd.f32 %v21869_v62, %v6259_v40  ;;  %v6260_v27 = vadd.f32 %v6077_v50, %v21541_v22 }
 0x377   :  { %9809 = vst.msk [vmem:[#allocation2 + $0x71] sm:$0xff] %vm8985_vm2, %v9722_v23  ;;  %v8716_v30 = vmax.f32 %v6981_v63, %v15079_v46  ;;  %v6391_v0 = vmax.f32 %v6327_v9, 0.0  ;;  %v6329_v38 = vadd.f32 %v21869_v62, %v6258_v36  ;;  %v6332_v11 = vadd.f32 %v21869_v62, %v6261_v7  ;;  %v9844_v46 = vld [vmem:[#allocation2 + $0xa1] sm:$0xff] }
 0x378   :  { %v7016_v51 = vcombine.high %v6392_v33, %v6392_v33  ;;  %v7023_v49 = vrot.slane %v6392_v33, %v21321_v5  ;;  %v6394_v3 = vmax.f32 %v6330_v52, 0.0  ;;  %v21990_v44 = vadd.f32 %v17092_v57, %v21545_v28 }
 0x379   :  { %v6999_v10 = vcombine.high %v6391_v0, %v6391_v0  ;;  %v7006_v16 = vrot.slane %v6391_v0, %v21321_v5  ;;  %v21993_v59 = vmax.f32 %v6329_v38, 0.0  ;;  %v21996_v22 = vadd.f32 %v21869_v62, %v6260_v27 }
 0x37a   :  { %v7030_v34 = vrot.slane %v7016_v51, %v21321_v5  ;;  %v7031_v41 = vcombine.high %v7023_v49, %v7023_v49  ;;  %v15088_v6 = vrot.slane %v7023_v49, 9  ;;  %v7050_v42 = vcombine.high %v6394_v3, %v6394_v3 }
 0x37b   :  { %v7013_v17 = vrot.slane %v6999_v10, %v21321_v5  ;;  %v7014_v4 = vcombine.high %v7006_v16, %v7006_v16  ;;  %v15084_v21 = vrot.slane %v7006_v16, 9  ;;  %v7057_v28 = vrot.slane %v6394_v3, %v21321_v5 }
 0x37c   :  { %v7032_v19 = vcombine.high %v7030_v34, %v7030_v34  ;;  %v15089_v63 = vrot.slane %v7031_v41, 9  ;;  %v15090_v47 = vrot.slane %v7030_v34, 9  ;;  %v8725_v54 = vmax.f32 %v7023_v49, %v15088_v6 }
 0x37d   :  { %v7015_v29 = vcombine.high %v7013_v17, %v7013_v17  ;;  %v15085_v35 = vrot.slane %v7014_v4, 9  ;;  %v15086_v50 = vrot.slane %v7013_v17, 9  ;;  %v8721_v55 = vmax.f32 %v7006_v16, %v15084_v21 }
 0x37e   :  { %v15091_v14 = vrot.slane %v7032_v19, 9  ;;  %v8726_v39 = vmax.f32 %v7031_v41, %v15089_v63  ;;  %v8727_v1 = vmax.f32 %v7030_v34, %v15090_v47  ;;  %v8917_v58 = vmax.f32 %v21951_v60, %v8725_v54  ;;  %v9843_v32 = vld [vmem:[#allocation2 + $0x71] sm:$0xff] }
 0x37f   :  { %v15087_v12 = vrot.slane %v7015_v29, 9  ;;  %v8722_v15 = vmax.f32 %v7014_v4, %v15085_v35  ;;  %v8723_v40 = vmax.f32 %v7013_v17, %v15086_v50  ;;  %v8913_v31 = vmax.f32 %v21966_v2, %v8721_v55  ;;  %17144 = vmatmul.mubr.msk.f32.gmra.mxu1 %vm8985_vm2, %v9843_v32  ;;  %17247 = vmatprep.mubr.msk.f32.mxu0 %vm8985_vm2, %v9843_v32 }
 0x380   :  { %v8728_v9 = vmax.f32 %v7032_v19, %v15091_v14  ;;  %v8918_v36 = vmax.f32 %v21953_v37, %v8726_v39  ;;  %v8919_v53 = vmax.f32 %v21958_v18, %v8727_v1  ;;  %v6396_v7 = vmax.f32 %v6332_v11, 0.0  ;;  %17146 = vmatprep.mubr.msk.f32.mxu1 %vm8985_vm2, %v9844_v46 }
 0x381   :  { %v9398_v60 = vrot.slane %v8917_v58, %v21353_v43  ;;  %v8724_v57 = vmax.f32 %v7015_v29, %v15087_v12  ;;  %v8914_v23 = vmax.f32 %v21968_v26, %v8722_v15  ;;  %v8915_v33 = vmax.f32 %v21973_v61, %v8723_v40 }
 0x382   :  { %v8920_v2 = vmax.f32 %v21961_v24, %v8728_v9  ;;  %v9402_v52 = vrot.slane %v8918_v36, %v21353_v43  ;;  %v9382_v27 = vrot.slane %v8913_v31, %v21353_v43  ;;  %v7064_v37 = vrot.slane %v7050_v42, %v21321_v5  ;;  %v6087_v9 = vpop.f32.mrf.mxu0 }
 0x383   :  { %v8916_v0 = vmax.f32 %v8716_v30, %v8724_v57  ;;  %v9386_v18 = vrot.slane %v8914_v23, %v21353_v43  ;;  %v9390_v38 = vrot.slane %v8915_v33, %v21353_v43  ;;  %v7065_v11 = vcombine.high %v7057_v28, %v7057_v28 }
 0x384   :  { %v9406_v51 = vrot.slane %v8919_v53, %v21353_v43  ;;  %v7066_v49 = vcombine.high %v7064_v37, %v7064_v37  ;;  %v15096_v26 = vrot.slane %v7057_v28, 9  ;;  %v15098_v3 = vrot.slane %v7064_v37, 9 }
 0x385   :  { %v9394_v61 = vrot.slane %v8916_v0, %v21353_v43  ;;  %v9723_v24 = vsel %vm9667_vm4, %v9386_v18, %v9382_v27  ;;  %v15097_v10 = vrot.slane %v7065_v11, 9  ;;  %v7033_v16 = vcombine.high %v21993_v59, %v21993_v59  ;;  %v23793_v0 = vld [vmem:[#allocation32_spill] sm:$0xff] }
 0x386   :  { %v9410_v30 = vrot.slane %v8920_v2, %v21353_v43  ;;  %v9724_v34 = vsel %vm9669_vm5, %v9390_v38, %v9723_v24  ;;  %v15099_v41 = vrot.slane %v7066_v49, 9  ;;  %v8733_v6 = vmax.f32 %v7057_v28, %v15096_v26  ;;  %v17095_v26 = vpop.f32.mrf.mxu0 }
 0x387   :  { %v9725_v42 = vsel %vm9671_vm6, %v9394_v61, %v9724_v34  ;;  %v8735_v17 = vmax.f32 %v7064_v37, %v15098_v3  ;;  %v7040_v4 = vrot.slane %v21993_v59, %v21321_v5  ;;  %v7047_v21 = vrot.slane %v7033_v16, %v21321_v5 }
 0x388   :  { %v9726_v19 = vsel %vm9673_vm7, %v9398_v60, %v9725_v42  ;;  %v8734_v63 = vmax.f32 %v7065_v11, %v15097_v10  ;;  %v7084_v47 = vcombine.high %v6396_v7, %v6396_v7  ;;  %v7091_v54 = vrot.slane %v6396_v7, %v21321_v5 }
 0x389   :  { %v9727_v29 = vsel %vm9675_vm8, %v9402_v52, %v9726_v19  ;;  %v7048_v35 = vcombine.high %v7040_v4, %v7040_v4  ;;  %v7049_v50 = vcombine.high %v7047_v21, %v7047_v21  ;;  %v15092_v55 = vrot.slane %v7040_v4, 9 }
 0x38a   :  { %v9728_v28 = vsel %vm9677_vm9, %v9406_v51, %v9727_v29  ;;  %v15094_v46 = vrot.slane %v7047_v21, 9  ;;  %v7098_v14 = vrot.slane %v7084_v47, %v21321_v5  ;;  %v7099_v39 = vcombine.high %v7091_v54, %v7091_v54  ;;  %v6097_v47 = vpop.f32.mrf.mxu0 }
 0x38b   :  { %v9729_v59 = vsel %vm9679_vm10, %v9410_v30, %v9728_v28  ;;  %v8736_v1 = vmax.f32 %v7066_v49, %v15099_v41  ;;  %v15093_v58 = vrot.slane %v7048_v35, 9  ;;  %v15095_v32 = vrot.slane %v7049_v50, 9 }
 0x38c   :  { %9810 = vst.msk [vmem:[#allocation2 + $0x81] sm:$0xff] %vm8985_vm2, %v9729_v59  ;;  %v8729_v12 = vmax.f32 %v7040_v4, %v15092_v55  ;;  %v7100_v15 = vcombine.high %v7098_v14, %v7098_v14  ;;  %v15104_v40 = vrot.slane %v7091_v54, 9  ;;  %v15105_v31 = vrot.slane %v7099_v39, 9 }
 0x38d   :  { %v8730_v36 = vmax.f32 %v7048_v35, %v15093_v58  ;;  %v8731_v53 = vmax.f32 %v7047_v21, %v15094_v46  ;;  %v15106_v7 = vrot.slane %v7098_v14, 9  ;;  %v6395_v60 = vmax.f32 %v21996_v22, 0.0 }
 0x38e   :  { %v15107_v57 = vrot.slane %v7100_v15, 9  ;;  %v8741_v23 = vmax.f32 %v7091_v54, %v15104_v40  ;;  %v8742_v33 = vmax.f32 %v7099_v39, %v15105_v31  ;;  %v6334_v2 = vadd.f32 %v21869_v62, %v21990_v44 }
 0x38f   :  { %v8743_v52 = vmax.f32 %v7098_v14, %v15106_v7  ;;  %v7067_v27 = vcombine.high %v6395_v60, %v6395_v60  ;;  %v7074_v37 = vrot.slane %v6395_v60, %v21321_v5  ;;  %v6262_v18 = vadd.f32 %v6087_v9, %v23793_v0  ;;  %v17098_v9 = vpop.f32.mrf.mxu0 }
 0x390   :  { %v8744_v38 = vmax.f32 %v7100_v15, %v15107_v57  ;;  %v8925_v11 = vmax.f32 %v8733_v6, %v8741_v23  ;;  %v8926_v51 = vmax.f32 %v8734_v63, %v8742_v33  ;;  %v6398_v49 = vmax.f32 %v6334_v2, 0.0 }
 0x391   :  { %v8927_v3 = vmax.f32 %v8735_v17, %v8743_v52  ;;  %v7081_v22 = vrot.slane %v7067_v27, %v21321_v5  ;;  %v7082_v61 = vcombine.high %v7074_v37, %v7074_v37  ;;  %v15100_v24 = vrot.slane %v7074_v37, 9 }
 0x392   :  { %v8732_v10 = vmax.f32 %v7049_v50, %v15095_v32  ;;  %v8928_v16 = vmax.f32 %v8736_v1, %v8744_v38  ;;  %v9430_v44 = vrot.slane %v8925_v11, %v21353_v43  ;;  %v7118_v30 = vcombine.high %v6398_v49, %v6398_v49 }
 0x393   :  { %v9434_v34 = vrot.slane %v8926_v51, %v21353_v43  ;;  %v7083_v41 = vcombine.high %v7081_v22, %v7081_v22  ;;  %v15101_v42 = vrot.slane %v7082_v61, 9  ;;  %v15102_v4 = vrot.slane %v7081_v22, 9  ;;  %v10698_v21 = vld [vmem:[#allocation2 + $0x81] sm:$0xff] }
 0x394   :  { %v9438_v6 = vrot.slane %v8927_v3, %v21353_v43  ;;  %v8737_v19 = vmax.f32 %v7074_v37, %v15100_v24  ;;  %v7125_v17 = vrot.slane %v6398_v49, %v21321_v5  ;;  %v7132_v63 = vrot.slane %v7118_v30, %v21321_v5  ;;  %17248 = vmatmul.mubr.msk.f32.gmra.mxu0 %vm8985_vm2, %v10698_v21  ;;  %v23795_v37 = vld [vmem:[#allocation25_spill] sm:$0xff] }
 0x395   :  { %v15103_v54 = vrot.slane %v7083_v41, 9  ;;  %v8738_v29 = vmax.f32 %v7082_v61, %v15101_v42  ;;  %v8739_v35 = vmax.f32 %v7081_v22, %v15102_v4  ;;  %v6333_v50 = vadd.f32 %v21869_v62, %v6262_v18  ;;  %v23796_v18 = vld [vmem:[#allocation27_spill] sm:$0xff]  ;;  %v6107_v42 = vpop.f32.mrf.mxu0 }
 0x396   :  { %v8921_v55 = vmax.f32 %v8729_v12, %v8737_v19  ;;  %v7133_v28 = vcombine.high %v7125_v17, %v7125_v17  ;;  %v7134_v46 = vcombine.high %v7132_v63, %v7132_v63  ;;  %v15112_v14 = vrot.slane %v7125_v17, 9 }
 0x397   :  { %v8740_v39 = vmax.f32 %v7083_v41, %v15103_v54  ;;  %v8922_v59 = vmax.f32 %v8730_v36, %v8738_v29  ;;  %v8923_v1 = vmax.f32 %v8731_v53, %v8739_v35  ;;  %v15114_v58 = vrot.slane %v7132_v63, 9  ;;  %v23794_v53 = vld [vmem:[#allocation34_spill] sm:$0xff] }
 0x398   :  { %v9442_v32 = vrot.slane %v8928_v16, %v21353_v43  ;;  %v9414_v15 = vrot.slane %v8921_v55, %v21353_v43  ;;  %v15113_v40 = vrot.slane %v7133_v28, 9  ;;  %v15115_v31 = vrot.slane %v7134_v46, 9  ;;  %v23797_v55 = vld [vmem:[#allocation35_spill] sm:$0xff] }
 0x399   :  { %v8924_v7 = vmax.f32 %v8732_v10, %v8740_v39  ;;  %v9418_v60 = vrot.slane %v8922_v59, %v21353_v43  ;;  %v9422_v57 = vrot.slane %v8923_v1, %v21353_v43  ;;  %v22052_v12 = vmax.f32 %v7125_v17, %v15112_v14 }
 0x39a   :  { %v22054_v23 = vmax.f32 %v7133_v28, %v15113_v40  ;;  %v22056_v33 = vmax.f32 %v7132_v63, %v15114_v58  ;;  %v6397_v36 = vmax.f32 %v6333_v50, 0.0  ;;  %v6265_v2 = vadd.f32 %v17095_v26, %v23794_v53 }
 0x39b   :  { %v9426_v52 = vrot.slane %v8924_v7, %v21353_v43  ;;  %v9730_v27 = vsel %vm9667_vm4, %v9418_v60, %v9414_v15  ;;  %v6264_v0 = vadd.f32 %v6097_v47, %v23795_v37  ;;  %v6267_v38 = vadd.f32 %v17098_v9, %v23796_v18 }
 0x39c   :  { %v9731_v11 = vsel %vm9669_vm5, %v9422_v57, %v9730_v27  ;;  %v7101_v51 = vcombine.high %v6397_v36, %v6397_v36  ;;  %v7108_v49 = vrot.slane %v6397_v36, %v21321_v5  ;;  %v6336_v3 = vadd.f32 %v21869_v62, %v6265_v2 }
 0x39d   :  { %v9732_v22 = vsel %vm9671_vm6, %v9426_v52, %v9731_v11  ;;  %v22067_v61 = vmax.f32 %v7134_v46, %v15115_v31  ;;  %v6335_v26 = vadd.f32 %v21869_v62, %v6264_v0  ;;  %v6338_v24 = vadd.f32 %v21869_v62, %v6267_v38  ;;  %v17027_v38 = vpop.f32.mrf.mxu1 }
 0x39e   :  { %v9733_v10 = vsel %vm9673_vm7, %v9430_v44, %v9732_v22  ;;  %v7115_v16 = vrot.slane %v7101_v51, %v21321_v5  ;;  %v7116_v30 = vcombine.high %v7108_v49, %v7108_v49  ;;  %v15108_v41 = vrot.slane %v7108_v49, 9  ;;  %v17101_v22 = vpop.f32.mrf.mxu0 }
 0x39f   :  { %v9734_v4 = vsel %vm9675_vm8, %v9434_v34, %v9733_v10  ;;  %v6400_v21 = vmax.f32 %v6336_v3, 0.0  ;;  %v6399_v19 = vmax.f32 %v6335_v26, 0.0  ;;  %v6402_v17 = vmax.f32 %v6338_v24, 0.0 }
 0x3a0   :  { %v9735_v63 = vsel %vm9677_vm9, %v9438_v6, %v9734_v4  ;;  %v7117_v47 = vcombine.high %v7115_v16, %v7115_v16  ;;  %v15109_v54 = vrot.slane %v7116_v30, 9  ;;  %v15110_v29 = vrot.slane %v7115_v16, 9 }
 0x3a1   :  { %v9736_v35 = vsel %vm9679_vm10, %v9442_v32, %v9735_v63  ;;  %v7152_v50 = vcombine.high %v6400_v21, %v6400_v21  ;;  %v7159_v44 = vrot.slane %v6400_v21, %v21321_v5  ;;  %v6266_v28 = vadd.f32 %v6107_v42, %v23797_v55 }
 0x3a2   :  { %9811 = vst.msk [vmem:[#allocation2 + $0xb1] sm:$0xff] %vm8985_vm2, %v9736_v35  ;;  %v15111_v46 = vrot.slane %v7117_v47, 9  ;;  %v8745_v14 = vmax.f32 %v7108_v49, %v15108_v41  ;;  %v8746_v34 = vmax.f32 %v7116_v30, %v15109_v54  ;;  %v7135_v39 = vcombine.high %v6399_v19, %v6399_v19  ;;  %v6117_v35 = vpop.f32.mrf.mxu0 }
 0x3a3   :  { %v7166_v59 = vrot.slane %v7152_v50, %v21321_v5  ;;  %v7167_v1 = vcombine.high %v7159_v44, %v7159_v44  ;;  %v15120_v6 = vrot.slane %v7159_v44, 9  ;;  %v7142_v58 = vrot.slane %v6399_v19, %v21321_v5 }
 0x3a4   :  { %v8747_v15 = vmax.f32 %v7115_v16, %v15110_v29  ;;  %v8748_v40 = vmax.f32 %v7117_v47, %v15111_v46  ;;  %v7149_v32 = vrot.slane %v7135_v39, %v21321_v5  ;;  %v7186_v31 = vcombine.high %v6402_v17, %v6402_v17 }
 0x3a5   :  { %v7168_v9 = vcombine.high %v7166_v59, %v7166_v59  ;;  %v15121_v7 = vrot.slane %v7167_v1, 9  ;;  %v15122_v60 = vrot.slane %v7166_v59, 9  ;;  %v8757_v57 = vmax.f32 %v7159_v44, %v15120_v6 }
 0x3a6   :  { %v7150_v36 = vcombine.high %v7142_v58, %v7142_v58  ;;  %v7151_v53 = vcombine.high %v7149_v32, %v7149_v32  ;;  %v15116_v2 = vrot.slane %v7142_v58, 9  ;;  %v15118_v52 = vrot.slane %v7149_v32, 9 }
 0x3a7   :  { %v15123_v27 = vrot.slane %v7168_v9, 9  ;;  %v8758_v37 = vmax.f32 %v7167_v1, %v15121_v7  ;;  %v8759_v0 = vmax.f32 %v7166_v59, %v15122_v60  ;;  %v8933_v18 = vmax.f32 %v22052_v12, %v8757_v57  ;;  %v23798_v12 = vld [vmem:[#allocation15_spill] sm:$0xff]  ;;  %v17104_v60 = vpop.f32.mrf.mxu0 }
 0x3a8   :  { %v15117_v11 = vrot.slane %v7150_v36, 9  ;;  %v15119_v51 = vrot.slane %v7151_v53, 9  ;;  %v8753_v49 = vmax.f32 %v7142_v58, %v15116_v2  ;;  %v8755_v3 = vmax.f32 %v7149_v32, %v15118_v52  ;;  %v23799_v58 = vld [vmem:[#allocation51_spill] sm:$0xff] }
 0x3a9   :  { %v8760_v26 = vmax.f32 %v7168_v9, %v15123_v27  ;;  %v8934_v24 = vmax.f32 %v22054_v23, %v8758_v37  ;;  %v8935_v10 = vmax.f32 %v22056_v33, %v8759_v0  ;;  %v7193_v16 = vrot.slane %v6402_v17, %v21321_v5  ;;  %v9845_v30 = vld [vmem:[#allocation2 + $0xb1] sm:$0xff]  ;;  %v9835_v0 = vld [vmem:[%s23402_s3] sm:$0xff] }
 0x3aa   :  { %v8754_v41 = vmax.f32 %v7150_v36, %v15117_v11  ;;  %v8756_v42 = vmax.f32 %v7151_v53, %v15119_v51  ;;  %v8929_v4 = vmax.f32 %v8745_v14, %v8753_v49  ;;  %v8931_v21 = vmax.f32 %v8747_v15, %v8755_v3  ;;  %17147 = vmatmul.mubr.msk.f32.gmra.mxu1 %vm8985_vm2, %v9845_v30  ;;  %v23800_v9 = vld [vmem:[#allocation52_spill] sm:$0xff] }
 0x3ab   :  { %v22088_v19 = vadd.f32 %v17027_v38, %v23798_v12  ;;  %v8936_v63 = vmax.f32 %v22067_v61, %v8760_v26  ;;  %v9462_v47 = vrot.slane %v8933_v18, %v21353_v43  ;;  %v7200_v23 = vrot.slane %v7186_v31, %v21321_v5  ;;  %17250 = vmatprep.mubr.msk.f32.mxu0 %vm8985_vm2, %v9845_v30 }
 0x3ac   :  { %v9466_v33 = vrot.slane %v8934_v24, %v21353_v43  ;;  %v8930_v17 = vmax.f32 %v8746_v34, %v8754_v41  ;;  %v8932_v54 = vmax.f32 %v8748_v40, %v8756_v42  ;;  %v9446_v29 = vrot.slane %v8929_v4, %v21353_v43  ;;  %17158 = vmatprep.subr.mxu1 %v9835_v0  ;;  %v6127_v24 = vpop.f32.mrf.mxu0 }
 0x3ad   :  { %v9454_v50 = vrot.slane %v8931_v21, %v21353_v43  ;;  %v7201_v44 = vcombine.high %v7193_v16, %v7193_v16  ;;  %v7202_v55 = vcombine.high %v7200_v23, %v7200_v23  ;;  %v15128_v46 = vrot.slane %v7193_v16, 9  ;;  %17159 = vmatpush3.msra.mxu1 %v9835_v0  ;;  %v23801_v21 = vld [vmem:[#allocation37_spill] sm:$0xff] }
 0x3ae   :  { %v9450_v61 = vrot.slane %v8930_v17, %v21353_v43  ;;  %v9458_v14 = vrot.slane %v8932_v54, %v21353_v43  ;;  %v15130_v39 = vrot.slane %v7200_v23, 9  ;;  %v6337_v59 = vadd.f32 %v21869_v62, %v6266_v28 }
 0x3af   :  { %v9470_v1 = vrot.slane %v8935_v10, %v21353_v43  ;;  %v15129_v6 = vrot.slane %v7201_v44, 9  ;;  %v15131_v34 = vrot.slane %v7202_v55, 9  ;;  %v6269_v15 = vadd.f32 %v17101_v22, %v23799_v58 }
 0x3b0   :  { %v9474_v40 = vrot.slane %v8936_v63, %v21353_v43  ;;  %v9737_v32 = vsel %vm9667_vm4, %v9450_v61, %v9446_v29  ;;  %v6401_v31 = vmax.f32 %v6337_v59, 0.0  ;;  %v6268_v7 = vadd.f32 %v6117_v35, %v23800_v9 }
 0x3b1   :  { %v9738_v57 = vsel %vm9669_vm5, %v9454_v50, %v9737_v32  ;;  %v22106_v36 = vmax.f32 %v7193_v16, %v15128_v46  ;;  %v22108_v53 = vmax.f32 %v7200_v23, %v15130_v39  ;;  %v6340_v28 = vadd.f32 %v21869_v62, %v6269_v15 }
 0x3b2   :  { %v9739_v2 = vsel %vm9671_vm6, %v9458_v14, %v9738_v57  ;;  %v7169_v52 = vcombine.high %v6401_v31, %v6401_v31  ;;  %v7176_v27 = vrot.slane %v6401_v31, %v21321_v5  ;;  %v6339_v37 = vadd.f32 %v21869_v62, %v6268_v7 }
 0x3b3   :  { %v9740_v18 = vsel %vm9673_vm7, %v9462_v47, %v9739_v2  ;;  %v22118_v38 = vmax.f32 %v7201_v44, %v15129_v6  ;;  %v22120_v11 = vmax.f32 %v7202_v55, %v15131_v34  ;;  %v6404_v51 = vmax.f32 %v6340_v28, 0.0  ;;  %v10255_v34 = vld [vmem:[%s23402_s3 + $0x10] sm:$0xff] }
 0x3b4   :  { %v9741_v49 = vsel %vm9675_vm8, %v9466_v33, %v9740_v18  ;;  %v7183_v3 = vrot.slane %v7169_v52, %v21321_v5  ;;  %v7184_v22 = vcombine.high %v7176_v27, %v7176_v27  ;;  %v15124_v26 = vrot.slane %v7176_v27, 9  ;;  %v23802_v33 = vld [vmem:[#allocation54_spill] sm:$0xff]  ;;  %17184 = vmatprep.subr.mxu1 %v10255_v34 }
 0x3b5   :  { %v9742_v62 = vsel %vm9677_vm9, %v9470_v1, %v9741_v49  ;;  %v7220_v10 = vcombine.high %v6404_v51, %v6404_v51  ;;  %v7227_v16 = vrot.slane %v6404_v51, %v21321_v5  ;;  %v6403_v30 = vmax.f32 %v6339_v37, 0.0  ;;  %v22136_v1 = vld [vmem:[%s23401_s2] ss:$0 sm:$0xff]  ;;  %v17107_v51 = vpop.f32.mrf.mxu0 }
 0x3b6   :  { %v9743_v41 = vsel %vm9679_vm10, %v9474_v40, %v9742_v62  ;;  %v7185_v42 = vcombine.high %v7183_v3, %v7183_v3  ;;  %v15125_v4 = vrot.slane %v7184_v22, 9  ;;  %v6271_v12 = vadd.f32 %v17104_v60, %v23801_v21 }
 0x3b7   :  { %9812 = vst.msk [vmem:[#allocation2 + $0xc1] sm:$0xff] %vm8985_vm2, %v9743_v41  ;;  %v7234_v63 = vrot.slane %v7220_v10, %v21321_v5  ;;  %v7235_v47 = vcombine.high %v7227_v16, %v7227_v16  ;;  %v15136_v23 = vrot.slane %v7227_v16, 9  ;;  %v6270_v17 = vadd.f32 %v6127_v24, %v23802_v33 }
 0x3b8   :  { %v15126_v54 = vrot.slane %v7183_v3, 9  ;;  %v15127_v29 = vrot.slane %v7185_v42, 9  ;;  %v8761_v35 = vmax.f32 %v7176_v27, %v15124_v26  ;;  %v7203_v50 = vcombine.high %v6403_v30, %v6403_v30 }
 0x3b9   :  { %v7236_v44 = vcombine.high %v7234_v63, %v7234_v63  ;;  %v15137_v55 = vrot.slane %v7235_v47, 9  ;;  %v15138_v46 = vrot.slane %v7234_v63, 9  ;;  %v8773_v61 = vmax.f32 %v7227_v16, %v15136_v23 }
 0x3ba   :  { %v8762_v14 = vmax.f32 %v7184_v22, %v15125_v4  ;;  %v7210_v39 = vrot.slane %v6403_v30, %v21321_v5  ;;  %v7217_v59 = vrot.slane %v7203_v50, %v21321_v5  ;;  %v6342_v6 = vadd.f32 %v22136_v1, %v6271_v12  ;;  %v6137_v12 = vpop.f32.mrf.mxu0  ;;  %v23803_v50 = vld [vmem:[#allocation38_spill] sm:$0xff] }
 0x3bb   :  { %v15139_v58 = vrot.slane %v7236_v44, 9  ;;  %v8774_v15 = vmax.f32 %v7235_v47, %v15137_v55  ;;  %v8775_v40 = vmax.f32 %v7234_v63, %v15138_v46  ;;  %v8941_v32 = vmax.f32 %v22106_v36, %v8773_v61 }
 0x3bc   :  { %v7218_v31 = vcombine.high %v7210_v39, %v7210_v39  ;;  %v7219_v9 = vcombine.high %v7217_v59, %v7217_v59  ;;  %v15132_v7 = vrot.slane %v7210_v39, 9  ;;  %v15134_v60 = vrot.slane %v7217_v59, 9 }
 0x3bd   :  { %v8763_v57 = vmax.f32 %v7183_v3, %v15126_v54  ;;  %v8776_v28 = vmax.f32 %v7236_v44, %v15139_v58  ;;  %v8942_v2 = vmax.f32 %v22118_v38, %v8774_v15  ;;  %v8943_v52 = vmax.f32 %v22108_v53, %v8775_v40  ;;  %v11160_v54 = vld [vmem:[%s23402_s3 + $0x30] sm:$0xff] }
 0x3be   :  { %v15133_v27 = vrot.slane %v7218_v31, 9  ;;  %v15135_v37 = vrot.slane %v7219_v9, 9  ;;  %v8769_v0 = vmax.f32 %v7210_v39, %v15132_v7  ;;  %v8771_v18 = vmax.f32 %v7217_v59, %v15134_v60  ;;  %v9846_v49 = vld [vmem:[#allocation2 + $0xc1] sm:$0xff]  ;;  %17288 = vmatprep.subr.mxu0 %v11160_v54 }
 0x3bf   :  { %v8764_v22 = vmax.f32 %v7185_v42, %v15127_v29  ;;  %v8944_v36 = vmax.f32 %v22120_v11, %v8776_v28  ;;  %v9494_v26 = vrot.slane %v8941_v32, %v21353_v43  ;;  %v6406_v24 = vmax.f32 %v6342_v6, 0.0  ;;  %17149 = vmatprep.mubr.msk.f32.mxu1 %vm8985_vm2, %v9846_v49  ;;  %17251 = vmatmul.mubr.msk.f32.gmra.mxu0 %vm8985_vm2, %v9846_v49 }
 0x3c0   :  { %v8770_v3 = vmax.f32 %v7218_v31, %v15133_v27  ;;  %v8772_v38 = vmax.f32 %v7219_v9, %v15135_v37  ;;  %v8937_v62 = vmax.f32 %v8761_v35, %v8769_v0  ;;  %v8939_v53 = vmax.f32 %v8763_v57, %v8771_v18  ;;  %17289 = vmatpush3.msra.mxu0 %v11160_v54  ;;  %v17110_v9 = vpop.f32.mrf.mxu0 }
 0x3c1   :  { %v9498_v10 = vrot.slane %v8942_v2, %v21353_v43  ;;  %v7254_v16 = vcombine.high %v6406_v24, %v6406_v24  ;;  %v7261_v30 = vrot.slane %v6406_v24, %v21321_v5  ;;  %v6341_v41 = vadd.f32 %v22136_v1, %v6270_v17 }
 0x3c2   :  { %v9502_v11 = vrot.slane %v8943_v52, %v21353_v43  ;;  %v8938_v42 = vmax.f32 %v8762_v14, %v8770_v3  ;;  %v8940_v4 = vmax.f32 %v8764_v22, %v8772_v38  ;;  %v9486_v21 = vrot.slane %v8939_v53, %v21353_v43  ;;  %v23804_v14 = vld [vmem:[#allocation55_spill] sm:$0xff]  ;;  %v6147_v38 = vpop.f32.mrf.mxu0 }
 0x3c3   :  { %v7268_v63 = vrot.slane %v7254_v16, %v21321_v5  ;;  %v7269_v47 = vcombine.high %v7261_v30, %v7261_v30  ;;  %v15144_v23 = vrot.slane %v7261_v30, 9  ;;  %v6405_v33 = vmax.f32 %v6341_v41, 0.0 }
 0x3c4   :  { %v9478_v29 = vrot.slane %v8937_v62, %v21353_v43  ;;  %v9482_v17 = vrot.slane %v8938_v42, %v21353_v43  ;;  %v9490_v35 = vrot.slane %v8940_v4, %v21353_v43  ;;  %v6273_v44 = vadd.f32 %v17107_v51, %v23803_v50 }
 0x3c5   :  { %v9506_v55 = vrot.slane %v8944_v36, %v21353_v43  ;;  %v7270_v46 = vcombine.high %v7268_v63, %v7268_v63  ;;  %v15145_v61 = vrot.slane %v7269_v47, 9  ;;  %v6272_v39 = vadd.f32 %v6137_v12, %v23804_v14 }
 0x3c6   :  { %v9744_v59 = vsel %vm9667_vm4, %v9482_v17, %v9478_v29  ;;  %v7237_v6 = vcombine.high %v6405_v33, %v6405_v33  ;;  %v7244_v34 = vrot.slane %v6405_v33, %v21321_v5  ;;  %v6344_v58 = vadd.f32 %v22136_v1, %v6273_v44 }
 0x3c7   :  { %v9745_v15 = vsel %vm9669_vm5, %v9486_v21, %v9744_v59  ;;  %v15146_v40 = vrot.slane %v7268_v63, 9  ;;  %v15147_v32 = vrot.slane %v7270_v46, 9  ;;  %v8781_v31 = vmax.f32 %v7261_v30, %v15144_v23  ;;  %v23805_v21 = vld [vmem:[#allocation57_spill] sm:$0xff] }
 0x3c8   :  { %v9746_v7 = vsel %vm9671_vm6, %v9490_v35, %v9745_v15  ;;  %v7251_v60 = vrot.slane %v7237_v6, %v21321_v5  ;;  %v7252_v57 = vcombine.high %v7244_v34, %v7244_v34  ;;  %v15140_v28 = vrot.slane %v7244_v34, 9 }
 0x3c9   :  { %v9747_v2 = vsel %vm9673_vm7, %v9494_v26, %v9746_v7  ;;  %v8782_v52 = vmax.f32 %v7269_v47, %v15145_v61  ;;  %v6408_v27 = vmax.f32 %v6344_v58, 0.0  ;;  %v6343_v37 = vadd.f32 %v22136_v1, %v6272_v39  ;;  %v17113_v58 = vpop.f32.mrf.mxu0 }
 0x3ca   :  { %v9748_v0 = vsel %vm9675_vm8, %v9498_v10, %v9747_v2  ;;  %v7253_v18 = vcombine.high %v7251_v60, %v7251_v60  ;;  %v15141_v51 = vrot.slane %v7252_v57, 9  ;;  %v15142_v49 = vrot.slane %v7251_v60, 9 }
 0x3cb   :  { %v9749_v22 = vsel %vm9677_vm9, %v9502_v11, %v9748_v0  ;;  %v22174_v36 = vmax.f32 %v7268_v63, %v15146_v40  ;;  %v7288_v24 = vcombine.high %v6408_v27, %v6408_v27  ;;  %v7295_v3 = vrot.slane %v6408_v27, %v21321_v5  ;;  %v23806_v63 = vld [vmem:[#allocation39_spill] sm:$0xff] }
 0x3cc   :  { %v9750_v62 = vsel %vm9679_vm10, %v9506_v55, %v9749_v22  ;;  %v22178_v26 = vmax.f32 %v7270_v46, %v15147_v32  ;;  %v15143_v53 = vrot.slane %v7253_v18, 9  ;;  %v8777_v16 = vmax.f32 %v7244_v34, %v15140_v28 }
 0x3cd   :  { %9813 = vst.msk [vmem:[#allocation2 + $0xd1] sm:$0xff] %vm8985_vm2, %v9750_v62  ;;  %v7302_v10 = vrot.slane %v7288_v24, %v21321_v5  ;;  %v7303_v30 = vcombine.high %v7295_v3, %v7295_v3  ;;  %v15152_v41 = vrot.slane %v7295_v3, 9  ;;  %v6407_v42 = vmax.f32 %v6343_v37, 0.0 }
 0x3ce   :  { %v8778_v11 = vmax.f32 %v7252_v57, %v15141_v51  ;;  %v8779_v4 = vmax.f32 %v7251_v60, %v15142_v49  ;;  %v6275_v12 = vadd.f32 %v17110_v9, %v23805_v21  ;;  %v6274_v47 = vadd.f32 %v6147_v38, %v23806_v63  ;;  %v6157_v38 = vpop.f32.mrf.mxu0 }
 0x3cf   :  { %v7304_v23 = vcombine.high %v7302_v10, %v7302_v10  ;;  %v15153_v33 = vrot.slane %v7303_v30, 9  ;;  %v15154_v54 = vrot.slane %v7302_v10, 9  ;;  %v8789_v29 = vmax.f32 %v7295_v3, %v15152_v41 }
 0x3d0   :  { %v8780_v17 = vmax.f32 %v7253_v18, %v15143_v53  ;;  %v7271_v35 = vcombine.high %v6407_v42, %v6407_v42  ;;  %v7278_v50 = vrot.slane %v6407_v42, %v21321_v5  ;;  %v6346_v44 = vadd.f32 %v22136_v1, %v6275_v12 }
 0x3d1   :  { %v15155_v55 = vrot.slane %v7304_v23, 9  ;;  %v8790_v46 = vmax.f32 %v7303_v30, %v15153_v33  ;;  %v8791_v61 = vmax.f32 %v7302_v10, %v15154_v54  ;;  %v8949_v14 = vmax.f32 %v8781_v31, %v8789_v29 }
 0x3d2   :  { %v7285_v39 = vrot.slane %v7271_v35, %v21321_v5  ;;  %v7286_v59 = vcombine.high %v7278_v50, %v7278_v50  ;;  %v15148_v6 = vrot.slane %v7278_v50, 9  ;;  %v6410_v34 = vmax.f32 %v6346_v44, 0.0 }
 0x3d3   :  { %v8792_v15 = vmax.f32 %v7304_v23, %v15155_v55  ;;  %v8950_v40 = vmax.f32 %v8782_v52, %v8790_v46  ;;  %v8951_v32 = vmax.f32 %v22174_v36, %v8791_v61  ;;  %v6345_v9 = vadd.f32 %v22136_v1, %v6274_v47 }
 0x3d4   :  { %v7287_v7 = vcombine.high %v7285_v39, %v7285_v39  ;;  %v15149_v60 = vrot.slane %v7286_v59, 9  ;;  %v15150_v57 = vrot.slane %v7285_v39, 9  ;;  %v8785_v28 = vmax.f32 %v7278_v50, %v15148_v6  ;;  %v9847_v2 = vld [vmem:[#allocation2 + $0xd1] sm:$0xff] }
 0x3d5   :  { %v8952_v27 = vmax.f32 %v22178_v26, %v8792_v15  ;;  %v9526_v31 = vrot.slane %v8949_v14, %v21353_v43  ;;  %v7322_v37 = vcombine.high %v6410_v34, %v6410_v34  ;;  %v6277_v0 = vadd.f32 %v17113_v58, %v21634_v56  ;;  %17150 = vmatmul.mubr.msk.f32.gmra.mxu1 %vm8985_vm2, %v9847_v2 }
 0x3d6   :  { %v15151_v18 = vrot.slane %v7287_v7, 9  ;;  %v8786_v52 = vmax.f32 %v7286_v59, %v15149_v60  ;;  %v8787_v51 = vmax.f32 %v7285_v39, %v15150_v57  ;;  %v8945_v49 = vmax.f32 %v8777_v16, %v8785_v28  ;;  %17253 = vmatprep.mubr.msk.f32.mxu0 %vm8985_vm2, %v9847_v2 }
 0x3d7   :  { %v9530_v22 = vrot.slane %v8950_v40, %v21353_v43  ;;  %v7329_v36 = vrot.slane %v6410_v34, %v21321_v5  ;;  %v7336_v24 = vrot.slane %v7322_v37, %v21321_v5  ;;  %v6409_v3 = vmax.f32 %v6345_v9, 0.0 }
 0x3d8   :  { %v8788_v62 = vmax.f32 %v7287_v7, %v15151_v18  ;;  %v8946_v26 = vmax.f32 %v8778_v11, %v8786_v52  ;;  %v8947_v53 = vmax.f32 %v8779_v4, %v8787_v51  ;;  %v9510_v56 = vrot.slane %v8945_v49, %v21353_v43  ;;  %v17116_v11 = vpop.f32.mrf.mxu0  ;;  %v23807_v49 = vld [vmem:[#allocation58_spill] sm:$0xff] }
 0x3d9   :  { %v7337_v10 = vcombine.high %v7329_v36, %v7329_v36  ;;  %v7338_v30 = vcombine.high %v7336_v24, %v7336_v24  ;;  %v15160_v41 = vrot.slane %v7329_v36, 9  ;;  %v15162_v42 = vrot.slane %v7336_v24, 9 }
 0x3da   :  { %v8948_v16 = vmax.f32 %v8780_v17, %v8788_v62  ;;  %v9514_v21 = vrot.slane %v8946_v26, %v21353_v43  ;;  %v9518_v12 = vrot.slane %v8947_v53, %v21353_v43  ;;  %v7305_v63 = vcombine.high %v6409_v3, %v6409_v3  ;;  %v6167_v40 = vpop.f32.mrf.mxu0 }
 0x3db   :  { %v9534_v47 = vrot.slane %v8951_v32, %v21353_v43  ;;  %v9538_v23 = vrot.slane %v8952_v27, %v21353_v43  ;;  %v15161_v33 = vrot.slane %v7337_v10, 9  ;;  %v15163_v54 = vrot.slane %v7338_v30, 9 }
 0x3dc   :  { %v9522_v4 = vrot.slane %v8948_v16, %v21353_v43  ;;  %v9751_v29 = vsel %vm9667_vm4, %v9514_v21, %v9510_v56  ;;  %v7312_v35 = vrot.slane %v6409_v3, %v21321_v5  ;;  %v7319_v17 = vrot.slane %v7305_v63, %v21321_v5 }
 0x3dd   :  { %v9752_v50 = vsel %vm9669_vm5, %v9518_v12, %v9751_v29  ;;  %v22207_v44 = vmax.f32 %v7329_v36, %v15160_v41  ;;  %v22209_v55 = vmax.f32 %v7336_v24, %v15162_v42  ;;  %v6348_v46 = vadd.f32 %v22136_v1, %v6277_v0  ;;  %v17119_v36 = vpop.f32.mrf.mxu0  ;;  %v22230_v24 = vld [vmem:[%s23402_s3 + $0x40] sm:$0xff] }
 0x3de   :  { %v9753_v61 = vsel %vm9671_vm6, %v9522_v4, %v9752_v50  ;;  %v7320_v14 = vcombine.high %v7312_v35, %v7312_v35  ;;  %v7321_v39 = vcombine.high %v7319_v17, %v7319_v17  ;;  %v15156_v59 = vrot.slane %v7312_v35, 9  ;;  %17340 = vmatprep.subr.mxu0 %v22230_v24 }
 0x3df   :  { %v9754_v6 = vsel %vm9673_vm7, %v9526_v31, %v9753_v61  ;;  %v15158_v34 = vrot.slane %v7319_v17, 9  ;;  %v6412_v58 = vmax.f32 %v6348_v46, 0.0  ;;  %v6276_v15 = vadd.f32 %v6157_v38, %v21637_v48  ;;  %v6177_v4 = vpop.f32.mrf.mxu0 }
 0x3e0   :  { %v9755_v32 = vsel %vm9675_vm8, %v9530_v22, %v9754_v6  ;;  %v8798_v9 = vmax.f32 %v7337_v10, %v15161_v33  ;;  %v15157_v7 = vrot.slane %v7320_v14, 9  ;;  %v15159_v60 = vrot.slane %v7321_v39, 9 }
 0x3e1   :  { %v9756_v57 = vsel %vm9677_vm9, %v9534_v47, %v9755_v32  ;;  %v22217_v28 = vmax.f32 %v7338_v30, %v15163_v54  ;;  %v7356_v2 = vcombine.high %v6412_v58, %v6412_v58  ;;  %v7363_v27 = vrot.slane %v6412_v58, %v21321_v5 }
 0x3e2   :  { %v9757_v37 = vsel %vm9679_vm10, %v9538_v23, %v9756_v57  ;;  %v8793_v31 = vmax.f32 %v7312_v35, %v15156_v59  ;;  %v22221_v0 = vmax.f32 %v7319_v17, %v15158_v34  ;;  %v6347_v48 = vadd.f32 %v22136_v1, %v6276_v15 }
 0x3e3   :  { %9814 = vst.msk [vmem:[#allocation2 + $0xe1] sm:$0xff] %vm8985_vm2, %v9757_v37  ;;  %v7370_v18 = vrot.slane %v7356_v2, %v21321_v5  ;;  %v7371_v52 = vcombine.high %v7363_v27, %v7363_v27  ;;  %v15168_v51 = vrot.slane %v7363_v27, 9  ;;  %v6279_v22 = vadd.f32 %v17116_v11, %v23807_v49 }
 0x3e4   :  { %v8794_v3 = vmax.f32 %v7320_v14, %v15157_v7  ;;  %v8796_v38 = vmax.f32 %v7321_v39, %v15159_v60  ;;  %v6411_v62 = vmax.f32 %v6347_v48, 0.0  ;;  %v6278_v26 = vadd.f32 %v6167_v40, %v21688_v20 }
 0x3e5   :  { %v7372_v53 = vcombine.high %v7370_v18, %v7370_v18  ;;  %v15169_v56 = vrot.slane %v7371_v52, 9  ;;  %v15170_v10 = vrot.slane %v7370_v18, 9  ;;  %v8805_v30 = vmax.f32 %v7363_v27, %v15168_v51 }
 0x3e6   :  { %v7339_v41 = vcombine.high %v6411_v62, %v6411_v62  ;;  %v7346_v42 = vrot.slane %v6411_v62, %v21321_v5  ;;  %v6350_v16 = vadd.f32 %v22136_v1, %v6279_v22  ;;  %v6281_v21 = vadd.f32 %v17119_v36, %v21691_v13 }
 0x3e7   :  { %v15171_v12 = vrot.slane %v7372_v53, 9  ;;  %v8806_v63 = vmax.f32 %v7371_v52, %v15169_v56  ;;  %v8807_v47 = vmax.f32 %v7370_v18, %v15170_v10  ;;  %v8957_v23 = vmax.f32 %v22207_v44, %v8805_v30 }
 0x3e8   :  { %v7353_v20 = vrot.slane %v7339_v41, %v21321_v5  ;;  %v7354_v33 = vcombine.high %v7346_v42, %v7346_v42  ;;  %v15164_v54 = vrot.slane %v7346_v42, 9  ;;  %v6414_v11 = vmax.f32 %v6350_v16, 0.0 }
 0x3e9   :  { %v8808_v29 = vmax.f32 %v7372_v53, %v15171_v12  ;;  %v8958_v35 = vmax.f32 %v8798_v9, %v8806_v63  ;;  %v8959_v17 = vmax.f32 %v22209_v55, %v8807_v47  ;;  %v6349_v50 = vadd.f32 %v22136_v1, %v6278_v26 }
 0x3ea   :  { %v7355_v46 = vcombine.high %v7353_v20, %v7353_v20  ;;  %v15165_v61 = vrot.slane %v7354_v33, 9  ;;  %v15166_v13 = vrot.slane %v7353_v20, 9  ;;  %v8801_v14 = vmax.f32 %v7346_v42, %v15164_v54  ;;  %v22241_v39 = vld [vmem:[#allocation2 + $0xe1] sm:$0xff]  ;;  %v17122_v42 = vpop.f32.mrf.mxu0 }
 0x3eb   :  { %v8960_v44 = vmax.f32 %v22217_v28, %v8808_v29  ;;  %v9558_v59 = vrot.slane %v8957_v23, %v21353_v43  ;;  %v7390_v6 = vcombine.high %v6414_v11, %v6414_v11  ;;  %v6280_v34 = vadd.f32 %v6177_v4, %v21695_v8  ;;  %17152 = vmatprep.mubr.msk.f32.mxu1 %vm8985_vm2, %v22241_v39 }
 0x3ec   :  { %v15167_v58 = vrot.slane %v7355_v46, 9  ;;  %v8802_v55 = vmax.f32 %v7354_v33, %v15165_v61  ;;  %v8803_v15 = vmax.f32 %v7353_v20, %v15166_v13  ;;  %v8953_v40 = vmax.f32 %v8793_v31, %v8801_v14  ;;  %17254 = vmatmul.mubr.msk.f32.gmra.mxu0 %vm8985_vm2, %v22241_v39  ;;  %v6187_v61 = vpop.f32.mrf.mxu0 }
 0x3ed   :  { %v9562_v32 = vrot.slane %v8958_v35, %v21353_v43  ;;  %v7397_v9 = vrot.slane %v6414_v11, %v21321_v5  ;;  %v7404_v7 = vrot.slane %v7390_v6, %v21321_v5  ;;  %v6413_v60 = vmax.f32 %v6349_v50, 0.0 }
 0x3ee   :  { %v8804_v57 = vmax.f32 %v7355_v46, %v15167_v58  ;;  %v8954_v28 = vmax.f32 %v8794_v3, %v8802_v55  ;;  %v8955_v8 = vmax.f32 %v22221_v0, %v8803_v15  ;;  %v9542_v2 = vrot.slane %v8953_v40, %v21353_v43 }
 0x3ef   :  { %v7405_v27 = vcombine.high %v7397_v9, %v7397_v9  ;;  %v7406_v37 = vcombine.high %v7404_v7, %v7404_v7  ;;  %v15176_v48 = vrot.slane %v7397_v9, 9  ;;  %v15178_v31 = vrot.slane %v7404_v7, 9 }
 0x3f0   :  { %v8956_v18 = vmax.f32 %v8796_v38, %v8804_v57  ;;  %v9546_v52 = vrot.slane %v8954_v28, %v21353_v43  ;;  %v9550_v51 = vrot.slane %v8955_v8, %v21353_v43  ;;  %v7373_v49 = vcombine.high %v6413_v60, %v6413_v60 }
 0x3f1   :  { %v9566_v22 = vrot.slane %v8959_v17, %v21353_v43  ;;  %v9570_v36 = vrot.slane %v8960_v44, %v21353_v43  ;;  %v15177_v62 = vrot.slane %v7405_v27, 9  ;;  %v15179_v3 = vrot.slane %v7406_v37, 9 }
 0x3f2   :  { %v9554_v0 = vrot.slane %v8956_v18, %v21353_v43  ;;  %v9758_v26 = vsel %vm9667_vm4, %v9546_v52, %v9542_v2  ;;  %v7380_v53 = vrot.slane %v6413_v60, %v21321_v5  ;;  %v7387_v56 = vrot.slane %v7373_v49, %v21321_v5 }
 0x3f3   :  { %v9759_v38 = vsel %vm9669_vm5, %v9550_v51, %v9758_v26  ;;  %v22264_v10 = vmax.f32 %v7397_v9, %v15176_v48  ;;  %v22266_v30 = vmax.f32 %v7404_v7, %v15178_v31  ;;  %v6352_v41 = vadd.f32 %v22136_v1, %v6281_v21  ;;  %v17125_v48 = vpop.f32.mrf.mxu0  ;;  %v5488_v51 = vpop.f32.mrf.mxu1 }
 0x3f4   :  { %v9760_v16 = vsel %vm9671_vm6, %v9554_v0, %v9759_v38  ;;  %v7388_v12 = vcombine.high %v7380_v53, %v7380_v53  ;;  %v7389_v63 = vcombine.high %v7387_v56, %v7387_v56  ;;  %v15172_v47 = vrot.slane %v7380_v53, 9 }
 0x3f5   :  { %v9761_v23 = vsel %vm9673_vm7, %v9558_v59, %v9760_v16  ;;  %v15174_v20 = vrot.slane %v7387_v56, 9  ;;  %v6416_v33 = vmax.f32 %v6352_v41, 0.0  ;;  %v6351_v54 = vadd.f32 %v22136_v1, %v6280_v34  ;;  %v23808_v16 = vld [vmem:[#allocation29_spill] sm:$0xff] }
 0x3f6   :  { %v9762_v11 = vsel %vm9675_vm8, %v9562_v32, %v9761_v23  ;;  %v22273_v4 = vmax.f32 %v7405_v27, %v15177_v62  ;;  %v22275_v29 = vmax.f32 %v7406_v37, %v15179_v3  ;;  %v15173_v35 = vrot.slane %v7388_v12, 9 }
 0x3f7   :  { %v9763_v21 = vsel %vm9677_vm9, %v9566_v22, %v9762_v11  ;;  %v15175_v17 = vrot.slane %v7389_v63, 9  ;;  %v7424_v50 = vcombine.high %v6416_v33, %v6416_v33  ;;  %v7431_v46 = vrot.slane %v6416_v33, %v21321_v5 }
 0x3f8   :  { %v9764_v13 = vsel %vm9679_vm10, %v9570_v36, %v9763_v21  ;;  %v8809_v14 = vmax.f32 %v7380_v53, %v15172_v47  ;;  %v8811_v44 = vmax.f32 %v7387_v56, %v15174_v20  ;;  %v6415_v59 = vmax.f32 %v6351_v54, 0.0  ;;  %v23810_v47 = vld [vmem:[#allocation36_spill] sm:$0xff] }
 0x3f9   :  { %9815 = vst.msk [vmem:[#allocation2 + $0xf1] sm:$0xff] %vm8985_vm2, %v9764_v13  ;;  %v7438_v6 = vrot.slane %v7424_v50, %v21321_v5  ;;  %v7439_v34 = vcombine.high %v7431_v46, %v7431_v46  ;;  %v15184_v58 = vrot.slane %v7431_v46, 9  ;;  %v6283_v55 = vadd.f32 %v17122_v42, %v21719_v25 }
 0x3fa   :  { %v8810_v15 = vmax.f32 %v7388_v12, %v15173_v35  ;;  %v7407_v40 = vcombine.high %v6415_v59, %v6415_v59  ;;  %v7414_v32 = vrot.slane %v6415_v59, %v21321_v5  ;;  %v6282_v9 = vadd.f32 %v6187_v61, %v21722_v45  ;;  %v23811_v59 = vld [vmem:[#allocation18_spill] sm:$0xff] }
 0x3fb   :  { %v7440_v7 = vcombine.high %v7438_v6, %v7438_v6  ;;  %v15185_v60 = vrot.slane %v7439_v34, 9  ;;  %v15186_v57 = vrot.slane %v7438_v6, 9  ;;  %v8821_v28 = vmax.f32 %v7431_v46, %v15184_v58 }
 0x3fc   :  { %v7421_v8 = vrot.slane %v7407_v40, %v21321_v5  ;;  %v7422_v2 = vcombine.high %v7414_v32, %v7414_v32  ;;  %v15180_v27 = vrot.slane %v7414_v32, 9  ;;  %v6354_v37 = vadd.f32 %v22136_v1, %v6283_v55 }
 0x3fd   :  { %v15187_v31 = vrot.slane %v7440_v7, 9  ;;  %v8822_v18 = vmax.f32 %v7439_v34, %v15185_v60  ;;  %v8823_v25 = vmax.f32 %v7438_v6, %v15186_v57  ;;  %v8965_v52 = vmax.f32 %v22264_v10, %v8821_v28  ;;  %v23809_v10 = vld [vmem:[#allocation16_spill] sm:$0xff]  ;;  %v6197_v34 = vpop.f32.mrf.mxu0 }
 0x3fe   :  { %v7423_v49 = vcombine.high %v7421_v8, %v7421_v8  ;;  %v15181_v22 = vrot.slane %v7422_v2, 9  ;;  %v15182_v45 = vrot.slane %v7421_v8, 9  ;;  %v8817_v36 = vmax.f32 %v7414_v32, %v15180_v27 }
 0x3ff   :  { %v8824_v62 = vmax.f32 %v7440_v7, %v15187_v31  ;;  %v8966_v3 = vmax.f32 %v22273_v4, %v8822_v18  ;;  %v8967_v0 = vmax.f32 %v22266_v30, %v8823_v25  ;;  %v6285_v26 = vadd.f32 %v17125_v48, %v22088_v19  ;;  %v17030_v19 = vpop.f32.mrf.mxu1  ;;  %v17128_v25 = vpop.f32.mrf.mxu0 }
 0x400   :  { %v15183_v53 = vrot.slane %v7423_v49, 9  ;;  %v8818_v56 = vmax.f32 %v7422_v2, %v15181_v22  ;;  %v8819_v38 = vmax.f32 %v7421_v8, %v15182_v45  ;;  %v8961_v41 = vmax.f32 %v8809_v14, %v8817_v36  ;;  %v22291_v42 = vld [vmem:[#allocation2 + $0xf1] sm:$0xff] }
 0x401   :  { %v4868_v12 = vadd.f32 %v23809_v10, %v23808_v16  ;;  %v5575_v23 = vadd.f32 %v5488_v51, %v23810_v47  ;;  %v8968_v20 = vmax.f32 %v22275_v29, %v8824_v62  ;;  %v6418_v33 = vmax.f32 %v6354_v37, 0.0  ;;  %17153 = vmatmul.mubr.msk.f32.gmra.mxu1 %vm8985_vm2, %v22291_v42  ;;  %17256 = vmatprep.mubr.msk.f32.mxu0 %vm8985_vm2, %v22291_v42  ;;  %v5498_v57 = vpop.f32.mrf.mxu1 }
 0x402   :  { %v8812_v30 = vmax.f32 %v7389_v63, %v15175_v17  ;;  %v8820_v54 = vmax.f32 %v7423_v49, %v15183_v53  ;;  %v8962_v11 = vmax.f32 %v8810_v15, %v8818_v56  ;;  %v8963_v4 = vmax.f32 %v8811_v44, %v8819_v38 }
 0x403   :  { %v9574_v35 = vrot.slane %v8961_v41, %v21353_v43  ;;  %v7458_v21 = vcombine.high %v6418_v33, %v6418_v33  ;;  %v7465_v50 = vrot.slane %v6418_v33, %v21321_v5  ;;  %v6353_v46 = vadd.f32 %v22136_v1, %v6282_v9 }
 0x404   :  { %v8964_v29 = vmax.f32 %v8812_v30, %v8820_v54  ;;  %v9578_v61 = vrot.slane %v8962_v11, %v21353_v43  ;;  %v9582_v13 = vrot.slane %v8963_v4, %v21353_v43  ;;  %v6356_v14 = vadd.f32 %v22136_v1, %v6285_v26 }
 0x405   :  { %v5578_v6 = vadd.f32 %v17030_v19, %v23811_v59  ;;  %v7472_v63 = vrot.slane %v7458_v21, %v21321_v5  ;;  %v7473_v17 = vcombine.high %v7465_v50, %v7465_v50  ;;  %v6417_v44 = vmax.f32 %v6353_v46, 0.0 }
 0x406   :  { %v9590_v58 = vrot.slane %v8965_v52, %v21353_v43  ;;  %v9594_v55 = vrot.slane %v8966_v3, %v21353_v43  ;;  %v9586_v15 = vrot.slane %v8964_v29, %v21353_v43  ;;  %v9765_v40 = vsel %vm9667_vm4, %v9578_v61, %v9574_v35 }
 0x407   :  { %v9766_v32 = vsel %vm9669_vm5, %v9582_v13, %v9765_v40  ;;  %v7474_v9 = vcombine.high %v7472_v63, %v7472_v63  ;;  %v15192_v7 = vrot.slane %v7465_v50, 9  ;;  %v6420_v60 = vmax.f32 %v6356_v14, 0.0 }
 0x408   :  { %v9767_v28 = vsel %vm9671_vm6, %v9586_v15, %v9766_v32  ;;  %v15193_v8 = vrot.slane %v7473_v17, 9  ;;  %v7441_v2 = vcombine.high %v6417_v44, %v6417_v44  ;;  %v7448_v27 = vrot.slane %v6417_v44, %v21321_v5 }
 0x409   :  { %v9598_v37 = vrot.slane %v8967_v0, %v21353_v43  ;;  %v9602_v48 = vrot.slane %v8968_v20, %v21353_v43  ;;  %v9768_v31 = vsel %vm9673_vm7, %v9590_v58, %v9767_v28  ;;  %v15194_v18 = vrot.slane %v7472_v63, 9  ;;  %v17033_v28 = vpop.f32.mrf.mxu1 }
 0x40a   :  { %v9769_v52 = vsel %vm9675_vm8, %v9594_v55, %v9768_v31  ;;  %v15195_v51 = vrot.slane %v7474_v9, 9  ;;  %v7455_v49 = vrot.slane %v7441_v2, %v21321_v5  ;;  %v6284_v22 = vadd.f32 %v6197_v34, %v5575_v23 }
 0x40b   :  { %v5577_v45 = vadd.f32 %v5498_v57, %v4868_v12  ;;  %v9770_v36 = vsel %vm9677_vm9, %v9598_v37, %v9769_v52  ;;  %v7492_v62 = vcombine.high %v6420_v60, %v6420_v60  ;;  %v7499_v3 = vrot.slane %v6420_v60, %v21321_v5  ;;  %v6207_v12 = vpop.f32.mrf.mxu0 }
 0x40c   :  { %v9771_v0 = vsel %vm9679_vm10, %v9602_v48, %v9770_v36  ;;  %v22324_v26 = vmax.f32 %v7465_v50, %v15192_v7  ;;  %v22326_v53 = vmax.f32 %v7473_v17, %v15193_v8  ;;  %v7456_v56 = vcombine.high %v7448_v27, %v7448_v27  ;;  %v23813_v36 = vld [vmem:[#allocation45_spill] sm:$0xff] }
 0x40d   :  { %9816 = vst.msk [vmem:[#allocation2 + $0x101] sm:$0xff] %vm8985_vm2, %v9771_v0  ;;  %v22329_v38 = vmax.f32 %v7472_v63, %v15194_v18  ;;  %v7506_v41 = vrot.slane %v7492_v62, %v21321_v5  ;;  %v7507_v16 = vcombine.high %v7499_v3, %v7499_v3  ;;  %v15200_v10 = vrot.slane %v7499_v3, 9 }
 0x40e   :  { %v22332_v47 = vmax.f32 %v7474_v9, %v15195_v51  ;;  %v7457_v23 = vcombine.high %v7455_v49, %v7455_v49  ;;  %v15188_v20 = vrot.slane %v7448_v27, 9  ;;  %v6355_v33 = vadd.f32 %v22136_v1, %v6284_v22 }
 0x40f   :  { %v7508_v19 = vcombine.high %v7506_v41, %v7506_v41  ;;  %v15201_v30 = vrot.slane %v7507_v16, 9  ;;  %v15202_v54 = vrot.slane %v7506_v41, 9  ;;  %v8837_v11 = vmax.f32 %v7499_v3, %v15200_v10  ;;  %v17131_v10 = vpop.f32.mrf.mxu0 }
 0x410   :  { %v15189_v4 = vrot.slane %v7456_v56, 9  ;;  %v6419_v35 = vmax.f32 %v6355_v33, 0.0  ;;  %v6287_v21 = vadd.f32 %v17128_v25, %v5578_v6  ;;  %v6286_v50 = vadd.f32 %v6207_v12, %v5577_v45  ;;  %v23812_v45 = vld [vmem:[#allocation33_spill] sm:$0xff] }
 0x411   :  { %v15203_v46 = vrot.slane %v7508_v19, 9  ;;  %v8838_v29 = vmax.f32 %v7507_v16, %v15201_v30  ;;  %v8839_v61 = vmax.f32 %v7506_v41, %v15202_v54  ;;  %v8973_v13 = vmax.f32 %v22324_v26, %v8837_v11  ;;  %v5508_v26 = vpop.f32.mrf.mxu1  ;;  %v23814_v12 = vld [vmem:[#allocation9_spill] sm:$0xff]  ;;  %v23815_v30 = vld [vmem:[#allocation6_spill] sm:$0xff] }
 0x412   :  { %v15190_v14 = vrot.slane %v7455_v49, 9  ;;  %v7475_v59 = vcombine.high %v6419_v35, %v6419_v35  ;;  %v7482_v63 = vrot.slane %v6419_v35, %v21321_v5  ;;  %v6358_v17 = vadd.f32 %v22136_v1, %v6287_v21 }
 0x413   :  { %v8840_v44 = vmax.f32 %v7508_v19, %v15203_v46  ;;  %v8974_v34 = vmax.f32 %v22326_v53, %v8838_v29  ;;  %v8975_v58 = vmax.f32 %v22329_v38, %v8839_v61  ;;  %v6357_v55 = vadd.f32 %v22136_v1, %v6286_v50  ;;  %v6217_v29 = vpop.f32.mrf.mxu0 }
 0x414   :  { %v7489_v6 = vrot.slane %v7475_v59, %v21321_v5  ;;  %v7490_v15 = vcombine.high %v7482_v63, %v7482_v63  ;;  %v15196_v40 = vrot.slane %v7482_v63, 9  ;;  %v22342_v32 = vld [vmem:[#allocation2 + $0x101] sm:$0xff]  ;;  %v15191_v9 = vrot.slane %v7457_v23, 9 }
 0x415   :  { %v8825_v7 = vmax.f32 %v7448_v27, %v15188_v20  ;;  %v8976_v60 = vmax.f32 %v22332_v47, %v8840_v44  ;;  %v6422_v57 = vmax.f32 %v6358_v17, 0.0  ;;  %17155 = vmatprep.mubr.msk.f32.mxu1 %vm8985_vm2, %v22342_v32  ;;  %17257 = vmatmul.mubr.msk.f32.gmra.mxu0 %vm8985_vm2, %v22342_v32  ;;  %v8826_v31 = vmax.f32 %v7456_v56, %v15189_v4 }
 0x416   :  { %v7491_v8 = vcombine.high %v7489_v6, %v7489_v6  ;;  %v15197_v2 = vrot.slane %v7490_v15, 9  ;;  %v15198_v37 = vrot.slane %v7489_v6, 9  ;;  %v8833_v48 = vmax.f32 %v7482_v63, %v15196_v40 }
 0x417   :  { %v8827_v18 = vmax.f32 %v7455_v49, %v15190_v14  ;;  %v6421_v25 = vmax.f32 %v6357_v55, 0.0  ;;  %v4160_v62 = vadd.f32 %v23813_v36, %v23812_v45  ;;  %v8828_v3 = vmax.f32 %v7457_v23, %v15191_v9 }
 0x418   :  { %v15199_v52 = vrot.slane %v7491_v8, 9  ;;  %v8834_v51 = vmax.f32 %v7490_v15, %v15197_v2  ;;  %v8835_v27 = vmax.f32 %v7489_v6, %v15198_v37  ;;  %v8969_v22 = vmax.f32 %v8825_v7, %v8833_v48 }
 0x419   :  { %v7526_v0 = vcombine.high %v6422_v57, %v6422_v57  ;;  %v7533_v16 = vrot.slane %v6422_v57, %v21321_v5  ;;  %v4870_v56 = vadd.f32 %v23814_v12, %v4160_v62  ;;  %v7509_v49 = vcombine.high %v6421_v25, %v6421_v25 }
 0x41a   :  { %v8836_v53 = vmax.f32 %v7491_v8, %v15199_v52  ;;  %v8970_v38 = vmax.f32 %v8826_v31, %v8834_v51  ;;  %v8971_v41 = vmax.f32 %v8827_v18, %v8835_v27  ;;  %v7516_v47 = vrot.slane %v6421_v25, %v21321_v5 }
 0x41b   :  { %v9606_v33 = vrot.slane %v8969_v22, %v21353_v43  ;;  %v5580_v54 = vadd.f32 %v17033_v28, %v23815_v30  ;;  %v5579_v11 = vadd.f32 %v5508_v26, %v4870_v56  ;;  %v7540_v4 = vrot.slane %v7526_v0, %v21321_v5 }
 0x41c   :  { %v8972_v20 = vmax.f32 %v8828_v3, %v8836_v53  ;;  %v9610_v19 = vrot.slane %v8970_v38, %v21353_v43  ;;  %v9614_v23 = vrot.slane %v8971_v41, %v21353_v43  ;;  %v9622_v35 = vrot.slane %v8973_v13, %v21353_v43 }
 0x41d   :  { %v7541_v46 = vcombine.high %v7533_v16, %v7533_v16  ;;  %v9626_v61 = vrot.slane %v8974_v34, %v21353_v43  ;;  %v9630_v14 = vrot.slane %v8975_v58, %v21353_v43  ;;  %v7523_v63 = vrot.slane %v7509_v49, %v21321_v5 }
 0x41e   :  { %v9618_v21 = vrot.slane %v8972_v20, %v21353_v43  ;;  %v9772_v50 = vsel %vm9667_vm4, %v9610_v19, %v9606_v33  ;;  %v9634_v17 = vrot.slane %v8976_v60, %v21353_v43  ;;  %v7524_v55 = vcombine.high %v7516_v47, %v7516_v47 }
 0x41f   :  { %v9773_v59 = vsel %vm9669_vm5, %v9614_v23, %v9772_v50  ;;  %v6289_v13 = vadd.f32 %v17131_v10, %v5580_v54  ;;  %v7542_v15 = vcombine.high %v7540_v4, %v7540_v4  ;;  %v15208_v40 = vrot.slane %v7533_v16, 9 }
 0x420   :  { %v9774_v44 = vsel %vm9671_vm6, %v9618_v21, %v9773_v59  ;;  %v6288_v9 = vadd.f32 %v6217_v29, %v5579_v11  ;;  %v15209_v34 = vrot.slane %v7541_v46, 9  ;;  %v15210_v57 = vrot.slane %v7540_v4, 9  ;;  %v9819_v11 = vld [vmem:[#allocation2] sm:$0xff] }
 0x421   :  { %v9775_v6 = vsel %vm9673_vm7, %v9622_v35, %v9774_v44  ;;  %v6360_v58 = vadd.f32 %v22136_v1, %v6289_v13  ;;  %v7525_v8 = vcombine.high %v7523_v63, %v7523_v63  ;;  %v15204_v2 = vrot.slane %v7516_v47, 9 }
 0x422   :  { %v9776_v7 = vsel %vm9675_vm8, %v9626_v61, %v9775_v6  ;;  %v6359_v60 = vadd.f32 %v22136_v1, %v6288_v9  ;;  %v15205_v48 = vrot.slane %v7524_v55, 9  ;;  %v15211_v18 = vrot.slane %v7542_v15, 9 }
 0x423   :  { %v9777_v28 = vsel %vm9677_vm9, %v9630_v14, %v9776_v7  ;;  %v6424_v31 = vmax.f32 %v6360_v58, 0.0  ;;  %v22375_v25 = vmax.f32 %v7533_v16, %v15208_v40  ;;  %v15206_v52 = vrot.slane %v7523_v63, 9 }
 0x424   :  { %v9778_v37 = vsel %vm9679_vm10, %v9634_v17, %v9777_v28  ;;  %v6423_v51 = vmax.f32 %v6359_v60, 0.0  ;;  %v22377_v27 = vmax.f32 %v7541_v46, %v15209_v34  ;;  %v22379_v22 = vmax.f32 %v7540_v4, %v15210_v57  ;;  %v22395_v34 = vld [vmem:[#allocation2 + $0x10] sm:$0xff]  ;;  %v22400_v57 = vld [vmem:[%s23402_s3 + $0x18] sm:$0xff] }
 0x425   :  { %9817 = vst.msk [vmem:[#allocation2 + $0x111] sm:$0xff] %vm8985_vm2, %v9778_v37  ;;  %v7560_v45 = vcombine.high %v6424_v31, %v6424_v31  ;;  %v7567_v36 = vrot.slane %v6424_v31, %v21321_v5  ;;  %v15207_v62 = vrot.slane %v7525_v8, 9  ;;  %v8841_v1 = vmax.f32 %v7516_v47, %v15204_v2  ;;  %v17521_v60 = vld [vmem:[%s23402_s3 + $0x10] sm:$0xff] }
 0x426   :  { %v7543_v3 = vcombine.high %v6423_v51, %v6423_v51  ;;  %v7550_v0 = vrot.slane %v6423_v51, %v21321_v5  ;;  %v8842_v26 = vmax.f32 %v7524_v55, %v15205_v48  ;;  %v8843_v16 = vmax.f32 %v7523_v63, %v15206_v52 }
 0x427   :  { %v7574_v53 = vrot.slane %v7560_v45, %v21321_v5  ;;  %v7575_v38 = vcombine.high %v7567_v36, %v7567_v36  ;;  %v15216_v41 = vrot.slane %v7567_v36, 9  ;;  %v8848_v63 = vmax.f32 %v7542_v15, %v15211_v18 }
 0x428   :  { %v7557_v10 = vrot.slane %v7543_v3, %v21321_v5  ;;  %v7558_v12 = vcombine.high %v7550_v0, %v7550_v0  ;;  %v15212_v56 = vrot.slane %v7550_v0, 9  ;;  %v8844_v13 = vmax.f32 %v7525_v8, %v15207_v62  ;;  %v22407_v8 = vld [vmem:[#allocation2 + $0x20] sm:$0xff]  ;;  %v22434_v3 = vld [vmem:[#allocation2 + $0x50] sm:$0xff] }
 0x429   :  { %v7576_v49 = vcombine.high %v7574_v53, %v7574_v53  ;;  %v15217_v20 = vrot.slane %v7575_v38, 9  ;;  %v15218_v33 = vrot.slane %v7574_v53, 9  ;;  %v8853_v19 = vmax.f32 %v7567_v36, %v15216_v41  ;;  %v22449_v41 = vld [vmem:[#allocation2 + $0xb0] sm:$0xff] }
 0x42a   :  { %v7559_v23 = vcombine.high %v7557_v10, %v7557_v10  ;;  %v15213_v30 = vrot.slane %v7558_v12, 9  ;;  %v15214_v47 = vrot.slane %v7557_v10, 9  ;;  %v8849_v54 = vmax.f32 %v7550_v0, %v15212_v56  ;;  %v22467_v56 = vld [vmem:[#allocation2 + $0xe0] sm:$0xff] }
 0x42b   :  { %v15219_v4 = vrot.slane %v7576_v49, 9  ;;  %v8854_v35 = vmax.f32 %v7575_v38, %v15217_v20  ;;  %v8855_v21 = vmax.f32 %v7574_v53, %v15218_v33  ;;  %v8981_v50 = vmax.f32 %v22375_v25, %v8853_v19  ;;  %v22419_v25 = vld [vmem:[#allocation2 + $0x30] sm:$0xff]  ;;  %v9827_v53 = vld [vmem:[#allocation2 + $0xa0] sm:$0xff] }
 0x42c   :  { %v22386_v46 = vld [vmem:[#allocation2 + $0x111] sm:$0xff]  ;;  %v15215_v29 = vrot.slane %v7559_v23, 9  ;;  %v8850_v61 = vmax.f32 %v7558_v12, %v15213_v30  ;;  %v8851_v14 = vmax.f32 %v7557_v10, %v15214_v47  ;;  %v8977_v59 = vmax.f32 %v8841_v1, %v8849_v54  ;;  %v22455_v10 = vld [vmem:[#allocation2 + $0xc0] sm:$0xff] }
 0x42d   :  { %17156 = vmatmul.mubr.msk.f32.gmra.mxu1 %vm8985_vm2, %v22386_v46  ;;  %17259 = vmatprep.mubr.msk.f32.mxu0 %vm8985_vm2, %v22386_v46  ;;  %v8856_v17 = vmax.f32 %v7576_v49, %v15219_v4  ;;  %v8982_v44 = vmax.f32 %v22377_v27, %v8854_v35  ;;  %v8983_v55 = vmax.f32 %v22379_v22, %v8855_v21  ;;  %v22425_v27 = vld [vmem:[#allocation2 + $0x40] sm:$0xff]  ;;  %v22444_v38 = vld [vmem:[#allocation2 + $0x70] sm:$0xff]  ;;  %v23816_v20 = vmov 0.0  }
 0x42e   :  { %17160 = vmatprep.mubr.msk.f32.mxu1 %vm8985_vm2, %v9819_v11  ;;  %v8852_v6 = vmax.f32 %v7559_v23, %v15215_v29  ;;  %v8978_v40 = vmax.f32 %v8842_v26, %v8850_v61  ;;  %v8979_v9 = vmax.f32 %v8843_v16, %v8851_v14  ;;  %v9638_v58 = vrot.slane %v8977_v59, %v21353_v43  ;;  %v22439_v26 = vld [vmem:[#allocation2 + $0x60] sm:$0xff]  ;;  %v22463_v12 = vld [vmem:[#allocation2 + $0xd0] sm:$0xff]  ;;  %v10933_v11 = vld [vmem:[%s23402_s3 + $0x28] sm:$0xff] }
 0x42f   :  { %v8984_v7 = vmax.f32 %v8848_v63, %v8856_v17  ;;  %v9654_v31 = vrot.slane %v8981_v50, %v21353_v43  ;;  %v9658_v52 = vrot.slane %v8982_v44, %v21353_v43  ;;  %v9662_v22 = vrot.slane %v8983_v55, %v21353_v43  ;;  %v22476_v49 = vld [vmem:[#allocation2 + $0xf0] sm:$0xff]  ;;  %v22481_v33 = vld [vmem:[#allocation2 + $0x100] sm:$0xff] }
 0x430   :  { %v8980_v15 = vmax.f32 %v8844_v13, %v8852_v6  ;;  %v9642_v28 = vrot.slane %v8978_v40, %v21353_v43  ;;  %v9646_v2 = vrot.slane %v8979_v9, %v21353_v43  ;;  %v10239_v19 = vld [vmem:[#allocation2 + $0x2] sm:$0xff]  ;;  %v11151_v30 = vld [vmem:[#allocation2 + $0x90] sm:$0xff] }
 0x431   :  { %17161 = vmatmul.mubr.msk.f32.vlgmr.msra.gmra.mxu1 %vm8985_vm2, %v22395_v34  ;;  %v9666_v36 = vrot.slane %v8984_v7, %v21353_v43  ;;  %v22495_v23 = vld [vmem:[#allocation2 + $0x80] sm:$0xff]  ;;  %v22500_v47 = vld [vmem:[#allocation2 + $0x12] sm:$0xff] }
 0x432   :  { %17163 = vmatprep.mubr.msk.f32.mxu1 %vm8985_vm2, %v22407_v8  ;;  %17185 = vmatpush3.msra.mxu1 %v17521_v60  ;;  %v9650_v37 = vrot.slane %v8980_v15, %v21353_v43  ;;  %v9779_v48 = vsel %vm9667_vm4, %v9642_v28, %v9638_v58  ;;  %v22504_v54 = vld [vmem:[#allocation2 + $0x22] sm:$0xff]  ;;  %v22515_v4 = vld [vmem:[#allocation2 + $0x32] sm:$0xff] }
 0x433   :  { %17210 = vmatprep.subr.mxu1 %v22400_v57  ;;  %v9780_v18 = vsel %vm9669_vm5, %v9646_v2, %v9779_v48  ;;  %v22519_v35 = vld [vmem:[#allocation2 + $0x42] sm:$0xff]  ;;  %v22527_v21 = vld [vmem:[#allocation2 + $0x52] sm:$0xff] }
 0x434   :  { %v9781_v51 = vsel %vm9671_vm6, %v9650_v37, %v9780_v18  ;;  %v22531_v50 = vld [vmem:[#allocation2 + $0x62] sm:$0xff]  ;;  %v22539_v61 = vld [vmem:[#allocation2 + $0x72] sm:$0xff] }
 0x435   :  { %17164 = vmatmul.mubr.msk.f32.gmra.mxu1 %vm8985_vm2, %v22419_v25  ;;  %v9782_v45 = vsel %vm9673_vm7, %v9654_v31, %v9781_v51  ;;  %v10247_v29 = vld [vmem:[#allocation2 + $0xa2] sm:$0xff]  ;;  %v11159_v59 = vld [vmem:[#allocation2 + $0x130] sm:$0xff] }
 0x436   :  { %17166 = vmatprep.mubr.msk.f32.mxu1 %vm8985_vm2, %v22425_v27  ;;  %v9783_v62 = vsel %vm9675_vm8, %v9658_v52, %v9782_v45  ;;  %v22547_v63 = vld [vmem:[#allocation2 + $0xb2] sm:$0xff]  ;;  %v22551_v17 = vld [vmem:[#allocation2 + $0xc2] sm:$0xff]  ;;  %v17136_v52 = vpop.f32.mrf.mxu1 }
 0x437   :  { %v9784_v1 = vsel %vm9677_vm9, %v9662_v22, %v9783_v62  ;;  %v10250_v44 = vld [vmem:[#allocation2 + $0xd2] sm:$0xff]  ;;  %v10251_v55 = vld [vmem:[#allocation2 + $0xe2] sm:$0xff] }
 0x438   :  { %v9785_v0 = vsel %vm9679_vm10, %v9666_v36, %v9784_v1  ;;  %v10252_v13 = vld [vmem:[#allocation2 + $0xf2] sm:$0xff]  ;;  %v10253_v6 = vld [vmem:[#allocation2 + $0x102] sm:$0xff]  ;;  %v9967_v51 = vpop.f32.mrf.mxu1 }
 0x439   :  { %17167 = vmatmul.mubr.msk.f32.gmra.mxu1 %vm8985_vm2, %v22434_v3  ;;  %9818 = vst.msk [vmem:[#allocation2 + $0x121] sm:$0xff] %vm8985_vm2, %v9785_v0  ;;  %v10254_v40 = vld [vmem:[#allocation2 + $0x112] sm:$0xff]  ;;  %v11602_v9 = vld [vmem:[#allocation2 + $0x82] sm:$0xff] }
 0x43a   :  { %17169 = vmatprep.mubr.msk.f32.mxu1 %vm8985_vm2, %v22439_v26  ;;  %v11603_v7 = vld [vmem:[#allocation2 + $0x92] sm:$0xff]  ;;  %v11370_v58 = vld [vmem:[#allocation2 + $0x21] sm:$0xff] }
 0x43b   :  { %v11611_v15 = vld [vmem:[#allocation2 + $0x132] sm:$0xff]  ;;  %v11372_v2 = vld [vmem:[#allocation2 + $0x41] sm:$0xff] }
 0x43c   :  { %v11371_v28 = vld [vmem:[#allocation2 + $0x31] sm:$0xff]  ;;  %v11374_v60 = vld [vmem:[#allocation2 + $0x61] sm:$0xff] }
 0x43d   :  { %17170 = vmatmul.mubr.msk.f32.gmra.mxu1 %vm8985_vm2, %v22444_v38  ;;  %v11375_v37 = vld [vmem:[#allocation2 + $0x71] sm:$0xff]  ;;  %v11376_v48 = vld [vmem:[#allocation2 + $0x81] sm:$0xff] }
 0x43e   :  { %17172 = vmatprep.mubr.msk.f32.mxu1 %vm8985_vm2, %v9827_v53  ;;  %v11377_v31 = vld [vmem:[#allocation2 + $0x91] sm:$0xff]  ;;  %v17522_v18 = vld [vmem:[#allocation2 + $0xc1] sm:$0xff] }
 0x43f   :  { %v11385_v22 = vld [vmem:[#allocation2 + $0x131] sm:$0xff] }
 0x440   :  { %v22451_v16 = vld [vmem:[#allocation2 + $0x121] sm:$0xff] }
 0x441   :  { %17173 = vmatmul.mubr.msk.f32.gmra.mxu1 %vm8985_vm2, %v22449_v41  ;;  %17260 = vmatmul.mubr.msk.f32.gmra.mxu0 %vm8985_vm2, %v22451_v16  ;;  %v11158_v14 = vld [vmem:[#allocation2 + $0x120] sm:$0xff] }
 0x442   :  { %17175 = vmatprep.mubr.msk.f32.mxu1 %vm8985_vm2, %v22455_v10  ;;  %17290 = vmatprep.mubr.msk.f32.mxu0 %vm8985_vm2, %v22407_v8 }
 0x445   :  { %17176 = vmatmul.mubr.msk.f32.gmra.mxu1 %vm8985_vm2, %v22463_v12  ;;  %17291 = vmatmul.mubr.msk.f32.vlgmr.msra.gmra.mxu0 %vm8985_vm2, %v22419_v25 }
 0x446   :  { %17178 = vmatprep.mubr.msk.f32.mxu1 %vm8985_vm2, %v22467_v56  ;;  %17293 = vmatprep.mubr.msk.f32.mxu0 %vm8985_vm2, %v22425_v27 }
 0x447   :  { %17341 = vmatpush3.msra.mxu0 %v22230_v24  ;;  %v22489_v24 = vld [vmem:[#allocation2 + $0x110] sm:$0xff] }
 0x448   :  { %17422 = vmatprep.subr.mxu0 %v23816_v20 }
 0x449   :  { %17179 = vmatmul.mubr.msk.f32.gmra.mxu1 %vm8985_vm2, %v22476_v49  ;;  %17294 = vmatmul.mubr.msk.f32.gmra.mxu0 %vm8985_vm2, %v22434_v3 }
 0x44a   :  { %17181 = vmatprep.mubr.msk.f32.mxu1 %vm8985_vm2, %v22481_v33  ;;  %17296 = vmatprep.mubr.msk.f32.mxu0 %vm8985_vm2, %v22439_v26 }
 0x44d   :  { %17182 = vmatmul.mubr.msk.f32.gmra.mxu1 %vm8985_vm2, %v22489_v24  ;;  %17297 = vmatmul.mubr.msk.f32.gmra.mxu0 %vm8985_vm2, %v22444_v38 }
 0x44e   :  { %17186 = vmatprep.mubr.msk.f32.mxu1 %vm8985_vm2, %v10239_v19  ;;  %17299 = vmatprep.mubr.msk.f32.mxu0 %vm8985_vm2, %v22495_v23 }
 0x451   :  { %17187 = vmatmul.mubr.msk.f32.vlgmr.msra.gmra.mxu1 %vm8985_vm2, %v22500_v47  ;;  %17300 = vmatmul.mubr.msk.f32.gmra.mxu0 %vm8985_vm2, %v11151_v30 }
 0x452   :  { %17189 = vmatprep.mubr.msk.f32.mxu1 %vm8985_vm2, %v22504_v54  ;;  %17302 = vmatprep.mubr.msk.f32.mxu0 %vm8985_vm2, %v22455_v10 }
 0x453   :  { %17211 = vmatpush3.msra.mxu1 %v22400_v57  ;;  %v11386_v57 = vld [vmem:[%s23402_s3 + $0x38] sm:$0xff] }
 0x454   :  { %17262 = vmatprep.subr.mxu1 %v10933_v11 }
 0x455   :  { %17190 = vmatmul.mubr.msk.f32.gmra.mxu1 %vm8985_vm2, %v22515_v4  ;;  %17303 = vmatmul.mubr.msk.f32.gmra.mxu0 %vm8985_vm2, %v22463_v12 }
 0x456   :  { %17192 = vmatprep.mubr.msk.f32.mxu1 %vm8985_vm2, %v22519_v35  ;;  %17305 = vmatprep.mubr.msk.f32.mxu0 %vm8985_vm2, %v22467_v56 }
 0x459   :  { %17193 = vmatmul.mubr.msk.f32.gmra.mxu1 %vm8985_vm2, %v22527_v21  ;;  %17306 = vmatmul.mubr.msk.f32.gmra.mxu0 %vm8985_vm2, %v22476_v49 }
 0x45a   :  { %17195 = vmatprep.mubr.msk.f32.mxu1 %vm8985_vm2, %v22531_v50  ;;  %17308 = vmatprep.mubr.msk.f32.mxu0 %vm8985_vm2, %v22481_v33 }
 0x45d   :  { %17196 = vmatmul.mubr.msk.f32.gmra.mxu1 %vm8985_vm2, %v22539_v61  ;;  %17309 = vmatmul.mubr.msk.f32.gmra.mxu0 %vm8985_vm2, %v22489_v24 }
 0x45e   :  { %17198 = vmatprep.mubr.msk.f32.mxu1 %vm8985_vm2, %v10247_v29  ;;  %17311 = vmatprep.mubr.msk.f32.mxu0 %vm8985_vm2, %v11158_v14 }
 0x461   :  { %17199 = vmatmul.mubr.msk.f32.gmra.mxu1 %vm8985_vm2, %v22547_v63  ;;  %17312 = vmatmul.mubr.msk.f32.gmra.mxu0 %vm8985_vm2, %v11159_v59 }
 0x462   :  { %17201 = vmatprep.mubr.msk.f32.mxu1 %vm8985_vm2, %v22551_v17  ;;  %17342 = vmatprep.mubr.msk.f32.mxu0 %vm8985_vm2, %v22504_v54 }
 0x465   :  { %17202 = vmatmul.mubr.msk.f32.gmra.mxu1 %vm8985_vm2, %v10250_v44  ;;  %17343 = vmatmul.mubr.msk.f32.vlgmr.msra.gmra.mxu0 %vm8985_vm2, %v22515_v4 }
 0x466   :  { %17204 = vmatprep.mubr.msk.f32.mxu1 %vm8985_vm2, %v10251_v55  ;;  %17345 = vmatprep.mubr.msk.f32.mxu0 %vm8985_vm2, %v22519_v35 }
 0x469   :  { %17205 = vmatmul.mubr.msk.f32.gmra.mxu1 %vm8985_vm2, %v10252_v13  ;;  %17346 = vmatmul.mubr.msk.f32.gmra.mxu0 %vm8985_vm2, %v22527_v21 }
 0x46a   :  { %17207 = vmatprep.mubr.msk.f32.mxu1 %vm8985_vm2, %v10253_v6  ;;  %17348 = vmatprep.mubr.msk.f32.mxu0 %vm8985_vm2, %v22531_v50 }
 0x46d   :  { %17208 = vmatmul.mubr.msk.f32.gmra.mxu1 %vm8985_vm2, %v10254_v40  ;;  %17349 = vmatmul.mubr.msk.f32.gmra.mxu0 %vm8985_vm2, %v22539_v61 }
 0x46e   :  { %17212 = vmatprep.mubr.msk.f32.mxu1 %vm8985_vm2, %v22395_v34  ;;  %17351 = vmatprep.mubr.msk.f32.mxu0 %vm8985_vm2, %v11602_v9  ;;  %v11610_v34 = vld [vmem:[#allocation2 + $0x122] sm:$0xff] }
 0x471   :  { %17213 = vmatmul.mubr.msk.f32.vlgmr.msra.gmra.mxu1 %vm8985_vm2, %v22407_v8  ;;  %17352 = vmatmul.mubr.msk.f32.gmra.mxu0 %vm8985_vm2, %v11603_v7  ;;  %v11373_v8 = vld [vmem:[#allocation2 + $0x51] sm:$0xff] }
 0x472   :  { %17215 = vmatprep.mubr.msk.f32.mxu1 %vm8985_vm2, %v22419_v25  ;;  %17354 = vmatprep.mubr.msk.f32.mxu0 %vm8985_vm2, %v22551_v17  ;;  %v17523_v25 = vld [vmem:[#allocation2 + $0xd1] sm:$0xff] }
 0x473   :  { %17263 = vmatpush3.msra.mxu1 %v10933_v11 }
 0x474   :  { %17314 = vmatprep.subr.mxu1 %v11386_v57 }
 0x475   :  { %17216 = vmatmul.mubr.msk.f32.gmra.mxu1 %vm8985_vm2, %v22425_v27  ;;  %17355 = vmatmul.mubr.msk.f32.gmra.mxu0 %vm8985_vm2, %v10250_v44  ;;  %v17139_v27 = vpop.f32.mrf.mxu1 }
 0x476   :  { %17218 = vmatprep.mubr.msk.f32.mxu1 %vm8985_vm2, %v22434_v3  ;;  %17357 = vmatprep.mubr.msk.f32.mxu0 %vm8985_vm2, %v10251_v55 }
 0x477   :  { %v9977_v45 = vpop.f32.mrf.mxu1 }
 0x479   :  { %17219 = vmatmul.mubr.msk.f32.gmra.mxu1 %vm8985_vm2, %v22439_v26  ;;  %17358 = vmatmul.mubr.msk.f32.gmra.mxu0 %vm8985_vm2, %v10252_v13 }
 0x47a   :  { %17221 = vmatprep.mubr.msk.f32.mxu1 %vm8985_vm2, %v22444_v38  ;;  %17360 = vmatprep.mubr.msk.f32.mxu0 %vm8985_vm2, %v10253_v6 }
 0x47d   :  { %17222 = vmatmul.mubr.msk.f32.gmra.mxu1 %vm8985_vm2, %v22495_v23  ;;  %17361 = vmatmul.mubr.msk.f32.gmra.mxu0 %vm8985_vm2, %v10254_v40 }
 0x47e   :  { %17224 = vmatprep.mubr.msk.f32.mxu1 %vm8985_vm2, %v22449_v41  ;;  %17363 = vmatprep.mubr.msk.f32.mxu0 %vm8985_vm2, %v11610_v34 }
 0x481   :  { %17225 = vmatmul.mubr.msk.f32.gmra.mxu1 %vm8985_vm2, %v22455_v10  ;;  %17364 = vmatmul.mubr.msk.f32.gmra.mxu0 %vm8985_vm2, %v11611_v15 }
 0x482   :  { %17227 = vmatprep.mubr.msk.f32.mxu1 %vm8985_vm2, %v22463_v12  ;;  %17426 = vmatprep.mubr.msk.f32.mxu0 %vm17548_vm11, %v23816_v20 }
 0x485   :  { %17228 = vmatmul.mubr.msk.f32.gmra.mxu1 %vm8985_vm2, %v22467_v56  ;;  %v22677_v56 = vpop.f32.mrf.mxu0 }
 0x486   :  { %17230 = vmatprep.mubr.msk.f32.mxu1 %vm8985_vm2, %v22476_v49 }
 0x487   :  { %v22679_v19 = vpop.f32.mrf.mxu0 }
 0x489   :  { %17231 = vmatmul.mubr.msk.f32.gmra.mxu1 %vm8985_vm2, %v22481_v33  ;;  %v22681_v23 = vpop.f32.mrf.mxu0 }
 0x48a   :  { %17233 = vmatprep.mubr.msk.f32.mxu1 %vm8985_vm2, %v22489_v24 }
 0x48d   :  { %17234 = vmatmul.mubr.msk.f32.gmra.mxu1 %vm8985_vm2, %v11158_v14 }
 0x48e   :  { %17264 = vmatprep.mubr.msk.f32.mxu1 %vm8985_vm2, %v22500_v47 }
 0x491   :  { %17265 = vmatmul.mubr.msk.f32.vlgmr.msra.gmra.mxu1 %vm8985_vm2, %v22504_v54  ;;  %v22683_v54 = vpop.f32.mrf.mxu0 }
 0x492   :  { %17267 = vmatprep.mubr.msk.f32.mxu1 %vm8985_vm2, %v22515_v4  ;;  %17315 = vmatpush3.msra.mxu1 %v11386_v57 }
 0x493   :  { %17366 = vmatprep.subr.mxu1 %v23816_v20  ;;  %v22685_v4 = vpop.f32.mrf.mxu0 }
 0x495   :  { %17268 = vmatmul.mubr.msk.f32.gmra.mxu1 %vm8985_vm2, %v22519_v35 }
 0x496   :  { %17270 = vmatprep.mubr.msk.f32.mxu1 %vm8985_vm2, %v22527_v21 }
 0x499   :  { %17271 = vmatmul.mubr.msk.f32.gmra.mxu1 %vm8985_vm2, %v22531_v50  ;;  %v22687_v50 = vpop.f32.mrf.mxu0 }
 0x49a   :  { %17273 = vmatprep.mubr.msk.f32.mxu1 %vm8985_vm2, %v22539_v61 }
 0x49b   :  { %v22689_v61 = vpop.f32.mrf.mxu0 }
 0x49d   :  { %17274 = vmatmul.mubr.msk.f32.gmra.mxu1 %vm8985_vm2, %v11602_v9 }
 0x49e   :  { %17276 = vmatprep.mubr.msk.f32.mxu1 %vm8985_vm2, %v22547_v63 }
 0x4a1   :  { %17277 = vmatmul.mubr.msk.f32.gmra.mxu1 %vm8985_vm2, %v22551_v17  ;;  %v22691_v17 = vpop.f32.mrf.mxu0 }
 0x4a2   :  { %17279 = vmatprep.mubr.msk.f32.mxu1 %vm8985_vm2, %v10250_v44 }
 0x4a5   :  { %17280 = vmatmul.mubr.msk.f32.gmra.mxu1 %vm8985_vm2, %v10251_v55 }
 0x4a6   :  { %17282 = vmatprep.mubr.msk.f32.mxu1 %vm8985_vm2, %v10252_v13  ;;  %v22693_v13 = vpop.f32.mrf.mxu0 }
 0x4a9   :  { %17283 = vmatmul.mubr.msk.f32.gmra.mxu1 %vm8985_vm2, %v10253_v6 }
 0x4aa   :  { %17285 = vmatprep.mubr.msk.f32.mxu1 %vm8985_vm2, %v10254_v40 }
 0x4ad   :  { %17286 = vmatmul.mubr.msk.f32.gmra.mxu1 %vm8985_vm2, %v11610_v34  ;;  %v12504_v34 = vld [vmem:[%s23404_s5 + $0x18] sm:$0xff] }
 0x4ae   :  { %17316 = vmatprep.mubr.msk.f32.mxu1 %vm8985_vm2, %v11370_v58  ;;  %v22698_v58 = vpop.f32.mrf.mxu0 }
 0x4b1   :  { %17317 = vmatmul.mubr.msk.f32.vlgmr.msra.gmra.mxu1 %vm8985_vm2, %v11371_v28 }
 0x4b2   :  { %17319 = vmatprep.mubr.msk.f32.mxu1 %vm8985_vm2, %v11372_v2  ;;  %17367 = vmatpush3.msra.mxu1 %v12504_v34 }
 0x4b3   :  { %17368 = vmatprep.subr.mxu1 %v23816_v20 }
 0x4b5   :  { %17320 = vmatmul.mubr.msk.f32.gmra.mxu1 %vm8985_vm2, %v11373_v8 }
 0x4b6   :  { %17322 = vmatprep.mubr.msk.f32.mxu1 %vm8985_vm2, %v11374_v60  ;;  %v22701_v60 = vpop.f32.mrf.mxu0 }
 0x4b9   :  { %17323 = vmatmul.mubr.msk.f32.gmra.mxu1 %vm8985_vm2, %v11375_v37 }
 0x4ba   :  { %17325 = vmatprep.mubr.msk.f32.mxu1 %vm8985_vm2, %v11376_v48 }
 0x4bd   :  { %17326 = vmatmul.mubr.msk.f32.gmra.mxu1 %vm8985_vm2, %v11377_v31 }
 0x4be   :  { %17328 = vmatprep.mubr.msk.f32.mxu1 %vm8985_vm2, %v17522_v18 }
 0x4c1   :  { %17329 = vmatmul.mubr.msk.f32.gmra.mxu1 %vm8985_vm2, %v17523_v25 }
 0x4c2   :  { %17331 = vmatprep.mubr.msk.f32.mxu1 %vm8985_vm2, %v22241_v39  ;;  %v17142_v39 = vpop.f32.mrf.mxu1 }
 0x4c4   :  { %v9987_v36 = vpop.f32.mrf.mxu1 }
 0x4c5   :  { %17332 = vmatmul.mubr.msk.f32.gmra.mxu1 %vm8985_vm2, %v22291_v42 }
 0x4c6   :  { %17334 = vmatprep.mubr.msk.f32.mxu1 %vm8985_vm2, %v22342_v32  ;;  %v17145_v62 = vpop.f32.mrf.mxu1 }
 0x4c8   :  { %v22665_v1 = vpop.f32.mrf.mxu1 }
 0x4c9   :  { %17335 = vmatmul.mubr.msk.f32.gmra.mxu1 %vm8985_vm2, %v22386_v46 }
 0x4ca   :  { %17337 = vmatprep.mubr.msk.f32.mxu1 %vm8985_vm2, %v22451_v16  ;;  %v22667_v42 = vpop.f32.mrf.mxu1 }
 0x4cc   :  { %v22669_v32 = vpop.f32.mrf.mxu1 }
 0x4cd   :  { %17338 = vmatmul.mubr.msk.f32.gmra.mxu1 %vm8985_vm2, %v11385_v22 }
 0x4ce   :  { %v22671_v3 = vpop.f32.mrf.mxu1  ;;  %17370 = vmatprep.mubr.msk.f32.mxu1 %vm17548_vm11, %v23816_v20 }
 0x4d0   :  { %v22673_v0 = vpop.f32.mrf.mxu1 }
 0x4d2   :  { %v22675_v46 = vpop.f32.mrf.mxu1 }
 0x4d4   :  { %v10027_v26 = vpop.f32.mrf.mxu1 }
 0x4ed   :  { %v17157_v53 = vpop.f32.mrf.mxu1 }
 0x4ef   :  { %v10037_v38 = vpop.f32.mrf.mxu1 }
 0x4f1   :  { %v17162_v41 = vpop.f32.mrf.mxu1 }
 0x4f2   :  { %v10166_v6 = vadd.f32 %v17162_v41, %v17136_v52 }
 0x4f3   :  { %v10160_v16 = vpop.f32.mrf.mxu1 }
 0x4f4   :  { %v10161_v7 = vadd.f32 %v10160_v16, %v9967_v51  ;;  %v22703_v51 = vpop.f32.mrf.mxu0 }
 0x4f5   :  { %v17165_v10 = vpop.f32.mrf.mxu1 }
 0x4f6   :  { %v10176_v28 = vadd.f32 %v17165_v10, %v17139_v27 }
 0x4f7   :  { %v10170_v12 = vpop.f32.mrf.mxu1 }
 0x4f8   :  { %v10171_v37 = vadd.f32 %v10170_v12, %v9977_v45 }
 0x4f9   :  { %v17168_v49 = vpop.f32.mrf.mxu1 }
 0x4fa   :  { %v10186_v18 = vadd.f32 %v17168_v49, %v17142_v39 }
 0x4fb   :  { %v10180_v33 = vpop.f32.mrf.mxu1 }
 0x4fc   :  { %v10181_v22 = vadd.f32 %v10180_v33, %v9987_v36 }
 0x4fd   :  { %v17171_v24 = vpop.f32.mrf.mxu1 }
 0x4fe   :  { %v10196_v27 = vadd.f32 %v17171_v24, %v17145_v62 }
 0x4ff   :  { %v10190_v30 = vpop.f32.mrf.mxu1 }
 0x500   :  { %v10191_v10 = vadd.f32 %v10190_v30, %v22665_v1 }
 0x501   :  { %v17174_v47 = vpop.f32.mrf.mxu1 }
 0x502   :  { %v10206_v39 = vadd.f32 %v17174_v47, %v22667_v42 }
 0x503   :  { %v10200_v11 = vpop.f32.mrf.mxu1 }
 0x504   :  { %v10201_v36 = vadd.f32 %v10200_v11, %v22669_v32 }
 0x505   :  { %v17177_v35 = vpop.f32.mrf.mxu1 }
 0x506   :  { %v10216_v62 = vadd.f32 %v17177_v35, %v22671_v3 }
 0x507   :  { %v10210_v21 = vpop.f32.mrf.mxu1 }
 0x509   :  { %v17180_v29 = vpop.f32.mrf.mxu1 }
 0x50a   :  { %v10226_v47 = vadd.f32 %v17180_v29, %v22675_v46  ;;  %v12503_v29 = vld [vmem:[%s23404_s5 + $0x10] sm:$0xff] }
 0x50b   :  { %v10220_v14 = vpop.f32.mrf.mxu1  ;;  %17369 = vmatpush3.msra.mxu1 %v12503_v29 }
 0x50c   :  { %v10221_v59 = vadd.f32 %v10220_v14, %v10027_v26  ;;  %17373 = vmatprep.subr.mxu1 %v23816_v20 }
 0x50d   :  { %v17183_v63 = vpop.f32.mrf.mxu1 }
 0x50e   :  { %v10236_v44 = vadd.f32 %v17183_v63, %v17157_v53 }
 0x50f   :  { %v10230_v55 = vpop.f32.mrf.mxu1 }
 0x510   :  { %v10231_v40 = vadd.f32 %v10230_v55, %v10037_v38  ;;  %v22705_v38 = vpop.f32.mrf.mxu0 }
 0x511   :  { %v17188_v9 = vpop.f32.mrf.mxu1 }
 0x512   :  { %v10450_v57 = vadd.f32 %v17188_v9, %v10166_v6  ;;  %v22708_v45 = vpop.f32.mrf.mxu0  ;;  %v10211_v9 = vadd.f32 %v10210_v21, %v22673_v0 }
 0x513   :  { %v10370_v15 = vpop.f32.mrf.mxu1 }
 0x514   :  { %v10449_v2 = vadd.f32 %v10370_v15, %v10161_v7  ;;  %v22711_v55 = vpop.f32.mrf.mxu0 }
 0x515   :  { %v17191_v8 = vpop.f32.mrf.mxu1 }
 0x516   :  { %v10452_v48 = vadd.f32 %v17191_v8, %v10176_v28  ;;  %v22719_v30 = vpop.f32.mrf.mxu0 }
 0x517   :  { %v10380_v31 = vpop.f32.mrf.mxu1 }
 0x518   :  { %v10451_v25 = vadd.f32 %v10380_v31, %v10171_v37  ;;  %v22723_v28 = vpop.f32.mrf.mxu0 }
 0x519   :  { %v17194_v52 = vpop.f32.mrf.mxu1 }
 0x51a   :  { %v10454_v26 = vadd.f32 %v17194_v52, %v10186_v18  ;;  %v22729_v35 = vpop.f32.mrf.mxu0 }
 0x51b   :  { %v10390_v53 = vpop.f32.mrf.mxu1 }
 0x51c   :  { %v10453_v41 = vadd.f32 %v10390_v53, %v10181_v22  ;;  %v17295_v21 = vpop.f32.mrf.mxu0 }
 0x51d   :  { %v17197_v16 = vpop.f32.mrf.mxu1 }
 0x51e   :  { %v10456_v14 = vadd.f32 %v17197_v16, %v10196_v27  ;;  %v22739_v53 = vpop.f32.mrf.mxu0 }
 0x51f   :  { %v10400_v63 = vpop.f32.mrf.mxu1 }
 0x520   :  { %v10455_v12 = vadd.f32 %v10400_v63, %v10191_v10 }
 0x521   :  { %v17200_v49 = vpop.f32.mrf.mxu1 }
 0x522   :  { %v22714_v33 = vadd.f32 %v17200_v49, %v10206_v39 }
 0x523   :  { %v10410_v6 = vpop.f32.mrf.mxu1 }
 0x524   :  { %v22717_v24 = vadd.f32 %v10410_v6, %v10201_v36 }
 0x525   :  { %v17203_v1 = vpop.f32.mrf.mxu1 }
 0x526   :  { %v10460_v7 = vadd.f32 %v17203_v1, %v10216_v62 }
 0x527   :  { %v10420_v42 = vpop.f32.mrf.mxu1 }
 0x528   :  { %v10459_v34 = vadd.f32 %v10420_v42, %v10211_v9 }
 0x529   :  { %v17206_v15 = vpop.f32.mrf.mxu1 }
 0x52a   :  { %v22725_v32 = vadd.f32 %v17206_v15, %v10226_v47 }
 0x52b   :  { %v10430_v11 = vpop.f32.mrf.mxu1 }
 0x52c   :  { %v22727_v8 = vadd.f32 %v10430_v11, %v10221_v59 }
 0x52d   :  { %v17209_v3 = vpop.f32.mrf.mxu1 }
 0x52e   :  { %v10464_v37 = vadd.f32 %v17209_v3, %v10236_v44 }
 0x52f   :  { %v10440_v31 = vpop.f32.mrf.mxu1 }
 0x530   :  { %v10463_v18 = vadd.f32 %v10440_v31, %v10231_v40 }
 0x531   :  { %v17214_v0 = vpop.f32.mrf.mxu1 }
 0x532   :  { %v22731_v52 = vadd.f32 %v17214_v0, %v10450_v57  ;;  %v22743_v57 = vpop.f32.mrf.mxu0 }
 0x533   :  { %v10596_v46 = vpop.f32.mrf.mxu1 }
 0x534   :  { %v22736_v22 = vadd.f32 %v10596_v46, %v10449_v2 }
 0x535   :  { %v17217_v59 = vpop.f32.mrf.mxu1 }
 0x536   :  { %v10678_v44 = vadd.f32 %v17217_v59, %v10452_v48  ;;  %v22753_v48 = vpop.f32.mrf.mxu0 }
 0x537   :  { %v10606_v27 = vpop.f32.mrf.mxu1 }
 0x538   :  { %v22741_v40 = vadd.f32 %v10606_v27, %v10451_v25  ;;  %v22761_v62 = vpop.f32.mrf.mxu0 }
 0x539   :  { %v17220_v16 = vpop.f32.mrf.mxu1 }
 0x53a   :  { %v22745_v10 = vadd.f32 %v17220_v16, %v10454_v26  ;;  %v13189_v26 = vld [vmem:[%s23404_s5 + $0x88] sm:$0xff] }
 0x53b   :  { %v10616_v63 = vpop.f32.mrf.mxu1  ;;  %17423 = vmatpush3.msra.mxu0 %v13189_v26 }
 0x53c   :  { %v22751_v2 = vadd.f32 %v10616_v63, %v10453_v41  ;;  %17424 = vmatprep.subr.mxu0 %v23816_v20  ;;  %v13188_v41 = vld [vmem:[%s23404_s5 + $0x80] sm:$0xff] }
 0x53d   :  { %v17223_v39 = vpop.f32.mrf.mxu1  ;;  %17425 = vmatpush3.msra.mxu0 %v13188_v41 }
 0x53e   :  { %v22755_v25 = vadd.f32 %v17223_v39, %v10456_v14  ;;  %v22766_v14 = vpop.f32.mrf.mxu0  ;;  %17436 = vmatprep.subr.mxu0 %v23816_v20  ;;  %v10904_v39 = vadd.f32 %v22681_v23, %v10678_v44 }
 0x53f   :  { %v10626_v49 = vpop.f32.mrf.mxu1 }
 0x540   :  { %v10681_v36 = vadd.f32 %v10626_v49, %v10455_v12  ;;  %v22769_v11 = vpop.f32.mrf.mxu0 }
 0x541   :  { %v17226_v6 = vpop.f32.mrf.mxu1  ;;  %23817 = vst [vmem:[#allocation41_spill] sm:$0xff] %v22769_v11  ;;  %v10906_v11 = vadd.f32 %v22685_v4, %v22745_v10 }
 0x542   :  { %v22771_v0 = vpop.f32.mrf.mxu0 }
 0x543   :  { %v10636_v1 = vpop.f32.mrf.mxu1  ;;  %23818 = vst [vmem:[#allocation59_spill] sm:$0xff] %v22771_v0 }
 0x544   :  { %v22773_v16 = vpop.f32.mrf.mxu0 }
 0x545   :  { %v17229_v9 = vpop.f32.mrf.mxu1  ;;  %23819 = vst [vmem:[#allocation40_spill] sm:$0xff] %v22773_v16  ;;  %v10901_v16 = vadd.f32 %v22679_v19, %v22736_v22 }
 0x546   :  { %v10686_v42 = vadd.f32 %v17229_v9, %v10460_v7  ;;  %v22779_v26 = vpop.f32.mrf.mxu0 }
 0x547   :  { %v10646_v47 = vpop.f32.mrf.mxu1  ;;  %23820 = vst [vmem:[#allocation61_spill] sm:$0xff] %v22779_v26  ;;  %v10683_v26 = vadd.f32 %v10636_v1, %v22717_v24  ;;  %v10905_v24 = vadd.f32 %v22687_v50, %v22751_v2 }
 0x548   :  { %v10685_v15 = vadd.f32 %v10646_v47, %v10459_v34 }
 0x549   :  { %v17232_v12 = vpop.f32.mrf.mxu1  ;;  %v10909_v4 = vadd.f32 %v22698_v58, %v10683_v26 }
 0x54a   :  { %v10911_v50 = vadd.f32 %v22703_v51, %v10685_v15 }
 0x54b   :  { %v10656_v3 = vpop.f32.mrf.mxu1 }
 0x54c   :  { %v10687_v0 = vadd.f32 %v10656_v3, %v22727_v8 }
 0x54d   :  { %v17235_v31 = vpop.f32.mrf.mxu1 }
 0x54e   :  { %v10690_v46 = vadd.f32 %v17235_v31, %v10464_v37  ;;  %v22783_v37 = vpop.f32.mrf.mxu0 }
 0x54f   :  { %v10666_v29 = vpop.f32.mrf.mxu1  ;;  %23821 = vst [vmem:[#allocation42_spill] sm:$0xff] %v22783_v37 }
 0x550   :  { %v10689_v59 = vadd.f32 %v10666_v29, %v10463_v18  ;;  %v22785_v29 = vpop.f32.mrf.mxu0 }
 0x551   :  { %v17266_v27 = vpop.f32.mrf.mxu1  ;;  %23822 = vst [vmem:[#allocation62_spill] sm:$0xff] %v22785_v29 }
 0x552   :  { %v22776_v63 = vadd.f32 %v22719_v30, %v10689_v59  ;;  %v22787_v59 = vpop.f32.mrf.mxu0 }
 0x553   :  { %v11048_v7 = vpop.f32.mrf.mxu1  ;;  %23823 = vst [vmem:[#allocation44_spill] sm:$0xff] %v22787_v59  ;;  %v10688_v59 = vadd.f32 %v17232_v12, %v22725_v32  ;;  %v10907_v32 = vadd.f32 %v22691_v17, %v10681_v36  ;;  %v10912_v12 = vadd.f32 %v22701_v60, %v10686_v42  ;;  %v22820_v60 = vld [vmem:[%s23403_s4] ss:$0 sm:$0xff] }
 0x554   :  { %v22789_v44 = vpop.f32.mrf.mxu0 }
 0x555   :  { %v17269_v34 = vpop.f32.mrf.mxu1  ;;  %23824 = vst [vmem:[#allocation63_spill] sm:$0xff] %v22789_v44  ;;  %v10903_v44 = vadd.f32 %v22683_v54, %v22741_v40  ;;  %v10914_v2 = vadd.f32 %v22705_v38, %v10688_v59 }
 0x556   :  { %v11130_v49 = vadd.f32 %v17269_v34, %v10904_v39  ;;  %v17344_v34 = vpop.f32.mrf.mxu0 }
 0x557   :  { %v11058_v41 = vpop.f32.mrf.mxu1 }
 0x558   :  { %v22781_v9 = vadd.f32 %v17295_v21, %v11130_v49  ;;  %v10902_v21 = vadd.f32 %v22677_v56, %v22731_v52  ;;  %v10684_v49 = vadd.f32 %v17226_v6, %v22714_v33  ;;  %v11727_v52 = vpop.f32.mrf.mxu0  ;;  %v11127_v33 = vadd.f32 %v11048_v7, %v10901_v16 }
 0x559   :  { %v17272_v47 = vpop.f32.mrf.mxu1  ;;  %v10908_v6 = vadd.f32 %v22689_v61, %v22755_v25  ;;  %v11129_v19 = vadd.f32 %v11058_v41, %v10903_v44  ;;  %v10913_v61 = vadd.f32 %v22708_v45, %v10687_v0 }
 0x55a   :  { %v11128_v29 = vadd.f32 %v17266_v27, %v10902_v21  ;;  %v11132_v22 = vadd.f32 %v17272_v47, %v10906_v11  ;;  %v10910_v8 = vadd.f32 %v22693_v13, %v10684_v49  ;;  %v17347_v11 = vpop.f32.mrf.mxu0  ;;  %v10916_v13 = vadd.f32 %v22711_v55, %v10690_v46  ;;  %v23830_v21 = vld [vmem:[#allocation62_spill] sm:$0xff] }
 0x55b   :  { %v11068_v18 = vpop.f32.mrf.mxu1  ;;  %v11354_v3 = vadd.f32 %v22729_v35, %v11127_v33  ;;  %v11356_v38 = vadd.f32 %v22739_v53, %v11129_v19  ;;  %v23831_v33 = vld [vmem:[#allocation19_spill] sm:$0xff] }
 0x55c   :  { %v11131_v54 = vadd.f32 %v11068_v18, %v10905_v24  ;;  %v11355_v10 = vadd.f32 %v22723_v28, %v11128_v29  ;;  %v11359_v45 = vadd.f32 %v22743_v57, %v11132_v22  ;;  %v11737_v16 = vpop.f32.mrf.mxu0 }
 0x55d   :  { %v17275_v31 = vpop.f32.mrf.mxu1 }
 0x55e   :  { %v11134_v40 = vadd.f32 %v17275_v31, %v10908_v6 }
 0x55f   :  { %v11078_v20 = vpop.f32.mrf.mxu1 }
 0x560   :  { %v11133_v17 = vadd.f32 %v11078_v20, %v10907_v32  ;;  %v22825_v20 = vadd.f32 %v22753_v48, %v11131_v54  ;;  %v22828_v55 = vadd.f32 %v22761_v62, %v11134_v40  ;;  %v23825_v62 = vld [vmem:[#allocation41_spill] sm:$0xff]  ;;  %v23833_v40 = vld [vmem:[#allocation63_spill] sm:$0xff] }
 0x561   :  { %v17278_v30 = vpop.f32.mrf.mxu1 }
 0x562   :  { %v11136_v27 = vadd.f32 %v17278_v30, %v10910_v8  ;;  %v22833_v57 = vadd.f32 %v22766_v14, %v11133_v17  ;;  %v23828_v14 = vld [vmem:[#allocation61_spill] sm:$0xff] }
 0x563   :  { %v11088_v43 = vpop.f32.mrf.mxu1 }
 0x564   :  { %v11135_v58 = vadd.f32 %v11088_v43, %v10909_v4  ;;  %v22837_v18 = vadd.f32 %v23825_v62, %v11136_v27 }
 0x565   :  { %v17281_v23 = vpop.f32.mrf.mxu1 }
 0x566   :  { %v11138_v35 = vadd.f32 %v17281_v23, %v10912_v12 }
 0x567   :  { %v11098_v5 = vpop.f32.mrf.mxu1 }
 0x568   :  { %v11137_v43 = vadd.f32 %v11098_v5, %v10911_v50  ;;  %v23826_v5 = vld [vmem:[#allocation59_spill] sm:$0xff] }
 0x569   :  { %v17284_v39 = vpop.f32.mrf.mxu1  ;;  %v22840_v31 = vadd.f32 %v23826_v5, %v11135_v58 }
 0x56a   :  { %v11140_v15 = vadd.f32 %v17284_v39, %v10914_v2  ;;  %v22847_v39 = vadd.f32 %v23828_v14, %v11137_v43 }
 0x56b   :  { %v11108_v37 = vpop.f32.mrf.mxu1 }
 0x56c   :  { %v11139_v0 = vadd.f32 %v11108_v37, %v10913_v61 }
 0x56d   :  { %v17287_v56 = vpop.f32.mrf.mxu1 }
 0x56e   :  { %v11142_v41 = vadd.f32 %v17287_v56, %v10916_v13  ;;  %v22853_v49 = vadd.f32 %v23830_v21, %v11139_v0  ;;  %v17350_v56 = vpop.f32.mrf.mxu0 }
 0x56f   :  { %v11118_v1 = vpop.f32.mrf.mxu1 }
 0x570   :  { %v11141_v48 = vadd.f32 %v11118_v1, %v22776_v63  ;;  %v23829_v63 = vld [vmem:[#allocation42_spill] sm:$0xff]  ;;  %v23832_v1 = vld [vmem:[#allocation44_spill] sm:$0xff] }
 0x571   :  { %v17318_v25 = vpop.f32.mrf.mxu1  ;;  %v22858_v54 = vadd.f32 %v23832_v1, %v11142_v41 }
 0x572   :  { %v11581_v36 = vadd.f32 %v17318_v25, %v11355_v10  ;;  %v22861_v4 = vadd.f32 %v23833_v40, %v11141_v48 }
 0x573   :  { %v11501_v51 = vpop.f32.mrf.mxu1 }
 0x574   :  { %v11807_v28 = vadd.f32 %v17344_v34, %v11581_v36  ;;  %v11580_v42 = vadd.f32 %v11501_v51, %v11354_v3  ;;  %v22850_v34 = vadd.f32 %v23829_v63, %v11140_v15  ;;  %v11747_v36 = vpop.f32.mrf.mxu0 }
 0x575   :  { %v17321_v46 = vpop.f32.mrf.mxu1 }
 0x576   :  { %v11830_v7 = vadd.f32 %v22820_v60, %v11807_v28  ;;  %v11806_v26 = vadd.f32 %v11727_v52, %v11580_v42  ;;  %v11583_v53 = vadd.f32 %v17321_v46, %v22781_v9  ;;  %v23827_v9 = vld [vmem:[#allocation40_spill] sm:$0xff]  ;;  %v17353_v41 = vpop.f32.mrf.mxu0 }
 0x577   :  { %v11511_v47 = vpop.f32.mrf.mxu1  ;;  %v22844_v44 = vadd.f32 %v23827_v9, %v11138_v35 }
 0x578   :  { %v11846_v37 = vmax.f32 %v11830_v7, 0.0  ;;  %v11829_v29 = vadd.f32 %v22820_v60, %v11806_v26  ;;  %v11809_v30 = vadd.f32 %v17347_v11, %v11583_v53  ;;  %v11582_v59 = vadd.f32 %v11511_v47, %v11356_v38 }
 0x579   :  { %v17324_v23 = vpop.f32.mrf.mxu1 }
 0x57a   :  { %v11894_v52 = vcombine.high %v11846_v37, %v11846_v37  ;;  %v11901_v24 = vrot.slane %v11846_v37, %v23831_v33  ;;  %v11845_v6 = vmax.f32 %v11829_v29, 0.0  ;;  %v11832_v19 = vadd.f32 %v22820_v60, %v11809_v30 }
 0x57b   :  { %v11808_v22 = vadd.f32 %v11737_v16, %v11582_v59  ;;  %v11585_v32 = vadd.f32 %v17324_v23, %v11359_v45  ;;  %v11521_v8 = vpop.f32.mrf.mxu1 }
 0x57c   :  { %v11908_v10 = vrot.slane %v11894_v52, %v23831_v33  ;;  %v11909_v12 = vcombine.high %v11901_v24, %v11901_v24  ;;  %v15369_v50 = vrot.slane %v11901_v24, 9  ;;  %v11877_v2 = vcombine.high %v11845_v6, %v11845_v6 }
 0x57d   :  { %v11884_v61 = vrot.slane %v11845_v6, %v23831_v33  ;;  %v11848_v25 = vmax.f32 %v11832_v19, 0.0  ;;  %v11831_v11 = vadd.f32 %v22820_v60, %v11808_v22  ;;  %v11811_v17 = vadd.f32 %v17350_v56, %v11585_v32  ;;  %v17327_v13 = vpop.f32.mrf.mxu1  ;;  %v11757_v19 = vpop.f32.mrf.mxu0 }
 0x57e   :  { %v11910_v3 = vcombine.high %v11908_v10, %v11908_v10  ;;  %v15370_v27 = vrot.slane %v11909_v12, 9  ;;  %v15371_v58 = vrot.slane %v11908_v10, 9  ;;  %v22866_v51 = vmax.f32 %v11901_v24, %v15369_v50 }
 0x57f   :  { %v11891_v38 = vrot.slane %v11877_v2, %v23831_v33  ;;  %v11892_v45 = vcombine.high %v11884_v61, %v11884_v61  ;;  %v15365_v28 = vrot.slane %v11884_v61, 9  ;;  %v11928_v42 = vcombine.high %v11848_v25, %v11848_v25  ;;  %v11531_v46 = vpop.f32.mrf.mxu1 }
 0x580   :  { %v15372_v35 = vrot.slane %v11910_v3, 9  ;;  %v22869_v43 = vmax.f32 %v11909_v12, %v15370_v27  ;;  %v22871_v15 = vmax.f32 %v11908_v10, %v15371_v58  ;;  %v11935_v0 = vrot.slane %v11848_v25, %v23831_v33 }
 0x581   :  { %v11893_v16 = vcombine.high %v11891_v38, %v11891_v38  ;;  %v15366_v7 = vrot.slane %v11892_v45, 9  ;;  %v15367_v26 = vrot.slane %v11891_v38, 9  ;;  %v22874_v53 = vmax.f32 %v11884_v61, %v15365_v28  ;;  %v17330_v21 = vpop.f32.mrf.mxu1 }
 0x582   :  { %v22876_v48 = vmax.f32 %v11910_v3, %v15372_v35  ;;  %v11942_v47 = vrot.slane %v11928_v42, %v23831_v33  ;;  %v11943_v62 = vcombine.high %v11935_v0, %v11935_v0  ;;  %v15377_v5 = vrot.slane %v11935_v0, 9 }
 0x583   :  { %v15368_v37 = vrot.slane %v11893_v16, 9  ;;  %v22879_v29 = vmax.f32 %v11892_v45, %v15366_v7  ;;  %v22881_v30 = vmax.f32 %v11891_v38, %v15367_v26  ;;  %v11847_v24 = vmax.f32 %v11831_v11, 0.0  ;;  %v11541_v3 = vpop.f32.mrf.mxu1 }
 0x584   :  { %v11944_v23 = vcombine.high %v11942_v47, %v11942_v47  ;;  %v15378_v9 = vrot.slane %v11943_v62, 9  ;;  %v15379_v14 = vrot.slane %v11942_v47, 9  ;;  %v22885_v63 = vmax.f32 %v11935_v0, %v15377_v5 }
 0x585   :  { %v22887_v56 = vmax.f32 %v11893_v16, %v15368_v37  ;;  %v11834_v6 = vadd.f32 %v22820_v60, %v11811_v17  ;;  %v11584_v40 = vadd.f32 %v11521_v8, %v22825_v20  ;;  %v11911_v10 = vcombine.high %v11847_v24, %v11847_v24  ;;  %v17356_v20 = vpop.f32.mrf.mxu0  ;;  %v22909_v7 = vpop.f32.mrf.mxu1 }
 0x586   :  { %v15380_v22 = vrot.slane %v11944_v23, 9  ;;  %v22892_v32 = vmax.f32 %v11943_v62, %v15378_v9  ;;  %v22894_v1 = vmax.f32 %v11942_v47, %v15379_v14  ;;  %v11918_v12 = vrot.slane %v11847_v24, %v23831_v33 }
 0x587   :  { %v11850_v50 = vmax.f32 %v11834_v6, 0.0  ;;  %v11587_v2 = vadd.f32 %v17327_v13, %v22828_v55  ;;  %v11810_v25 = vadd.f32 %v11747_v36, %v11584_v40  ;;  %v11586_v11 = vadd.f32 %v11531_v46, %v22833_v57  ;;  %v22917_v5 = vpop.f32.mrf.mxu0 }
 0x588   :  { %v22899_v61 = vmax.f32 %v11944_v23, %v15380_v22  ;;  %v11589_v17 = vadd.f32 %v17330_v21, %v22837_v18  ;;  %v11925_v27 = vrot.slane %v11911_v10, %v23831_v33  ;;  %v11926_v58 = vcombine.high %v11918_v12, %v11918_v12 }
 0x589   :  { %v15373_v38 = vrot.slane %v11918_v12, 9  ;;  %v11962_v45 = vcombine.high %v11850_v50, %v11850_v50  ;;  %v11969_v8 = vrot.slane %v11850_v50, %v23831_v33  ;;  %v11833_v28 = vadd.f32 %v22820_v60, %v11810_v25  ;;  %v11551_v50 = vpop.f32.mrf.mxu1 }
 0x58a   :  { %23834 = vst [vmem:[#allocation46_spill] sm:$0xff] %v22899_v61  ;;  %v11813_v42 = vadd.f32 %v17353_v41, %v11587_v2  ;;  %v11812_v55 = vadd.f32 %v11757_v19, %v11586_v11  ;;  %v11927_v13 = vcombine.high %v11925_v27, %v11925_v27  ;;  %v15374_v35 = vrot.slane %v11926_v58, 9 }
 0x58b   :  { %v15375_v36 = vrot.slane %v11925_v27, 9  ;;  %v22906_v0 = vmax.f32 %v11918_v12, %v15373_v38  ;;  %v11976_v57 = vrot.slane %v11962_v45, %v23831_v33  ;;  %v11977_v18 = vcombine.high %v11969_v8, %v11969_v8 }
 0x58c   :  { %v15385_v46 = vrot.slane %v11969_v8, 9  ;;  %v11849_v16 = vmax.f32 %v11833_v28, 0.0  ;;  %v15376_v26 = vrot.slane %v11927_v13, 9  ;;  %v22911_v47 = vmax.f32 %v11926_v58, %v15374_v35  ;;  %v17359_v58 = vpop.f32.mrf.mxu0 }
 0x58d   :  { %v22913_v62 = vmax.f32 %v11925_v27, %v15375_v36  ;;  %v11978_v37 = vcombine.high %v11976_v57, %v11976_v57  ;;  %v15386_v23 = vrot.slane %v11977_v18, 9  ;;  %v15387_v9 = vrot.slane %v11976_v57, 9 }
 0x58e   :  { %v12425_v14 = vmax.f32 %v11969_v8, %v15385_v46  ;;  %v22919_v21 = vmax.f32 %v11927_v13, %v15376_v26  ;;  %v11945_v24 = vcombine.high %v11849_v16, %v11849_v16  ;;  %v11952_v6 = vrot.slane %v11849_v16, %v23831_v33  ;;  %v17336_v16 = vpop.f32.mrf.mxu1 }
 0x58f   :  { %v11836_v19 = vadd.f32 %v22820_v60, %v11813_v42  ;;  %v15388_v22 = vrot.slane %v11978_v37, 9  ;;  %v22923_v40 = vmax.f32 %v11977_v18, %v15386_v23  ;;  %v22925_v10 = vmax.f32 %v11976_v57, %v15387_v9 }
 0x590   :  { %23835 = vst [vmem:[#allocation65_spill] sm:$0xff] %v22919_v21  ;;  %v11835_v12 = vadd.f32 %v22820_v60, %v11812_v55  ;;  %v11959_v2 = vrot.slane %v11945_v24, %v23831_v33  ;;  %v11960_v25 = vcombine.high %v11952_v6, %v11952_v6  ;;  %v15381_v11 = vrot.slane %v11952_v6, 9 }
 0x591   :  { %23836 = vst [vmem:[#allocation47_spill] sm:$0xff] %v22923_v40  ;;  %v11852_v27 = vmax.f32 %v11836_v19, 0.0  ;;  %v22929_v38 = vmax.f32 %v11978_v37, %v15388_v22  ;;  %v11815_v8 = vadd.f32 %v17356_v20, %v11589_v17  ;;  %v11588_v28 = vadd.f32 %v11541_v3, %v22840_v31  ;;  %v11777_v17 = vpop.f32.mrf.mxu0  ;;  %v23840_v19 = vld [vmem:[#allocation7_spill] sm:$0xff] }
 0x592   :  { %v11851_v45 = vmax.f32 %v11835_v12, 0.0  ;;  %v11961_v42 = vcombine.high %v11959_v2, %v11959_v2  ;;  %v15382_v13 = vrot.slane %v11960_v25, 9  ;;  %v15383_v35 = vrot.slane %v11959_v2, 9 }
 0x593   :  { %23837 = vst [vmem:[#allocation67_spill] sm:$0xff] %v22929_v38  ;;  %v12421_v36 = vmax.f32 %v11952_v6, %v15381_v11  ;;  %v11996_v57 = vcombine.high %v11852_v27, %v11852_v27  ;;  %v12003_v55 = vrot.slane %v11852_v27, %v23831_v33  ;;  %v17362_v41 = vpop.f32.mrf.mxu0 }
 0x594   :  { %v11979_v18 = vcombine.high %v11851_v45, %v11851_v45  ;;  %v11986_v46 = vrot.slane %v11851_v45, %v23831_v33  ;;  %v15384_v26 = vrot.slane %v11961_v42, 9  ;;  %v22934_v23 = vmax.f32 %v11960_v25, %v15382_v13 }
 0x595   :  { %v22936_v37 = vmax.f32 %v11959_v2, %v15383_v35  ;;  %v12477_v9 = vmax.f32 %v12421_v36, %v12425_v14  ;;  %v12010_v31 = vrot.slane %v11996_v57, %v23831_v33  ;;  %v12011_v3 = vcombine.high %v12003_v55, %v12003_v55  ;;  %v11561_v14 = vpop.f32.mrf.mxu1 }
 0x596   :  { %23838 = vst [vmem:[#allocation68_spill] sm:$0xff] %v22934_v23  ;;  %v15393_v20 = vrot.slane %v12003_v55, 9  ;;  %v11993_v24 = vrot.slane %v11979_v18, %v23831_v33  ;;  %v22940_v6 = vmax.f32 %v11961_v42, %v15384_v26  ;;  %v11994_v12 = vcombine.high %v11986_v46, %v11986_v46 }
 0x597   :  { %v22943_v22 = vrot.slane %v12477_v9, %v23840_v19  ;;  %v15389_v11 = vrot.slane %v11986_v46, 9  ;;  %v12012_v27 = vcombine.high %v12010_v31, %v12010_v31  ;;  %v15394_v25 = vrot.slane %v12011_v3, 9 }
 0x598   :  { %23839 = vst [vmem:[#allocation48_spill] sm:$0xff] %v22940_v6  ;;  %v15395_v45 = vrot.slane %v12010_v31, 9  ;;  %v22945_v2 = vmax.f32 %v12003_v55, %v15393_v20  ;;  %v11995_v13 = vcombine.high %v11993_v24, %v11993_v24  ;;  %v15390_v35 = vrot.slane %v11994_v12, 9 }
 0x599   :  { %v15391_v36 = vrot.slane %v11993_v24, 9  ;;  %v22947_v57 = vmax.f32 %v11986_v46, %v15389_v11  ;;  %v15396_v18 = vrot.slane %v12012_v27, 9  ;;  %v22949_v42 = vmax.f32 %v12011_v3, %v15394_v25 }
 0x59a   :  { %v22951_v26 = vmax.f32 %v12010_v31, %v15395_v45  ;;  %v11838_v9 = vadd.f32 %v22820_v60, %v11815_v8  ;;  %v15392_v59 = vrot.slane %v11995_v13, 9  ;;  %v22954_v52 = vmax.f32 %v11994_v12, %v15390_v35  ;;  %v17339_v31 = vpop.f32.mrf.mxu1  ;;  %v11787_v45 = vpop.f32.mrf.mxu0 }
 0x59b   :  { %23841 = vst [vmem:[#allocation70_spill] sm:$0xff] %v22949_v42  ;;  %v22956_v6 = vmax.f32 %v11993_v24, %v15391_v36  ;;  %v22960_v20 = vmax.f32 %v12012_v27, %v15396_v18  ;;  %v11814_v11 = vadd.f32 %v22917_v5, %v11588_v28  ;;  %v11591_v3 = vadd.f32 %v22909_v7, %v22844_v44 }
 0x59c   :  { %23842 = vst [vmem:[#allocation71_spill] sm:$0xff] %v22954_v52  ;;  %v11854_v46 = vmax.f32 %v11838_v9, 0.0  ;;  %v22965_v25 = vmax.f32 %v11995_v13, %v15392_v59  ;;  %v11590_v8 = vadd.f32 %v11551_v50, %v22847_v39  ;;  %v11593_v12 = vadd.f32 %v17336_v16, %v22850_v34 }
 0x59d   :  { %23843 = vst [vmem:[#allocation49_spill] sm:$0xff] %v22960_v20  ;;  %v11592_v24 = vadd.f32 %v11561_v14, %v22853_v49  ;;  %v11837_v36 = vadd.f32 %v22820_v60, %v11814_v11  ;;  %v11817_v18 = vadd.f32 %v17359_v58, %v11591_v3  ;;  %v22973_v44 = vadd.f32 %v17339_v31, %v22858_v54 }
 0x59e   :  { %23844 = vst [vmem:[#allocation73_spill] sm:$0xff] %v22965_v25  ;;  %v12030_v35 = vcombine.high %v11854_v46, %v11854_v46  ;;  %v12037_v27 = vrot.slane %v11854_v46, %v23831_v33  ;;  %v11816_v5 = vadd.f32 %v11777_v17, %v11590_v8  ;;  %v11819_v28 = vadd.f32 %v17362_v41, %v11593_v12 }
 0x59f   :  { %v11818_v9 = vadd.f32 %v11787_v45, %v11592_v24  ;;  %v11853_v34 = vmax.f32 %v11837_v36, 0.0  ;;  %v11840_v49 = vadd.f32 %v22820_v60, %v11817_v18 }
 0x5a0   :  { %v12044_v59 = vrot.slane %v12030_v35, %v23831_v33  ;;  %v12045_v39 = vcombine.high %v12037_v27, %v12037_v27  ;;  %v15401_v7 = vrot.slane %v12037_v27, 9  ;;  %v11839_v50 = vadd.f32 %v22820_v60, %v11816_v5 }
 0x5a1   :  { %v11842_v16 = vadd.f32 %v22820_v60, %v11819_v28  ;;  %v11841_v14 = vadd.f32 %v22820_v60, %v11818_v9  ;;  %v12013_v54 = vcombine.high %v11853_v34, %v11853_v34  ;;  %v12020_v46 = vrot.slane %v11853_v34, %v23831_v33 }
 0x5a2   :  { %v12046_v58 = vcombine.high %v12044_v59, %v12044_v59  ;;  %v15402_v17 = vrot.slane %v12045_v39, 9  ;;  %v15403_v41 = vrot.slane %v12044_v59, 9  ;;  %v22980_v13 = vmax.f32 %v12037_v27, %v15401_v7 }
 0x5a3   :  { %v11856_v11 = vmax.f32 %v11840_v49, 0.0  ;;  %v11855_v3 = vmax.f32 %v11839_v50, 0.0  ;;  %v11858_v24 = vmax.f32 %v11842_v16, 0.0  ;;  %v12027_v45 = vrot.slane %v12013_v54, %v23831_v33 }
 0x5a4   :  { %v15404_v31 = vrot.slane %v12046_v58, 9  ;;  %v22983_v8 = vmax.f32 %v12045_v39, %v15402_v17  ;;  %v22985_v12 = vmax.f32 %v12044_v59, %v15403_v41  ;;  %v12028_v35 = vcombine.high %v12020_v46, %v12020_v46 }
 0x5a5   :  { %v15397_v36 = vrot.slane %v12020_v46, 9  ;;  %v12064_v18 = vcombine.high %v11856_v11, %v11856_v11  ;;  %v12071_v27 = vrot.slane %v11856_v11, %v23831_v33  ;;  %v12047_v28 = vcombine.high %v11855_v3, %v11855_v3 }
 0x5a6   :  { %v22988_v5 = vmax.f32 %v12046_v58, %v15404_v31  ;;  %v12054_v9 = vrot.slane %v11855_v3, %v23831_v33  ;;  %v12029_v7 = vcombine.high %v12027_v45, %v12027_v45  ;;  %v15398_v34 = vrot.slane %v12028_v35, 9 }
 0x5a7   :  { %v15399_v49 = vrot.slane %v12027_v45, 9  ;;  %v22992_v39 = vmax.f32 %v12020_v46, %v15397_v36  ;;  %v12078_v59 = vrot.slane %v12064_v18, %v23831_v33  ;;  %v12079_v50 = vcombine.high %v12071_v27, %v12071_v27 }
 0x5a8   :  { %v15409_v16 = vrot.slane %v12071_v27, 9  ;;  %v12061_v17 = vrot.slane %v12047_v28, %v23831_v33  ;;  %v15400_v41 = vrot.slane %v12029_v7, 9  ;;  %v22996_v54 = vmax.f32 %v12028_v35, %v15398_v34 }
 0x5a9   :  { %v22998_v58 = vmax.f32 %v12027_v45, %v15399_v49  ;;  %v12080_v3 = vcombine.high %v12078_v59, %v12078_v59  ;;  %v15410_v31 = vrot.slane %v12079_v50, 9  ;;  %v15411_v55 = vrot.slane %v12078_v59, 9 }
 0x5aa   :  { %v23002_v25 = vmax.f32 %v12071_v27, %v15409_v16  ;;  %v23004_v46 = vmax.f32 %v12029_v7, %v15400_v41  ;;  %v12486_v36 = vmax.f32 %v22996_v54, %v22983_v8  ;;  %v12062_v18 = vcombine.high %v12054_v9, %v12054_v9  ;;  %v11571_v8 = vpop.f32.mrf.mxu1  ;;  %v17365_v41 = vpop.f32.mrf.mxu0 }
 0x5ab   :  { %v12063_v28 = vcombine.high %v12061_v17, %v12061_v17  ;;  %v15412_v20 = vrot.slane %v12080_v3, 9  ;;  %v23008_v35 = vmax.f32 %v12079_v50, %v15410_v31  ;;  %v23010_v45 = vmax.f32 %v12078_v59, %v15411_v55 }
 0x5ac   :  { %v15405_v34 = vrot.slane %v12054_v9, 9  ;;  %v15406_v49 = vrot.slane %v12062_v18, 9  ;;  %v15407_v11 = vrot.slane %v12061_v17, 9  ;;  %v12098_v42 = vcombine.high %v11858_v24, %v11858_v24 }
 0x5ad   :  { %v15408_v52 = vrot.slane %v12063_v28, 9  ;;  %v23012_v38 = vmax.f32 %v12080_v3, %v15412_v20  ;;  %v12105_v7 = vrot.slane %v11858_v24, %v23831_v33  ;;  %v11857_v16 = vmax.f32 %v11841_v14, 0.0 }
 0x5ae   :  { %v23014_v27 = vmax.f32 %v12054_v9, %v15405_v34  ;;  %v23017_v54 = vmax.f32 %v12062_v18, %v15406_v49  ;;  %v23019_v50 = vmax.f32 %v12061_v17, %v15407_v11  ;;  %v12112_v59 = vrot.slane %v12098_v42, %v23831_v33  ;;  %v11797_v42 = vpop.f32.mrf.mxu0 }
 0x5af   :  { %23845 = vst [vmem:[#allocation74_spill] sm:$0xff] %v23012_v38  ;;  %v23021_v55 = vmax.f32 %v12063_v28, %v15408_v52  ;;  %v12113_v3 = vcombine.high %v12105_v7, %v12105_v7  ;;  %v15417_v9 = vrot.slane %v12105_v7, 9  ;;  %v12081_v31 = vcombine.high %v11857_v16, %v11857_v16 }
 0x5b0   :  { %v12114_v34 = vcombine.high %v12112_v59, %v12112_v59  ;;  %v15419_v24 = vrot.slane %v12112_v59, 9  ;;  %v12088_v14 = vrot.slane %v11857_v16, %v23831_v33  ;;  %v11594_v18 = vadd.f32 %v11571_v8, %v22861_v4 }
 0x5b1   :  { %23846 = vst [vmem:[#allocation50_spill] sm:$0xff] %v23021_v55  ;;  %v15418_v49 = vrot.slane %v12113_v3, 9  ;;  %v12457_v17 = vmax.f32 %v12105_v7, %v15417_v9  ;;  %v12095_v52 = vrot.slane %v12081_v31, %v23831_v33  ;;  %v11821_v11 = vadd.f32 %v17365_v41, %v22973_v44 }
 0x5b2   :  { %v15420_v28 = vrot.slane %v12114_v34, 9  ;;  %v23030_v23 = vmax.f32 %v12112_v59, %v15419_v24  ;;  %v12096_v20 = vcombine.high %v12088_v14, %v12088_v14  ;;  %v15413_v40 = vrot.slane %v12088_v14, 9 }
 0x5b3   :  { %v23032_v55 = vmax.f32 %v12113_v3, %v15418_v49  ;;  %v12097_v38 = vcombine.high %v12095_v52, %v12095_v52  ;;  %v15415_v21 = vrot.slane %v12095_v52, 9  ;;  %v11844_v16 = vadd.f32 %v22820_v60, %v11821_v11 }
 0x5b4   :  { %v23035_v61 = vmax.f32 %v12114_v34, %v15420_v28  ;;  %v15414_v4 = vrot.slane %v12096_v20, 9  ;;  %v12453_v7 = vmax.f32 %v12088_v14, %v15413_v40  ;;  %v11820_v8 = vadd.f32 %v11797_v42, %v11594_v18 }
 0x5b5   :  { %v15416_v9 = vrot.slane %v12097_v38, 9  ;;  %v23037_v31 = vmax.f32 %v12095_v52, %v15415_v21  ;;  %v11860_v44 = vmax.f32 %v11844_v16, 0.0  ;;  %v23847_v41 = vmax.f32 %v22879_v29, %v22869_v43  ;;  %v12502_v21 = vld [vmem:[%s23404_s5 + $0x8] sm:$0xff] }
 0x5b6   :  { %v23043_v3 = vmax.f32 %v12096_v20, %v15414_v4  ;;  %v12493_v24 = vmax.f32 %v12453_v7, %v12457_v17  ;;  %v11843_v49 = vadd.f32 %v22820_v60, %v11820_v8  ;;  %v12514_v34 = vrot.slane %v12486_v36, %v23840_v19 }
 0x5b7   :  { %v12510_v59 = vrot.slane %v23847_v41, %v23840_v19  ;;  %v23047_v11 = vmax.f32 %v12097_v38, %v15416_v9  ;;  %v12132_v40 = vcombine.high %v11860_v44, %v11860_v44  ;;  %v12139_v14 = vrot.slane %v11860_v44, %v23831_v33  ;;  %v12673_v44 = vld [vmem:[%s23404_s5 + $0x28] sm:$0xff] }
 0x5b8   :  { %v23848_v43 = vmax.f32 %v22874_v53, %v22866_v51  ;;  %v13199_v20 = vrot.slane %v12493_v24, %v23840_v19  ;;  %v11859_v18 = vmax.f32 %v11843_v49, 0.0  ;;  %v23849_v38 = vmax.f32 %v22992_v39, %v22980_v13  ;;  %v12501_v51 = vld [vmem:[%s23404_s5] sm:$0xff] }
 0x5b9   :  { %v12515_v60 = vsel %vm9667_vm4, %v12514_v34, %v12510_v59  ;;  %v12146_v17 = vrot.slane %v12132_v40, %v23831_v33  ;;  %v12147_v52 = vcombine.high %v12139_v14, %v12139_v14  ;;  %v15425_v42 = vrot.slane %v12139_v14, 9  ;;  %v12672_v40 = vld [vmem:[%s23404_s5 + $0x20] sm:$0xff] }
 0x5ba   :  { %v12594_v29 = vrot.slane %v23848_v43, %v23840_v19  ;;  %v12598_v36 = vrot.slane %v23849_v38, %v23840_v19  ;;  %17371 = vmatmul.mubr.msk.f32.vlgmr.msra.gmra.mxu1 %vm12516_vm12, %v12515_v60  ;;  %v12471_v53 = vmax.f32 %v22881_v30, %v22871_v15  ;;  %v12115_v28 = vcombine.high %v11859_v18, %v11859_v18 }
 0x5bb   :  { %v12122_v16 = vrot.slane %v11859_v18, %v23831_v33  ;;  %17374 = vmatpush3.msra.mxu1 %v12502_v21  ;;  %v23850_v4 = vmov 0.0   ;;  %v12148_v39 = vcombine.high %v12146_v17, %v12146_v17  ;;  %v15426_v7 = vrot.slane %v12147_v52, 9 }
 0x5bc   :  { %17377 = vmatprep.mubr.msk.f32.mxu1 %vm17548_vm11, %v23850_v4  ;;  %v12599_v13 = vsel %vm9667_vm4, %v12598_v36, %v12594_v29  ;;  %v15427_v8 = vrot.slane %v12146_v17, 9  ;;  %v12465_v9 = vmax.f32 %v12139_v14, %v15425_v42  ;;  %17375 = vmatprep.subr.mxu1 %v23850_v4  ;;  %v12129_v15 = vrot.slane %v12115_v28, %v23831_v33  ;;  %v13361_v33 = vld [vmem:[%s23404_s5 + $0xa8] sm:$0xff] }
 0x5bd   :  { %v12130_v30 = vcombine.high %v12122_v16, %v12122_v16  ;;  %v15421_v41 = vrot.slane %v12122_v16, 9  ;;  %17376 = vmatpush3.msra.mxu1 %v12501_v51  ;;  %v13200_v59 = vsel %vm9667_vm4, %v13199_v20, %v22943_v22  ;;  %v15428_v24 = vrot.slane %v12148_v39, 9 }
 0x5be   :  { %v23081_v49 = vmax.f32 %v12147_v52, %v15426_v7  ;;  %v23083_v34 = vmax.f32 %v12146_v17, %v15427_v8  ;;  %17378 = vmatmul.mubr.msk.f32.vlgmr.msra.gmra.mxu1 %vm12516_vm12, %v12599_v13  ;;  %17380 = vmatprep.subr.mxu1 %v23850_v4  ;;  %v12487_v22 = vmax.f32 %v22998_v58, %v22985_v12  ;;  %v15423_v43 = vrot.slane %v12129_v15, 9  ;;  %v13360_v12 = vld [vmem:[%s23404_s5 + $0xa0] sm:$0xff]  ;;  %v12759_v52 = vld [vmem:[%s23404_s5 + $0x38] sm:$0xff] }
 0x5bf   :  { %v12131_v14 = vcombine.high %v12129_v15, %v12129_v15  ;;  %v15422_v21 = vrot.slane %v12130_v30, 9  ;;  %v12461_v29 = vmax.f32 %v12122_v16, %v15421_v41  ;;  %17381 = vmatpush3.msra.mxu1 %v12673_v44  ;;  %17427 = vmatmul.mubr.msk.f32.vlgmr.msra.gmra.mxu0 %vm12516_vm12, %v13200_v59  ;;  %v23096_v20 = vmax.f32 %v12148_v39, %v15428_v24  ;;  %v12758_v39 = vld [vmem:[%s23404_s5 + $0x30] sm:$0xff] }
 0x5c0   :  { %17382 = vmatprep.subr.mxu1 %v23850_v4  ;;  %17384 = vmatprep.mubr.msk.f32.mxu1 %vm17548_vm11, %v23850_v4  ;;  %v12679_v18 = vrot.slane %v12471_v53, %v23840_v19  ;;  %v12683_v60 = vrot.slane %v12487_v22, %v23840_v19  ;;  %v12463_v36 = vmax.f32 %v12129_v15, %v15423_v43 }
 0x5c1   :  { %v15424_v58 = vrot.slane %v12131_v14, 9  ;;  %v23106_v38 = vmax.f32 %v12130_v30, %v15422_v21  ;;  %v12497_v17 = vmax.f32 %v12461_v29, %v12465_v9  ;;  %17383 = vmatpush3.msra.mxu1 %v12672_v40  ;;  %17437 = vmatpush3.msra.mxu0 %v13361_v33  ;;  %v12479_v51 = vmax.f32 %v22936_v37, %v22925_v10  ;;  %v23855_v33 = vld [vmem:[#allocation65_spill] sm:$0xff]  ;;  %v23857_v21 = vld [vmem:[#allocation50_spill] sm:$0xff] }
 0x5c2   :  { %v12684_v42 = vsel %vm9667_vm4, %v12683_v60, %v12679_v18  ;;  %17387 = vmatprep.subr.mxu1 %v23850_v4  ;;  %17438 = vmatprep.subr.mxu0 %v23850_v4  ;;  %v12495_v53 = vmax.f32 %v23037_v31, %v23030_v23  ;;  %v12499_v13 = vmax.f32 %v12463_v36, %v23083_v34  ;;  %v13533_v31 = vld [vmem:[%s23404_s5 + $0xc8] sm:$0xff]  ;;  %v12931_v29 = vld [vmem:[%s23404_s5 + $0x58] sm:$0xff]  ;;  %v13704_v18 = vld [vmem:[%s23404_s5 + $0xe0] sm:$0xff] }
 0x5c3   :  { %v23118_v28 = vmax.f32 %v12131_v14, %v15424_v58  ;;  %v12498_v16 = vmax.f32 %v23106_v38, %v23081_v49  ;;  %17385 = vmatmul.mubr.msk.f32.vlgmr.msra.gmra.mxu1 %vm12516_vm12, %v12684_v42  ;;  %17439 = vmatpush3.msra.mxu0 %v13360_v12  ;;  %v13367_v10 = vrot.slane %v12479_v51, %v23840_v19  ;;  %v23856_v14 = vld [vmem:[#allocation74_spill] sm:$0xff]  ;;  %v23858_v58 = vld [vmem:[#allocation47_spill] sm:$0xff]  ;;  %v23859_v36 = vld [vmem:[#allocation68_spill] sm:$0xff] }
 0x5c4   :  { %17388 = vmatpush3.msra.mxu1 %v12759_v52  ;;  %17440 = vmatprep.mubr.msk.f32.mxu0 %vm17548_vm11, %v23850_v4  ;;  %v13371_v23 = vrot.slane %v12495_v53, %v23840_v19  ;;  %v12472_v37 = vmax.f32 %v22887_v56, %v22876_v48  ;;  %v12488_v7 = vmax.f32 %v23004_v46, %v22988_v5  ;;  %v12930_v53 = vld [vmem:[%s23404_s5 + $0x50] sm:$0xff] }
 0x5c5   :  { %17389 = vmatprep.subr.mxu1 %v23850_v4  ;;  %17450 = vmatprep.subr.mxu0 %v23850_v4  ;;  %v23851_v8 = vmax.f32 %v22947_v57, %v22945_v2  ;;  %v13543_v44 = vrot.slane %v12497_v17, %v23840_v19  ;;  %v23852_v15 = vmax.f32 %v22906_v0, %v22885_v63  ;;  %v13532_v57 = vld [vmem:[%s23404_s5 + $0xc0] sm:$0xff]  ;;  %v12845_v63 = vld [vmem:[%s23404_s5 + $0x48] sm:$0xff] }
 0x5c6   :  { %v13372_v48 = vsel %vm9667_vm4, %v13371_v23, %v13367_v10  ;;  %17390 = vmatpush3.msra.mxu1 %v12758_v39  ;;  %17391 = vmatprep.mubr.msk.f32.mxu1 %vm17548_vm11, %v23850_v4  ;;  %v12765_v56 = vrot.slane %v12472_v37, %v23840_v19  ;;  %v12769_v2 = vrot.slane %v12488_v7, %v23840_v19  ;;  %v23860_v39 = vld [vmem:[#allocation67_spill] sm:$0xff]  ;;  %v23861_v10 = vld [vmem:[#allocation48_spill] sm:$0xff] }
 0x5c7   :  { %v13539_v9 = vrot.slane %v23851_v8, %v23840_v19  ;;  %v12851_v5 = vrot.slane %v23852_v15, %v23840_v19  ;;  %17441 = vmatmul.mubr.msk.f32.vlgmr.msra.gmra.mxu0 %vm12516_vm12, %v13372_v48  ;;  %17394 = vmatprep.subr.mxu1 %v23850_v4  ;;  %v23853_v30 = vmax.f32 %v23014_v27, %v23002_v25  ;;  %v23863_v7 = vld [vmem:[#allocation71_spill] sm:$0xff]  ;;  %v23864_v15 = vld [vmem:[#allocation49_spill] sm:$0xff] }
 0x5c8   :  { %17451 = vmatpush3.msra.mxu0 %v13533_v31  ;;  %17454 = vmatprep.mubr.msk.f32.mxu0 %vm17548_vm11, %v23850_v4  ;;  %v12483_v0 = vmax.f32 %v22956_v6, %v22951_v26  ;;  %v13715_v59 = vrot.slane %v12499_v13, %v23840_v19  ;;  %v12474_v24 = vmax.f32 %v22911_v47, %v22892_v32  ;;  %v12844_v6 = vld [vmem:[%s23404_s5 + $0x40] sm:$0xff] }
 0x5c9   :  { %v13544_v46 = vsel %vm9667_vm4, %v13543_v44, %v13539_v9  ;;  %v12855_v41 = vrot.slane %v23853_v30, %v23840_v19  ;;  %v12770_v34 = vsel %vm9667_vm4, %v12769_v2, %v12765_v56  ;;  %17452 = vmatprep.subr.mxu0 %v23850_v4  ;;  %v12490_v27 = vmax.f32 %v23017_v54, %v23008_v35  ;;  %v23854_v54 = vld [vmem:[#allocation46_spill] sm:$0xff] }
 0x5ca   :  { %v12475_v40 = vmax.f32 %v22913_v62, %v22894_v1  ;;  %17392 = vmatmul.mubr.msk.f32.vlgmr.msra.gmra.mxu1 %vm12516_vm12, %v12770_v34  ;;  %17453 = vmatpush3.msra.mxu0 %v13532_v57  ;;  %v13711_v32 = vrot.slane %v12483_v0, %v23840_v19  ;;  %v12937_v47 = vrot.slane %v12474_v24, %v23840_v19  ;;  %v13705_v1 = vld [vmem:[%s23404_s5 + $0xe8] sm:$0xff]  ;;  %v13447_v0 = vld [vmem:[%s23404_s5 + $0xb8] sm:$0xff]  ;;  %v13618_v34 = vld [vmem:[%s23404_s5 + $0xd0] sm:$0xff] }
 0x5cb   :  { %v12856_v25 = vsel %vm9667_vm4, %v12855_v41, %v12851_v5  ;;  %v12491_v26 = vmax.f32 %v23019_v50, %v23010_v45  ;;  %17395 = vmatpush3.msra.mxu1 %v12845_v63  ;;  %17455 = vmatmul.mubr.msk.f32.vlgmr.msra.gmra.mxu0 %vm12516_vm12, %v13544_v46  ;;  %v12941_v62 = vrot.slane %v12490_v27, %v23840_v19  ;;  %v23862_v31 = vld [vmem:[#allocation70_spill] sm:$0xff]  ;;  %v23865_v5 = vld [vmem:[#allocation73_spill] sm:$0xff]  ;;  %v13274_v63 = vld [vmem:[%s23404_s5 + $0x90] sm:$0xff] }
 0x5cc   :  { %v13023_v35 = vrot.slane %v12475_v40, %v23840_v19  ;;  %v12476_v22 = vmax.f32 %v23855_v33, %v23854_v54  ;;  %17396 = vmatprep.subr.mxu1 %v23850_v4  ;;  %17464 = vmatprep.subr.mxu0 %v23850_v4  ;;  %v13716_v45 = vsel %vm9667_vm4, %v13715_v59, %v13711_v32  ;;  %v13275_v41 = vld [vmem:[%s23404_s5 + $0x98] sm:$0xff]  ;;  %v13446_v59 = vld [vmem:[%s23404_s5 + $0xb0] sm:$0xff]  ;;  %v13898_v32 = vld [vmem:[%s23406_s7 + $0x68] sm:$0xff] }
 0x5cd   :  { %v13027_v50 = vrot.slane %v12491_v26, %v23840_v19  ;;  %v12492_v43 = vmax.f32 %v23857_v21, %v23856_v14  ;;  %17397 = vmatpush3.msra.mxu1 %v12844_v6  ;;  %17398 = vmatprep.mubr.msk.f32.mxu1 %vm17548_vm11, %v23850_v4  ;;  %v12942_v60 = vsel %vm9667_vm4, %v12941_v62, %v12937_v47  ;;  %v13619_v24 = vld [vmem:[%s23404_s5 + $0xd8] sm:$0xff]  ;;  %v13790_v27 = vld [vmem:[%s23404_s5 + $0xf0] sm:$0xff]  ;;  %v13897_v47 = vld [vmem:[%s23406_s7 + $0x60] sm:$0xff] }
 0x5ce   :  { %v13109_v12 = vrot.slane %v12476_v22, %v23840_v19  ;;  %v12478_v17 = vmax.f32 %v23859_v36, %v23858_v58  ;;  %17465 = vmatpush3.msra.mxu0 %v13705_v1  ;;  %17399 = vmatmul.mubr.msk.f32.vlgmr.msra.gmra.mxu1 %vm12516_vm12, %v12856_v25  ;;  %v12494_v51 = vmax.f32 %v23043_v3, %v23032_v55  ;;  %v13791_v25 = vld [vmem:[%s23404_s5 + $0xf8] sm:$0xff]  ;;  %v13899_v6 = vld [vmem:[%s23406_s7 + $0x70] sm:$0xff]  ;;  %v13894_v62 = vld [vmem:[%s23406_s7 + $0x48] sm:$0xff] }
 0x5cf   :  { %v13028_v52 = vsel %vm9667_vm4, %v13027_v50, %v13023_v35  ;;  %v13113_v42 = vrot.slane %v12492_v43, %v23840_v19  ;;  %17401 = vmatprep.subr.mxu1 %v23850_v4  ;;  %17466 = vmatprep.subr.mxu0 %v23850_v4  ;;  %v12480_v23 = vmax.f32 %v23861_v10, %v23860_v39  ;;  %v13900_v40 = vld [vmem:[%s23406_s7 + $0x78] sm:$0xff]  ;;  %v13895_v1 = vld [vmem:[%s23406_s7 + $0x50] sm:$0xff]  ;;  %v13893_v35 = vld [vmem:[%s23406_s7 + $0x40] sm:$0xff] }
 0x5d0   :  { %v13281_v13 = vrot.slane %v12478_v17, %v23840_v19  ;;  %v12496_v37 = vmax.f32 %v23047_v11, %v23035_v61  ;;  %17402 = vmatpush3.msra.mxu1 %v12931_v29  ;;  %17467 = vmatpush3.msra.mxu0 %v13704_v18  ;;  %v13285_v3 = vrot.slane %v12494_v51, %v23840_v19  ;;  %v13017_v11 = vld [vmem:[%s23404_s5 + $0x68] sm:$0xff]  ;;  %v13896_v26 = vld [vmem:[%s23406_s7 + $0x58] sm:$0xff]  ;;  %v13891_v33 = vld [vmem:[%s23406_s7 + $0x30] sm:$0xff] }
 0x5d1   :  { %v13114_v55 = vsel %vm9667_vm4, %v13113_v42, %v13109_v12  ;;  %v12482_v8 = vmax.f32 %v23863_v7, %v23862_v31  ;;  %17468 = vmatprep.mubr.msk.f32.mxu0 %vm17548_vm11, %v23850_v4  ;;  %17403 = vmatprep.subr.mxu1 %v23850_v4  ;;  %v13453_v9 = vrot.slane %v12480_v23, %v23840_v19  ;;  %v13892_v54 = vld [vmem:[%s23406_s7 + $0x38] sm:$0xff]  ;;  %v13890_v22 = vld [vmem:[%s23406_s7 + $0x28] sm:$0xff]  ;;  %v13887_v14 = vld [vmem:[%s23406_s7 + $0x10] sm:$0xff] }
 0x5d2   :  { %v13457_v44 = vrot.slane %v12496_v37, %v23840_v19  ;;  %v13629_v61 = vrot.slane %v12498_v16, %v23840_v19  ;;  %17469 = vmatmul.mubr.msk.f32.vlgmr.msra.gmra.mxu0 %vm12516_vm12, %v13716_v45  ;;  %17404 = vmatpush3.msra.mxu1 %v12930_v53  ;;  %v13286_v48 = vsel %vm9667_vm4, %v13285_v3, %v13281_v13  ;;  %v13016_v16 = vld [vmem:[%s23404_s5 + $0x60] sm:$0xff]  ;;  %v13888_v50 = vld [vmem:[%s23406_s7 + $0x18] sm:$0xff]  ;;  %v13886_v21 = vld [vmem:[%s23406_s7 + $0x8] sm:$0xff] }
 0x5d3   :  { %v13625_v56 = vrot.slane %v12482_v8, %v23840_v19  ;;  %v12484_v2 = vmax.f32 %v23865_v5, %v23864_v15  ;;  %17405 = vmatprep.mubr.msk.f32.mxu1 %vm17548_vm11, %v23850_v4  ;;  %17408 = vmatprep.subr.mxu1 %v23850_v4  ;;  %v12500_v38 = vmax.f32 %v23118_v28, %v23096_v20  ;;  %v13103_v20 = vld [vmem:[%s23404_s5 + $0x78] sm:$0xff]  ;;  %v13889_v45 = vld [vmem:[%s23406_s7 + $0x20] sm:$0xff] }
 0x5d4   :  { %v13458_v49 = vsel %vm9667_vm4, %v13457_v44, %v13453_v9  ;;  %17406 = vmatmul.mubr.msk.f32.vlgmr.msra.gmra.mxu1 %vm12516_vm12, %v12942_v60  ;;  %17478 = vmatprep.subr.mxu0 %v23850_v4  ;;  %v13885_v43 = vld [vmem:[%s23406_s7] sm:$0xff] }
 0x5d5   :  { %v13630_v57 = vsel %vm9667_vm4, %v13629_v61, %v13625_v56  ;;  %17409 = vmatpush3.msra.mxu1 %v13017_v11  ;;  %17412 = vmatprep.mubr.msk.f32.mxu1 %vm17548_vm11, %v23850_v4  ;;  %v13797_v46 = vrot.slane %v12484_v2, %v23840_v19  ;;  %v13801_v30 = vrot.slane %v12500_v38, %v23840_v19  ;;  %v13102_v19 = vld [vmem:[%s23404_s5 + $0x70] sm:$0xff] }
 0x5d6   :  { %17410 = vmatprep.subr.mxu1 %v23850_v4  ;;  %17510 = vmatprep.mubr.msk.f32.mxu0 %vm17548_vm11, %v23850_v4 }
 0x5d7   :  { %17411 = vmatpush3.msra.mxu1 %v13016_v16  ;;  %v13802_v28 = vsel %vm9667_vm4, %v13801_v30, %v13797_v46  ;;  %17479 = vmatpush3.msra.mxu0 %v13900_v40 }
 0x5d8   :  { %17413 = vmatmul.mubr.msk.f32.vlgmr.msra.gmra.mxu1 %vm12516_vm12, %v13028_v52  ;;  %17415 = vmatprep.subr.mxu1 %v23850_v4 }
 0x5d9   :  { %17416 = vmatpush3.msra.mxu1 %v13103_v20  ;;  %17419 = vmatprep.mubr.msk.f32.mxu1 %vm17548_vm11, %v23850_v4 }
 0x5da   :  { %17417 = vmatprep.subr.mxu1 %v23850_v4  ;;  %17480 = vmatprep.subr.mxu0 %v23850_v4 }
 0x5db   :  { %17418 = vmatpush3.msra.mxu1 %v13102_v19  ;;  %17481 = vmatpush3.msra.mxu0 %v13899_v6 }
 0x5dc   :  { %17420 = vmatmul.mubr.msk.f32.vlgmr.msra.gmra.mxu1 %vm12516_vm12, %v13114_v55  ;;  %17429 = vmatprep.subr.mxu1 %v23850_v4 }
 0x5dd   :  { %17430 = vmatpush3.msra.mxu1 %v13275_v41  ;;  %17433 = vmatprep.mubr.msk.f32.mxu1 %vm17548_vm11, %v23850_v4 }
 0x5de   :  { %17431 = vmatprep.subr.mxu1 %v23850_v4  ;;  %17482 = vmatprep.subr.mxu0 %v23850_v4 }
 0x5df   :  { %17432 = vmatpush3.msra.mxu1 %v13274_v63  ;;  %17483 = vmatpush3.msra.mxu0 %v13898_v32  ;;  %v15446_v32 = vld [vmem:[%s23407_s8] ss:$0 sm:$0xff] }
 0x5e0   :  { %17434 = vmatmul.mubr.msk.f32.vlgmr.msra.gmra.mxu1 %vm12516_vm12, %v13286_v48  ;;  %17443 = vmatprep.subr.mxu1 %v23850_v4 }
 0x5e1   :  { %17444 = vmatpush3.msra.mxu1 %v13447_v0  ;;  %17447 = vmatprep.mubr.msk.f32.mxu1 %vm17548_vm11, %v23850_v4 }
 0x5e2   :  { %17445 = vmatprep.subr.mxu1 %v23850_v4  ;;  %17484 = vmatprep.subr.mxu0 %v23850_v4 }
 0x5e3   :  { %17446 = vmatpush3.msra.mxu1 %v13446_v59  ;;  %17485 = vmatpush3.msra.mxu0 %v13897_v47 }
 0x5e4   :  { %17448 = vmatmul.mubr.msk.f32.vlgmr.msra.gmra.mxu1 %vm12516_vm12, %v13458_v49  ;;  %17457 = vmatprep.subr.mxu1 %v23850_v4 }
 0x5e5   :  { %17458 = vmatpush3.msra.mxu1 %v13619_v24  ;;  %17461 = vmatprep.mubr.msk.f32.mxu1 %vm17548_vm11, %v23850_v4 }
 0x5e6   :  { %17459 = vmatprep.subr.mxu1 %v23850_v4  ;;  %17486 = vmatprep.subr.mxu0 %v23850_v4 }
 0x5e7   :  { %17460 = vmatpush3.msra.mxu1 %v13618_v34  ;;  %17487 = vmatpush3.msra.mxu0 %v13896_v26  ;;  %v15445_v34 = vld [vmem:[%s23405_s6] ss:$0 sm:$0xff] }
 0x5e8   :  { %17462 = vmatmul.mubr.msk.f32.vlgmr.msra.gmra.mxu1 %vm12516_vm12, %v13630_v57  ;;  %17471 = vmatprep.subr.mxu1 %v23850_v4 }
 0x5e9   :  { %17472 = vmatpush3.msra.mxu1 %v13791_v25  ;;  %17475 = vmatprep.mubr.msk.f32.mxu1 %vm17548_vm11, %v23850_v4 }
 0x5ea   :  { %17473 = vmatprep.subr.mxu1 %v23850_v4  ;;  %17488 = vmatprep.subr.mxu0 %v23850_v4 }
 0x5eb   :  { %17474 = vmatpush3.msra.mxu1 %v13790_v27  ;;  %17489 = vmatpush3.msra.mxu0 %v13895_v1 }
 0x5ec   :  { %17476 = vmatmul.mubr.msk.f32.vlgmr.msra.gmra.mxu1 %vm12516_vm12, %v13802_v28  ;;  %17490 = vmatprep.subr.mxu0 %v23850_v4 }
 0x5ed   :  { %17491 = vmatpush3.msra.mxu0 %v13894_v62 }
 0x5ee   :  { %17492 = vmatprep.subr.mxu0 %v23850_v4 }
 0x5ef   :  { %17493 = vmatpush3.msra.mxu0 %v13893_v35 }
 0x5f0   :  { %17494 = vmatprep.subr.mxu0 %v23850_v4 }
 0x5f1   :  { %17495 = vmatpush3.msra.mxu0 %v13892_v54 }
 0x5f2   :  { %17496 = vmatprep.subr.mxu0 %v23850_v4 }
 0x5f3   :  { %17497 = vmatpush3.msra.mxu0 %v13891_v33 }
 0x5f4   :  { %17498 = vmatprep.subr.mxu0 %v23850_v4 }
 0x5f5   :  { %17499 = vmatpush3.msra.mxu0 %v13890_v22 }
 0x5f6   :  { %17500 = vmatprep.subr.mxu0 %v23850_v4 }
 0x5f7   :  { %17501 = vmatpush3.msra.mxu0 %v13889_v45 }
 0x5f8   :  { %17502 = vmatprep.subr.mxu0 %v23850_v4 }
 0x5f9   :  { %17503 = vmatpush3.msra.mxu0 %v13888_v50 }
 0x5fa   :  { %17504 = vmatprep.subr.mxu0 %v23850_v4 }
 0x5fb   :  { %17505 = vmatpush3.msra.mxu0 %v13887_v14 }
 0x5fc   :  { %17506 = vmatprep.subr.mxu0 %v23850_v4 }
 0x5fd   :  { %17507 = vmatpush3.msra.mxu0 %v13886_v21 }
 0x5fe   :  { %17508 = vmatprep.subr.mxu0 %v23850_v4 }
 0x5ff   :  { %17509 = vmatpush3.msra.mxu0 %v13885_v43 }
 0x67a   :  { %v12585_v29 = vpop.f32.mrf.mxu1 }
 0x67c   :  { %v17372_v18 = vpop.f32.mrf.mxu1 }
 0x67e   :  { %v12668_v60 = vpop.f32.mrf.mxu1 }
 0x67f   :  { %v13269_v12 = vpop.f32.mrf.mxu0  ;;  %v12669_v55 = vadd.f32 %v12668_v60, %v12585_v29 }
 0x680   :  { %v17379_v58 = vpop.f32.mrf.mxu1 }
 0x681   :  { %v17428_v36 = vpop.f32.mrf.mxu0 }
 0x683   :  { %v12753_v17 = vpop.f32.mrf.mxu1 }
 0x684   :  { %v12757_v4 = vadd.f32 %v12753_v17, %v12669_v55 }
 0x685   :  { %v17386_v52 = vpop.f32.mrf.mxu1 }
 0x687   :  { %v13441_v42 = vpop.f32.mrf.mxu0 }
 0x689   :  { %v17442_v51 = vpop.f32.mrf.mxu0 }
 0x68a   :  { %v12839_v53 = vpop.f32.mrf.mxu1 }
 0x68b   :  { %v13613_v13 = vpop.f32.mrf.mxu0  ;;  %v12843_v8 = vadd.f32 %v12839_v53, %v12757_v4 }
 0x68c   :  { %v17393_v39 = vpop.f32.mrf.mxu1 }
 0x68d   :  { %v17456_v10 = vpop.f32.mrf.mxu0 }
 0x68e   :  { %v12925_v23 = vpop.f32.mrf.mxu1 }
 0x68f   :  { %v12929_v44 = vadd.f32 %v12925_v23, %v12843_v8 }
 0x690   :  { %v17400_v37 = vpop.f32.mrf.mxu1 }
 0x692   :  { %v13785_v3 = vpop.f32.mrf.mxu0 }
 0x694   :  { %v13011_v31 = vpop.f32.mrf.mxu1  ;;  %v17470_v7 = vpop.f32.mrf.mxu0 }
 0x695   :  { %v13015_v11 = vadd.f32 %v13011_v31, %v12929_v44 }
 0x696   :  { %v17407_v9 = vpop.f32.mrf.mxu1 }
 0x698   :  { %v13097_v61 = vpop.f32.mrf.mxu1 }
 0x699   :  { %v13101_v56 = vadd.f32 %v13097_v61, %v13015_v11 }
 0x69a   :  { %v17414_v48 = vpop.f32.mrf.mxu1 }
 0x69c   :  { %v13183_v15 = vpop.f32.mrf.mxu1 }
 0x69d   :  { %v13187_v5 = vadd.f32 %v13183_v15, %v13101_v56 }
 0x69e   :  { %v17421_v2 = vpop.f32.mrf.mxu1 }
 0x69f   :  { %v13273_v49 = vadd.f32 %v13269_v12, %v13187_v5 }
 0x6a0   :  { %v13355_v38 = vpop.f32.mrf.mxu1 }
 0x6a1   :  { %v13359_v16 = vadd.f32 %v13355_v38, %v13273_v49 }
 0x6a2   :  { %v17435_v57 = vpop.f32.mrf.mxu1 }
 0x6a3   :  { %v13445_v46 = vadd.f32 %v13441_v42, %v13359_v16 }
 0x6a4   :  { %v13527_v30 = vpop.f32.mrf.mxu1 }
 0x6a5   :  { %v13531_v20 = vadd.f32 %v13527_v30, %v13445_v46 }
 0x6a6   :  { %v17449_v28 = vpop.f32.mrf.mxu1 }
 0x6a7   :  { %v13617_v19 = vadd.f32 %v13613_v13, %v13531_v20 }
 0x6a8   :  { %v13699_v41 = vpop.f32.mrf.mxu1 }
 0x6a9   :  { %v13703_v63 = vadd.f32 %v13699_v41, %v13617_v19 }
 0x6aa   :  { %v17463_v0 = vpop.f32.mrf.mxu1 }
 0x6ab   :  { %v13789_v59 = vadd.f32 %v13785_v3, %v13703_v63 }
 0x6ac   :  { %v13871_v24 = vpop.f32.mrf.mxu1 }
 0x6ad   :  { %v13875_v25 = vadd.f32 %v13871_v24, %v13789_v59 }
 0x6ae   :  { %v17477_v27 = vpop.f32.mrf.mxu1 }
 0x6af   :  { %v13883_v40 = vadd.f32 %v15445_v34, %v13875_v25 }
 0x6b1   :  { %v13884_v6 = vmax.f32 %v13883_v40, 0.0 }
 0x6b3   :  { %17511 = vmatmul.mubr.f32.vlgmr.msra.gmra.mxu0 %v13884_v6 }
 0x773   :  { %v13974_v47 = vpop.f32.mrf.mxu0 }
 0x774   :  { %v13975_v26 = vadd.f32 %v15446_v32, %v13974_v47 }
 0x775   :  { %v17512_v1 = vpop.f32.mrf.mxu0 }
 0x776   :  { %13979 = vst.msk [vmem:[#allocation3] sm:$0x3] %vm13978_vm13, %v13975_v26 }
 0x777   :  { %17535 = shalt.err (!%p17532_p4)
}
 0x778   :  { %13989 = dma.vmem_to_hbm [thread:$0]  %s13987_s14, 32, %s23408_s9, [#allocation4]  }
 0x779   :  { %17544 = dma.done.wait [#allocation4], 32  }
 0x77a   :  { %17545 = vsyncadd [#allocation4], 4294967264 }
 0x77b   :  { %13993 = vsyncpa [#allocation4], 1 }

</bundles_post_ra>
